<compile_context>
chip_gen: v5e
topology: v5e:2x2
jax: 0.10.0
libtpu: 0.0.40
codegen_flags: <defaults>
</compile_context>

<pallas_src>
import functools

import jax
import jax.numpy as jnp
from jax.experimental import pallas as pl
from jax.experimental.pallas import tpu as pltpu


# ----------------------------- Pallas kernel --------------------------------
def _corr_kernel(x_ref, y_ref, o_ref, xflat_ref, yflat_ref, *, C, H, W, md):
    # x_ref     : (1, C, H, W)      first image, native NCHW block
    # y_ref     : (1, C, H, W)      second image, native NCHW block
    # o_ref     : (1, D, H*Wp)      cost volume rows, lane-dense (D = K*K)
    # xflat_ref : (C, H*Wp)  VMEM   x in flat stride-Wp layout, zero in halo cols
    # yflat_ref : (C, Lp)    VMEM   y in flat stride-Wp layout with zero halo
    K = 2 * md + 1
    Wp = W + 2 * md
    HWp = H * Wp
    inv_c = 1.0 / C

    # Zero-fill the scratches: this IS the zero padding of y (out-of-bounds
    # displacements must read zeros), and zeroes x's junk columns so the
    # discarded w >= W output columns stay finite.
    xflat_ref[...] = jnp.zeros_like(xflat_ref)
    yflat_ref[...] = jnp.zeros_like(yflat_ref)

    # Row-by-row scatter into the flat stride-Wp layouts (once per grid step,
    # static lane offsets). y's interior lands md rows down / md cols right.
    for h in range(H):
        xb = h * Wp
        xflat_ref[:, xb:xb + W] = x_ref[0, :, h, :]
        yb = (h + md) * Wp + md
        yflat_ref[:, yb:yb + W] = y_ref[0, :, h, :]

    # Fold 1/C into x once (instead of into each of the K*K output rows).
    xs = xflat_ref[...] * inv_c                      # (C, H*Wp), spatial on lanes

    # One flat lane-offset window per displacement:
    #   yflat[c, off + h*Wp + w] == ypad_full[c, h+dy, w+dx]   for w < W.
    for dy in range(K):
        for dx in range(K):
            off = dy * Wp + dx
            ywin = yflat_ref[:, off:off + HWp]       # (C, H*Wp) shifted window
            o_ref[0, dy * K + dx, :] = jnp.sum(xs * ywin, axis=0)


# -------------------------------- wrapper ------------------------------------
def correlation(x, y, max_displacement):
    """Correlation.forward: x, y (B, C, H, W) -> (B, (2*md+1)**2, H, W) / C."""
    B, C, H, W = x.shape
    md = max_displacement
    K = 2 * md + 1
    D = K * K
    Wp = W + 2 * md
    HWp = H * Wp

    x = x.astype(jnp.float32)
    y = y.astype(jnp.float32)

    # Flat padded-y scratch length: largest window start + window length,
    # rounded up to a lane tile.
    max_off = (K - 1) * Wp + (K - 1)
    Lp = ((max_off + HWp + 127) // 128) * 128

    kernel = functools.partial(_corr_kernel, C=C, H=H, W=W, md=md)

    flops = 2 * B * D * H * W * C
    bytes_accessed = 4 * (2 * B * C * H * W + B * D * HWp)

    out_flat = pl.pallas_call(
        kernel,
        out_shape=jax.ShapeDtypeStruct((B, D, HWp), jnp.float32),
        grid=(B,),
        in_specs=[
            pl.BlockSpec((1, C, H, W), lambda b: (b, 0, 0, 0)),
            pl.BlockSpec((1, C, H, W), lambda b: (b, 0, 0, 0)),
        ],
        out_specs=pl.BlockSpec((1, D, HWp), lambda b: (b, 0, 0)),
        scratch_shapes=[
            pltpu.VMEM((C, HWp), jnp.float32),   # flat x (stride Wp, zero halo cols)
            pltpu.VMEM((C, Lp), jnp.float32),    # flat zero-padded y
        ],
        compiler_params=pltpu.CompilerParams(
            dimension_semantics=("parallel",)),
        cost_estimate=pl.CostEstimate(
            flops=flops, transcendentals=0, bytes_accessed=bytes_accessed),
    )(x, y)

    # (B, D, H*Wp) -> (B, D, H, Wp): free reshape (contiguous); then drop the
    # Wp-W junk columns (x's flat copy is zero there) -> PyTorch NCHW output.
    return out_flat.reshape(B, D, H, Wp)[..., :W]


# ------------------------------- reference -----------------------------------
def correlation_ref(x, y, max_displacement):
    B, C, H, W = x.shape
    md = max_displacement
    K = 2 * md + 1
    ypad = jnp.pad(y, ((0, 0), (0, 0), (md, md), (md, md)))
    outs = []
    for dy in range(K):
        for dx in range(K):
            ysh = ypad[:, :, dy:dy + H, dx:dx + W]
            outs.append(jnp.sum(x * ysh, axis=1))
    return jnp.stack(outs, axis=1) / C


# --------------------------------- main ---------------------------------------
if __name__ == "__main__":
    key = jax.random.PRNGKey(0)
    kx, ky = jax.random.split(key)

    B, C, H, W = 2, 4, 16, 16          # NCHW, matching the PyTorch module
    max_displacement = 4               # K = 9 -> 81 output channels
    x = jax.random.normal(kx, (B, C, H, W), jnp.float32)
    y = jax.random.normal(ky, (B, C, H, W), jnp.float32)

    out = jax.block_until_ready(correlation(x, y, max_displacement))
    K = 2 * max_displacement + 1
    assert out.shape == (B, K * K, H, W), out.shape

    ref = jax.block_until_ready(correlation_ref(x, y, max_displacement))
    if not jnp.allclose(out, ref, atol=1e-4, rtol=1e-4):
        raise AssertionError("Pallas correlation output mismatch vs reference")

    print("KERNEL_OK")
</pallas_src>

<mosaic_0001>
module attributes {stable_mosaic.version = 11 : i64} {
  func.func @_corr_kernel(%arg0: i32, %arg1: memref<1x4x16x16xf32, #tpu.memory_space<vmem>>, %arg2: memref<1x4x16x16xf32, #tpu.memory_space<vmem>>, %arg3: memref<1x81x384xf32, #tpu.memory_space<vmem>>, %arg4: memref<4x384xf32, #tpu.memory_space<vmem>>, %arg5: memref<4x640xf32, #tpu.memory_space<vmem>>) attributes {dimension_semantics = [#tpu.dimension_semantics<parallel>], iteration_bounds = array<i64: 2>, scalar_prefetch = 0 : i64, scratch_operands = 2 : i64, tpu.core_type = #tpu.core_type<tc>, window_params = [{transform_indices = @transform_0, window_bounds = array<i64: 1, 4, 16, 16>}, {transform_indices = @transform_1, window_bounds = array<i64: 1, 4, 16, 16>}, {transform_indices = @transform_2, window_bounds = array<i64: 1, 81, 384>}]} {
    %cst = arith.constant 0.000000e+00 : f32
    %0 = vector.broadcast %cst : f32 to vector<4x384xf32>
    %c0 = arith.constant 0 : index
    %c0_0 = arith.constant 0 : index
    %1 = vector.load %arg4[%c0, %c0_0] : memref<4x384xf32, #tpu.memory_space<vmem>>, vector<4x384xf32>
    tpu.vector_store %arg4[%c0, %c0_0], %0 {strides = array<i32>} : memref<4x384xf32, #tpu.memory_space<vmem>>, vector<4x384xf32>,
    %cst_1 = arith.constant 0.000000e+00 : f32
    %2 = vector.broadcast %cst_1 : f32 to vector<4x640xf32>
    %c0_2 = arith.constant 0 : index
    %c0_3 = arith.constant 0 : index
    %3 = vector.load %arg5[%c0_2, %c0_3] : memref<4x640xf32, #tpu.memory_space<vmem>>, vector<4x640xf32>
    tpu.vector_store %arg5[%c0_2, %c0_3], %2 {strides = array<i32>} : memref<4x640xf32, #tpu.memory_space<vmem>>, vector<4x640xf32>,
    %c0_4 = arith.constant 0 : index
    %c0_5 = arith.constant 0 : index
    %c0_6 = arith.constant 0 : index
    %c0_7 = arith.constant 0 : index
    %4 = vector.load %arg1[%c0_4, %c0_5, %c0_6, %c0_7] : memref<1x4x16x16xf32, #tpu.memory_space<vmem>>, vector<1x4x1x16xf32>
    %5 = vector.shape_cast %4 : vector<1x4x1x16xf32> to vector<4x16xf32>
    %c0_8 = arith.constant 0 : index
    %c0_9 = arith.constant 0 : index
    %6 = vector.load %arg4[%c0_8, %c0_9] : memref<4x384xf32, #tpu.memory_space<vmem>>, vector<4x16xf32>
    tpu.vector_store %arg4[%c0_8, %c0_9], %5 {strides = array<i32>} : memref<4x384xf32, #tpu.memory_space<vmem>>, vector<4x16xf32>,
    %c0_10 = arith.constant 0 : index
    %c0_11 = arith.constant 0 : index
    %c0_12 = arith.constant 0 : index
    %c0_13 = arith.constant 0 : index
    %7 = vector.load %arg2[%c0_10, %c0_11, %c0_12, %c0_13] : memref<1x4x16x16xf32, #tpu.memory_space<vmem>>, vector<1x4x1x16xf32>
    %8 = vector.shape_cast %7 : vector<1x4x1x16xf32> to vector<4x16xf32>
    %c0_14 = arith.constant 0 : index
    %c100 = arith.constant 100 : index
    %9 = vector.load %arg5[%c0_14, %c100] : memref<4x640xf32, #tpu.memory_space<vmem>>, vector<4x16xf32>
    tpu.vector_store %arg5[%c0_14, %c100], %8 {strides = array<i32>} : memref<4x640xf32, #tpu.memory_space<vmem>>, vector<4x16xf32>,
    %c0_15 = arith.constant 0 : index
    %c0_16 = arith.constant 0 : index
    %c1 = arith.constant 1 : index
    %c0_17 = arith.constant 0 : index
    %10 = vector.load %arg1[%c0_15, %c0_16, %c1, %c0_17] : memref<1x4x16x16xf32, #tpu.memory_space<vmem>>, vector<1x4x1x16xf32>
    %11 = vector.shape_cast %10 : vector<1x4x1x16xf32> to vector<4x16xf32>
    %c0_18 = arith.constant 0 : index
    %c24 = arith.constant 24 : index
    %12 = vector.load %arg4[%c0_18, %c24] : memref<4x384xf32, #tpu.memory_space<vmem>>, vector<4x16xf32>
    tpu.vector_store %arg4[%c0_18, %c24], %11 {strides = array<i32>} : memref<4x384xf32, #tpu.memory_space<vmem>>, vector<4x16xf32>,
    %c0_19 = arith.constant 0 : index
    %c0_20 = arith.constant 0 : index
    %c1_21 = arith.constant 1 : index
    %c0_22 = arith.constant 0 : index
    %13 = vector.load %arg2[%c0_19, %c0_20, %c1_21, %c0_22] : memref<1x4x16x16xf32, #tpu.memory_space<vmem>>, vector<1x4x1x16xf32>
    %14 = vector.shape_cast %13 : vector<1x4x1x16xf32> to vector<4x16xf32>
    %c0_23 = arith.constant 0 : index
    %c124 = arith.constant 124 : index
    %15 = vector.load %arg5[%c0_23, %c124] : memref<4x640xf32, #tpu.memory_space<vmem>>, vector<4x16xf32>
    tpu.vector_store %arg5[%c0_23, %c124], %14 {strides = array<i32>} : memref<4x640xf32, #tpu.memory_space<vmem>>, vector<4x16xf32>,
    %c0_24 = arith.constant 0 : index
    %c0_25 = arith.constant 0 : index
    %c2 = arith.constant 2 : index
    %c0_26 = arith.constant 0 : index
    %16 = vector.load %arg1[%c0_24, %c0_25, %c2, %c0_26] : memref<1x4x16x16xf32, #tpu.memory_space<vmem>>, vector<1x4x1x16xf32>
    %17 = vector.shape_cast %16 : vector<1x4x1x16xf32> to vector<4x16xf32>
    %c0_27 = arith.constant 0 : index
    %c48 = arith.constant 48 : index
    %18 = vector.load %arg4[%c0_27, %c48] : memref<4x384xf32, #tpu.memory_space<vmem>>, vector<4x16xf32>
    tpu.vector_store %arg4[%c0_27, %c48], %17 {strides = array<i32>} : memref<4x384xf32, #tpu.memory_space<vmem>>, vector<4x16xf32>,
    %c0_28 = arith.constant 0 : index
    %c0_29 = arith.constant 0 : index
    %c2_30 = arith.constant 2 : index
    %c0_31 = arith.constant 0 : index
    %19 = vector.load %arg2[%c0_28, %c0_29, %c2_30, %c0_31] : memref<1x4x16x16xf32, #tpu.memory_space<vmem>>, vector<1x4x1x16xf32>
    %20 = vector.shape_cast %19 : vector<1x4x1x16xf32> to vector<4x16xf32>
    %c0_32 = arith.constant 0 : index
    %c148 = arith.constant 148 : index
    %21 = vector.load %arg5[%c0_32, %c148] : memref<4x640xf32, #tpu.memory_space<vmem>>, vector<4x16xf32>
    tpu.vector_store %arg5[%c0_32, %c148], %20 {strides = array<i32>} : memref<4x640xf32, #tpu.memory_space<vmem>>, vector<4x16xf32>,
    %c0_33 = arith.constant 0 : index
    %c0_34 = arith.constant 0 : index
    %c3 = arith.constant 3 : index
    %c0_35 = arith.constant 0 : index
    %22 = vector.load %arg1[%c0_33, %c0_34, %c3, %c0_35] : memref<1x4x16x16xf32, #tpu.memory_space<vmem>>, vector<1x4x1x16xf32>
    %23 = vector.shape_cast %22 : vector<1x4x1x16xf32> to vector<4x16xf32>
    %c0_36 = arith.constant 0 : index
    %c72 = arith.constant 72 : index
    %24 = vector.load %arg4[%c0_36, %c72] : memref<4x384xf32, #tpu.memory_space<vmem>>, vector<4x16xf32>
    tpu.vector_store %arg4[%c0_36, %c72], %23 {strides = array<i32>} : memref<4x384xf32, #tpu.memory_space<vmem>>, vector<4x16xf32>,
    %c0_37 = arith.constant 0 : index
    %c0_38 = arith.constant 0 : index
    %c3_39 = arith.constant 3 : index
    %c0_40 = arith.constant 0 : index
    %25 = vector.load %arg2[%c0_37, %c0_38, %c3_39, %c0_40] : memref<1x4x16x16xf32, #tpu.memory_space<vmem>>, vector<1x4x1x16xf32>
    %26 = vector.shape_cast %25 : vector<1x4x1x16xf32> to vector<4x16xf32>
    %c0_41 = arith.constant 0 : index
    %c172 = arith.constant 172 : index
    %27 = vector.load %arg5[%c0_41, %c172] : memref<4x640xf32, #tpu.memory_space<vmem>>, vector<4x16xf32>
    tpu.vector_store %arg5[%c0_41, %c172], %26 {strides = array<i32>} : memref<4x640xf32, #tpu.memory_space<vmem>>, vector<4x16xf32>,
    %c0_42 = arith.constant 0 : index
    %c0_43 = arith.constant 0 : index
    %c4 = arith.constant 4 : index
    %c0_44 = arith.constant 0 : index
    %28 = vector.load %arg1[%c0_42, %c0_43, %c4, %c0_44] : memref<1x4x16x16xf32, #tpu.memory_space<vmem>>, vector<1x4x1x16xf32>
    %29 = vector.shape_cast %28 : vector<1x4x1x16xf32> to vector<4x16xf32>
    %c0_45 = arith.constant 0 : index
    %c96 = arith.constant 96 : index
    %30 = vector.load %arg4[%c0_45, %c96] : memref<4x384xf32, #tpu.memory_space<vmem>>, vector<4x16xf32>
    tpu.vector_store %arg4[%c0_45, %c96], %29 {strides = array<i32>} : memref<4x384xf32, #tpu.memory_space<vmem>>, vector<4x16xf32>,
    %c0_46 = arith.constant 0 : index
    %c0_47 = arith.constant 0 : index
    %c4_48 = arith.constant 4 : index
    %c0_49 = arith.constant 0 : index
    %31 = vector.load %arg2[%c0_46, %c0_47, %c4_48, %c0_49] : memref<1x4x16x16xf32, #tpu.memory_space<vmem>>, vector<1x4x1x16xf32>
    %32 = vector.shape_cast %31 : vector<1x4x1x16xf32> to vector<4x16xf32>
    %c0_50 = arith.constant 0 : index
    %c196 = arith.constant 196 : index
    %33 = vector.load %arg5[%c0_50, %c196] : memref<4x640xf32, #tpu.memory_space<vmem>>, vector<4x16xf32>
    tpu.vector_store %arg5[%c0_50, %c196], %32 {strides = array<i32>} : memref<4x640xf32, #tpu.memory_space<vmem>>, vector<4x16xf32>,
    %c0_51 = arith.constant 0 : index
    %c0_52 = arith.constant 0 : index
    %c5 = arith.constant 5 : index
    %c0_53 = arith.constant 0 : index
    %34 = vector.load %arg1[%c0_51, %c0_52, %c5, %c0_53] : memref<1x4x16x16xf32, #tpu.memory_space<vmem>>, vector<1x4x1x16xf32>
    %35 = vector.shape_cast %34 : vector<1x4x1x16xf32> to vector<4x16xf32>
    %c0_54 = arith.constant 0 : index
    %c120 = arith.constant 120 : index
    %36 = vector.load %arg4[%c0_54, %c120] : memref<4x384xf32, #tpu.memory_space<vmem>>, vector<4x16xf32>
    tpu.vector_store %arg4[%c0_54, %c120], %35 {strides = array<i32>} : memref<4x384xf32, #tpu.memory_space<vmem>>, vector<4x16xf32>,
    %c0_55 = arith.constant 0 : index
    %c0_56 = arith.constant 0 : index
    %c5_57 = arith.constant 5 : index
    %c0_58 = arith.constant 0 : index
    %37 = vector.load %arg2[%c0_55, %c0_56, %c5_57, %c0_58] : memref<1x4x16x16xf32, #tpu.memory_space<vmem>>, vector<1x4x1x16xf32>
    %38 = vector.shape_cast %37 : vector<1x4x1x16xf32> to vector<4x16xf32>
    %c0_59 = arith.constant 0 : index
    %c220 = arith.constant 220 : index
    %39 = vector.load %arg5[%c0_59, %c220] : memref<4x640xf32, #tpu.memory_space<vmem>>, vector<4x16xf32>
    tpu.vector_store %arg5[%c0_59, %c220], %38 {strides = array<i32>} : memref<4x640xf32, #tpu.memory_space<vmem>>, vector<4x16xf32>,
    %c0_60 = arith.constant 0 : index
    %c0_61 = arith.constant 0 : index
    %c6 = arith.constant 6 : index
    %c0_62 = arith.constant 0 : index
    %40 = vector.load %arg1[%c0_60, %c0_61, %c6, %c0_62] : memref<1x4x16x16xf32, #tpu.memory_space<vmem>>, vector<1x4x1x16xf32>
    %41 = vector.shape_cast %40 : vector<1x4x1x16xf32> to vector<4x16xf32>
    %c0_63 = arith.constant 0 : index
    %c144 = arith.constant 144 : index
    %42 = vector.load %arg4[%c0_63, %c144] : memref<4x384xf32, #tpu.memory_space<vmem>>, vector<4x16xf32>
    tpu.vector_store %arg4[%c0_63, %c144], %41 {strides = array<i32>} : memref<4x384xf32, #tpu.memory_space<vmem>>, vector<4x16xf32>,
    %c0_64 = arith.constant 0 : index
    %c0_65 = arith.constant 0 : index
    %c6_66 = arith.constant 6 : index
    %c0_67 = arith.constant 0 : index
    %43 = vector.load %arg2[%c0_64, %c0_65, %c6_66, %c0_67] : memref<1x4x16x16xf32, #tpu.memory_space<vmem>>, vector<1x4x1x16xf32>
    %44 = vector.shape_cast %43 : vector<1x4x1x16xf32> to vector<4x16xf32>
    %c0_68 = arith.constant 0 : index
    %c244 = arith.constant 244 : index
    %45 = vector.load %arg5[%c0_68, %c244] : memref<4x640xf32, #tpu.memory_space<vmem>>, vector<4x16xf32>
    tpu.vector_store %arg5[%c0_68, %c244], %44 {strides = array<i32>} : memref<4x640xf32, #tpu.memory_space<vmem>>, vector<4x16xf32>,
    %c0_69 = arith.constant 0 : index
    %c0_70 = arith.constant 0 : index
    %c7 = arith.constant 7 : index
    %c0_71 = arith.constant 0 : index
    %46 = vector.load %arg1[%c0_69, %c0_70, %c7, %c0_71] : memref<1x4x16x16xf32, #tpu.memory_space<vmem>>, vector<1x4x1x16xf32>
    %47 = vector.shape_cast %46 : vector<1x4x1x16xf32> to vector<4x16xf32>
    %c0_72 = arith.constant 0 : index
    %c168 = arith.constant 168 : index
    %48 = vector.load %arg4[%c0_72, %c168] : memref<4x384xf32, #tpu.memory_space<vmem>>, vector<4x16xf32>
    tpu.vector_store %arg4[%c0_72, %c168], %47 {strides = array<i32>} : memref<4x384xf32, #tpu.memory_space<vmem>>, vector<4x16xf32>,
    %c0_73 = arith.constant 0 : index
    %c0_74 = arith.constant 0 : index
    %c7_75 = arith.constant 7 : index
    %c0_76 = arith.constant 0 : index
    %49 = vector.load %arg2[%c0_73, %c0_74, %c7_75, %c0_76] : memref<1x4x16x16xf32, #tpu.memory_space<vmem>>, vector<1x4x1x16xf32>
    %50 = vector.shape_cast %49 : vector<1x4x1x16xf32> to vector<4x16xf32>
    %c0_77 = arith.constant 0 : index
    %c268 = arith.constant 268 : index
    %51 = vector.load %arg5[%c0_77, %c268] : memref<4x640xf32, #tpu.memory_space<vmem>>, vector<4x16xf32>
    tpu.vector_store %arg5[%c0_77, %c268], %50 {strides = array<i32>} : memref<4x640xf32, #tpu.memory_space<vmem>>, vector<4x16xf32>,
    %c0_78 = arith.constant 0 : index
    %c0_79 = arith.constant 0 : index
    %c8 = arith.constant 8 : index
    %c0_80 = arith.constant 0 : index
    %52 = vector.load %arg1[%c0_78, %c0_79, %c8, %c0_80] : memref<1x4x16x16xf32, #tpu.memory_space<vmem>>, vector<1x4x1x16xf32>
    %53 = vector.shape_cast %52 : vector<1x4x1x16xf32> to vector<4x16xf32>
    %c0_81 = arith.constant 0 : index
    %c192 = arith.constant 192 : index
    %54 = vector.load %arg4[%c0_81, %c192] : memref<4x384xf32, #tpu.memory_space<vmem>>, vector<4x16xf32>
    tpu.vector_store %arg4[%c0_81, %c192], %53 {strides = array<i32>} : memref<4x384xf32, #tpu.memory_space<vmem>>, vector<4x16xf32>,
    %c0_82 = arith.constant 0 : index
    %c0_83 = arith.constant 0 : index
    %c8_84 = arith.constant 8 : index
    %c0_85 = arith.constant 0 : index
    %55 = vector.load %arg2[%c0_82, %c0_83, %c8_84, %c0_85] : memref<1x4x16x16xf32, #tpu.memory_space<vmem>>, vector<1x4x1x16xf32>
    %56 = vector.shape_cast %55 : vector<1x4x1x16xf32> to vector<4x16xf32>
    %c0_86 = arith.constant 0 : index
    %c292 = arith.constant 292 : index
    %57 = vector.load %arg5[%c0_86, %c292] : memref<4x640xf32, #tpu.memory_space<vmem>>, vector<4x16xf32>
    tpu.vector_store %arg5[%c0_86, %c292], %56 {strides = array<i32>} : memref<4x640xf32, #tpu.memory_space<vmem>>, vector<4x16xf32>,
    %c0_87 = arith.constant 0 : index
    %c0_88 = arith.constant 0 : index
    %c9 = arith.constant 9 : index
    %c0_89 = arith.constant 0 : index
    %58 = vector.load %arg1[%c0_87, %c0_88, %c9, %c0_89] : memref<1x4x16x16xf32, #tpu.memory_space<vmem>>, vector<1x4x1x16xf32>
    %59 = vector.shape_cast %58 : vector<1x4x1x16xf32> to vector<4x16xf32>
    %c0_90 = arith.constant 0 : index
    %c216 = arith.constant 216 : index
    %60 = vector.load %arg4[%c0_90, %c216] : memref<4x384xf32, #tpu.memory_space<vmem>>, vector<4x16xf32>
    tpu.vector_store %arg4[%c0_90, %c216], %59 {strides = array<i32>} : memref<4x384xf32, #tpu.memory_space<vmem>>, vector<4x16xf32>,
    %c0_91 = arith.constant 0 : index
    %c0_92 = arith.constant 0 : index
    %c9_93 = arith.constant 9 : index
    %c0_94 = arith.constant 0 : index
    %61 = vector.load %arg2[%c0_91, %c0_92, %c9_93, %c0_94] : memref<1x4x16x16xf32, #tpu.memory_space<vmem>>, vector<1x4x1x16xf32>
    %62 = vector.shape_cast %61 : vector<1x4x1x16xf32> to vector<4x16xf32>
    %c0_95 = arith.constant 0 : index
    %c316 = arith.constant 316 : index
    %63 = vector.load %arg5[%c0_95, %c316] : memref<4x640xf32, #tpu.memory_space<vmem>>, vector<4x16xf32>
    tpu.vector_store %arg5[%c0_95, %c316], %62 {strides = array<i32>} : memref<4x640xf32, #tpu.memory_space<vmem>>, vector<4x16xf32>,
    %c0_96 = arith.constant 0 : index
    %c0_97 = arith.constant 0 : index
    %c10 = arith.constant 10 : index
    %c0_98 = arith.constant 0 : index
    %64 = vector.load %arg1[%c0_96, %c0_97, %c10, %c0_98] : memref<1x4x16x16xf32, #tpu.memory_space<vmem>>, vector<1x4x1x16xf32>
    %65 = vector.shape_cast %64 : vector<1x4x1x16xf32> to vector<4x16xf32>
    %c0_99 = arith.constant 0 : index
    %c240 = arith.constant 240 : index
    %66 = vector.load %arg4[%c0_99, %c240] : memref<4x384xf32, #tpu.memory_space<vmem>>, vector<4x16xf32>
    tpu.vector_store %arg4[%c0_99, %c240], %65 {strides = array<i32>} : memref<4x384xf32, #tpu.memory_space<vmem>>, vector<4x16xf32>,
    %c0_100 = arith.constant 0 : index
    %c0_101 = arith.constant 0 : index
    %c10_102 = arith.constant 10 : index
    %c0_103 = arith.constant 0 : index
    %67 = vector.load %arg2[%c0_100, %c0_101, %c10_102, %c0_103] : memref<1x4x16x16xf32, #tpu.memory_space<vmem>>, vector<1x4x1x16xf32>
    %68 = vector.shape_cast %67 : vector<1x4x1x16xf32> to vector<4x16xf32>
    %c0_104 = arith.constant 0 : index
    %c340 = arith.constant 340 : index
    %69 = vector.load %arg5[%c0_104, %c340] : memref<4x640xf32, #tpu.memory_space<vmem>>, vector<4x16xf32>
    tpu.vector_store %arg5[%c0_104, %c340], %68 {strides = array<i32>} : memref<4x640xf32, #tpu.memory_space<vmem>>, vector<4x16xf32>,
    %c0_105 = arith.constant 0 : index
    %c0_106 = arith.constant 0 : index
    %c11 = arith.constant 11 : index
    %c0_107 = arith.constant 0 : index
    %70 = vector.load %arg1[%c0_105, %c0_106, %c11, %c0_107] : memref<1x4x16x16xf32, #tpu.memory_space<vmem>>, vector<1x4x1x16xf32>
    %71 = vector.shape_cast %70 : vector<1x4x1x16xf32> to vector<4x16xf32>
    %c0_108 = arith.constant 0 : index
    %c264 = arith.constant 264 : index
    %72 = vector.load %arg4[%c0_108, %c264] : memref<4x384xf32, #tpu.memory_space<vmem>>, vector<4x16xf32>
    tpu.vector_store %arg4[%c0_108, %c264], %71 {strides = array<i32>} : memref<4x384xf32, #tpu.memory_space<vmem>>, vector<4x16xf32>,
    %c0_109 = arith.constant 0 : index
    %c0_110 = arith.constant 0 : index
    %c11_111 = arith.constant 11 : index
    %c0_112 = arith.constant 0 : index
    %73 = vector.load %arg2[%c0_109, %c0_110, %c11_111, %c0_112] : memref<1x4x16x16xf32, #tpu.memory_space<vmem>>, vector<1x4x1x16xf32>
    %74 = vector.shape_cast %73 : vector<1x4x1x16xf32> to vector<4x16xf32>
    %c0_113 = arith.constant 0 : index
    %c364 = arith.constant 364 : index
    %75 = vector.load %arg5[%c0_113, %c364] : memref<4x640xf32, #tpu.memory_space<vmem>>, vector<4x16xf32>
    tpu.vector_store %arg5[%c0_113, %c364], %74 {strides = array<i32>} : memref<4x640xf32, #tpu.memory_space<vmem>>, vector<4x16xf32>,
    %c0_114 = arith.constant 0 : index
    %c0_115 = arith.constant 0 : index
    %c12 = arith.constant 12 : index
    %c0_116 = arith.constant 0 : index
    %76 = vector.load %arg1[%c0_114, %c0_115, %c12, %c0_116] : memref<1x4x16x16xf32, #tpu.memory_space<vmem>>, vector<1x4x1x16xf32>
    %77 = vector.shape_cast %76 : vector<1x4x1x16xf32> to vector<4x16xf32>
    %c0_117 = arith.constant 0 : index
    %c288 = arith.constant 288 : index
    %78 = vector.load %arg4[%c0_117, %c288] : memref<4x384xf32, #tpu.memory_space<vmem>>, vector<4x16xf32>
    tpu.vector_store %arg4[%c0_117, %c288], %77 {strides = array<i32>} : memref<4x384xf32, #tpu.memory_space<vmem>>, vector<4x16xf32>,
    %c0_118 = arith.constant 0 : index
    %c0_119 = arith.constant 0 : index
    %c12_120 = arith.constant 12 : index
    %c0_121 = arith.constant 0 : index
    %79 = vector.load %arg2[%c0_118, %c0_119, %c12_120, %c0_121] : memref<1x4x16x16xf32, #tpu.memory_space<vmem>>, vector<1x4x1x16xf32>
    %80 = vector.shape_cast %79 : vector<1x4x1x16xf32> to vector<4x16xf32>
    %c0_122 = arith.constant 0 : index
    %c388 = arith.constant 388 : index
    %81 = vector.load %arg5[%c0_122, %c388] : memref<4x640xf32, #tpu.memory_space<vmem>>, vector<4x16xf32>
    tpu.vector_store %arg5[%c0_122, %c388], %80 {strides = array<i32>} : memref<4x640xf32, #tpu.memory_space<vmem>>, vector<4x16xf32>,
    %c0_123 = arith.constant 0 : index
    %c0_124 = arith.constant 0 : index
    %c13 = arith.constant 13 : index
    %c0_125 = arith.constant 0 : index
    %82 = vector.load %arg1[%c0_123, %c0_124, %c13, %c0_125] : memref<1x4x16x16xf32, #tpu.memory_space<vmem>>, vector<1x4x1x16xf32>
    %83 = vector.shape_cast %82 : vector<1x4x1x16xf32> to vector<4x16xf32>
    %c0_126 = arith.constant 0 : index
    %c312 = arith.constant 312 : index
    %84 = vector.load %arg4[%c0_126, %c312] : memref<4x384xf32, #tpu.memory_space<vmem>>, vector<4x16xf32>
    tpu.vector_store %arg4[%c0_126, %c312], %83 {strides = array<i32>} : memref<4x384xf32, #tpu.memory_space<vmem>>, vector<4x16xf32>,
    %c0_127 = arith.constant 0 : index
    %c0_128 = arith.constant 0 : index
    %c13_129 = arith.constant 13 : index
    %c0_130 = arith.constant 0 : index
    %85 = vector.load %arg2[%c0_127, %c0_128, %c13_129, %c0_130] : memref<1x4x16x16xf32, #tpu.memory_space<vmem>>, vector<1x4x1x16xf32>
    %86 = vector.shape_cast %85 : vector<1x4x1x16xf32> to vector<4x16xf32>
    %c0_131 = arith.constant 0 : index
    %c412 = arith.constant 412 : index
    %87 = vector.load %arg5[%c0_131, %c412] : memref<4x640xf32, #tpu.memory_space<vmem>>, vector<4x16xf32>
    tpu.vector_store %arg5[%c0_131, %c412], %86 {strides = array<i32>} : memref<4x640xf32, #tpu.memory_space<vmem>>, vector<4x16xf32>,
    %c0_132 = arith.constant 0 : index
    %c0_133 = arith.constant 0 : index
    %c14 = arith.constant 14 : index
    %c0_134 = arith.constant 0 : index
    %88 = vector.load %arg1[%c0_132, %c0_133, %c14, %c0_134] : memref<1x4x16x16xf32, #tpu.memory_space<vmem>>, vector<1x4x1x16xf32>
    %89 = vector.shape_cast %88 : vector<1x4x1x16xf32> to vector<4x16xf32>
    %c0_135 = arith.constant 0 : index
    %c336 = arith.constant 336 : index
    %90 = vector.load %arg4[%c0_135, %c336] : memref<4x384xf32, #tpu.memory_space<vmem>>, vector<4x16xf32>
    tpu.vector_store %arg4[%c0_135, %c336], %89 {strides = array<i32>} : memref<4x384xf32, #tpu.memory_space<vmem>>, vector<4x16xf32>,
    %c0_136 = arith.constant 0 : index
    %c0_137 = arith.constant 0 : index
    %c14_138 = arith.constant 14 : index
    %c0_139 = arith.constant 0 : index
    %91 = vector.load %arg2[%c0_136, %c0_137, %c14_138, %c0_139] : memref<1x4x16x16xf32, #tpu.memory_space<vmem>>, vector<1x4x1x16xf32>
    %92 = vector.shape_cast %91 : vector<1x4x1x16xf32> to vector<4x16xf32>
    %c0_140 = arith.constant 0 : index
    %c436 = arith.constant 436 : index
    %93 = vector.load %arg5[%c0_140, %c436] : memref<4x640xf32, #tpu.memory_space<vmem>>, vector<4x16xf32>
    tpu.vector_store %arg5[%c0_140, %c436], %92 {strides = array<i32>} : memref<4x640xf32, #tpu.memory_space<vmem>>, vector<4x16xf32>,
    %c0_141 = arith.constant 0 : index
    %c0_142 = arith.constant 0 : index
    %c15 = arith.constant 15 : index
    %c0_143 = arith.constant 0 : index
    %94 = vector.load %arg1[%c0_141, %c0_142, %c15, %c0_143] : memref<1x4x16x16xf32, #tpu.memory_space<vmem>>, vector<1x4x1x16xf32>
    %95 = vector.shape_cast %94 : vector<1x4x1x16xf32> to vector<4x16xf32>
    %c0_144 = arith.constant 0 : index
    %c360 = arith.constant 360 : index
    %96 = vector.load %arg4[%c0_144, %c360] : memref<4x384xf32, #tpu.memory_space<vmem>>, vector<4x16xf32>
    tpu.vector_store %arg4[%c0_144, %c360], %95 {strides = array<i32>} : memref<4x384xf32, #tpu.memory_space<vmem>>, vector<4x16xf32>,
    %c0_145 = arith.constant 0 : index
    %c0_146 = arith.constant 0 : index
    %c15_147 = arith.constant 15 : index
    %c0_148 = arith.constant 0 : index
    %97 = vector.load %arg2[%c0_145, %c0_146, %c15_147, %c0_148] : memref<1x4x16x16xf32, #tpu.memory_space<vmem>>, vector<1x4x1x16xf32>
    %98 = vector.shape_cast %97 : vector<1x4x1x16xf32> to vector<4x16xf32>
    %c0_149 = arith.constant 0 : index
    %c460 = arith.constant 460 : index
    %99 = vector.load %arg5[%c0_149, %c460] : memref<4x640xf32, #tpu.memory_space<vmem>>, vector<4x16xf32>
    tpu.vector_store %arg5[%c0_149, %c460], %98 {strides = array<i32>} : memref<4x640xf32, #tpu.memory_space<vmem>>, vector<4x16xf32>,
    %c0_150 = arith.constant 0 : index
    %c0_151 = arith.constant 0 : index
    %100 = vector.load %arg4[%c0_150, %c0_151] : memref<4x384xf32, #tpu.memory_space<vmem>>, vector<4x384xf32>
    %cst_152 = arith.constant 2.500000e-01 : f32
    %101 = vector.broadcast %cst_152 : f32 to vector<4x384xf32>
    %102 = arith.mulf %100, %101 : vector<4x384xf32>
    %c0_153 = arith.constant 0 : index
    %c0_154 = arith.constant 0 : index
    %103 = vector.load %arg5[%c0_153, %c0_154] : memref<4x640xf32, #tpu.memory_space<vmem>>, vector<4x384xf32>
    %104 = arith.mulf %102, %103 : vector<4x384xf32>
    %cst_155 = arith.constant dense<0.000000e+00> : vector<384xf32>
    %105 = vector.multi_reduction <add>, %104, %cst_155 [0] : vector<4x384xf32> to vector<384xf32>
    %c0_156 = arith.constant 0 : index
    %c0_157 = arith.constant 0 : index
    %c0_158 = arith.constant 0 : index
    %106 = vector.load %arg3[%c0_156, %c0_157, %c0_158] : memref<1x81x384xf32, #tpu.memory_space<vmem>>, vector<1x1x384xf32>
    %107 = vector.shape_cast %106 : vector<1x1x384xf32> to vector<384xf32>
    %108 = vector.shape_cast %105 : vector<384xf32> to vector<1x1x384xf32>
    tpu.vector_store %arg3[%c0_156, %c0_157, %c0_158], %108 {strides = array<i32>} : memref<1x81x384xf32, #tpu.memory_space<vmem>>, vector<1x1x384xf32>,
    %c0_159 = arith.constant 0 : index
    %c1_160 = arith.constant 1 : index
    %109 = vector.load %arg5[%c0_159, %c1_160] : memref<4x640xf32, #tpu.memory_space<vmem>>, vector<4x384xf32>
    %110 = arith.mulf %102, %109 : vector<4x384xf32>
    %cst_161 = arith.constant dense<0.000000e+00> : vector<384xf32>
    %111 = vector.multi_reduction <add>, %110, %cst_161 [0] : vector<4x384xf32> to vector<384xf32>
    %c0_162 = arith.constant 0 : index
    %c1_163 = arith.constant 1 : index
    %c0_164 = arith.constant 0 : index
    %112 = vector.load %arg3[%c0_162, %c1_163, %c0_164] : memref<1x81x384xf32, #tpu.memory_space<vmem>>, vector<1x1x384xf32>
    %113 = vector.shape_cast %112 : vector<1x1x384xf32> to vector<384xf32>
    %114 = vector.shape_cast %111 : vector<384xf32> to vector<1x1x384xf32>
    tpu.vector_store %arg3[%c0_162, %c1_163, %c0_164], %114 {strides = array<i32>} : memref<1x81x384xf32, #tpu.memory_space<vmem>>, vector<1x1x384xf32>,
    %c0_165 = arith.constant 0 : index
    %c2_166 = arith.constant 2 : index
    %115 = vector.load %arg5[%c0_165, %c2_166] : memref<4x640xf32, #tpu.memory_space<vmem>>, vector<4x384xf32>
    %116 = arith.mulf %102, %115 : vector<4x384xf32>
    %cst_167 = arith.constant dense<0.000000e+00> : vector<384xf32>
    %117 = vector.multi_reduction <add>, %116, %cst_167 [0] : vector<4x384xf32> to vector<384xf32>
    %c0_168 = arith.constant 0 : index
    %c2_169 = arith.constant 2 : index
    %c0_170 = arith.constant 0 : index
    %118 = vector.load %arg3[%c0_168, %c2_169, %c0_170] : memref<1x81x384xf32, #tpu.memory_space<vmem>>, vector<1x1x384xf32>
    %119 = vector.shape_cast %118 : vector<1x1x384xf32> to vector<384xf32>
    %120 = vector.shape_cast %117 : vector<384xf32> to vector<1x1x384xf32>
    tpu.vector_store %arg3[%c0_168, %c2_169, %c0_170], %120 {strides = array<i32>} : memref<1x81x384xf32, #tpu.memory_space<vmem>>, vector<1x1x384xf32>,
    %c0_171 = arith.constant 0 : index
    %c3_172 = arith.constant 3 : index
    %121 = vector.load %arg5[%c0_171, %c3_172] : memref<4x640xf32, #tpu.memory_space<vmem>>, vector<4x384xf32>
    %122 = arith.mulf %102, %121 : vector<4x384xf32>
    %cst_173 = arith.constant dense<0.000000e+00> : vector<384xf32>
    %123 = vector.multi_reduction <add>, %122, %cst_173 [0] : vector<4x384xf32> to vector<384xf32>
    %c0_174 = arith.constant 0 : index
    %c3_175 = arith.constant 3 : index
    %c0_176 = arith.constant 0 : index
    %124 = vector.load %arg3[%c0_174, %c3_175, %c0_176] : memref<1x81x384xf32, #tpu.memory_space<vmem>>, vector<1x1x384xf32>
    %125 = vector.shape_cast %124 : vector<1x1x384xf32> to vector<384xf32>
    %126 = vector.shape_cast %123 : vector<384xf32> to vector<1x1x384xf32>
    tpu.vector_store %arg3[%c0_174, %c3_175, %c0_176], %126 {strides = array<i32>} : memref<1x81x384xf32, #tpu.memory_space<vmem>>, vector<1x1x384xf32>,
    %c0_177 = arith.constant 0 : index
    %c4_178 = arith.constant 4 : index
    %127 = vector.load %arg5[%c0_177, %c4_178] : memref<4x640xf32, #tpu.memory_space<vmem>>, vector<4x384xf32>
    %128 = arith.mulf %102, %127 : vector<4x384xf32>
    %cst_179 = arith.constant dense<0.000000e+00> : vector<384xf32>
    %129 = vector.multi_reduction <add>, %128, %cst_179 [0] : vector<4x384xf32> to vector<384xf32>
    %c0_180 = arith.constant 0 : index
    %c4_181 = arith.constant 4 : index
    %c0_182 = arith.constant 0 : index
    %130 = vector.load %arg3[%c0_180, %c4_181, %c0_182] : memref<1x81x384xf32, #tpu.memory_space<vmem>>, vector<1x1x384xf32>
    %131 = vector.shape_cast %130 : vector<1x1x384xf32> to vector<384xf32>
    %132 = vector.shape_cast %129 : vector<384xf32> to vector<1x1x384xf32>
    tpu.vector_store %arg3[%c0_180, %c4_181, %c0_182], %132 {strides = array<i32>} : memref<1x81x384xf32, #tpu.memory_space<vmem>>, vector<1x1x384xf32>,
    %c0_183 = arith.constant 0 : index
    %c5_184 = arith.constant 5 : index
    %133 = vector.load %arg5[%c0_183, %c5_184] : memref<4x640xf32, #tpu.memory_space<vmem>>, vector<4x384xf32>
    %134 = arith.mulf %102, %133 : vector<4x384xf32>
    %cst_185 = arith.constant dense<0.000000e+00> : vector<384xf32>
    %135 = vector.multi_reduction <add>, %134, %cst_185 [0] : vector<4x384xf32> to vector<384xf32>
    %c0_186 = arith.constant 0 : index
    %c5_187 = arith.constant 5 : index
    %c0_188 = arith.constant 0 : index
    %136 = vector.load %arg3[%c0_186, %c5_187, %c0_188] : memref<1x81x384xf32, #tpu.memory_space<vmem>>, vector<1x1x384xf32>
    %137 = vector.shape_cast %136 : vector<1x1x384xf32> to vector<384xf32>
    %138 = vector.shape_cast %135 : vector<384xf32> to vector<1x1x384xf32>
    tpu.vector_store %arg3[%c0_186, %c5_187, %c0_188], %138 {strides = array<i32>} : memref<1x81x384xf32, #tpu.memory_space<vmem>>, vector<1x1x384xf32>,
    %c0_189 = arith.constant 0 : index
    %c6_190 = arith.constant 6 : index
    %139 = vector.load %arg5[%c0_189, %c6_190] : memref<4x640xf32, #tpu.memory_space<vmem>>, vector<4x384xf32>
    %140 = arith.mulf %102, %139 : vector<4x384xf32>
    %cst_191 = arith.constant dense<0.000000e+00> : vector<384xf32>
    %141 = vector.multi_reduction <add>, %140, %cst_191 [0] : vector<4x384xf32> to vector<384xf32>
    %c0_192 = arith.constant 0 : index
    %c6_193 = arith.constant 6 : index
    %c0_194 = arith.constant 0 : index
    %142 = vector.load %arg3[%c0_192, %c6_193, %c0_194] : memref<1x81x384xf32, #tpu.memory_space<vmem>>, vector<1x1x384xf32>
    %143 = vector.shape_cast %142 : vector<1x1x384xf32> to vector<384xf32>
    %144 = vector.shape_cast %141 : vector<384xf32> to vector<1x1x384xf32>
    tpu.vector_store %arg3[%c0_192, %c6_193, %c0_194], %144 {strides = array<i32>} : memref<1x81x384xf32, #tpu.memory_space<vmem>>, vector<1x1x384xf32>,
    %c0_195 = arith.constant 0 : index
    %c7_196 = arith.constant 7 : index
    %145 = vector.load %arg5[%c0_195, %c7_196] : memref<4x640xf32, #tpu.memory_space<vmem>>, vector<4x384xf32>
    %146 = arith.mulf %102, %145 : vector<4x384xf32>
    %cst_197 = arith.constant dense<0.000000e+00> : vector<384xf32>
    %147 = vector.multi_reduction <add>, %146, %cst_197 [0] : vector<4x384xf32> to vector<384xf32>
    %c0_198 = arith.constant 0 : index
    %c7_199 = arith.constant 7 : index
    %c0_200 = arith.constant 0 : index
    %148 = vector.load %arg3[%c0_198, %c7_199, %c0_200] : memref<1x81x384xf32, #tpu.memory_space<vmem>>, vector<1x1x384xf32>
    %149 = vector.shape_cast %148 : vector<1x1x384xf32> to vector<384xf32>
    %150 = vector.shape_cast %147 : vector<384xf32> to vector<1x1x384xf32>
    tpu.vector_store %arg3[%c0_198, %c7_199, %c0_200], %150 {strides = array<i32>} : memref<1x81x384xf32, #tpu.memory_space<vmem>>, vector<1x1x384xf32>,
    %c0_201 = arith.constant 0 : index
    %c8_202 = arith.constant 8 : index
    %151 = vector.load %arg5[%c0_201, %c8_202] : memref<4x640xf32, #tpu.memory_space<vmem>>, vector<4x384xf32>
    %152 = arith.mulf %102, %151 : vector<4x384xf32>
    %cst_203 = arith.constant dense<0.000000e+00> : vector<384xf32>
    %153 = vector.multi_reduction <add>, %152, %cst_203 [0] : vector<4x384xf32> to vector<384xf32>
    %c0_204 = arith.constant 0 : index
    %c8_205 = arith.constant 8 : index
    %c0_206 = arith.constant 0 : index
    %154 = vector.load %arg3[%c0_204, %c8_205, %c0_206] : memref<1x81x384xf32, #tpu.memory_space<vmem>>, vector<1x1x384xf32>
    %155 = vector.shape_cast %154 : vector<1x1x384xf32> to vector<384xf32>
    %156 = vector.shape_cast %153 : vector<384xf32> to vector<1x1x384xf32>
    tpu.vector_store %arg3[%c0_204, %c8_205, %c0_206], %156 {strides = array<i32>} : memref<1x81x384xf32, #tpu.memory_space<vmem>>, vector<1x1x384xf32>,
    %c0_207 = arith.constant 0 : index
    %c24_208 = arith.constant 24 : index
    %157 = vector.load %arg5[%c0_207, %c24_208] : memref<4x640xf32, #tpu.memory_space<vmem>>, vector<4x384xf32>
    %158 = arith.mulf %102, %157 : vector<4x384xf32>
    %cst_209 = arith.constant dense<0.000000e+00> : vector<384xf32>
    %159 = vector.multi_reduction <add>, %158, %cst_209 [0] : vector<4x384xf32> to vector<384xf32>
    %c0_210 = arith.constant 0 : index
    %c9_211 = arith.constant 9 : index
    %c0_212 = arith.constant 0 : index
    %160 = vector.load %arg3[%c0_210, %c9_211, %c0_212] : memref<1x81x384xf32, #tpu.memory_space<vmem>>, vector<1x1x384xf32>
    %161 = vector.shape_cast %160 : vector<1x1x384xf32> to vector<384xf32>
    %162 = vector.shape_cast %159 : vector<384xf32> to vector<1x1x384xf32>
    tpu.vector_store %arg3[%c0_210, %c9_211, %c0_212], %162 {strides = array<i32>} : memref<1x81x384xf32, #tpu.memory_space<vmem>>, vector<1x1x384xf32>,
    %c0_213 = arith.constant 0 : index
    %c25 = arith.constant 25 : index
    %163 = vector.load %arg5[%c0_213, %c25] : memref<4x640xf32, #tpu.memory_space<vmem>>, vector<4x384xf32>
    %164 = arith.mulf %102, %163 : vector<4x384xf32>
    %cst_214 = arith.constant dense<0.000000e+00> : vector<384xf32>
    %165 = vector.multi_reduction <add>, %164, %cst_214 [0] : vector<4x384xf32> to vector<384xf32>
    %c0_215 = arith.constant 0 : index
    %c10_216 = arith.constant 10 : index
    %c0_217 = arith.constant 0 : index
    %166 = vector.load %arg3[%c0_215, %c10_216, %c0_217] : memref<1x81x384xf32, #tpu.memory_space<vmem>>, vector<1x1x384xf32>
    %167 = vector.shape_cast %166 : vector<1x1x384xf32> to vector<384xf32>
    %168 = vector.shape_cast %165 : vector<384xf32> to vector<1x1x384xf32>
    tpu.vector_store %arg3[%c0_215, %c10_216, %c0_217], %168 {strides = array<i32>} : memref<1x81x384xf32, #tpu.memory_space<vmem>>, vector<1x1x384xf32>,
    %c0_218 = arith.constant 0 : index
    %c26 = arith.constant 26 : index
    %169 = vector.load %arg5[%c0_218, %c26] : memref<4x640xf32, #tpu.memory_space<vmem>>, vector<4x384xf32>
    %170 = arith.mulf %102, %169 : vector<4x384xf32>
    %cst_219 = arith.constant dense<0.000000e+00> : vector<384xf32>
    %171 = vector.multi_reduction <add>, %170, %cst_219 [0] : vector<4x384xf32> to vector<384xf32>
    %c0_220 = arith.constant 0 : index
    %c11_221 = arith.constant 11 : index
    %c0_222 = arith.constant 0 : index
    %172 = vector.load %arg3[%c0_220, %c11_221, %c0_222] : memref<1x81x384xf32, #tpu.memory_space<vmem>>, vector<1x1x384xf32>
    %173 = vector.shape_cast %172 : vector<1x1x384xf32> to vector<384xf32>
    %174 = vector.shape_cast %171 : vector<384xf32> to vector<1x1x384xf32>
    tpu.vector_store %arg3[%c0_220, %c11_221, %c0_222], %174 {strides = array<i32>} : memref<1x81x384xf32, #tpu.memory_space<vmem>>, vector<1x1x384xf32>,
    %c0_223 = arith.constant 0 : index
    %c27 = arith.constant 27 : index
    %175 = vector.load %arg5[%c0_223, %c27] : memref<4x640xf32, #tpu.memory_space<vmem>>, vector<4x384xf32>
    %176 = arith.mulf %102, %175 : vector<4x384xf32>
    %cst_224 = arith.constant dense<0.000000e+00> : vector<384xf32>
    %177 = vector.multi_reduction <add>, %176, %cst_224 [0] : vector<4x384xf32> to vector<384xf32>
    %c0_225 = arith.constant 0 : index
    %c12_226 = arith.constant 12 : index
    %c0_227 = arith.constant 0 : index
    %178 = vector.load %arg3[%c0_225, %c12_226, %c0_227] : memref<1x81x384xf32, #tpu.memory_space<vmem>>, vector<1x1x384xf32>
    %179 = vector.shape_cast %178 : vector<1x1x384xf32> to vector<384xf32>
    %180 = vector.shape_cast %177 : vector<384xf32> to vector<1x1x384xf32>
    tpu.vector_store %arg3[%c0_225, %c12_226, %c0_227], %180 {strides = array<i32>} : memref<1x81x384xf32, #tpu.memory_space<vmem>>, vector<1x1x384xf32>,
    %c0_228 = arith.constant 0 : index
    %c28 = arith.constant 28 : index
    %181 = vector.load %arg5[%c0_228, %c28] : memref<4x640xf32, #tpu.memory_space<vmem>>, vector<4x384xf32>
    %182 = arith.mulf %102, %181 : vector<4x384xf32>
    %cst_229 = arith.constant dense<0.000000e+00> : vector<384xf32>
    %183 = vector.multi_reduction <add>, %182, %cst_229 [0] : vector<4x384xf32> to vector<384xf32>
    %c0_230 = arith.constant 0 : index
    %c13_231 = arith.constant 13 : index
    %c0_232 = arith.constant 0 : index
    %184 = vector.load %arg3[%c0_230, %c13_231, %c0_232] : memref<1x81x384xf32, #tpu.memory_space<vmem>>, vector<1x1x384xf32>
    %185 = vector.shape_cast %184 : vector<1x1x384xf32> to vector<384xf32>
    %186 = vector.shape_cast %183 : vector<384xf32> to vector<1x1x384xf32>
    tpu.vector_store %arg3[%c0_230, %c13_231, %c0_232], %186 {strides = array<i32>} : memref<1x81x384xf32, #tpu.memory_space<vmem>>, vector<1x1x384xf32>,
    %c0_233 = arith.constant 0 : index
    %c29 = arith.constant 29 : index
    %187 = vector.load %arg5[%c0_233, %c29] : memref<4x640xf32, #tpu.memory_space<vmem>>, vector<4x384xf32>
    %188 = arith.mulf %102, %187 : vector<4x384xf32>
    %cst_234 = arith.constant dense<0.000000e+00> : vector<384xf32>
    %189 = vector.multi_reduction <add>, %188, %cst_234 [0] : vector<4x384xf32> to vector<384xf32>
    %c0_235 = arith.constant 0 : index
    %c14_236 = arith.constant 14 : index
    %c0_237 = arith.constant 0 : index
    %190 = vector.load %arg3[%c0_235, %c14_236, %c0_237] : memref<1x81x384xf32, #tpu.memory_space<vmem>>, vector<1x1x384xf32>
    %191 = vector.shape_cast %190 : vector<1x1x384xf32> to vector<384xf32>
    %192 = vector.shape_cast %189 : vector<384xf32> to vector<1x1x384xf32>
    tpu.vector_store %arg3[%c0_235, %c14_236, %c0_237], %192 {strides = array<i32>} : memref<1x81x384xf32, #tpu.memory_space<vmem>>, vector<1x1x384xf32>,
    %c0_238 = arith.constant 0 : index
    %c30 = arith.constant 30 : index
    %193 = vector.load %arg5[%c0_238, %c30] : memref<4x640xf32, #tpu.memory_space<vmem>>, vector<4x384xf32>
    %194 = arith.mulf %102, %193 : vector<4x384xf32>
    %cst_239 = arith.constant dense<0.000000e+00> : vector<384xf32>
    %195 = vector.multi_reduction <add>, %194, %cst_239 [0] : vector<4x384xf32> to vector<384xf32>
    %c0_240 = arith.constant 0 : index
    %c15_241 = arith.constant 15 : index
    %c0_242 = arith.constant 0 : index
    %196 = vector.load %arg3[%c0_240, %c15_241, %c0_242] : memref<1x81x384xf32, #tpu.memory_space<vmem>>, vector<1x1x384xf32>
    %197 = vector.shape_cast %196 : vector<1x1x384xf32> to vector<384xf32>
    %198 = vector.shape_cast %195 : vector<384xf32> to vector<1x1x384xf32>
    tpu.vector_store %arg3[%c0_240, %c15_241, %c0_242], %198 {strides = array<i32>} : memref<1x81x384xf32, #tpu.memory_space<vmem>>, vector<1x1x384xf32>,
    %c0_243 = arith.constant 0 : index
    %c31 = arith.constant 31 : index
    %199 = vector.load %arg5[%c0_243, %c31] : memref<4x640xf32, #tpu.memory_space<vmem>>, vector<4x384xf32>
    %200 = arith.mulf %102, %199 : vector<4x384xf32>
    %cst_244 = arith.constant dense<0.000000e+00> : vector<384xf32>
    %201 = vector.multi_reduction <add>, %200, %cst_244 [0] : vector<4x384xf32> to vector<384xf32>
    %c0_245 = arith.constant 0 : index
    %c16 = arith.constant 16 : index
    %c0_246 = arith.constant 0 : index
    %202 = vector.load %arg3[%c0_245, %c16, %c0_246] : memref<1x81x384xf32, #tpu.memory_space<vmem>>, vector<1x1x384xf32>
    %203 = vector.shape_cast %202 : vector<1x1x384xf32> to vector<384xf32>
    %204 = vector.shape_cast %201 : vector<384xf32> to vector<1x1x384xf32>
    tpu.vector_store %arg3[%c0_245, %c16, %c0_246], %204 {strides = array<i32>} : memref<1x81x384xf32, #tpu.memory_space<vmem>>, vector<1x1x384xf32>,
    %c0_247 = arith.constant 0 : index
    %c32 = arith.constant 32 : index
    %205 = vector.load %arg5[%c0_247, %c32] : memref<4x640xf32, #tpu.memory_space<vmem>>, vector<4x384xf32>
    %206 = arith.mulf %102, %205 : vector<4x384xf32>
    %cst_248 = arith.constant dense<0.000000e+00> : vector<384xf32>
    %207 = vector.multi_reduction <add>, %206, %cst_248 [0] : vector<4x384xf32> to vector<384xf32>
    %c0_249 = arith.constant 0 : index
    %c17 = arith.constant 17 : index
    %c0_250 = arith.constant 0 : index
    %208 = vector.load %arg3[%c0_249, %c17, %c0_250] : memref<1x81x384xf32, #tpu.memory_space<vmem>>, vector<1x1x384xf32>
    %209 = vector.shape_cast %208 : vector<1x1x384xf32> to vector<384xf32>
    %210 = vector.shape_cast %207 : vector<384xf32> to vector<1x1x384xf32>
    tpu.vector_store %arg3[%c0_249, %c17, %c0_250], %210 {strides = array<i32>} : memref<1x81x384xf32, #tpu.memory_space<vmem>>, vector<1x1x384xf32>,
    %c0_251 = arith.constant 0 : index
    %c48_252 = arith.constant 48 : index
    %211 = vector.load %arg5[%c0_251, %c48_252] : memref<4x640xf32, #tpu.memory_space<vmem>>, vector<4x384xf32>
    %212 = arith.mulf %102, %211 : vector<4x384xf32>
    %cst_253 = arith.constant dense<0.000000e+00> : vector<384xf32>
    %213 = vector.multi_reduction <add>, %212, %cst_253 [0] : vector<4x384xf32> to vector<384xf32>
    %c0_254 = arith.constant 0 : index
    %c18 = arith.constant 18 : index
    %c0_255 = arith.constant 0 : index
    %214 = vector.load %arg3[%c0_254, %c18, %c0_255] : memref<1x81x384xf32, #tpu.memory_space<vmem>>, vector<1x1x384xf32>
    %215 = vector.shape_cast %214 : vector<1x1x384xf32> to vector<384xf32>
    %216 = vector.shape_cast %213 : vector<384xf32> to vector<1x1x384xf32>
    tpu.vector_store %arg3[%c0_254, %c18, %c0_255], %216 {strides = array<i32>} : memref<1x81x384xf32, #tpu.memory_space<vmem>>, vector<1x1x384xf32>,
    %c0_256 = arith.constant 0 : index
    %c49 = arith.constant 49 : index
    %217 = vector.load %arg5[%c0_256, %c49] : memref<4x640xf32, #tpu.memory_space<vmem>>, vector<4x384xf32>
    %218 = arith.mulf %102, %217 : vector<4x384xf32>
    %cst_257 = arith.constant dense<0.000000e+00> : vector<384xf32>
    %219 = vector.multi_reduction <add>, %218, %cst_257 [0] : vector<4x384xf32> to vector<384xf32>
    %c0_258 = arith.constant 0 : index
    %c19 = arith.constant 19 : index
    %c0_259 = arith.constant 0 : index
    %220 = vector.load %arg3[%c0_258, %c19, %c0_259] : memref<1x81x384xf32, #tpu.memory_space<vmem>>, vector<1x1x384xf32>
    %221 = vector.shape_cast %220 : vector<1x1x384xf32> to vector<384xf32>
    %222 = vector.shape_cast %219 : vector<384xf32> to vector<1x1x384xf32>
    tpu.vector_store %arg3[%c0_258, %c19, %c0_259], %222 {strides = array<i32>} : memref<1x81x384xf32, #tpu.memory_space<vmem>>, vector<1x1x384xf32>,
    %c0_260 = arith.constant 0 : index
    %c50 = arith.constant 50 : index
    %223 = vector.load %arg5[%c0_260, %c50] : memref<4x640xf32, #tpu.memory_space<vmem>>, vector<4x384xf32>
    %224 = arith.mulf %102, %223 : vector<4x384xf32>
    %cst_261 = arith.constant dense<0.000000e+00> : vector<384xf32>
    %225 = vector.multi_reduction <add>, %224, %cst_261 [0] : vector<4x384xf32> to vector<384xf32>
    %c0_262 = arith.constant 0 : index
    %c20 = arith.constant 20 : index
    %c0_263 = arith.constant 0 : index
    %226 = vector.load %arg3[%c0_262, %c20, %c0_263] : memref<1x81x384xf32, #tpu.memory_space<vmem>>, vector<1x1x384xf32>
    %227 = vector.shape_cast %226 : vector<1x1x384xf32> to vector<384xf32>
    %228 = vector.shape_cast %225 : vector<384xf32> to vector<1x1x384xf32>
    tpu.vector_store %arg3[%c0_262, %c20, %c0_263], %228 {strides = array<i32>} : memref<1x81x384xf32, #tpu.memory_space<vmem>>, vector<1x1x384xf32>,
    %c0_264 = arith.constant 0 : index
    %c51 = arith.constant 51 : index
    %229 = vector.load %arg5[%c0_264, %c51] : memref<4x640xf32, #tpu.memory_space<vmem>>, vector<4x384xf32>
    %230 = arith.mulf %102, %229 : vector<4x384xf32>
    %cst_265 = arith.constant dense<0.000000e+00> : vector<384xf32>
    %231 = vector.multi_reduction <add>, %230, %cst_265 [0] : vector<4x384xf32> to vector<384xf32>
    %c0_266 = arith.constant 0 : index
    %c21 = arith.constant 21 : index
    %c0_267 = arith.constant 0 : index
    %232 = vector.load %arg3[%c0_266, %c21, %c0_267] : memref<1x81x384xf32, #tpu.memory_space<vmem>>, vector<1x1x384xf32>
    %233 = vector.shape_cast %232 : vector<1x1x384xf32> to vector<384xf32>
    %234 = vector.shape_cast %231 : vector<384xf32> to vector<1x1x384xf32>
    tpu.vector_store %arg3[%c0_266, %c21, %c0_267], %234 {strides = array<i32>} : memref<1x81x384xf32, #tpu.memory_space<vmem>>, vector<1x1x384xf32>,
    %c0_268 = arith.constant 0 : index
    %c52 = arith.constant 52 : index
    %235 = vector.load %arg5[%c0_268, %c52] : memref<4x640xf32, #tpu.memory_space<vmem>>, vector<4x384xf32>
    %236 = arith.mulf %102, %235 : vector<4x384xf32>
    %cst_269 = arith.constant dense<0.000000e+00> : vector<384xf32>
    %237 = vector.multi_reduction <add>, %236, %cst_269 [0] : vector<4x384xf32> to vector<384xf32>
    %c0_270 = arith.constant 0 : index
    %c22 = arith.constant 22 : index
    %c0_271 = arith.constant 0 : index
    %238 = vector.load %arg3[%c0_270, %c22, %c0_271] : memref<1x81x384xf32, #tpu.memory_space<vmem>>, vector<1x1x384xf32>
    %239 = vector.shape_cast %238 : vector<1x1x384xf32> to vector<384xf32>
    %240 = vector.shape_cast %237 : vector<384xf32> to vector<1x1x384xf32>
    tpu.vector_store %arg3[%c0_270, %c22, %c0_271], %240 {strides = array<i32>} : memref<1x81x384xf32, #tpu.memory_space<vmem>>, vector<1x1x384xf32>,
    %c0_272 = arith.constant 0 : index
    %c53 = arith.constant 53 : index
    %241 = vector.load %arg5[%c0_272, %c53] : memref<4x640xf32, #tpu.memory_space<vmem>>, vector<4x384xf32>
    %242 = arith.mulf %102, %241 : vector<4x384xf32>
    %cst_273 = arith.constant dense<0.000000e+00> : vector<384xf32>
    %243 = vector.multi_reduction <add>, %242, %cst_273 [0] : vector<4x384xf32> to vector<384xf32>
    %c0_274 = arith.constant 0 : index
    %c23 = arith.constant 23 : index
    %c0_275 = arith.constant 0 : index
    %244 = vector.load %arg3[%c0_274, %c23, %c0_275] : memref<1x81x384xf32, #tpu.memory_space<vmem>>, vector<1x1x384xf32>
    %245 = vector.shape_cast %244 : vector<1x1x384xf32> to vector<384xf32>
    %246 = vector.shape_cast %243 : vector<384xf32> to vector<1x1x384xf32>
    tpu.vector_store %arg3[%c0_274, %c23, %c0_275], %246 {strides = array<i32>} : memref<1x81x384xf32, #tpu.memory_space<vmem>>, vector<1x1x384xf32>,
    %c0_276 = arith.constant 0 : index
    %c54 = arith.constant 54 : index
    %247 = vector.load %arg5[%c0_276, %c54] : memref<4x640xf32, #tpu.memory_space<vmem>>, vector<4x384xf32>
    %248 = arith.mulf %102, %247 : vector<4x384xf32>
    %cst_277 = arith.constant dense<0.000000e+00> : vector<384xf32>
    %249 = vector.multi_reduction <add>, %248, %cst_277 [0] : vector<4x384xf32> to vector<384xf32>
    %c0_278 = arith.constant 0 : index
    %c24_279 = arith.constant 24 : index
    %c0_280 = arith.constant 0 : index
    %250 = vector.load %arg3[%c0_278, %c24_279, %c0_280] : memref<1x81x384xf32, #tpu.memory_space<vmem>>, vector<1x1x384xf32>
    %251 = vector.shape_cast %250 : vector<1x1x384xf32> to vector<384xf32>
    %252 = vector.shape_cast %249 : vector<384xf32> to vector<1x1x384xf32>
    tpu.vector_store %arg3[%c0_278, %c24_279, %c0_280], %252 {strides = array<i32>} : memref<1x81x384xf32, #tpu.memory_space<vmem>>, vector<1x1x384xf32>,
    %c0_281 = arith.constant 0 : index
    %c55 = arith.constant 55 : index
    %253 = vector.load %arg5[%c0_281, %c55] : memref<4x640xf32, #tpu.memory_space<vmem>>, vector<4x384xf32>
    %254 = arith.mulf %102, %253 : vector<4x384xf32>
    %cst_282 = arith.constant dense<0.000000e+00> : vector<384xf32>
    %255 = vector.multi_reduction <add>, %254, %cst_282 [0] : vector<4x384xf32> to vector<384xf32>
    %c0_283 = arith.constant 0 : index
    %c25_284 = arith.constant 25 : index
    %c0_285 = arith.constant 0 : index
    %256 = vector.load %arg3[%c0_283, %c25_284, %c0_285] : memref<1x81x384xf32, #tpu.memory_space<vmem>>, vector<1x1x384xf32>
    %257 = vector.shape_cast %256 : vector<1x1x384xf32> to vector<384xf32>
    %258 = vector.shape_cast %255 : vector<384xf32> to vector<1x1x384xf32>
    tpu.vector_store %arg3[%c0_283, %c25_284, %c0_285], %258 {strides = array<i32>} : memref<1x81x384xf32, #tpu.memory_space<vmem>>, vector<1x1x384xf32>,
    %c0_286 = arith.constant 0 : index
    %c56 = arith.constant 56 : index
    %259 = vector.load %arg5[%c0_286, %c56] : memref<4x640xf32, #tpu.memory_space<vmem>>, vector<4x384xf32>
    %260 = arith.mulf %102, %259 : vector<4x384xf32>
    %cst_287 = arith.constant dense<0.000000e+00> : vector<384xf32>
    %261 = vector.multi_reduction <add>, %260, %cst_287 [0] : vector<4x384xf32> to vector<384xf32>
    %c0_288 = arith.constant 0 : index
    %c26_289 = arith.constant 26 : index
    %c0_290 = arith.constant 0 : index
    %262 = vector.load %arg3[%c0_288, %c26_289, %c0_290] : memref<1x81x384xf32, #tpu.memory_space<vmem>>, vector<1x1x384xf32>
    %263 = vector.shape_cast %262 : vector<1x1x384xf32> to vector<384xf32>
    %264 = vector.shape_cast %261 : vector<384xf32> to vector<1x1x384xf32>
    tpu.vector_store %arg3[%c0_288, %c26_289, %c0_290], %264 {strides = array<i32>} : memref<1x81x384xf32, #tpu.memory_space<vmem>>, vector<1x1x384xf32>,
    %c0_291 = arith.constant 0 : index
    %c72_292 = arith.constant 72 : index
    %265 = vector.load %arg5[%c0_291, %c72_292] : memref<4x640xf32, #tpu.memory_space<vmem>>, vector<4x384xf32>
    %266 = arith.mulf %102, %265 : vector<4x384xf32>
    %cst_293 = arith.constant dense<0.000000e+00> : vector<384xf32>
    %267 = vector.multi_reduction <add>, %266, %cst_293 [0] : vector<4x384xf32> to vector<384xf32>
    %c0_294 = arith.constant 0 : index
    %c27_295 = arith.constant 27 : index
    %c0_296 = arith.constant 0 : index
    %268 = vector.load %arg3[%c0_294, %c27_295, %c0_296] : memref<1x81x384xf32, #tpu.memory_space<vmem>>, vector<1x1x384xf32>
    %269 = vector.shape_cast %268 : vector<1x1x384xf32> to vector<384xf32>
    %270 = vector.shape_cast %267 : vector<384xf32> to vector<1x1x384xf32>
    tpu.vector_store %arg3[%c0_294, %c27_295, %c0_296], %270 {strides = array<i32>} : memref<1x81x384xf32, #tpu.memory_space<vmem>>, vector<1x1x384xf32>,
    %c0_297 = arith.constant 0 : index
    %c73 = arith.constant 73 : index
    %271 = vector.load %arg5[%c0_297, %c73] : memref<4x640xf32, #tpu.memory_space<vmem>>, vector<4x384xf32>
    %272 = arith.mulf %102, %271 : vector<4x384xf32>
    %cst_298 = arith.constant dense<0.000000e+00> : vector<384xf32>
    %273 = vector.multi_reduction <add>, %272, %cst_298 [0] : vector<4x384xf32> to vector<384xf32>
    %c0_299 = arith.constant 0 : index
    %c28_300 = arith.constant 28 : index
    %c0_301 = arith.constant 0 : index
    %274 = vector.load %arg3[%c0_299, %c28_300, %c0_301] : memref<1x81x384xf32, #tpu.memory_space<vmem>>, vector<1x1x384xf32>
    %275 = vector.shape_cast %274 : vector<1x1x384xf32> to vector<384xf32>
    %276 = vector.shape_cast %273 : vector<384xf32> to vector<1x1x384xf32>
    tpu.vector_store %arg3[%c0_299, %c28_300, %c0_301], %276 {strides = array<i32>} : memref<1x81x384xf32, #tpu.memory_space<vmem>>, vector<1x1x384xf32>,
    %c0_302 = arith.constant 0 : index
    %c74 = arith.constant 74 : index
    %277 = vector.load %arg5[%c0_302, %c74] : memref<4x640xf32, #tpu.memory_space<vmem>>, vector<4x384xf32>
    %278 = arith.mulf %102, %277 : vector<4x384xf32>
    %cst_303 = arith.constant dense<0.000000e+00> : vector<384xf32>
    %279 = vector.multi_reduction <add>, %278, %cst_303 [0] : vector<4x384xf32> to vector<384xf32>
    %c0_304 = arith.constant 0 : index
    %c29_305 = arith.constant 29 : index
    %c0_306 = arith.constant 0 : index
    %280 = vector.load %arg3[%c0_304, %c29_305, %c0_306] : memref<1x81x384xf32, #tpu.memory_space<vmem>>, vector<1x1x384xf32>
    %281 = vector.shape_cast %280 : vector<1x1x384xf32> to vector<384xf32>
    %282 = vector.shape_cast %279 : vector<384xf32> to vector<1x1x384xf32>
    tpu.vector_store %arg3[%c0_304, %c29_305, %c0_306], %282 {strides = array<i32>} : memref<1x81x384xf32, #tpu.memory_space<vmem>>, vector<1x1x384xf32>,
    %c0_307 = arith.constant 0 : index
    %c75 = arith.constant 75 : index
    %283 = vector.load %arg5[%c0_307, %c75] : memref<4x640xf32, #tpu.memory_space<vmem>>, vector<4x384xf32>
    %284 = arith.mulf %102, %283 : vector<4x384xf32>
    %cst_308 = arith.constant dense<0.000000e+00> : vector<384xf32>
    %285 = vector.multi_reduction <add>, %284, %cst_308 [0] : vector<4x384xf32> to vector<384xf32>
    %c0_309 = arith.constant 0 : index
    %c30_310 = arith.constant 30 : index
    %c0_311 = arith.constant 0 : index
    %286 = vector.load %arg3[%c0_309, %c30_310, %c0_311] : memref<1x81x384xf32, #tpu.memory_space<vmem>>, vector<1x1x384xf32>
    %287 = vector.shape_cast %286 : vector<1x1x384xf32> to vector<384xf32>
    %288 = vector.shape_cast %285 : vector<384xf32> to vector<1x1x384xf32>
    tpu.vector_store %arg3[%c0_309, %c30_310, %c0_311], %288 {strides = array<i32>} : memref<1x81x384xf32, #tpu.memory_space<vmem>>, vector<1x1x384xf32>,
    %c0_312 = arith.constant 0 : index
    %c76 = arith.constant 76 : index
    %289 = vector.load %arg5[%c0_312, %c76] : memref<4x640xf32, #tpu.memory_space<vmem>>, vector<4x384xf32>
    %290 = arith.mulf %102, %289 : vector<4x384xf32>
    %cst_313 = arith.constant dense<0.000000e+00> : vector<384xf32>
    %291 = vector.multi_reduction <add>, %290, %cst_313 [0] : vector<4x384xf32> to vector<384xf32>
    %c0_314 = arith.constant 0 : index
    %c31_315 = arith.constant 31 : index
    %c0_316 = arith.constant 0 : index
    %292 = vector.load %arg3[%c0_314, %c31_315, %c0_316] : memref<1x81x384xf32, #tpu.memory_space<vmem>>, vector<1x1x384xf32>
    %293 = vector.shape_cast %292 : vector<1x1x384xf32> to vector<384xf32>
    %294 = vector.shape_cast %291 : vector<384xf32> to vector<1x1x384xf32>
    tpu.vector_store %arg3[%c0_314, %c31_315, %c0_316], %294 {strides = array<i32>} : memref<1x81x384xf32, #tpu.memory_space<vmem>>, vector<1x1x384xf32>,
    %c0_317 = arith.constant 0 : index
    %c77 = arith.constant 77 : index
    %295 = vector.load %arg5[%c0_317, %c77] : memref<4x640xf32, #tpu.memory_space<vmem>>, vector<4x384xf32>
    %296 = arith.mulf %102, %295 : vector<4x384xf32>
    %cst_318 = arith.constant dense<0.000000e+00> : vector<384xf32>
    %297 = vector.multi_reduction <add>, %296, %cst_318 [0] : vector<4x384xf32> to vector<384xf32>
    %c0_319 = arith.constant 0 : index
    %c32_320 = arith.constant 32 : index
    %c0_321 = arith.constant 0 : index
    %298 = vector.load %arg3[%c0_319, %c32_320, %c0_321] : memref<1x81x384xf32, #tpu.memory_space<vmem>>, vector<1x1x384xf32>
    %299 = vector.shape_cast %298 : vector<1x1x384xf32> to vector<384xf32>
    %300 = vector.shape_cast %297 : vector<384xf32> to vector<1x1x384xf32>
    tpu.vector_store %arg3[%c0_319, %c32_320, %c0_321], %300 {strides = array<i32>} : memref<1x81x384xf32, #tpu.memory_space<vmem>>, vector<1x1x384xf32>,
    %c0_322 = arith.constant 0 : index
    %c78 = arith.constant 78 : index
    %301 = vector.load %arg5[%c0_322, %c78] : memref<4x640xf32, #tpu.memory_space<vmem>>, vector<4x384xf32>
    %302 = arith.mulf %102, %301 : vector<4x384xf32>
    %cst_323 = arith.constant dense<0.000000e+00> : vector<384xf32>
    %303 = vector.multi_reduction <add>, %302, %cst_323 [0] : vector<4x384xf32> to vector<384xf32>
    %c0_324 = arith.constant 0 : index
    %c33 = arith.constant 33 : index
    %c0_325 = arith.constant 0 : index
    %304 = vector.load %arg3[%c0_324, %c33, %c0_325] : memref<1x81x384xf32, #tpu.memory_space<vmem>>, vector<1x1x384xf32>
    %305 = vector.shape_cast %304 : vector<1x1x384xf32> to vector<384xf32>
    %306 = vector.shape_cast %303 : vector<384xf32> to vector<1x1x384xf32>
    tpu.vector_store %arg3[%c0_324, %c33, %c0_325], %306 {strides = array<i32>} : memref<1x81x384xf32, #tpu.memory_space<vmem>>, vector<1x1x384xf32>,
    %c0_326 = arith.constant 0 : index
    %c79 = arith.constant 79 : index
    %307 = vector.load %arg5[%c0_326, %c79] : memref<4x640xf32, #tpu.memory_space<vmem>>, vector<4x384xf32>
    %308 = arith.mulf %102, %307 : vector<4x384xf32>
    %cst_327 = arith.constant dense<0.000000e+00> : vector<384xf32>
    %309 = vector.multi_reduction <add>, %308, %cst_327 [0] : vector<4x384xf32> to vector<384xf32>
    %c0_328 = arith.constant 0 : index
    %c34 = arith.constant 34 : index
    %c0_329 = arith.constant 0 : index
    %310 = vector.load %arg3[%c0_328, %c34, %c0_329] : memref<1x81x384xf32, #tpu.memory_space<vmem>>, vector<1x1x384xf32>
    %311 = vector.shape_cast %310 : vector<1x1x384xf32> to vector<384xf32>
    %312 = vector.shape_cast %309 : vector<384xf32> to vector<1x1x384xf32>
    tpu.vector_store %arg3[%c0_328, %c34, %c0_329], %312 {strides = array<i32>} : memref<1x81x384xf32, #tpu.memory_space<vmem>>, vector<1x1x384xf32>,
    %c0_330 = arith.constant 0 : index
    %c80 = arith.constant 80 : index
    %313 = vector.load %arg5[%c0_330, %c80] : memref<4x640xf32, #tpu.memory_space<vmem>>, vector<4x384xf32>
    %314 = arith.mulf %102, %313 : vector<4x384xf32>
    %cst_331 = arith.constant dense<0.000000e+00> : vector<384xf32>
    %315 = vector.multi_reduction <add>, %314, %cst_331 [0] : vector<4x384xf32> to vector<384xf32>
    %c0_332 = arith.constant 0 : index
    %c35 = arith.constant 35 : index
    %c0_333 = arith.constant 0 : index
    %316 = vector.load %arg3[%c0_332, %c35, %c0_333] : memref<1x81x384xf32, #tpu.memory_space<vmem>>, vector<1x1x384xf32>
    %317 = vector.shape_cast %316 : vector<1x1x384xf32> to vector<384xf32>
    %318 = vector.shape_cast %315 : vector<384xf32> to vector<1x1x384xf32>
    tpu.vector_store %arg3[%c0_332, %c35, %c0_333], %318 {strides = array<i32>} : memref<1x81x384xf32, #tpu.memory_space<vmem>>, vector<1x1x384xf32>,
    %c0_334 = arith.constant 0 : index
    %c96_335 = arith.constant 96 : index
    %319 = vector.load %arg5[%c0_334, %c96_335] : memref<4x640xf32, #tpu.memory_space<vmem>>, vector<4x384xf32>
    %320 = arith.mulf %102, %319 : vector<4x384xf32>
    %cst_336 = arith.constant dense<0.000000e+00> : vector<384xf32>
    %321 = vector.multi_reduction <add>, %320, %cst_336 [0] : vector<4x384xf32> to vector<384xf32>
    %c0_337 = arith.constant 0 : index
    %c36 = arith.constant 36 : index
    %c0_338 = arith.constant 0 : index
    %322 = vector.load %arg3[%c0_337, %c36, %c0_338] : memref<1x81x384xf32, #tpu.memory_space<vmem>>, vector<1x1x384xf32>
    %323 = vector.shape_cast %322 : vector<1x1x384xf32> to vector<384xf32>
    %324 = vector.shape_cast %321 : vector<384xf32> to vector<1x1x384xf32>
    tpu.vector_store %arg3[%c0_337, %c36, %c0_338], %324 {strides = array<i32>} : memref<1x81x384xf32, #tpu.memory_space<vmem>>, vector<1x1x384xf32>,
    %c0_339 = arith.constant 0 : index
    %c97 = arith.constant 97 : index
    %325 = vector.load %arg5[%c0_339, %c97] : memref<4x640xf32, #tpu.memory_space<vmem>>, vector<4x384xf32>
    %326 = arith.mulf %102, %325 : vector<4x384xf32>
    %cst_340 = arith.constant dense<0.000000e+00> : vector<384xf32>
    %327 = vector.multi_reduction <add>, %326, %cst_340 [0] : vector<4x384xf32> to vector<384xf32>
    %c0_341 = arith.constant 0 : index
    %c37 = arith.constant 37 : index
    %c0_342 = arith.constant 0 : index
    %328 = vector.load %arg3[%c0_341, %c37, %c0_342] : memref<1x81x384xf32, #tpu.memory_space<vmem>>, vector<1x1x384xf32>
    %329 = vector.shape_cast %328 : vector<1x1x384xf32> to vector<384xf32>
    %330 = vector.shape_cast %327 : vector<384xf32> to vector<1x1x384xf32>
    tpu.vector_store %arg3[%c0_341, %c37, %c0_342], %330 {strides = array<i32>} : memref<1x81x384xf32, #tpu.memory_space<vmem>>, vector<1x1x384xf32>,
    %c0_343 = arith.constant 0 : index
    %c98 = arith.constant 98 : index
    %331 = vector.load %arg5[%c0_343, %c98] : memref<4x640xf32, #tpu.memory_space<vmem>>, vector<4x384xf32>
    %332 = arith.mulf %102, %331 : vector<4x384xf32>
    %cst_344 = arith.constant dense<0.000000e+00> : vector<384xf32>
    %333 = vector.multi_reduction <add>, %332, %cst_344 [0] : vector<4x384xf32> to vector<384xf32>
    %c0_345 = arith.constant 0 : index
    %c38 = arith.constant 38 : index
    %c0_346 = arith.constant 0 : index
    %334 = vector.load %arg3[%c0_345, %c38, %c0_346] : memref<1x81x384xf32, #tpu.memory_space<vmem>>, vector<1x1x384xf32>
    %335 = vector.shape_cast %334 : vector<1x1x384xf32> to vector<384xf32>
    %336 = vector.shape_cast %333 : vector<384xf32> to vector<1x1x384xf32>
    tpu.vector_store %arg3[%c0_345, %c38, %c0_346], %336 {strides = array<i32>} : memref<1x81x384xf32, #tpu.memory_space<vmem>>, vector<1x1x384xf32>,
    %c0_347 = arith.constant 0 : index
    %c99 = arith.constant 99 : index
    %337 = vector.load %arg5[%c0_347, %c99] : memref<4x640xf32, #tpu.memory_space<vmem>>, vector<4x384xf32>
    %338 = arith.mulf %102, %337 : vector<4x384xf32>
    %cst_348 = arith.constant dense<0.000000e+00> : vector<384xf32>
    %339 = vector.multi_reduction <add>, %338, %cst_348 [0] : vector<4x384xf32> to vector<384xf32>
    %c0_349 = arith.constant 0 : index
    %c39 = arith.constant 39 : index
    %c0_350 = arith.constant 0 : index
    %340 = vector.load %arg3[%c0_349, %c39, %c0_350] : memref<1x81x384xf32, #tpu.memory_space<vmem>>, vector<1x1x384xf32>
    %341 = vector.shape_cast %340 : vector<1x1x384xf32> to vector<384xf32>
    %342 = vector.shape_cast %339 : vector<384xf32> to vector<1x1x384xf32>
    tpu.vector_store %arg3[%c0_349, %c39, %c0_350], %342 {strides = array<i32>} : memref<1x81x384xf32, #tpu.memory_space<vmem>>, vector<1x1x384xf32>,
    %c0_351 = arith.constant 0 : index
    %c100_352 = arith.constant 100 : index
    %343 = vector.load %arg5[%c0_351, %c100_352] : memref<4x640xf32, #tpu.memory_space<vmem>>, vector<4x384xf32>
    %344 = arith.mulf %102, %343 : vector<4x384xf32>
    %cst_353 = arith.constant dense<0.000000e+00> : vector<384xf32>
    %345 = vector.multi_reduction <add>, %344, %cst_353 [0] : vector<4x384xf32> to vector<384xf32>
    %c0_354 = arith.constant 0 : index
    %c40 = arith.constant 40 : index
    %c0_355 = arith.constant 0 : index
    %346 = vector.load %arg3[%c0_354, %c40, %c0_355] : memref<1x81x384xf32, #tpu.memory_space<vmem>>, vector<1x1x384xf32>
    %347 = vector.shape_cast %346 : vector<1x1x384xf32> to vector<384xf32>
    %348 = vector.shape_cast %345 : vector<384xf32> to vector<1x1x384xf32>
    tpu.vector_store %arg3[%c0_354, %c40, %c0_355], %348 {strides = array<i32>} : memref<1x81x384xf32, #tpu.memory_space<vmem>>, vector<1x1x384xf32>,
    %c0_356 = arith.constant 0 : index
    %c101 = arith.constant 101 : index
    %349 = vector.load %arg5[%c0_356, %c101] : memref<4x640xf32, #tpu.memory_space<vmem>>, vector<4x384xf32>
    %350 = arith.mulf %102, %349 : vector<4x384xf32>
    %cst_357 = arith.constant dense<0.000000e+00> : vector<384xf32>
    %351 = vector.multi_reduction <add>, %350, %cst_357 [0] : vector<4x384xf32> to vector<384xf32>
    %c0_358 = arith.constant 0 : index
    %c41 = arith.constant 41 : index
    %c0_359 = arith.constant 0 : index
    %352 = vector.load %arg3[%c0_358, %c41, %c0_359] : memref<1x81x384xf32, #tpu.memory_space<vmem>>, vector<1x1x384xf32>
    %353 = vector.shape_cast %352 : vector<1x1x384xf32> to vector<384xf32>
    %354 = vector.shape_cast %351 : vector<384xf32> to vector<1x1x384xf32>
    tpu.vector_store %arg3[%c0_358, %c41, %c0_359], %354 {strides = array<i32>} : memref<1x81x384xf32, #tpu.memory_space<vmem>>, vector<1x1x384xf32>,
    %c0_360 = arith.constant 0 : index
    %c102 = arith.constant 102 : index
    %355 = vector.load %arg5[%c0_360, %c102] : memref<4x640xf32, #tpu.memory_space<vmem>>, vector<4x384xf32>
    %356 = arith.mulf %102, %355 : vector<4x384xf32>
    %cst_361 = arith.constant dense<0.000000e+00> : vector<384xf32>
    %357 = vector.multi_reduction <add>, %356, %cst_361 [0] : vector<4x384xf32> to vector<384xf32>
    %c0_362 = arith.constant 0 : index
    %c42 = arith.constant 42 : index
    %c0_363 = arith.constant 0 : index
    %358 = vector.load %arg3[%c0_362, %c42, %c0_363] : memref<1x81x384xf32, #tpu.memory_space<vmem>>, vector<1x1x384xf32>
    %359 = vector.shape_cast %358 : vector<1x1x384xf32> to vector<384xf32>
    %360 = vector.shape_cast %357 : vector<384xf32> to vector<1x1x384xf32>
    tpu.vector_store %arg3[%c0_362, %c42, %c0_363], %360 {strides = array<i32>} : memref<1x81x384xf32, #tpu.memory_space<vmem>>, vector<1x1x384xf32>,
    %c0_364 = arith.constant 0 : index
    %c103 = arith.constant 103 : index
    %361 = vector.load %arg5[%c0_364, %c103] : memref<4x640xf32, #tpu.memory_space<vmem>>, vector<4x384xf32>
    %362 = arith.mulf %102, %361 : vector<4x384xf32>
    %cst_365 = arith.constant dense<0.000000e+00> : vector<384xf32>
    %363 = vector.multi_reduction <add>, %362, %cst_365 [0] : vector<4x384xf32> to vector<384xf32>
    %c0_366 = arith.constant 0 : index
    %c43 = arith.constant 43 : index
    %c0_367 = arith.constant 0 : index
    %364 = vector.load %arg3[%c0_366, %c43, %c0_367] : memref<1x81x384xf32, #tpu.memory_space<vmem>>, vector<1x1x384xf32>
    %365 = vector.shape_cast %364 : vector<1x1x384xf32> to vector<384xf32>
    %366 = vector.shape_cast %363 : vector<384xf32> to vector<1x1x384xf32>
    tpu.vector_store %arg3[%c0_366, %c43, %c0_367], %366 {strides = array<i32>} : memref<1x81x384xf32, #tpu.memory_space<vmem>>, vector<1x1x384xf32>,
    %c0_368 = arith.constant 0 : index
    %c104 = arith.constant 104 : index
    %367 = vector.load %arg5[%c0_368, %c104] : memref<4x640xf32, #tpu.memory_space<vmem>>, vector<4x384xf32>
    %368 = arith.mulf %102, %367 : vector<4x384xf32>
    %cst_369 = arith.constant dense<0.000000e+00> : vector<384xf32>
    %369 = vector.multi_reduction <add>, %368, %cst_369 [0] : vector<4x384xf32> to vector<384xf32>
    %c0_370 = arith.constant 0 : index
    %c44 = arith.constant 44 : index
    %c0_371 = arith.constant 0 : index
    %370 = vector.load %arg3[%c0_370, %c44, %c0_371] : memref<1x81x384xf32, #tpu.memory_space<vmem>>, vector<1x1x384xf32>
    %371 = vector.shape_cast %370 : vector<1x1x384xf32> to vector<384xf32>
    %372 = vector.shape_cast %369 : vector<384xf32> to vector<1x1x384xf32>
    tpu.vector_store %arg3[%c0_370, %c44, %c0_371], %372 {strides = array<i32>} : memref<1x81x384xf32, #tpu.memory_space<vmem>>, vector<1x1x384xf32>,
    %c0_372 = arith.constant 0 : index
    %c120_373 = arith.constant 120 : index
    %373 = vector.load %arg5[%c0_372, %c120_373] : memref<4x640xf32, #tpu.memory_space<vmem>>, vector<4x384xf32>
    %374 = arith.mulf %102, %373 : vector<4x384xf32>
    %cst_374 = arith.constant dense<0.000000e+00> : vector<384xf32>
    %375 = vector.multi_reduction <add>, %374, %cst_374 [0] : vector<4x384xf32> to vector<384xf32>
    %c0_375 = arith.constant 0 : index
    %c45 = arith.constant 45 : index
    %c0_376 = arith.constant 0 : index
    %376 = vector.load %arg3[%c0_375, %c45, %c0_376] : memref<1x81x384xf32, #tpu.memory_space<vmem>>, vector<1x1x384xf32>
    %377 = vector.shape_cast %376 : vector<1x1x384xf32> to vector<384xf32>
    %378 = vector.shape_cast %375 : vector<384xf32> to vector<1x1x384xf32>
    tpu.vector_store %arg3[%c0_375, %c45, %c0_376], %378 {strides = array<i32>} : memref<1x81x384xf32, #tpu.memory_space<vmem>>, vector<1x1x384xf32>,
    %c0_377 = arith.constant 0 : index
    %c121 = arith.constant 121 : index
    %379 = vector.load %arg5[%c0_377, %c121] : memref<4x640xf32, #tpu.memory_space<vmem>>, vector<4x384xf32>
    %380 = arith.mulf %102, %379 : vector<4x384xf32>
    %cst_378 = arith.constant dense<0.000000e+00> : vector<384xf32>
    %381 = vector.multi_reduction <add>, %380, %cst_378 [0] : vector<4x384xf32> to vector<384xf32>
    %c0_379 = arith.constant 0 : index
    %c46 = arith.constant 46 : index
    %c0_380 = arith.constant 0 : index
    %382 = vector.load %arg3[%c0_379, %c46, %c0_380] : memref<1x81x384xf32, #tpu.memory_space<vmem>>, vector<1x1x384xf32>
    %383 = vector.shape_cast %382 : vector<1x1x384xf32> to vector<384xf32>
    %384 = vector.shape_cast %381 : vector<384xf32> to vector<1x1x384xf32>
    tpu.vector_store %arg3[%c0_379, %c46, %c0_380], %384 {strides = array<i32>} : memref<1x81x384xf32, #tpu.memory_space<vmem>>, vector<1x1x384xf32>,
    %c0_381 = arith.constant 0 : index
    %c122 = arith.constant 122 : index
    %385 = vector.load %arg5[%c0_381, %c122] : memref<4x640xf32, #tpu.memory_space<vmem>>, vector<4x384xf32>
    %386 = arith.mulf %102, %385 : vector<4x384xf32>
    %cst_382 = arith.constant dense<0.000000e+00> : vector<384xf32>
    %387 = vector.multi_reduction <add>, %386, %cst_382 [0] : vector<4x384xf32> to vector<384xf32>
    %c0_383 = arith.constant 0 : index
    %c47 = arith.constant 47 : index
    %c0_384 = arith.constant 0 : index
    %388 = vector.load %arg3[%c0_383, %c47, %c0_384] : memref<1x81x384xf32, #tpu.memory_space<vmem>>, vector<1x1x384xf32>
    %389 = vector.shape_cast %388 : vector<1x1x384xf32> to vector<384xf32>
    %390 = vector.shape_cast %387 : vector<384xf32> to vector<1x1x384xf32>
    tpu.vector_store %arg3[%c0_383, %c47, %c0_384], %390 {strides = array<i32>} : memref<1x81x384xf32, #tpu.memory_space<vmem>>, vector<1x1x384xf32>,
    %c0_385 = arith.constant 0 : index
    %c123 = arith.constant 123 : index
    %391 = vector.load %arg5[%c0_385, %c123] : memref<4x640xf32, #tpu.memory_space<vmem>>, vector<4x384xf32>
    %392 = arith.mulf %102, %391 : vector<4x384xf32>
    %cst_386 = arith.constant dense<0.000000e+00> : vector<384xf32>
    %393 = vector.multi_reduction <add>, %392, %cst_386 [0] : vector<4x384xf32> to vector<384xf32>
    %c0_387 = arith.constant 0 : index
    %c48_388 = arith.constant 48 : index
    %c0_389 = arith.constant 0 : index
    %394 = vector.load %arg3[%c0_387, %c48_388, %c0_389] : memref<1x81x384xf32, #tpu.memory_space<vmem>>, vector<1x1x384xf32>
    %395 = vector.shape_cast %394 : vector<1x1x384xf32> to vector<384xf32>
    %396 = vector.shape_cast %393 : vector<384xf32> to vector<1x1x384xf32>
    tpu.vector_store %arg3[%c0_387, %c48_388, %c0_389], %396 {strides = array<i32>} : memref<1x81x384xf32, #tpu.memory_space<vmem>>, vector<1x1x384xf32>,
    %c0_390 = arith.constant 0 : index
    %c124_391 = arith.constant 124 : index
    %397 = vector.load %arg5[%c0_390, %c124_391] : memref<4x640xf32, #tpu.memory_space<vmem>>, vector<4x384xf32>
    %398 = arith.mulf %102, %397 : vector<4x384xf32>
    %cst_392 = arith.constant dense<0.000000e+00> : vector<384xf32>
    %399 = vector.multi_reduction <add>, %398, %cst_392 [0] : vector<4x384xf32> to vector<384xf32>
    %c0_393 = arith.constant 0 : index
    %c49_394 = arith.constant 49 : index
    %c0_395 = arith.constant 0 : index
    %400 = vector.load %arg3[%c0_393, %c49_394, %c0_395] : memref<1x81x384xf32, #tpu.memory_space<vmem>>, vector<1x1x384xf32>
    %401 = vector.shape_cast %400 : vector<1x1x384xf32> to vector<384xf32>
    %402 = vector.shape_cast %399 : vector<384xf32> to vector<1x1x384xf32>
    tpu.vector_store %arg3[%c0_393, %c49_394, %c0_395], %402 {strides = array<i32>} : memref<1x81x384xf32, #tpu.memory_space<vmem>>, vector<1x1x384xf32>,
    %c0_396 = arith.constant 0 : index
    %c125 = arith.constant 125 : index
    %403 = vector.load %arg5[%c0_396, %c125] : memref<4x640xf32, #tpu.memory_space<vmem>>, vector<4x384xf32>
    %404 = arith.mulf %102, %403 : vector<4x384xf32>
    %cst_397 = arith.constant dense<0.000000e+00> : vector<384xf32>
    %405 = vector.multi_reduction <add>, %404, %cst_397 [0] : vector<4x384xf32> to vector<384xf32>
    %c0_398 = arith.constant 0 : index
    %c50_399 = arith.constant 50 : index
    %c0_400 = arith.constant 0 : index
    %406 = vector.load %arg3[%c0_398, %c50_399, %c0_400] : memref<1x81x384xf32, #tpu.memory_space<vmem>>, vector<1x1x384xf32>
    %407 = vector.shape_cast %406 : vector<1x1x384xf32> to vector<384xf32>
    %408 = vector.shape_cast %405 : vector<384xf32> to vector<1x1x384xf32>
    tpu.vector_store %arg3[%c0_398, %c50_399, %c0_400], %408 {strides = array<i32>} : memref<1x81x384xf32, #tpu.memory_space<vmem>>, vector<1x1x384xf32>,
    %c0_401 = arith.constant 0 : index
    %c126 = arith.constant 126 : index
    %409 = vector.load %arg5[%c0_401, %c126] : memref<4x640xf32, #tpu.memory_space<vmem>>, vector<4x384xf32>
    %410 = arith.mulf %102, %409 : vector<4x384xf32>
    %cst_402 = arith.constant dense<0.000000e+00> : vector<384xf32>
    %411 = vector.multi_reduction <add>, %410, %cst_402 [0] : vector<4x384xf32> to vector<384xf32>
    %c0_403 = arith.constant 0 : index
    %c51_404 = arith.constant 51 : index
    %c0_405 = arith.constant 0 : index
    %412 = vector.load %arg3[%c0_403, %c51_404, %c0_405] : memref<1x81x384xf32, #tpu.memory_space<vmem>>, vector<1x1x384xf32>
    %413 = vector.shape_cast %412 : vector<1x1x384xf32> to vector<384xf32>
    %414 = vector.shape_cast %411 : vector<384xf32> to vector<1x1x384xf32>
    tpu.vector_store %arg3[%c0_403, %c51_404, %c0_405], %414 {strides = array<i32>} : memref<1x81x384xf32, #tpu.memory_space<vmem>>, vector<1x1x384xf32>,
    %c0_406 = arith.constant 0 : index
    %c127 = arith.constant 127 : index
    %415 = vector.load %arg5[%c0_406, %c127] : memref<4x640xf32, #tpu.memory_space<vmem>>, vector<4x384xf32>
    %416 = arith.mulf %102, %415 : vector<4x384xf32>
    %cst_407 = arith.constant dense<0.000000e+00> : vector<384xf32>
    %417 = vector.multi_reduction <add>, %416, %cst_407 [0] : vector<4x384xf32> to vector<384xf32>
    %c0_408 = arith.constant 0 : index
    %c52_409 = arith.constant 52 : index
    %c0_410 = arith.constant 0 : index
    %418 = vector.load %arg3[%c0_408, %c52_409, %c0_410] : memref<1x81x384xf32, #tpu.memory_space<vmem>>, vector<1x1x384xf32>
    %419 = vector.shape_cast %418 : vector<1x1x384xf32> to vector<384xf32>
    %420 = vector.shape_cast %417 : vector<384xf32> to vector<1x1x384xf32>
    tpu.vector_store %arg3[%c0_408, %c52_409, %c0_410], %420 {strides = array<i32>} : memref<1x81x384xf32, #tpu.memory_space<vmem>>, vector<1x1x384xf32>,
    %c0_411 = arith.constant 0 : index
    %c128 = arith.constant 128 : index
    %421 = vector.load %arg5[%c0_411, %c128] : memref<4x640xf32, #tpu.memory_space<vmem>>, vector<4x384xf32>
    %422 = arith.mulf %102, %421 : vector<4x384xf32>
    %cst_412 = arith.constant dense<0.000000e+00> : vector<384xf32>
    %423 = vector.multi_reduction <add>, %422, %cst_412 [0] : vector<4x384xf32> to vector<384xf32>
    %c0_413 = arith.constant 0 : index
    %c53_414 = arith.constant 53 : index
    %c0_415 = arith.constant 0 : index
    %424 = vector.load %arg3[%c0_413, %c53_414, %c0_415] : memref<1x81x384xf32, #tpu.memory_space<vmem>>, vector<1x1x384xf32>
    %425 = vector.shape_cast %424 : vector<1x1x384xf32> to vector<384xf32>
    %426 = vector.shape_cast %423 : vector<384xf32> to vector<1x1x384xf32>
    tpu.vector_store %arg3[%c0_413, %c53_414, %c0_415], %426 {strides = array<i32>} : memref<1x81x384xf32, #tpu.memory_space<vmem>>, vector<1x1x384xf32>,
    %c0_416 = arith.constant 0 : index
    %c144_417 = arith.constant 144 : index
    %427 = vector.load %arg5[%c0_416, %c144_417] : memref<4x640xf32, #tpu.memory_space<vmem>>, vector<4x384xf32>
    %428 = arith.mulf %102, %427 : vector<4x384xf32>
    %cst_418 = arith.constant dense<0.000000e+00> : vector<384xf32>
    %429 = vector.multi_reduction <add>, %428, %cst_418 [0] : vector<4x384xf32> to vector<384xf32>
    %c0_419 = arith.constant 0 : index
    %c54_420 = arith.constant 54 : index
    %c0_421 = arith.constant 0 : index
    %430 = vector.load %arg3[%c0_419, %c54_420, %c0_421] : memref<1x81x384xf32, #tpu.memory_space<vmem>>, vector<1x1x384xf32>
    %431 = vector.shape_cast %430 : vector<1x1x384xf32> to vector<384xf32>
    %432 = vector.shape_cast %429 : vector<384xf32> to vector<1x1x384xf32>
    tpu.vector_store %arg3[%c0_419, %c54_420, %c0_421], %432 {strides = array<i32>} : memref<1x81x384xf32, #tpu.memory_space<vmem>>, vector<1x1x384xf32>,
    %c0_422 = arith.constant 0 : index
    %c145 = arith.constant 145 : index
    %433 = vector.load %arg5[%c0_422, %c145] : memref<4x640xf32, #tpu.memory_space<vmem>>, vector<4x384xf32>
    %434 = arith.mulf %102, %433 : vector<4x384xf32>
    %cst_423 = arith.constant dense<0.000000e+00> : vector<384xf32>
    %435 = vector.multi_reduction <add>, %434, %cst_423 [0] : vector<4x384xf32> to vector<384xf32>
    %c0_424 = arith.constant 0 : index
    %c55_425 = arith.constant 55 : index
    %c0_426 = arith.constant 0 : index
    %436 = vector.load %arg3[%c0_424, %c55_425, %c0_426] : memref<1x81x384xf32, #tpu.memory_space<vmem>>, vector<1x1x384xf32>
    %437 = vector.shape_cast %436 : vector<1x1x384xf32> to vector<384xf32>
    %438 = vector.shape_cast %435 : vector<384xf32> to vector<1x1x384xf32>
    tpu.vector_store %arg3[%c0_424, %c55_425, %c0_426], %438 {strides = array<i32>} : memref<1x81x384xf32, #tpu.memory_space<vmem>>, vector<1x1x384xf32>,
    %c0_427 = arith.constant 0 : index
    %c146 = arith.constant 146 : index
    %439 = vector.load %arg5[%c0_427, %c146] : memref<4x640xf32, #tpu.memory_space<vmem>>, vector<4x384xf32>
    %440 = arith.mulf %102, %439 : vector<4x384xf32>
    %cst_428 = arith.constant dense<0.000000e+00> : vector<384xf32>
    %441 = vector.multi_reduction <add>, %440, %cst_428 [0] : vector<4x384xf32> to vector<384xf32>
    %c0_429 = arith.constant 0 : index
    %c56_430 = arith.constant 56 : index
    %c0_431 = arith.constant 0 : index
    %442 = vector.load %arg3[%c0_429, %c56_430, %c0_431] : memref<1x81x384xf32, #tpu.memory_space<vmem>>, vector<1x1x384xf32>
    %443 = vector.shape_cast %442 : vector<1x1x384xf32> to vector<384xf32>
    %444 = vector.shape_cast %441 : vector<384xf32> to vector<1x1x384xf32>
    tpu.vector_store %arg3[%c0_429, %c56_430, %c0_431], %444 {strides = array<i32>} : memref<1x81x384xf32, #tpu.memory_space<vmem>>, vector<1x1x384xf32>,
    %c0_432 = arith.constant 0 : index
    %c147 = arith.constant 147 : index
    %445 = vector.load %arg5[%c0_432, %c147] : memref<4x640xf32, #tpu.memory_space<vmem>>, vector<4x384xf32>
    %446 = arith.mulf %102, %445 : vector<4x384xf32>
    %cst_433 = arith.constant dense<0.000000e+00> : vector<384xf32>
    %447 = vector.multi_reduction <add>, %446, %cst_433 [0] : vector<4x384xf32> to vector<384xf32>
    %c0_434 = arith.constant 0 : index
    %c57 = arith.constant 57 : index
    %c0_435 = arith.constant 0 : index
    %448 = vector.load %arg3[%c0_434, %c57, %c0_435] : memref<1x81x384xf32, #tpu.memory_space<vmem>>, vector<1x1x384xf32>
    %449 = vector.shape_cast %448 : vector<1x1x384xf32> to vector<384xf32>
    %450 = vector.shape_cast %447 : vector<384xf32> to vector<1x1x384xf32>
    tpu.vector_store %arg3[%c0_434, %c57, %c0_435], %450 {strides = array<i32>} : memref<1x81x384xf32, #tpu.memory_space<vmem>>, vector<1x1x384xf32>,
    %c0_436 = arith.constant 0 : index
    %c148_437 = arith.constant 148 : index
    %451 = vector.load %arg5[%c0_436, %c148_437] : memref<4x640xf32, #tpu.memory_space<vmem>>, vector<4x384xf32>
    %452 = arith.mulf %102, %451 : vector<4x384xf32>
    %cst_438 = arith.constant dense<0.000000e+00> : vector<384xf32>
    %453 = vector.multi_reduction <add>, %452, %cst_438 [0] : vector<4x384xf32> to vector<384xf32>
    %c0_439 = arith.constant 0 : index
    %c58 = arith.constant 58 : index
    %c0_440 = arith.constant 0 : index
    %454 = vector.load %arg3[%c0_439, %c58, %c0_440] : memref<1x81x384xf32, #tpu.memory_space<vmem>>, vector<1x1x384xf32>
    %455 = vector.shape_cast %454 : vector<1x1x384xf32> to vector<384xf32>
    %456 = vector.shape_cast %453 : vector<384xf32> to vector<1x1x384xf32>
    tpu.vector_store %arg3[%c0_439, %c58, %c0_440], %456 {strides = array<i32>} : memref<1x81x384xf32, #tpu.memory_space<vmem>>, vector<1x1x384xf32>,
    %c0_441 = arith.constant 0 : index
    %c149 = arith.constant 149 : index
    %457 = vector.load %arg5[%c0_441, %c149] : memref<4x640xf32, #tpu.memory_space<vmem>>, vector<4x384xf32>
    %458 = arith.mulf %102, %457 : vector<4x384xf32>
    %cst_442 = arith.constant dense<0.000000e+00> : vector<384xf32>
    %459 = vector.multi_reduction <add>, %458, %cst_442 [0] : vector<4x384xf32> to vector<384xf32>
    %c0_443 = arith.constant 0 : index
    %c59 = arith.constant 59 : index
    %c0_444 = arith.constant 0 : index
    %460 = vector.load %arg3[%c0_443, %c59, %c0_444] : memref<1x81x384xf32, #tpu.memory_space<vmem>>, vector<1x1x384xf32>
    %461 = vector.shape_cast %460 : vector<1x1x384xf32> to vector<384xf32>
    %462 = vector.shape_cast %459 : vector<384xf32> to vector<1x1x384xf32>
    tpu.vector_store %arg3[%c0_443, %c59, %c0_444], %462 {strides = array<i32>} : memref<1x81x384xf32, #tpu.memory_space<vmem>>, vector<1x1x384xf32>,
    %c0_445 = arith.constant 0 : index
    %c150 = arith.constant 150 : index
    %463 = vector.load %arg5[%c0_445, %c150] : memref<4x640xf32, #tpu.memory_space<vmem>>, vector<4x384xf32>
    %464 = arith.mulf %102, %463 : vector<4x384xf32>
    %cst_446 = arith.constant dense<0.000000e+00> : vector<384xf32>
    %465 = vector.multi_reduction <add>, %464, %cst_446 [0] : vector<4x384xf32> to vector<384xf32>
    %c0_447 = arith.constant 0 : index
    %c60 = arith.constant 60 : index
    %c0_448 = arith.constant 0 : index
    %466 = vector.load %arg3[%c0_447, %c60, %c0_448] : memref<1x81x384xf32, #tpu.memory_space<vmem>>, vector<1x1x384xf32>
    %467 = vector.shape_cast %466 : vector<1x1x384xf32> to vector<384xf32>
    %468 = vector.shape_cast %465 : vector<384xf32> to vector<1x1x384xf32>
    tpu.vector_store %arg3[%c0_447, %c60, %c0_448], %468 {strides = array<i32>} : memref<1x81x384xf32, #tpu.memory_space<vmem>>, vector<1x1x384xf32>,
    %c0_449 = arith.constant 0 : index
    %c151 = arith.constant 151 : index
    %469 = vector.load %arg5[%c0_449, %c151] : memref<4x640xf32, #tpu.memory_space<vmem>>, vector<4x384xf32>
    %470 = arith.mulf %102, %469 : vector<4x384xf32>
    %cst_450 = arith.constant dense<0.000000e+00> : vector<384xf32>
    %471 = vector.multi_reduction <add>, %470, %cst_450 [0] : vector<4x384xf32> to vector<384xf32>
    %c0_451 = arith.constant 0 : index
    %c61 = arith.constant 61 : index
    %c0_452 = arith.constant 0 : index
    %472 = vector.load %arg3[%c0_451, %c61, %c0_452] : memref<1x81x384xf32, #tpu.memory_space<vmem>>, vector<1x1x384xf32>
    %473 = vector.shape_cast %472 : vector<1x1x384xf32> to vector<384xf32>
    %474 = vector.shape_cast %471 : vector<384xf32> to vector<1x1x384xf32>
    tpu.vector_store %arg3[%c0_451, %c61, %c0_452], %474 {strides = array<i32>} : memref<1x81x384xf32, #tpu.memory_space<vmem>>, vector<1x1x384xf32>,
    %c0_453 = arith.constant 0 : index
    %c152 = arith.constant 152 : index
    %475 = vector.load %arg5[%c0_453, %c152] : memref<4x640xf32, #tpu.memory_space<vmem>>, vector<4x384xf32>
    %476 = arith.mulf %102, %475 : vector<4x384xf32>
    %cst_454 = arith.constant dense<0.000000e+00> : vector<384xf32>
    %477 = vector.multi_reduction <add>, %476, %cst_454 [0] : vector<4x384xf32> to vector<384xf32>
    %c0_455 = arith.constant 0 : index
    %c62 = arith.constant 62 : index
    %c0_456 = arith.constant 0 : index
    %478 = vector.load %arg3[%c0_455, %c62, %c0_456] : memref<1x81x384xf32, #tpu.memory_space<vmem>>, vector<1x1x384xf32>
    %479 = vector.shape_cast %478 : vector<1x1x384xf32> to vector<384xf32>
    %480 = vector.shape_cast %477 : vector<384xf32> to vector<1x1x384xf32>
    tpu.vector_store %arg3[%c0_455, %c62, %c0_456], %480 {strides = array<i32>} : memref<1x81x384xf32, #tpu.memory_space<vmem>>, vector<1x1x384xf32>,
    %c0_457 = arith.constant 0 : index
    %c168_458 = arith.constant 168 : index
    %481 = vector.load %arg5[%c0_457, %c168_458] : memref<4x640xf32, #tpu.memory_space<vmem>>, vector<4x384xf32>
    %482 = arith.mulf %102, %481 : vector<4x384xf32>
    %cst_459 = arith.constant dense<0.000000e+00> : vector<384xf32>
    %483 = vector.multi_reduction <add>, %482, %cst_459 [0] : vector<4x384xf32> to vector<384xf32>
    %c0_460 = arith.constant 0 : index
    %c63 = arith.constant 63 : index
    %c0_461 = arith.constant 0 : index
    %484 = vector.load %arg3[%c0_460, %c63, %c0_461] : memref<1x81x384xf32, #tpu.memory_space<vmem>>, vector<1x1x384xf32>
    %485 = vector.shape_cast %484 : vector<1x1x384xf32> to vector<384xf32>
    %486 = vector.shape_cast %483 : vector<384xf32> to vector<1x1x384xf32>
    tpu.vector_store %arg3[%c0_460, %c63, %c0_461], %486 {strides = array<i32>} : memref<1x81x384xf32, #tpu.memory_space<vmem>>, vector<1x1x384xf32>,
    %c0_462 = arith.constant 0 : index
    %c169 = arith.constant 169 : index
    %487 = vector.load %arg5[%c0_462, %c169] : memref<4x640xf32, #tpu.memory_space<vmem>>, vector<4x384xf32>
    %488 = arith.mulf %102, %487 : vector<4x384xf32>
    %cst_463 = arith.constant dense<0.000000e+00> : vector<384xf32>
    %489 = vector.multi_reduction <add>, %488, %cst_463 [0] : vector<4x384xf32> to vector<384xf32>
    %c0_464 = arith.constant 0 : index
    %c64 = arith.constant 64 : index
    %c0_465 = arith.constant 0 : index
    %490 = vector.load %arg3[%c0_464, %c64, %c0_465] : memref<1x81x384xf32, #tpu.memory_space<vmem>>, vector<1x1x384xf32>
    %491 = vector.shape_cast %490 : vector<1x1x384xf32> to vector<384xf32>
    %492 = vector.shape_cast %489 : vector<384xf32> to vector<1x1x384xf32>
    tpu.vector_store %arg3[%c0_464, %c64, %c0_465], %492 {strides = array<i32>} : memref<1x81x384xf32, #tpu.memory_space<vmem>>, vector<1x1x384xf32>,
    %c0_466 = arith.constant 0 : index
    %c170 = arith.constant 170 : index
    %493 = vector.load %arg5[%c0_466, %c170] : memref<4x640xf32, #tpu.memory_space<vmem>>, vector<4x384xf32>
    %494 = arith.mulf %102, %493 : vector<4x384xf32>
    %cst_467 = arith.constant dense<0.000000e+00> : vector<384xf32>
    %495 = vector.multi_reduction <add>, %494, %cst_467 [0] : vector<4x384xf32> to vector<384xf32>
    %c0_468 = arith.constant 0 : index
    %c65 = arith.constant 65 : index
    %c0_469 = arith.constant 0 : index
    %496 = vector.load %arg3[%c0_468, %c65, %c0_469] : memref<1x81x384xf32, #tpu.memory_space<vmem>>, vector<1x1x384xf32>
    %497 = vector.shape_cast %496 : vector<1x1x384xf32> to vector<384xf32>
    %498 = vector.shape_cast %495 : vector<384xf32> to vector<1x1x384xf32>
    tpu.vector_store %arg3[%c0_468, %c65, %c0_469], %498 {strides = array<i32>} : memref<1x81x384xf32, #tpu.memory_space<vmem>>, vector<1x1x384xf32>,
    %c0_470 = arith.constant 0 : index
    %c171 = arith.constant 171 : index
    %499 = vector.load %arg5[%c0_470, %c171] : memref<4x640xf32, #tpu.memory_space<vmem>>, vector<4x384xf32>
    %500 = arith.mulf %102, %499 : vector<4x384xf32>
    %cst_471 = arith.constant dense<0.000000e+00> : vector<384xf32>
    %501 = vector.multi_reduction <add>, %500, %cst_471 [0] : vector<4x384xf32> to vector<384xf32>
    %c0_472 = arith.constant 0 : index
    %c66 = arith.constant 66 : index
    %c0_473 = arith.constant 0 : index
    %502 = vector.load %arg3[%c0_472, %c66, %c0_473] : memref<1x81x384xf32, #tpu.memory_space<vmem>>, vector<1x1x384xf32>
    %503 = vector.shape_cast %502 : vector<1x1x384xf32> to vector<384xf32>
    %504 = vector.shape_cast %501 : vector<384xf32> to vector<1x1x384xf32>
    tpu.vector_store %arg3[%c0_472, %c66, %c0_473], %504 {strides = array<i32>} : memref<1x81x384xf32, #tpu.memory_space<vmem>>, vector<1x1x384xf32>,
    %c0_474 = arith.constant 0 : index
    %c172_475 = arith.constant 172 : index
    %505 = vector.load %arg5[%c0_474, %c172_475] : memref<4x640xf32, #tpu.memory_space<vmem>>, vector<4x384xf32>
    %506 = arith.mulf %102, %505 : vector<4x384xf32>
    %cst_476 = arith.constant dense<0.000000e+00> : vector<384xf32>
    %507 = vector.multi_reduction <add>, %506, %cst_476 [0] : vector<4x384xf32> to vector<384xf32>
    %c0_477 = arith.constant 0 : index
    %c67 = arith.constant 67 : index
    %c0_478 = arith.constant 0 : index
    %508 = vector.load %arg3[%c0_477, %c67, %c0_478] : memref<1x81x384xf32, #tpu.memory_space<vmem>>, vector<1x1x384xf32>
    %509 = vector.shape_cast %508 : vector<1x1x384xf32> to vector<384xf32>
    %510 = vector.shape_cast %507 : vector<384xf32> to vector<1x1x384xf32>
    tpu.vector_store %arg3[%c0_477, %c67, %c0_478], %510 {strides = array<i32>} : memref<1x81x384xf32, #tpu.memory_space<vmem>>, vector<1x1x384xf32>,
    %c0_479 = arith.constant 0 : index
    %c173 = arith.constant 173 : index
    %511 = vector.load %arg5[%c0_479, %c173] : memref<4x640xf32, #tpu.memory_space<vmem>>, vector<4x384xf32>
    %512 = arith.mulf %102, %511 : vector<4x384xf32>
    %cst_480 = arith.constant dense<0.000000e+00> : vector<384xf32>
    %513 = vector.multi_reduction <add>, %512, %cst_480 [0] : vector<4x384xf32> to vector<384xf32>
    %c0_481 = arith.constant 0 : index
    %c68 = arith.constant 68 : index
    %c0_482 = arith.constant 0 : index
    %514 = vector.load %arg3[%c0_481, %c68, %c0_482] : memref<1x81x384xf32, #tpu.memory_space<vmem>>, vector<1x1x384xf32>
    %515 = vector.shape_cast %514 : vector<1x1x384xf32> to vector<384xf32>
    %516 = vector.shape_cast %513 : vector<384xf32> to vector<1x1x384xf32>
    tpu.vector_store %arg3[%c0_481, %c68, %c0_482], %516 {strides = array<i32>} : memref<1x81x384xf32, #tpu.memory_space<vmem>>, vector<1x1x384xf32>,
    %c0_483 = arith.constant 0 : index
    %c174 = arith.constant 174 : index
    %517 = vector.load %arg5[%c0_483, %c174] : memref<4x640xf32, #tpu.memory_space<vmem>>, vector<4x384xf32>
    %518 = arith.mulf %102, %517 : vector<4x384xf32>
    %cst_484 = arith.constant dense<0.000000e+00> : vector<384xf32>
    %519 = vector.multi_reduction <add>, %518, %cst_484 [0] : vector<4x384xf32> to vector<384xf32>
    %c0_485 = arith.constant 0 : index
    %c69 = arith.constant 69 : index
    %c0_486 = arith.constant 0 : index
    %520 = vector.load %arg3[%c0_485, %c69, %c0_486] : memref<1x81x384xf32, #tpu.memory_space<vmem>>, vector<1x1x384xf32>
    %521 = vector.shape_cast %520 : vector<1x1x384xf32> to vector<384xf32>
    %522 = vector.shape_cast %519 : vector<384xf32> to vector<1x1x384xf32>
    tpu.vector_store %arg3[%c0_485, %c69, %c0_486], %522 {strides = array<i32>} : memref<1x81x384xf32, #tpu.memory_space<vmem>>, vector<1x1x384xf32>,
    %c0_487 = arith.constant 0 : index
    %c175 = arith.constant 175 : index
    %523 = vector.load %arg5[%c0_487, %c175] : memref<4x640xf32, #tpu.memory_space<vmem>>, vector<4x384xf32>
    %524 = arith.mulf %102, %523 : vector<4x384xf32>
    %cst_488 = arith.constant dense<0.000000e+00> : vector<384xf32>
    %525 = vector.multi_reduction <add>, %524, %cst_488 [0] : vector<4x384xf32> to vector<384xf32>
    %c0_489 = arith.constant 0 : index
    %c70 = arith.constant 70 : index
    %c0_490 = arith.constant 0 : index
    %526 = vector.load %arg3[%c0_489, %c70, %c0_490] : memref<1x81x384xf32, #tpu.memory_space<vmem>>, vector<1x1x384xf32>
    %527 = vector.shape_cast %526 : vector<1x1x384xf32> to vector<384xf32>
    %528 = vector.shape_cast %525 : vector<384xf32> to vector<1x1x384xf32>
    tpu.vector_store %arg3[%c0_489, %c70, %c0_490], %528 {strides = array<i32>} : memref<1x81x384xf32, #tpu.memory_space<vmem>>, vector<1x1x384xf32>,
    %c0_491 = arith.constant 0 : index
    %c176 = arith.constant 176 : index
    %529 = vector.load %arg5[%c0_491, %c176] : memref<4x640xf32, #tpu.memory_space<vmem>>, vector<4x384xf32>
    %530 = arith.mulf %102, %529 : vector<4x384xf32>
    %cst_492 = arith.constant dense<0.000000e+00> : vector<384xf32>
    %531 = vector.multi_reduction <add>, %530, %cst_492 [0] : vector<4x384xf32> to vector<384xf32>
    %c0_493 = arith.constant 0 : index
    %c71 = arith.constant 71 : index
    %c0_494 = arith.constant 0 : index
    %532 = vector.load %arg3[%c0_493, %c71, %c0_494] : memref<1x81x384xf32, #tpu.memory_space<vmem>>, vector<1x1x384xf32>
    %533 = vector.shape_cast %532 : vector<1x1x384xf32> to vector<384xf32>
    %534 = vector.shape_cast %531 : vector<384xf32> to vector<1x1x384xf32>
    tpu.vector_store %arg3[%c0_493, %c71, %c0_494], %534 {strides = array<i32>} : memref<1x81x384xf32, #tpu.memory_space<vmem>>, vector<1x1x384xf32>,
    %c0_495 = arith.constant 0 : index
    %c192_496 = arith.constant 192 : index
    %535 = vector.load %arg5[%c0_495, %c192_496] : memref<4x640xf32, #tpu.memory_space<vmem>>, vector<4x384xf32>
    %536 = arith.mulf %102, %535 : vector<4x384xf32>
    %cst_497 = arith.constant dense<0.000000e+00> : vector<384xf32>
    %537 = vector.multi_reduction <add>, %536, %cst_497 [0] : vector<4x384xf32> to vector<384xf32>
    %c0_498 = arith.constant 0 : index
    %c72_499 = arith.constant 72 : index
    %c0_500 = arith.constant 0 : index
    %538 = vector.load %arg3[%c0_498, %c72_499, %c0_500] : memref<1x81x384xf32, #tpu.memory_space<vmem>>, vector<1x1x384xf32>
    %539 = vector.shape_cast %538 : vector<1x1x384xf32> to vector<384xf32>
    %540 = vector.shape_cast %537 : vector<384xf32> to vector<1x1x384xf32>
    tpu.vector_store %arg3[%c0_498, %c72_499, %c0_500], %540 {strides = array<i32>} : memref<1x81x384xf32, #tpu.memory_space<vmem>>, vector<1x1x384xf32>,
    %c0_501 = arith.constant 0 : index
    %c193 = arith.constant 193 : index
    %541 = vector.load %arg5[%c0_501, %c193] : memref<4x640xf32, #tpu.memory_space<vmem>>, vector<4x384xf32>
    %542 = arith.mulf %102, %541 : vector<4x384xf32>
    %cst_502 = arith.constant dense<0.000000e+00> : vector<384xf32>
    %543 = vector.multi_reduction <add>, %542, %cst_502 [0] : vector<4x384xf32> to vector<384xf32>
    %c0_503 = arith.constant 0 : index
    %c73_504 = arith.constant 73 : index
    %c0_505 = arith.constant 0 : index
    %544 = vector.load %arg3[%c0_503, %c73_504, %c0_505] : memref<1x81x384xf32, #tpu.memory_space<vmem>>, vector<1x1x384xf32>
    %545 = vector.shape_cast %544 : vector<1x1x384xf32> to vector<384xf32>
    %546 = vector.shape_cast %543 : vector<384xf32> to vector<1x1x384xf32>
    tpu.vector_store %arg3[%c0_503, %c73_504, %c0_505], %546 {strides = array<i32>} : memref<1x81x384xf32, #tpu.memory_space<vmem>>, vector<1x1x384xf32>,
    %c0_506 = arith.constant 0 : index
    %c194 = arith.constant 194 : index
    %547 = vector.load %arg5[%c0_506, %c194] : memref<4x640xf32, #tpu.memory_space<vmem>>, vector<4x384xf32>
    %548 = arith.mulf %102, %547 : vector<4x384xf32>
    %cst_507 = arith.constant dense<0.000000e+00> : vector<384xf32>
    %549 = vector.multi_reduction <add>, %548, %cst_507 [0] : vector<4x384xf32> to vector<384xf32>
    %c0_508 = arith.constant 0 : index
    %c74_509 = arith.constant 74 : index
    %c0_510 = arith.constant 0 : index
    %550 = vector.load %arg3[%c0_508, %c74_509, %c0_510] : memref<1x81x384xf32, #tpu.memory_space<vmem>>, vector<1x1x384xf32>
    %551 = vector.shape_cast %550 : vector<1x1x384xf32> to vector<384xf32>
    %552 = vector.shape_cast %549 : vector<384xf32> to vector<1x1x384xf32>
    tpu.vector_store %arg3[%c0_508, %c74_509, %c0_510], %552 {strides = array<i32>} : memref<1x81x384xf32, #tpu.memory_space<vmem>>, vector<1x1x384xf32>,
    %c0_511 = arith.constant 0 : index
    %c195 = arith.constant 195 : index
    %553 = vector.load %arg5[%c0_511, %c195] : memref<4x640xf32, #tpu.memory_space<vmem>>, vector<4x384xf32>
    %554 = arith.mulf %102, %553 : vector<4x384xf32>
    %cst_512 = arith.constant dense<0.000000e+00> : vector<384xf32>
    %555 = vector.multi_reduction <add>, %554, %cst_512 [0] : vector<4x384xf32> to vector<384xf32>
    %c0_513 = arith.constant 0 : index
    %c75_514 = arith.constant 75 : index
    %c0_515 = arith.constant 0 : index
    %556 = vector.load %arg3[%c0_513, %c75_514, %c0_515] : memref<1x81x384xf32, #tpu.memory_space<vmem>>, vector<1x1x384xf32>
    %557 = vector.shape_cast %556 : vector<1x1x384xf32> to vector<384xf32>
    %558 = vector.shape_cast %555 : vector<384xf32> to vector<1x1x384xf32>
    tpu.vector_store %arg3[%c0_513, %c75_514, %c0_515], %558 {strides = array<i32>} : memref<1x81x384xf32, #tpu.memory_space<vmem>>, vector<1x1x384xf32>,
    %c0_516 = arith.constant 0 : index
    %c196_517 = arith.constant 196 : index
    %559 = vector.load %arg5[%c0_516, %c196_517] : memref<4x640xf32, #tpu.memory_space<vmem>>, vector<4x384xf32>
    %560 = arith.mulf %102, %559 : vector<4x384xf32>
    %cst_518 = arith.constant dense<0.000000e+00> : vector<384xf32>
    %561 = vector.multi_reduction <add>, %560, %cst_518 [0] : vector<4x384xf32> to vector<384xf32>
    %c0_519 = arith.constant 0 : index
    %c76_520 = arith.constant 76 : index
    %c0_521 = arith.constant 0 : index
    %562 = vector.load %arg3[%c0_519, %c76_520, %c0_521] : memref<1x81x384xf32, #tpu.memory_space<vmem>>, vector<1x1x384xf32>
    %563 = vector.shape_cast %562 : vector<1x1x384xf32> to vector<384xf32>
    %564 = vector.shape_cast %561 : vector<384xf32> to vector<1x1x384xf32>
    tpu.vector_store %arg3[%c0_519, %c76_520, %c0_521], %564 {strides = array<i32>} : memref<1x81x384xf32, #tpu.memory_space<vmem>>, vector<1x1x384xf32>,
    %c0_522 = arith.constant 0 : index
    %c197 = arith.constant 197 : index
    %565 = vector.load %arg5[%c0_522, %c197] : memref<4x640xf32, #tpu.memory_space<vmem>>, vector<4x384xf32>
    %566 = arith.mulf %102, %565 : vector<4x384xf32>
    %cst_523 = arith.constant dense<0.000000e+00> : vector<384xf32>
    %567 = vector.multi_reduction <add>, %566, %cst_523 [0] : vector<4x384xf32> to vector<384xf32>
    %c0_524 = arith.constant 0 : index
    %c77_525 = arith.constant 77 : index
    %c0_526 = arith.constant 0 : index
    %568 = vector.load %arg3[%c0_524, %c77_525, %c0_526] : memref<1x81x384xf32, #tpu.memory_space<vmem>>, vector<1x1x384xf32>
    %569 = vector.shape_cast %568 : vector<1x1x384xf32> to vector<384xf32>
    %570 = vector.shape_cast %567 : vector<384xf32> to vector<1x1x384xf32>
    tpu.vector_store %arg3[%c0_524, %c77_525, %c0_526], %570 {strides = array<i32>} : memref<1x81x384xf32, #tpu.memory_space<vmem>>, vector<1x1x384xf32>,
    %c0_527 = arith.constant 0 : index
    %c198 = arith.constant 198 : index
    %571 = vector.load %arg5[%c0_527, %c198] : memref<4x640xf32, #tpu.memory_space<vmem>>, vector<4x384xf32>
    %572 = arith.mulf %102, %571 : vector<4x384xf32>
    %cst_528 = arith.constant dense<0.000000e+00> : vector<384xf32>
    %573 = vector.multi_reduction <add>, %572, %cst_528 [0] : vector<4x384xf32> to vector<384xf32>
    %c0_529 = arith.constant 0 : index
    %c78_530 = arith.constant 78 : index
    %c0_531 = arith.constant 0 : index
    %574 = vector.load %arg3[%c0_529, %c78_530, %c0_531] : memref<1x81x384xf32, #tpu.memory_space<vmem>>, vector<1x1x384xf32>
    %575 = vector.shape_cast %574 : vector<1x1x384xf32> to vector<384xf32>
    %576 = vector.shape_cast %573 : vector<384xf32> to vector<1x1x384xf32>
    tpu.vector_store %arg3[%c0_529, %c78_530, %c0_531], %576 {strides = array<i32>} : memref<1x81x384xf32, #tpu.memory_space<vmem>>, vector<1x1x384xf32>,
    %c0_532 = arith.constant 0 : index
    %c199 = arith.constant 199 : index
    %577 = vector.load %arg5[%c0_532, %c199] : memref<4x640xf32, #tpu.memory_space<vmem>>, vector<4x384xf32>
    %578 = arith.mulf %102, %577 : vector<4x384xf32>
    %cst_533 = arith.constant dense<0.000000e+00> : vector<384xf32>
    %579 = vector.multi_reduction <add>, %578, %cst_533 [0] : vector<4x384xf32> to vector<384xf32>
    %c0_534 = arith.constant 0 : index
    %c79_535 = arith.constant 79 : index
    %c0_536 = arith.constant 0 : index
    %580 = vector.load %arg3[%c0_534, %c79_535, %c0_536] : memref<1x81x384xf32, #tpu.memory_space<vmem>>, vector<1x1x384xf32>
    %581 = vector.shape_cast %580 : vector<1x1x384xf32> to vector<384xf32>
    %582 = vector.shape_cast %579 : vector<384xf32> to vector<1x1x384xf32>
    tpu.vector_store %arg3[%c0_534, %c79_535, %c0_536], %582 {strides = array<i32>} : memref<1x81x384xf32, #tpu.memory_space<vmem>>, vector<1x1x384xf32>,
    %c0_537 = arith.constant 0 : index
    %c200 = arith.constant 200 : index
    %583 = vector.load %arg5[%c0_537, %c200] : memref<4x640xf32, #tpu.memory_space<vmem>>, vector<4x384xf32>
    %584 = arith.mulf %102, %583 : vector<4x384xf32>
    %cst_538 = arith.constant dense<0.000000e+00> : vector<384xf32>
    %585 = vector.multi_reduction <add>, %584, %cst_538 [0] : vector<4x384xf32> to vector<384xf32>
    %c0_539 = arith.constant 0 : index
    %c80_540 = arith.constant 80 : index
    %c0_541 = arith.constant 0 : index
    %586 = vector.load %arg3[%c0_539, %c80_540, %c0_541] : memref<1x81x384xf32, #tpu.memory_space<vmem>>, vector<1x1x384xf32>
    %587 = vector.shape_cast %586 : vector<1x1x384xf32> to vector<384xf32>
    %588 = vector.shape_cast %585 : vector<384xf32> to vector<1x1x384xf32>
    tpu.vector_store %arg3[%c0_539, %c80_540, %c0_541], %588 {strides = array<i32>} : memref<1x81x384xf32, #tpu.memory_space<vmem>>, vector<1x1x384xf32>,
    return
  }
  func.func @transform_0(%arg0: i32) -> (i32, i32, i32, i32) {
    %c0_i32 = arith.constant 0 : i32
    %c0_i32_0 = arith.constant 0 : i32
    %c0_i32_1 = arith.constant 0 : i32
    %c0_i32_2 = arith.constant 0 : i32
    return %arg0, %c0_i32, %c0_i32_0, %c0_i32_1 : i32, i32, i32, i32
  }
  func.func @transform_1(%arg0: i32) -> (i32, i32, i32, i32) {
    %c0_i32 = arith.constant 0 : i32
    %c0_i32_0 = arith.constant 0 : i32
    %c0_i32_1 = arith.constant 0 : i32
    %c0_i32_2 = arith.constant 0 : i32
    return %arg0, %c0_i32, %c0_i32_0, %c0_i32_1 : i32, i32, i32, i32
  }
  func.func @transform_2(%arg0: i32) -> (i32, i32, i32) {
    %c0_i32 = arith.constant 0 : i32
    %c0_i32_0 = arith.constant 0 : i32
    %c0_i32_1 = arith.constant 0 : i32
    return %arg0, %c0_i32, %c0_i32_0 : i32, i32, i32
  }
}

</mosaic_0001>

<bundles_post_ra>
// kernel: tpu_custom_call.1
= control target key start
LH: loop header
LB: loop body
LE: loop exit
PB: predicated region body
PF: predicated region fallthrough
CT: control target
= control target key end

     0   :  { %7 = vsyncpa [#allocation5], 0  ;;  %s8350_s0 = inlined_call_operand.hbm [shape: f32[2,4,16,16], index: 0, kind: input, shape index: {}]   ;;  %s8351_s1 = inlined_call_operand.hbm [shape: f32[2,4,16,16], index: 1, kind: input, shape index: {}]   ;;  %s8352_s2 = inlined_call_operand.vmem [shape: f32[2,81,384], index: 2, kind: output, shape index: {}]  }
   0x1   :  { %9 = vsyncpa [#allocation5 + $0x1], 0 }
   0x2   :  { %10 = vsyncpa [#allocation7], 0 }
   0x3   :  { %12 = vsyncpa [#allocation7 + $0x1], 0  ;;  %s6377_s9 = smov 0   ;;  %s6379_s10 = smov 0  }
   0x4   :  { %s6381_s11 = smov 0   ;;  %s6383_s12 = smov 0  }
   0x5 LB: > { %s6396_s13 = sadd.s32 4294967295, %s6272_s12   ;;  %s6399_s14 = sadd.s32 1, %s6272_s12   ;;  %s6272_s12 = sphi %s6383_s12, %s8371_s12   ;;  %s6268_s11 = sphi %s6381_s11, %s8370_s11   ;;  %s6264_s10 = sphi %s6379_s10, %s8369_s10   ;;  %s6260_s9 = sphi %s6377_s9, %s8368_s9  }
   0x6   : > { %s22_s15 = ssub.s32 %s6272_s12, %s6399_s14  ;;  %s25_s16 = sadd.s32 1, %s6268_s11 }
   0x7   : > { %p23_p0 = scmp.eq.s32.totalorder %s22_s15, 0  ;;  %p32_p1 = scmp.ne.s32.totalorder %s6268_s11, %s6264_s10 }
   0x8   : > { %p33_p2 = scmp.eq.s32.totalorder %s6272_s12, 0  ;;  %p38_p3 = scmp.ne.s32.totalorder %s6264_s10, %s6260_s9 }
   0x9   : > { %s6409_s17 = scalar_select %p23_p0, %s6268_s11, %s25_s16  }
   0xa   : > { %p6411_p4 = por %p33_p2, %p32_p1  ;;  %p39_p5 = scmp.eq.s32.totalorder %s6396_s13, 0 }
   0xb   : > { %p6053_p6 = scmp.lt.s32.totalorder %s6272_s12, 2  ;;  %s6422_s20 = sand.u32 1, %s6268_s11  }
   0xc   : > { %p6417_p7 = por %p39_p5, %p38_p3  ;;  %s5947_s21 = sshll.u32 %s6422_s20, 6 }
   0xd   : > { %s6039_s22 = sshll.u32 %s6272_s12, 6  ;;  %s118_s26 = scalar_lea.vmem [#allocation4], %s5947_s21 }
   0xe   : > { %s123_s25 = scalar_lea.hbm %s8350_s0, %s6039_s22  ;;  %s126_s27 = sshll.u32 %s118_s26, 4  ;;  %s127_s27 = int_to_ptr.vmem [resolvable:$true] %s126_s27 }
   0xf   : > { %s124_s28 = sshll.u32 %s123_s25, 4  ;;  %p6435_p8 = pnand %p6053_p6, %p6411_p4  ;;  %s125_s28 = int_to_ptr.hbm [resolvable:$true] %s124_s28 }
  0x10   : > { %p5953_p9 = scmp.ge.s32.totalorder %s6272_s12, 1  ;;  %s115_s30 = scalar_lea.sflag [#allocation5], %s6422_s20 }
  0x11   : > { %s6174_s3 = sshra.s32 %s125_s28, 4  ;;  %p6178_p11 = pneg %p6435_p8  ;;  %s6175_s3 = int_to_ptr.hbm [resolvable:$true] %s6174_s3 }
  0x12   : > { %s6176_s4 = scalar_lea.hbm %s6175_s3, 64  ;;  %s6181_s7 = scalar_lea.hbm %s8350_s0, 128 }
  0x13   : > { %p6177_p10 = scmp.ne.s32.totalorder %s6175_s3, %s6176_s4  ;;  %p6182_p0 = scmp.lt.s32.totalorder %s6175_s3, %s8350_s0 }
  0x14   : > { %p6183_p1 = scmp.lt.s32.totalorder %s6181_s7, %s6176_s4 }
  0x15   : > { %p6179_p12 = pnand %p6178_p11, %p6177_p10 }
  0x16   : > { %p6184_p2 = por %p6183_p1, %p6182_p0 }
  0x17   : > { %p6180_p13 = pneg %p6179_p12 }
  0x19   : > { %p6185_p3 = pnand %p6184_p2, %p6180_p13 }
  0x1b   : > { %6188 = shalt.err (!%p6185_p3)
}
  0x1c   : > { %s6274_s15 = smov 128   ;;  %s6275_s16 = smov 8  }
  0x1d   : > { %6049 = dma.hbm_to_vmem [thread:$0]  (!%p6435_p8), %s125_s28, 1024, %s127_s27, %s115_s30, %s6274_s15, %s6274_s15, %s6275_s16  }
  0x1e   : > { %p156_p4 = scmp.lt.s32.totalorder %s6272_s12, 3  ;;  %s145_s24 = scalar_lea.hbm %s8351_s1, %s6039_s22 }
  0x1f   : > { %s146_s26 = sshll.u32 %s145_s24, 4  ;;  %s140_s3 = scalar_lea.vmem [#allocation6], %s5947_s21  ;;  %s147_s26 = int_to_ptr.hbm [resolvable:$true] %s146_s26 }
  0x20   : > { %p6462_p5 = pnand %p5953_p9, %p156_p4  ;;  %s148_s4 = sshll.u32 %s140_s3, 4  ;;  %s149_s4 = int_to_ptr.vmem [resolvable:$true] %s148_s4 }
  0x21   : > { %s137_s5 = scalar_lea.sflag [#allocation7], %s6422_s20  ;;  %s6204_s6 = sshra.s32 %s147_s26, 4  ;;  %s6205_s6 = int_to_ptr.hbm [resolvable:$true] %s6204_s6 }
  0x22   : > { %s6206_s27 = scalar_lea.hbm %s6205_s6, 64  ;;  %s6211_s28 = scalar_lea.hbm %s8351_s1, 128 }
  0x23   : > { %p6207_p6 = scmp.ne.s32.totalorder %s6205_s6, %s6206_s27  ;;  %p6212_p9 = scmp.lt.s32.totalorder %s6205_s6, %s8351_s1 }
  0x24   : > { %p6213_p13 = scmp.lt.s32.totalorder %s6211_s28, %s6206_s27 }
  0x25   : > { %p6209_p10 = pnand %p6207_p6, %p6178_p11 }
  0x26   : > { %p6214_p0 = por %p6213_p13, %p6212_p9 }
  0x27   : > { %p6210_p12 = pneg %p6209_p10 }
  0x29   : > { %p6215_p1 = pnand %p6214_p0, %p6210_p12 }
  0x2b   : > { %6218 = shalt.err (!%p6215_p1)
}
  0x2c   : > { %6052 = dma.hbm_to_vmem [thread:$0]  (!%p6435_p8), %s147_s26, 1024, %s149_s4, %s137_s5, %s6274_s15, %s6274_s15, %s6275_s16  }
  0x2d   : > { %160 = sbr.rel (%p6462_p5) target bundleno = 1118 (0x45e), region = 28  ;;  %s162_s20 = sand.u32 (!%p6462_p5), 1, %s6264_s10  }
  0x2e   : > { %s5954_s21 = sshll.u32 (!%p6462_p5), %s162_s20, 6  ;;  %s163_s8 = scalar_lea.sflag (!%p6462_p5), [#allocation5], %s162_s20 }
  0x2f   : > { %s6483_s9 = scalar_lea.vmem (!%p6462_p5), [#allocation4], %s5954_s21 }
  0x32   : > { %6251 = dma.done.wait (%p6417_p7), %s163_s8, 1024  }
  0x33   : > { %6253 = vsyncadd (%p6417_p7), %s163_s8, 4294966272  ;;  %s173_s18 = scalar_lea.sflag [#allocation7], %s162_s20  ;;  %s6489_s23 = scalar_lea.vmem [#allocation6], %s5954_s21 }
  0x34   : > { %6255 = dma.done.wait (%p6417_p7), %s173_s18, 1024  }
  0x35   : > { %6257 = vsyncadd (%p6417_p7), %s173_s18, 4294966272  ;;  %vm222_vm0 = vcmask 1041409   ;;  %vm224_vm1 = vcmask 1045509   ;;  %vm227_vm2 = vcmask 1042434   ;;  %vm229_vm3 = vcmask 1046534   ;;  %s6276_s19 = smov 20  }
  0x36   : > { %v332_v0 = vld [vmem:[%s6489_s23 + $0x2] sm:$0x1]  ;;  %v333_v1 = vld [vmem:[%s6489_s23 + $0x12] sm:$0x1]  ;;  %v283_v6 = vld [vmem:[%s6489_s23 + $0x1] sm:$0x1] }
  0x37   : > { %v334_v2 = vld [vmem:[%s6489_s23 + $0x22] sm:$0x1]  ;;  %v335_v3 = vld [vmem:[%s6489_s23 + $0x32] sm:$0x1]  ;;  %v340_v4 = vrot.slane %v333_v1, 7  ;;  %vm232_vm4 = vcmask 1043459  }
  0x38   : > { %v343_v5 = vrot.slane %v334_v2, 6  ;;  %v346_v7 = vrot.slane %v335_v3, 5  ;;  %v284_v8 = vld [vmem:[%s6489_s23 + $0x11] sm:$0x1]  ;;  %v285_v9 = vld [vmem:[%s6489_s23 + $0x21] sm:$0x1] }
  0x39   : > { %v341_v10 = vsel %vm222_vm0, %v340_v4, %v332_v0  ;;  %v286_v11 = vld [vmem:[%s6489_s23 + $0x31] sm:$0x1]  ;;  %v291_v12 = vrot.slane %v284_v8, 7  ;;  %v294_v13 = vrot.slane %v285_v9, 6  ;;  %v376_v14 = vld [vmem:[%s6489_s23 + $0x3] sm:$0x1] }
  0x3a   : > { %vm234_vm5 = vcmask 1047559   ;;  %v342_v15 = vsel %vm224_vm1, %v340_v4, %v341_v10  ;;  %v297_v16 = vrot.slane %v286_v11, 5  ;;  %v377_v17 = vld [vmem:[%s6489_s23 + $0x13] sm:$0x1]  ;;  %v378_v18 = vld [vmem:[%s6489_s23 + $0x23] sm:$0x1] }
  0x3b   : > { %v344_v19 = vsel %vm227_vm2, %v343_v5, %v342_v15  ;;  %v292_v20 = vsel %vm222_vm0, %v291_v12, %v283_v6  ;;  %v379_v21 = vld [vmem:[%s6489_s23 + $0x33] sm:$0x1]  ;;  %v384_v22 = vrot.slane %v377_v17, 7  ;;  %v387_v23 = vrot.slane %v378_v18, 6  ;;  %v239_v24 = vld [vmem:[%s6489_s23] sm:$0x1] }
  0x3c   : > { %v345_v25 = vsel %vm229_vm3, %v343_v5, %v344_v19  ;;  %v293_v26 = vsel %vm224_vm1, %v291_v12, %v292_v20  ;;  %v390_v27 = vrot.slane %v379_v21, 5  ;;  %v240_v28 = vld [vmem:[%s6489_s23 + $0x10] sm:$0x1]  ;;  %v241_v29 = vld [vmem:[%s6489_s23 + $0x20] sm:$0x1]  ;;  %s6277_s29 = smov 124  }
  0x3d   : > { %v347_v30 = vsel %vm232_vm4, %v346_v7, %v345_v25  ;;  %v295_v31 = vsel %vm227_vm2, %v294_v13, %v293_v26  ;;  %v385_v32 = vsel %vm222_vm0, %v384_v22, %v376_v14  ;;  %v242_v33 = vld [vmem:[%s6489_s23 + $0x30] sm:$0x1]  ;;  %v247_v34 = vrot.slane %v240_v28, 7  ;;  %v563_v39 = vld [vmem:[%s6489_s23 + $0x17] sm:$0x1]  ;;  %s6278_s15 = smov 44  }
  0x3e   : > { %v348_v35 = vsel %vm234_vm5, %v346_v7, %v347_v30  ;;  %v296_v36 = vsel %vm229_vm3, %v294_v13, %v295_v31  ;;  %v386_v37 = vsel %vm224_vm1, %v384_v22, %v385_v32  ;;  %v250_v38 = vrot.slane %v241_v29, 6  ;;  %v564_v40 = vld [vmem:[%s6489_s23 + $0x27] sm:$0x1]  ;;  %v6530_v46 = vld [vmem:[%s6489_s23 + $0x37] sm:$0x1]  ;;  %s6279_s16 = smov 100  }
  0x3f   : > { %349 = vrot.lane.b32.xlu1 %v348_v35, %s6276_s19  ;;  %v298_v41 = vsel %vm232_vm4, %v297_v16, %v296_v36  ;;  %v388_v42 = vsel %vm227_vm2, %v387_v23, %v386_v37  ;;  %v248_v43 = vsel %vm222_vm0, %v247_v34, %v239_v24  ;;  %v253_v44 = vrot.slane %v242_v33, 5  ;;  %v562_v45 = vld [vmem:[%s6489_s23 + $0x7] sm:$0x1]  ;;  %v470_v51 = vld [vmem:[%s6489_s23 + $0x15] sm:$0x1]  ;;  %s6280_s24 = smov 12  }
  0x40   : > { %v299_v47 = vsel %vm234_vm5, %v297_v16, %v298_v41  ;;  %v389_v48 = vsel %vm229_vm3, %v387_v23, %v388_v42  ;;  %v249_v49 = vsel %vm224_vm1, %v247_v34, %v248_v43  ;;  %v570_v50 = vrot.slane %v563_v39, 7  ;;  %v471_v52 = vld [vmem:[%s6489_s23 + $0x25] sm:$0x1]  ;;  %v6542_v57 = vld [vmem:[%s6489_s23 + $0x35] sm:$0x1]  ;;  %s6281_s25 = smov 92  }
  0x41   : > { %300 = vrot.lane.b32.xlu0 %v299_v47, %s6277_s29  ;;  %v391_v53 = vsel %vm232_vm4, %v390_v27, %v389_v48  ;;  %v251_v54 = vsel %vm227_vm2, %v250_v38, %v249_v49  ;;  %v573_v55 = vrot.slane %v564_v40, 6  ;;  %v469_v56 = vld [vmem:[%s6489_s23 + $0x5] sm:$0x1]  ;;  %v477_v60 = vrot.slane %v470_v51, 7  ;;  %v651_v61 = vld [vmem:[%s6489_s23 + $0x19] sm:$0x1] }
  0x42   : > { %v252_v58 = vsel %vm229_vm3, %v250_v38, %v251_v54  ;;  %v571_v59 = vsel %vm222_vm0, %v570_v50, %v562_v45  ;;  %v652_v62 = vld [vmem:[%s6489_s23 + $0x29] sm:$0x1]  ;;  %v576_v1 = vrot.slane %v6530_v46, 5  ;;  %v480_v2 = vrot.slane %v471_v52, 6  ;;  %v783_v8 = vld [vmem:[%s6489_s23 + $0x1c] sm:$0x1] }
  0x43   : > { %v254_v63 = vsel %vm232_vm4, %v253_v44, %v252_v58  ;;  %v572_v0 = vsel %vm224_vm1, %v570_v50, %v571_v59  ;;  %v650_v3 = vld [vmem:[%s6489_s23 + $0x9] sm:$0x1]  ;;  %v392_v4 = vsel %vm234_vm5, %v390_v27, %v391_v53  ;;  %v478_v6 = vsel %vm222_vm0, %v477_v60, %v469_v56  ;;  %v784_v9 = vld [vmem:[%s6489_s23 + $0x2c] sm:$0x1]  ;;  %v514_v19 = vld [vmem:[%s6489_s23 + $0x16] sm:$0x1] }
  0x44   : > { %v574_v5 = vsel %vm227_vm2, %v573_v55, %v572_v0  ;;  %v658_v7 = vrot.slane %v651_v61, 7  ;;  %v255_v10 = vsel %vm234_vm5, %v253_v44, %v254_v63  ;;  %v479_v11 = vsel %vm224_vm1, %v477_v60, %v478_v6  ;;  %v782_v14 = vld [vmem:[%s6489_s23 + $0xc] sm:$0x1]  ;;  %v6567_v21 = vld [vmem:[%s6489_s23 + $0x39] sm:$0x1]  ;;  %s6282_s26 = smov 116  }
  0x45   : > { %v483_v12 = vrot.slane %v6542_v57, 5  ;;  %v661_v13 = vrot.slane %v652_v62, 6  ;;  %v575_v15 = vsel %vm229_vm3, %v573_v55, %v574_v5  ;;  %v481_v16 = vsel %vm227_vm2, %v480_v2, %v479_v11  ;;  %v515_v24 = vld [vmem:[%s6489_s23 + $0x26] sm:$0x1]  ;;  %v516_v28 = vld [vmem:[%s6489_s23 + $0x36] sm:$0x1] }
  0x46   : > { %v659_v17 = vsel %vm222_vm0, %v658_v7, %v650_v3  ;;  %v790_v18 = vrot.slane %v783_v8, 7  ;;  %v482_v20 = vsel %vm229_vm3, %v480_v2, %v481_v16  ;;  %v793_v23 = vrot.slane %v784_v9, 6  ;;  %v513_v27 = vld [vmem:[%s6489_s23 + $0x6] sm:$0x1]  ;;  %v871_v29 = vld [vmem:[%s6489_s23 + $0x1e] sm:$0x1] }
  0x47   : > { %393 = vrot.lane.b32.xlu1 %v392_v4, %s6278_s15  ;;  %v660_v22 = vsel %vm224_vm1, %v658_v7, %v659_v17  ;;  %v577_v30 = vsel %vm232_vm4, %v576_v1, %v575_v15  ;;  %v6579_v31 = vld [vmem:[%s6489_s23 + $0x3c] sm:$0x1]  ;;  %v521_v33 = vrot.slane %v514_v19, 7  ;;  %v484_v34 = vsel %vm232_vm4, %v483_v12, %v482_v20  ;;  %v870_v38 = vld [vmem:[%s6489_s23 + $0xe] sm:$0x1]  ;;  %s8353_s3 = smov 60  }
  0x48   : > { %v662_v25 = vsel %vm227_vm2, %v661_v13, %v660_v22  ;;  %v791_v26 = vsel %vm222_vm0, %v790_v18, %v782_v14  ;;  %v664_v36 = vrot.slane %v6567_v21, 5  ;;  %v524_v37 = vrot.slane %v515_v24, 6  ;;  %v695_v39 = vld [vmem:[%s6489_s23 + $0x1a] sm:$0x1]  ;;  %v872_v46 = vld [vmem:[%s6489_s23 + $0x2e] sm:$0x1] }
  0x49   : > { %256 = vrot.lane.b32.xlu0 %v255_v10, %s6279_s16  ;;  %v792_v32 = vsel %vm224_vm1, %v790_v18, %v791_v26  ;;  %v663_v35 = vsel %vm229_vm3, %v661_v13, %v662_v25  ;;  %v522_v41 = vsel %vm222_vm0, %v521_v33, %v513_v27  ;;  %v527_v42 = vrot.slane %v516_v28, 5  ;;  %v694_v47 = vld [vmem:[%s6489_s23 + $0xa] sm:$0x1]  ;;  %v421_v48 = vld [vmem:[%s6489_s23 + $0x14] sm:$0x1]  ;;  %s6284_s4 = smov 4  }
  0x4a   : > { %v794_v40 = vsel %vm227_vm2, %v793_v23, %v792_v32  ;;  %v878_v43 = vrot.slane %v871_v29, 7  ;;  %v578_v44 = vsel %vm234_vm5, %v576_v1, %v577_v30  ;;  %v523_v45 = vsel %vm224_vm1, %v521_v33, %v522_v41  ;;  %v696_v52 = vld [vmem:[%s6489_s23 + $0x2a] sm:$0x1]  ;;  %v422_v54 = vld [vmem:[%s6489_s23 + $0x24] sm:$0x1]  ;;  %s6285_s5 = smov 68  }
  0x4b   : > { %v796_v49 = vrot.slane %v6579_v31, 5  ;;  %v525_v50 = vsel %vm227_vm2, %v524_v37, %v523_v45  ;;  %v702_v53 = vrot.slane %v695_v39, 7  ;;  %v485_v55 = vsel %vm234_vm5, %v483_v12, %v484_v34  ;;  %v420_v59 = vld [vmem:[%s6489_s23 + $0x4] sm:$0x1]  ;;  %v423_v60 = vld [vmem:[%s6489_s23 + $0x34] sm:$0x1] }
  0x4c   : > { %v879_v51 = vsel %vm222_vm0, %v878_v43, %v870_v38  ;;  %v665_v56 = vsel %vm232_vm4, %v664_v36, %v663_v35  ;;  %v795_v57 = vsel %vm229_vm3, %v793_v23, %v794_v40  ;;  %v526_v58 = vsel %vm229_vm3, %v524_v37, %v525_v50  ;;  %v262_v1 = vld [vmem:[%s6483_s9 + $0x11] sm:$0x1]  ;;  %v6610_v3 = vld [vmem:[%s6489_s23 + $0x3e] sm:$0x1]  ;;  %v6614_v7 = vld [vmem:[%s6489_s23 + $0x3a] sm:$0x1] }
  0x4d   : > { %v528_v61 = vsel %vm232_vm4, %v527_v42, %v526_v58  ;;  %v881_v62 = vrot.slane %v872_v46, 6  ;;  %v703_v63 = vsel %vm222_vm0, %v702_v53, %v694_v47  ;;  %v428_v0 = vrot.slane %v421_v48, 7  ;;  %v915_v11 = vld [vmem:[%s6489_s23 + $0x1f] sm:$0x1]  ;;  %v261_v14 = vld [vmem:[%s6483_s9 + $0x1] sm:$0x1] }
  0x4e   : > { %v529_v2 = vsel %vm234_vm5, %v527_v42, %v528_v61  ;;  %v880_v4 = vsel %vm224_vm1, %v878_v43, %v879_v51  ;;  %v705_v5 = vrot.slane %v696_v52, 6  ;;  %v431_v6 = vrot.slane %v422_v54, 6  ;;  %v914_v20 = vld [vmem:[%s6489_s23 + $0xf] sm:$0x1]  ;;  %v607_v21 = vld [vmem:[%s6489_s23 + $0x18] sm:$0x1] }
  0x4f   : > { %579 = vrot.lane.b32.xlu1 %v578_v44, %s6280_s24  ;;  %530 = vrot.lane.b32.xlu2 %v529_v2, %s6282_s26  ;;  %v704_v8 = vsel %vm224_vm1, %v702_v53, %v703_v63  ;;  %v429_v9 = vsel %vm222_vm0, %v428_v0, %v420_v59  ;;  %v434_v10 = vrot.slane %v423_v60, 5  ;;  %v797_v12 = vsel %vm232_vm4, %v796_v49, %v795_v57  ;;  %v263_v25 = vld [vmem:[%s6483_s9 + $0x21] sm:$0x1]  ;;  %v608_v27 = vld [vmem:[%s6489_s23 + $0x28] sm:$0x1]  ;;  %s6286_s6 = smov 52  }
  0x50   : > { %v430_v13 = vsel %vm224_vm1, %v428_v0, %v429_v9  ;;  %v269_v15 = vrot.slane %v262_v1, 7  ;;  %v666_v16 = vsel %vm234_vm5, %v664_v36, %v665_v56  ;;  %v882_v17 = vsel %vm227_vm2, %v881_v62, %v880_v4  ;;  %v916_v31 = vld [vmem:[%s6489_s23 + $0x2f] sm:$0x1]  ;;  %v606_v32 = vld [vmem:[%s6489_s23 + $0x8] sm:$0x1]  ;;  %s8357_s27 = smov 84  }
  0x51   : > { %486 = vrot.lane.b32.xlu0 %v485_v55, %s6281_s25  ;;  %v884_v18 = vrot.slane %v6610_v3, 5  ;;  %v432_v19 = vsel %vm227_vm2, %v431_v6, %v430_v13  ;;  %v706_v22 = vsel %vm227_vm2, %v705_v5, %v704_v8  ;;  %v708_v23 = vrot.slane %v6614_v7, 5  ;;  %v609_v33 = vld [vmem:[%s6489_s23 + $0x38] sm:$0x1]  ;;  %v355_v38 = vld [vmem:[%s6483_s9 + $0x13] sm:$0x1] }
  0x52   : > { %v433_v24 = vsel %vm229_vm3, %v431_v6, %v432_v19  ;;  %v922_v26 = vrot.slane %v915_v11, 7  ;;  %v798_v28 = vsel %vm234_vm5, %v796_v49, %v797_v12  ;;  %v270_v30 = vsel %vm222_vm0, %v269_v15, %v261_v14  ;;  %v6646_v42 = vld [vmem:[%s6483_s9 + $0x31] sm:$0x1]  ;;  %v443_v47 = vld [vmem:[%s6483_s9 + $0x15] sm:$0x1]  ;;  %s6288_s12 = smov 36  }
  0x53   : > { %v435_v29 = vsel %vm232_vm4, %v434_v10, %v433_v24  ;;  %v883_v34 = vsel %vm229_vm3, %v881_v62, %v882_v17  ;;  %v614_v37 = vrot.slane %v607_v21, 7  ;;  %v707_v39 = vsel %vm229_vm3, %v705_v5, %v706_v22  ;;  %v6657_v53 = vld [vmem:[%s6489_s23 + $0x3f] sm:$0x1]  ;;  %v354_v55 = vld [vmem:[%s6483_s9 + $0x3] sm:$0x1]  ;;  %s6289_s22 = smov 24  }
  0x54   : > { %v436_v35 = vsel %vm234_vm5, %v434_v10, %v435_v29  ;;  %v923_v36 = vsel %vm222_vm0, %v922_v26, %v914_v20  ;;  %v272_v40 = vrot.slane %v263_v25, 6  ;;  %v617_v41 = vrot.slane %v608_v27, 6  ;;  %v827_v56 = vld [vmem:[%s6489_s23 + $0x1d] sm:$0x1]  ;;  %v442_v60 = vld [vmem:[%s6483_s9 + $0x5] sm:$0x1] }
  0x55   : > { %v271_v43 = vsel %vm224_vm1, %v269_v15, %v270_v30  ;;  %v925_v44 = vrot.slane %v916_v31, 6  ;;  %v615_v45 = vsel %vm222_vm0, %v614_v37, %v606_v32  ;;  %v620_v46 = vrot.slane %v609_v33, 5  ;;  %v828_v62 = vld [vmem:[%s6489_s23 + $0x2d] sm:$0x1]  ;;  %v356_v2 = vld [vmem:[%s6483_s9 + $0x23] sm:$0x1] }
  0x56   : > { %v885_v48 = vsel %vm232_vm4, %v884_v18, %v883_v34  ;;  %v924_v49 = vsel %vm224_vm1, %v922_v26, %v923_v36  ;;  %v616_v50 = vsel %vm224_vm1, %v614_v37, %v615_v45  ;;  %v362_v51 = vrot.slane %v355_v38, 7  ;;  %v826_v3 = vld [vmem:[%s6489_s23 + $0xd] sm:$0x1]  ;;  %v829_v4 = vld [vmem:[%s6489_s23 + $0x3d] sm:$0x1]  ;;  %s6290_s28 = smov 76  }
  0x57   : > { %667 = vrot.lane.b32.xlu1 %v666_v16, %s8353_s3  ;;  %437 = vrot.lane.b32.xlu2 %v436_v35, %s6285_s5  ;;  %v709_v52 = vsel %vm232_vm4, %v708_v23, %v707_v39  ;;  %v618_v54 = vsel %vm227_vm2, %v617_v41, %v616_v50  ;;  %v273_v57 = vsel %vm227_vm2, %v272_v40, %v271_v43  ;;  %v275_v58 = vrot.slane %v6646_v42, 5  ;;  %v444_v8 = vld [vmem:[%s6483_s9 + $0x25] sm:$0x1]  ;;  %v541_v14 = vld [vmem:[%s6483_s9 + $0x17] sm:$0x1]  ;;  %s6291_s30 = smov 28  }
  0x58   : > { %v619_v59 = vsel %vm229_vm3, %v617_v41, %v618_v54  ;;  %v450_v61 = vrot.slane %v443_v47, 7  ;;  %v886_v63 = vsel %vm234_vm5, %v884_v18, %v885_v48  ;;  %v926_v0 = vsel %vm227_vm2, %v925_v44, %v924_v49  ;;  %v492_v19 = vld [vmem:[%s6483_s9 + $0x16] sm:$0x1]  ;;  %v6686_v20 = vld [vmem:[%s6483_s9 + $0x33] sm:$0x1]  ;;  %s6292_s7 = smov 72  }
  0x59   : > { %799 = vrot.lane.b32.xlu0 %v798_v28, %s6284_s4  ;;  %v621_v1 = vsel %vm232_vm4, %v620_v46, %v619_v59  ;;  %v710_v5 = vsel %vm234_vm5, %v708_v23, %v709_v52  ;;  %v928_v6 = vrot.slane %v6657_v53, 5  ;;  %v363_v7 = vsel %vm222_vm0, %v362_v51, %v354_v55  ;;  %v6693_v25 = vld [vmem:[%s6483_s9 + $0x35] sm:$0x1]  ;;  %v739_v29 = vld [vmem:[%s6489_s23 + $0x1b] sm:$0x1]  ;;  %s6293_s20 = smov 120  }
  0x5a   : > { %v834_v9 = vrot.slane %v827_v56, 7  ;;  %v274_v10 = vsel %vm229_vm3, %v272_v40, %v273_v57  ;;  %v622_v11 = vsel %vm234_vm5, %v620_v46, %v621_v1  ;;  %v451_v12 = vsel %vm222_vm0, %v450_v61, %v442_v60  ;;  %v540_v32 = vld [vmem:[%s6483_s9 + $0x7] sm:$0x1]  ;;  %v740_v34 = vld [vmem:[%s6489_s23 + $0x2b] sm:$0x1]  ;;  %s6294_s21 = smov 108  }
  0x5b   : > { %v837_v13 = vrot.slane %v828_v62, 6  ;;  %v927_v15 = vsel %vm229_vm3, %v925_v44, %v926_v0  ;;  %v365_v16 = vrot.slane %v356_v2, 6  ;;  %v840_v18 = vrot.slane %v829_v4, 5  ;;  %v491_v37 = vld [vmem:[%s6483_s9 + $0x6] sm:$0x1]  ;;  %s6295_s8 = smov 40  }
  0x5c   : > { %v835_v17 = vsel %vm222_vm0, %v834_v9, %v826_v3  ;;  %v364_v21 = vsel %vm224_vm1, %v362_v51, %v363_v7  ;;  %v453_v22 = vrot.slane %v444_v8, 6  ;;  %v276_v24 = vsel %vm232_vm4, %v275_v58, %v274_v10  ;;  %v738_v38 = vld [vmem:[%s6489_s23 + $0xb] sm:$0x1]  ;;  %v542_v42 = vld [vmem:[%s6483_s9 + $0x27] sm:$0x1]  ;;  %s6296_s18 = smov 16  }
  0x5d   : > { %v836_v23 = vsel %vm224_vm1, %v834_v9, %v835_v17  ;;  %v452_v26 = vsel %vm224_vm1, %v450_v61, %v451_v12  ;;  %v548_v28 = vrot.slane %v541_v14, 7  ;;  %v929_v30 = vsel %vm232_vm4, %v928_v6, %v927_v15  ;;  %v741_v43 = vld [vmem:[%s6489_s23 + $0x3b] sm:$0x1]  ;;  %v493_v48 = vld [vmem:[%s6483_s9 + $0x26] sm:$0x1]  ;;  %s6297_s23 = smov 48  }
  0x5e   : > { %v838_v27 = vsel %vm227_vm2, %v837_v13, %v836_v23  ;;  %v499_v33 = vrot.slane %v492_v19, 7  ;;  %v366_v35 = vsel %vm227_vm2, %v365_v16, %v364_v21  ;;  %v277_v39 = vsel %vm234_vm5, %v275_v58, %v276_v24  ;;  %v761_v54 = vld [vmem:[%s6483_s9 + $0x1c] sm:$0x1]  ;;  %v585_v59 = vld [vmem:[%s6483_s9 + $0x18] sm:$0x1]  ;;  %s6298_s19 = smov 32  }
  0x5f   : > { %887 = vrot.lane.b32.xlu1 %v886_v63, %s6286_s6  ;;  %623 = vrot.lane.b32.xlu2 %v622_v11, %s6288_s12  ;;  %v839_v31 = vsel %vm229_vm3, %v837_v13, %v838_v27  ;;  %v368_v40 = vrot.slane %v6686_v20, 5  ;;  %v454_v41 = vsel %vm227_vm2, %v453_v22, %v452_v26  ;;  %v746_v44 = vrot.slane %v739_v29, 7  ;;  %v311_v60 = vld [vmem:[%s6483_s9 + $0x12] sm:$0x1]  ;;  %v312_v0 = vld [vmem:[%s6483_s9 + $0x22] sm:$0x1] }
  0x60   : > { %v841_v36 = vsel %vm232_vm4, %v840_v18, %v839_v31  ;;  %v930_v45 = vsel %vm234_vm5, %v928_v6, %v929_v30  ;;  %v456_v46 = vrot.slane %v6693_v25, 5  ;;  %v549_v47 = vsel %vm222_vm0, %v548_v28, %v540_v32  ;;  %v543_v2 = vld [vmem:[%s6483_s9 + $0x37] sm:$0x1]  ;;  %v310_v6 = vld [vmem:[%s6483_s9 + $0x2] sm:$0x1]  ;;  %s8355_s15 = smov 64  }
  0x61   : > { %711 = vrot.lane.b32.xlu0 %v710_v5, %s8357_s27  ;;  %v749_v49 = vrot.slane %v740_v34, 6  ;;  %v367_v50 = vsel %vm229_vm3, %v365_v16, %v366_v35  ;;  %v842_v51 = vsel %vm234_vm5, %v840_v18, %v841_v36  ;;  %v500_v52 = vsel %vm222_vm0, %v499_v33, %v491_v37  ;;  %v494_v8 = vld [vmem:[%s6483_s9 + $0x36] sm:$0x1]  ;;  %v760_v9 = vld [vmem:[%s6483_s9 + $0xc] sm:$0x1]  ;;  %s6300_s24 = smov 96  }
  0x62   : > { %v747_v53 = vsel %vm222_vm0, %v746_v44, %v738_v38  ;;  %v455_v55 = vsel %vm229_vm3, %v453_v22, %v454_v41  ;;  %v551_v56 = vrot.slane %v542_v42, 6  ;;  %v752_v58 = vrot.slane %v741_v43, 5  ;;  %v584_v14 = vld [vmem:[%s6483_s9 + $0x8] sm:$0x1]  ;;  %v762_v19 = vld [vmem:[%s6483_s9 + $0x2c] sm:$0x1] }
  0x63   : > { %v748_v57 = vsel %vm224_vm1, %v746_v44, %v747_v53  ;;  %v550_v61 = vsel %vm224_vm1, %v548_v28, %v549_v47  ;;  %v502_v62 = vrot.slane %v493_v48, 6  ;;  %v369_v1 = vsel %vm232_vm4, %v368_v40, %v367_v50  ;;  %v313_v20 = vld [vmem:[%s6483_s9 + $0x32] sm:$0x1]  ;;  %v586_v25 = vld [vmem:[%s6483_s9 + $0x28] sm:$0x1]  ;;  %s6301_s25 = smov 112  }
  0x64   : > { %v750_v63 = vsel %vm227_vm2, %v749_v49, %v748_v57  ;;  %v501_v3 = vsel %vm224_vm1, %v499_v33, %v500_v52  ;;  %v768_v5 = vrot.slane %v761_v54, 7  ;;  %v457_v7 = vsel %vm232_vm4, %v456_v46, %v455_v55  ;;  %v673_v31 = vld [vmem:[%s6483_s9 + $0x1a] sm:$0x1]  ;;  %v399_v32 = vld [vmem:[%s6483_s9 + $0x14] sm:$0x1]  ;;  %s6302_s26 = smov 56  }
  0x65   : > { %v751_v4 = vsel %vm229_vm3, %v749_v49, %v750_v63  ;;  %v592_v10 = vrot.slane %v585_v59, 7  ;;  %v318_v11 = vrot.slane %v311_v60, 7  ;;  %v552_v12 = vsel %vm227_vm2, %v551_v56, %v550_v61  ;;  %v400_v36 = vld [vmem:[%s6483_s9 + $0x24] sm:$0x1]  ;;  %v763_v47 = vld [vmem:[%s6483_s9 + $0x3c] sm:$0x1] }
  0x66   : > { %v753_v13 = vsel %vm232_vm4, %v752_v58, %v751_v4  ;;  %v321_v15 = vrot.slane %v312_v0, 6  ;;  %v370_v16 = vsel %vm234_vm5, %v368_v40, %v369_v1  ;;  %v554_v17 = vrot.slane %v543_v2, 5  ;;  %v805_v40 = vld [vmem:[%s6483_s9 + $0x1d] sm:$0x1]  ;;  %v398_v41 = vld [vmem:[%s6483_s9 + $0x4] sm:$0x1] }
  0x67   : > { %278 = vrot.lane.b32.xlu1 %v277_v39, %s6289_s22  ;;  %843 = vrot.lane.b32.xlu2 %v842_v51, %s6291_s30  ;;  %v503_v18 = vsel %vm227_vm2, %v502_v62, %v501_v3  ;;  %v319_v21 = vsel %vm222_vm0, %v318_v11, %v310_v6  ;;  %v458_v22 = vsel %vm234_vm5, %v456_v46, %v457_v7  ;;  %v505_v23 = vrot.slane %v494_v8, 5  ;;  %v672_v48 = vld [vmem:[%s6483_s9 + $0xa] sm:$0x1]  ;;  %v587_v51 = vld [vmem:[%s6483_s9 + $0x38] sm:$0x1]  ;;  %s6303_s5 = smov 8  }
  0x68   : > { %v769_v24 = vsel %vm222_vm0, %v768_v5, %v760_v9  ;;  %v320_v26 = vsel %vm224_vm1, %v318_v11, %v319_v21  ;;  %v553_v27 = vsel %vm229_vm3, %v551_v56, %v552_v12  ;;  %v754_v28 = vsel %vm234_vm5, %v752_v58, %v753_v13  ;;  %v717_v55 = vld [vmem:[%s6483_s9 + $0x1b] sm:$0x1]  ;;  %v674_v58 = vld [vmem:[%s6483_s9 + $0x2a] sm:$0x1]  ;;  %v804_v59 = vld [vmem:[%s6483_s9 + $0xd] sm:$0x1] }
  0x69   : > { %931 = vrot.lane.b32.xlu0 %v930_v45, %s6290_s28  ;;  %v593_v29 = vsel %vm222_vm0, %v592_v10, %v584_v14  ;;  %v322_v30 = vsel %vm227_vm2, %v321_v15, %v320_v26  ;;  %v504_v33 = vsel %vm229_vm3, %v502_v62, %v503_v18  ;;  %v771_v34 = vrot.slane %v762_v19, 6  ;;  %v401_v60 = vld [vmem:[%s6483_s9 + $0x34] sm:$0x1]  ;;  %v716_v2 = vld [vmem:[%s6483_s9 + $0xb] sm:$0x1]  ;;  %s6304_s12 = smov 104  }
  0x6a   : > { %v324_v35 = vrot.slane %v313_v20, 5  ;;  %v770_v37 = vsel %vm224_vm1, %v768_v5, %v769_v24  ;;  %v595_v38 = vrot.slane %v586_v25, 6  ;;  %v323_v39 = vsel %vm229_vm3, %v321_v15, %v322_v30  ;;  %v806_v6 = vld [vmem:[%s6483_s9 + $0x2d] sm:$0x1]  ;;  %v718_v7 = vld [vmem:[%s6483_s9 + $0x2b] sm:$0x1] }
  0x6b   : > { %v555_v42 = vsel %vm232_vm4, %v554_v17, %v553_v27  ;;  %v594_v43 = vsel %vm224_vm1, %v592_v10, %v593_v29  ;;  %v680_v44 = vrot.slane %v673_v31, 7  ;;  %v406_v45 = vrot.slane %v399_v32, 7  ;;  %v893_v15 = vld [vmem:[%s6483_s9 + $0x1f] sm:$0x1]  ;;  %v807_v26 = vld [vmem:[%s6483_s9 + $0x3d] sm:$0x1] }
  0x6c   : > { %v506_v46 = vsel %vm232_vm4, %v505_v23, %v504_v33  ;;  %v409_v49 = vrot.slane %v400_v36, 6  ;;  %v772_v50 = vsel %vm227_vm2, %v771_v34, %v770_v37  ;;  %v325_v52 = vsel %vm232_vm4, %v324_v35, %v323_v39  ;;  %v892_v31 = vld [vmem:[%s6483_s9 + $0xf] sm:$0x1]  ;;  %v719_v32 = vld [vmem:[%s6483_s9 + $0x3b] sm:$0x1]  ;;  %s6309_s3 = smov 127  }
  0x6d   : > { %v812_v53 = vrot.slane %v805_v40, 7  ;;  %v407_v54 = vsel %vm222_vm0, %v406_v45, %v398_v41  ;;  %v556_v56 = vsel %vm234_vm5, %v554_v17, %v555_v42  ;;  %v596_v57 = vsel %vm227_vm2, %v595_v38, %v594_v43  ;;  %v629_v17 = vld [vmem:[%s6483_s9 + $0x19] sm:$0x1]  ;;  %v628_v33 = vld [vmem:[%s6483_s9 + $0x9] sm:$0x1]  ;;  %s6311_s27 = smov 123  }
  0x6e   : > { %v408_v61 = vsel %vm224_vm1, %v406_v45, %v407_v54  ;;  %v507_v62 = vsel %vm234_vm5, %v505_v23, %v506_v46  ;;  %v774_v63 = vrot.slane %v763_v47, 5  ;;  %v681_v0 = vsel %vm222_vm0, %v680_v44, %v672_v48  ;;  %v894_v40 = vld [vmem:[%s6483_s9 + $0x2f] sm:$0x1]  ;;  %v630_v41 = vld [vmem:[%s6483_s9 + $0x29] sm:$0x1]  ;;  %p203_p7 = scmp.lt.s32.totalorder %s6396_s13, 1 }
  0x6f   : > { %371 = vrot.lane.b32.xlu1 %v370_v16, %s6292_s7  ;;  %755 = vrot.lane.b32.xlu2 %v754_v28, %s6294_s21  ;;  %v410_v1 = vsel %vm227_vm2, %v409_v49, %v408_v61  ;;  %v773_v3 = vsel %vm229_vm3, %v771_v34, %v772_v50  ;;  %v598_v4 = vrot.slane %v587_v51, 5  ;;  %v326_v5 = vsel %vm234_vm5, %v324_v35, %v325_v52  ;;  %v849_v48 = vld [vmem:[%s6483_s9 + $0x1e] sm:$0x1] }
  0x70   : > { %v724_v8 = vrot.slane %v717_v55, 7  ;;  %v597_v9 = vsel %vm229_vm3, %v595_v38, %v596_v57  ;;  %v683_v10 = vrot.slane %v674_v58, 6  ;;  %v813_v11 = vsel %vm222_vm0, %v812_v53, %v804_v59  ;;  %v895_v58 = vld [vmem:[%s6483_s9 + $0x3f] sm:$0x1]  ;;  %v631_v59 = vld [vmem:[%s6483_s9 + $0x39] sm:$0x1] }
  0x71   : > { %459 = vrot.lane.b32.xlu0 %v458_v22, %s6293_s20  ;;  %v412_v12 = vrot.slane %v401_v60, 5  ;;  %v682_v13 = vsel %vm224_vm1, %v680_v44, %v681_v0  ;;  %v411_v14 = vsel %vm229_vm3, %v409_v49, %v410_v1  ;;  %v775_v18 = vsel %vm232_vm4, %v774_v63, %v773_v3  ;;  %v675_v22 = vld [vmem:[%s6483_s9 + $0x3a] sm:$0x1]  ;;  %v848_v60 = vld [vmem:[%s6483_s9 + $0xe] sm:$0x1]  ;;  %s8373_s13 = smov (!%p203_p7, %s6396_s13), 1 }
  0x72   : > { %v725_v16 = vsel %vm222_vm0, %v724_v8, %v716_v2  ;;  %v815_v19 = vrot.slane %v806_v6, 6  ;;  %v727_v20 = vrot.slane %v718_v7, 6  ;;  %v599_v21 = vsel %vm232_vm4, %v598_v4, %v597_v9  ;;  %v850_v1 = vld [vmem:[%s6483_s9 + $0x2e] sm:$0x1] }
  0x73   : > { %v814_v23 = vsel %vm224_vm1, %v812_v53, %v813_v11  ;;  %v726_v24 = vsel %vm224_vm1, %v724_v8, %v725_v16  ;;  %v684_v25 = vsel %vm227_vm2, %v683_v10, %v682_v13  ;;  %v413_v27 = vsel %vm232_vm4, %v412_v12, %v411_v14  ;;  %v851_v11 = vld [vmem:[%s6483_s9 + $0x3e] sm:$0x1] }
  0x74   : > { %v900_v28 = vrot.slane %v893_v15, 7  ;;  %v636_v29 = vrot.slane %v629_v17, 7  ;;  %v776_v30 = vsel %vm234_vm5, %v774_v63, %v775_v18  ;;  %v686_v34 = vrot.slane %v675_v22, 5 }
  0x75   : > { %v816_v35 = vsel %vm227_vm2, %v815_v19, %v814_v23  ;;  %v728_v36 = vsel %vm227_vm2, %v727_v20, %v726_v24  ;;  %v600_v37 = vsel %vm234_vm5, %v598_v4, %v599_v21  ;;  %v685_v38 = vsel %vm229_vm3, %v683_v10, %v684_v25 }
  0x76   : > { %v414_v39 = vsel %vm234_vm5, %v412_v12, %v413_v27  ;;  %v818_v42 = vrot.slane %v807_v26, 5  ;;  %v901_v43 = vsel %vm222_vm0, %v900_v28, %v892_v31  ;;  %v730_v44 = vrot.slane %v719_v32, 5  ;;  %v213_v26 = vld [vmem:[%s6483_s9] sm:$0x1]  ;;  %v214_v27 = vld [vmem:[%s6483_s9 + $0x10] sm:$0x1] }
  0x77   : > { %557 = vrot.lane.b32.xlu1 %v556_v56, %s6295_s8  ;;  %327 = vrot.lane.b32.xlu2 %v326_v5, %s6297_s23  ;;  %v637_v45 = vsel %vm222_vm0, %v636_v29, %v628_v33  ;;  %v817_v46 = vsel %vm229_vm3, %v815_v19, %v816_v35  ;;  %v729_v47 = vsel %vm229_vm3, %v727_v20, %v728_v36  ;;  %v903_v50 = vrot.slane %v894_v40, 6  ;;  %s6305_s8 = smov 88  }
  0x78   : > { %v687_v49 = vsel %vm232_vm4, %v686_v34, %v685_v38  ;;  %v639_v51 = vrot.slane %v630_v41, 6  ;;  %v902_v52 = vsel %vm224_vm1, %v900_v28, %v901_v43  ;;  %v638_v53 = vsel %vm224_vm1, %v636_v29, %v637_v45  ;;  %v215_v28 = vld [vmem:[%s6483_s9 + $0x20] sm:$0x1]  ;;  %v216_v29 = vld [vmem:[%s6483_s9 + $0x30] sm:$0x1]  ;;  %s6308_s9 = smov 126  }
  0x79   : > { %508 = vrot.lane.b32.xlu0 %v507_v62, %s6296_s18  ;;  %v819_v54 = vsel %vm232_vm4, %v818_v42, %v817_v46  ;;  %v731_v55 = vsel %vm232_vm4, %v730_v44, %v729_v47  ;;  %v856_v56 = vrot.slane %v849_v48, 7  ;;  %v688_v57 = vsel %vm234_vm5, %v686_v34, %v687_v49  ;;  %s6306_s18 = smov 80  }
  0x7a   : > { %v904_v61 = vsel %vm227_vm2, %v903_v50, %v902_v52  ;;  %v640_v62 = vsel %vm227_vm2, %v639_v51, %v638_v53  ;;  %v820_v63 = vsel %vm234_vm5, %v818_v42, %v819_v54  ;;  %v732_v0 = vsel %vm234_vm5, %v730_v44, %v731_v55 }
  0x7b   : > { %v906_v2 = vrot.slane %v895_v58, 5  ;;  %v642_v3 = vrot.slane %v631_v59, 5  ;;  %v857_v4 = vsel %vm222_vm0, %v856_v56, %v848_v60  ;;  %v905_v5 = vsel %vm229_vm3, %v903_v50, %v904_v61 }
  0x7c   : > { %v641_v6 = vsel %vm229_vm3, %v639_v51, %v640_v62  ;;  %v859_v7 = vrot.slane %v850_v1, 6  ;;  %v858_v8 = vsel %vm224_vm1, %v856_v56, %v857_v4  ;;  %v862_v15 = vrot.slane %v851_v11, 5 }
  0x7d   : > { %v907_v9 = vsel %vm232_vm4, %v906_v2, %v905_v5  ;;  %v643_v10 = vsel %vm232_vm4, %v642_v3, %v641_v6  ;;  %v6307_v19 = vmov 0.0   ;;  %vm306_vm6 = vcmask 1044448  }
  0x7e   : > { %v860_v12 = vsel %vm227_vm2, %v859_v7, %v858_v8  ;;  %v908_v13 = vsel %vm234_vm5, %v906_v2, %v907_v9  ;;  %v644_v14 = vsel %vm234_vm5, %v642_v3, %v643_v10  ;;  %210 = vst [vmem:[#allocation3] sm:$0xff] %v6307_v19  ;;  %vm307_vm7 = vcmask 97284  }
  0x7f   : > { %777 = vrot.lane.b32.xlu1 %v776_v30, %s6298_s19  ;;  %415 = vrot.lane.b32.xlu2 %v414_v39, %s6300_s24  ;;  %v861_v16 = vsel %vm229_vm3, %v859_v7, %v860_v12  ;;  %208 = vst [vmem:[#allocation2] sm:$0xff] %v6307_v19  ;;  %vm303_vm8 = vcmask 1014784   ;;  %vm259_vm9 = vcmask 945952   ;;  %vm308_vm10 = vmor %vm307_vm7, %vm306_vm6  ;;  %v221_v30 = vrot.slane %v214_v27, 7 }
  0x80   : > { %v863_v17 = vsel %vm232_vm4, %v862_v15, %v861_v16  ;;  %209 = vst [vmem:[#allocation2 + $0x8] sm:$0xf] %v6307_v19  ;;  %v226_v31 = vrot.slane %v215_v28, 6  ;;  %vm352_vm11 = vcmask 289952   ;;  %vm396_vm12 = vcmask 486752  }
  0x81   : > { %601 = vrot.lane.b32.xlu0 %v600_v37, %s8355_s15  ;;  %v864_v18 = vsel %vm234_vm5, %v862_v15, %v863_v17  ;;  %211 = vst [vmem:[#allocation3 + $0x8] sm:$0xff] %v6307_v19  ;;  %v223_v35 = vsel %vm222_vm0, %v221_v30, %v213_v26  ;;  %v231_v36 = vrot.slane %v216_v29, 5  ;;  %vm440_vm13 = vcmask 683552   ;;  %s6310_s15 = smov 125  }
  0x82   : > { %212 = vst [vmem:[#allocation3 + $0x10] sm:$0xf] %v6307_v19  ;;  %v225_v37 = vsel %vm224_vm1, %v221_v30, %v223_v35  ;;  %vm536_vm14 = vcmask 1044384   ;;  %vm537_vm15 = vcmask 31748   ;;  %vm237_vm6 = vcmask 125952  }
  0x83   : > { %v228_v38 = vsel %vm227_vm2, %v226_v31, %v225_v37  ;;  %vm533_vm7 = vcmask 949248   ;;  %vm489_vm0 = vcmask 880352   ;;  %vm582_vm1 = vcmask 224352  }
  0x84   : > { %v230_v39 = vsel %vm229_vm3, %v226_v31, %v228_v38  ;;  %vm626_vm2 = vcmask 421152   ;;  %vm670_vm3 = vcmask 617952   ;;  %v987_v37 = vlaneseq }
  0x85   : > { %v233_v41 = vsel %vm232_vm4, %v231_v36, %v230_v39  ;;  %vm846_vm4 = vcmask 355552  }
  0x86   : > { %v235_v43 = vsel %vm234_vm5, %v231_v36, %v233_v41  ;;  %vm890_vm5 = vcmask 552352  }
  0x87   : > { %689 = vrot.lane.b32.xlu1 %v688_v57, %s6301_s25  ;;  %733 = vrot.lane.b32.xlu2 %v732_v0, %s6303_s5  ;;  %238 = vst.msk [vmem:[#allocation2] sm:$0xf] %vm237_vm6, %v235_v43  ;;  %vm374_vm6 = vcmask 716352  }
  0x89   : > { %821 = vrot.lane.b32.xlu0 %v820_v63, %s6302_s26 }
  0x8f   : > { %645 = vrot.lane.b32.xlu2 %v644_v14, %s6305_s8 }
  0x91   : > { %909 = vrot.lane.b32.xlu0 %v908_v13, %s6304_s12 }
  0x97   : > { %865 = vrot.lane.b32.xlu2 %v864_v18, %s6306_s18 }
  0xa9   : > { %v531_v20 = vpop.permute.xlu2 %530 }
  0xaa   : > { %v532_v40 = vrot.slane %v531_v20, 4 }
  0xac   : > { %v534_v46 = vsel %vm533_vm7, %v532_v40, %v531_v20  ;;  %vm418_vm7 = vcmask 913152  }
  0xb1   : > { %v350_v21 = vpop.permute.xlu1 %349  ;;  %v438_v23 = vpop.permute.xlu2 %437 }
  0xb3   : > { %v301_v22 = vpop.permute.xlu0 %300 }
  0xb4   : > { %v302_v24 = vrot.slane %v301_v22, 4 }
  0xb6   : > { %v304_v34 = vsel %vm303_vm8, %v302_v24, %v301_v22 }
  0xb9   : > { %v394_v25 = vpop.permute.xlu1 %393  ;;  %v624_v33 = vpop.permute.xlu2 %623 }
  0xbb   : > { %v257_v32 = vpop.permute.xlu0 %256 }
  0xbc   : > { %260 = vst.msk [vmem:[#allocation3] sm:$0xf] %vm259_vm9, %v257_v32  ;;  %vm538_vm9 = vmor %vm537_vm15, %vm536_vm14  ;;  %vm330_vm14 = vcmask 519552   ;;  %vm934_vm15 = vcmask 749152  }
  0xbd   : > { %309 = vst.msk [vmem:[#allocation3] sm:$0xff] %vm308_vm10, %v304_v34  ;;  %vm802_vm10 = vcmask 158752  }
  0xbe   : > { %353 = vst.msk [vmem:[#allocation3 + $0x4] sm:$0xf] %vm352_vm11, %v350_v21  ;;  %vm714_vm11 = vcmask 814752  }
  0xbf   : > { %397 = vst.msk [vmem:[#allocation3 + $0x4] sm:$0xf] %vm396_vm12, %v394_v25  ;;  %vm758_vm12 = vcmask 1011552  }
  0xc0   : > { %441 = vst.msk [vmem:[#allocation3 + $0x4] sm:$0xf] %vm440_vm13, %v438_v23  ;;  %vm281_vm13 = vcmask 322752  }
  0xc1   : > { %v580_v42 = vpop.permute.xlu1 %579  ;;  %v844_v45 = vpop.permute.xlu2 %843 }
  0xc3   : > { %v487_v44 = vpop.permute.xlu0 %486 }
  0xc4   : > { %490 = vst.msk [vmem:[#allocation3 + $0x4] sm:$0xf] %vm489_vm0, %v487_v44  ;;  %vm465_vm0 = vcmask 1044416  }
  0xc5   : > { %539 = vst.msk [vmem:[#allocation3 + $0x4] sm:$0xff] %vm538_vm9, %v534_v46  ;;  %vm466_vm9 = vcmask 64516  }
  0xc6   : > { %583 = vst.msk [vmem:[#allocation3 + $0x8] sm:$0xf] %vm582_vm1, %v580_v42  ;;  %vm736_vm1 = vcmask 191552  }
  0xc7   : > { %627 = vst.msk [vmem:[#allocation3 + $0x8] sm:$0xf] %vm626_vm2, %v624_v33  ;;  %vm462_vm2 = vcmask 982016  }
  0xc9   : > { %v668_v47 = vpop.permute.xlu1 %667  ;;  %v756_v49 = vpop.permute.xlu2 %755 }
  0xca   : > { %671 = vst.msk [vmem:[#allocation3 + $0x8] sm:$0xf] %vm670_vm3, %v668_v47  ;;  %vm467_vm3 = vmor %vm466_vm9, %vm465_vm0  ;;  %vm982_vm0 = vcmask 1040384   ;;  %vm984_vm9 = vcmask 1041408  }
  0xcb   : > { %v800_v48 = vpop.permute.xlu0 %799 }
  0xcc   : > { %803 = vst.msk [vmem:[#allocation3 + $0xc] sm:$0xf] %vm802_vm10, %v800_v48  ;;  %v6868_v50 = vld [vmem:[#allocation3] sm:$0xff]  ;;  %vm511_vm10 = vcmask 257152  }
  0xcd   : > { %847 = vst.msk [vmem:[#allocation3 + $0xc] sm:$0xf] %vm846_vm4, %v844_v45  ;;  %1058 = vrot.lane.b32.xlu0 %v6868_v50, %s6308_s9  ;;  %997 = vrot.lane.b32.xlu1 %v6868_v50, %s6309_s3  ;;  %vm560_vm4 = vcmask 453952  }
  0xd1   : > { %v888_v51 = vpop.permute.xlu1 %887  ;;  %v328_v53 = vpop.permute.xlu2 %327 }
  0xd2   : > { %891 = vst.msk [vmem:[#allocation3 + $0xc] sm:$0xf] %vm890_vm5, %v888_v51  ;;  %vm780_vm5 = vcmask 388352  }
  0xd3   : > { %v712_v52 = vpop.permute.xlu0 %711 }
  0xd4   : > { %715 = vst.msk [vmem:[#allocation3 + $0x8] sm:$0xf] %vm714_vm11, %v712_v52  ;;  %vm604_vm11 = vcmask 650752  }
  0xd5   : > { %759 = vst.msk [vmem:[#allocation3 + $0x8] sm:$0xf] %vm758_vm12, %v756_v49  ;;  %vm648_vm12 = vcmask 847552  }
  0xd9   : > { %v279_v54 = vpop.permute.xlu1 %278  ;;  %v416_v56 = vpop.permute.xlu2 %415 }
  0xda   : > { %282 = vst.msk [vmem:[#allocation2] sm:$0xf] %vm281_vm13, %v279_v54  ;;  %vm692_vm13 = vcmask 1044352  }
  0xdb   : > { %v932_v55 = vpop.permute.xlu0 %931  ;;  %331 = vst.msk [vmem:[#allocation2] sm:$0xf] %vm330_vm14, %v328_v53  ;;  %vm824_vm14 = vcmask 585152  }
  0xdc   : > { %935 = vst.msk [vmem:[#allocation3 + $0xc] sm:$0xf] %vm934_vm15, %v932_v55  ;;  %vm868_vm15 = vcmask 781952   ;;  %v941_v13 = vld [vmem:[#allocation3 + $0x8] sm:$0xf] }
  0xe1   : > { %v372_v57 = vpop.permute.xlu1 %371  ;;  %v734_v60 = vpop.permute.xlu2 %733 }
  0xe2   : > { %375 = vst.msk [vmem:[#allocation2] sm:$0xf] %vm374_vm6, %v372_v57  ;;  %vm912_vm6 = vcmask 978752  }
  0xe3   : > { %v460_v58 = vpop.permute.xlu0 %459  ;;  %v6874_v59 = vld [vmem:[#allocation3 + $0x8] sm:$0xff]  ;;  %419 = vst.msk [vmem:[#allocation2] sm:$0xf] %vm418_vm7, %v416_v56  ;;  %vm955_vm7 = vcmask 1043456  }
  0xe4   : > { %v461_v61 = vrot.slane %v460_v58, 4  ;;  %1121 = vrot.lane.b32.xlu0 %v6874_v59, %s6310_s15  ;;  %1060 = vrot.lane.b32.xlu1 %v6874_v59, %s6308_s9  ;;  %737 = vst.msk [vmem:[#allocation2 + $0x8] sm:$0xf] %vm736_vm1, %v734_v60  ;;  %s6317_s9 = smov 99   ;;  %vm6931_vm1 = vcmp.lt.s32.totalorder %v987_v37, 384 }
  0xe5   : > { %999 = vrot.lane.b32.xlu2 %v6874_v59, %s6309_s3  ;;  %s6312_s3 = smov 122  }
  0xe6   : > { %v463_v62 = vsel %vm462_vm2, %v461_v61, %v460_v58 }
  0xe7   : > { %468 = vst.msk [vmem:[#allocation2] sm:$0xff] %vm467_vm3, %v463_v62  ;;  %vm1004_vm3 = vcmask 1039360  }
  0xe9   : > { %v558_v63 = vpop.permute.xlu1 %557  ;;  %v646_v1 = vpop.permute.xlu2 %645 }
  0xeb   : > { %v509_v0 = vpop.permute.xlu0 %508 }
  0xec   : > { %512 = vst.msk [vmem:[#allocation2 + $0x4] sm:$0xf] %vm511_vm10, %v509_v0  ;;  %1240 = vrot.lane.b32.xlu0 %v6868_v50, %s6311_s27  ;;  %1180 = vrot.lane.b32.xlu1 %v6868_v50, %s6277_s29  ;;  %vm1065_vm10 = vcmask 1031168  }
  0xed   : > { %1119 = vrot.lane.b32.xlu2 %v6868_v50, %s6310_s15  ;;  %561 = vst.msk [vmem:[#allocation2 + $0x4] sm:$0xf] %vm560_vm4, %v558_v63  ;;  %s6313_s15 = smov 121   ;;  %vm1126_vm4 = vcmask 1022976  }
  0xf1   : > { %v778_v2 = vpop.permute.xlu1 %777  ;;  %v866_v5 = vpop.permute.xlu2 %865 }
  0xf2   : > { %781 = vst.msk [vmem:[#allocation2 + $0x8] sm:$0xf] %vm780_vm5, %v778_v2  ;;  %vm1308_vm5 = vcmask 998400  }
  0xf3   : > { %v602_v3 = vpop.permute.xlu0 %601 }
  0xf4   : > { %605 = vst.msk [vmem:[#allocation2 + $0x4] sm:$0xf] %vm604_vm11, %v602_v3  ;;  %1303 = vrot.lane.b32.xlu0 %v6874_v59, %s6312_s3  ;;  %1242 = vrot.lane.b32.xlu1 %v6874_v59, %s6311_s27  ;;  %s6315_s27 = smov 103   ;;  %vm1369_vm11 = vcmask 990208  }
  0xf5   : > { %1182 = vrot.lane.b32.xlu2 %v6874_v59, %s6277_s29  ;;  %649 = vst.msk [vmem:[#allocation2 + $0x4] sm:$0xf] %vm648_vm12, %v646_v1  ;;  %s6314_s29 = smov 102   ;;  %vm1551_vm12 = vcmask 842752  }
  0xf9   : > { %v690_v4 = vpop.permute.xlu1 %689 }
  0xfa   : > { %693 = vst.msk [vmem:[#allocation2 + $0x4] sm:$0xf] %vm692_vm13, %v690_v4  ;;  %vm1612_vm13 = vcmask 834560  }
  0xfb   : > { %v822_v6 = vpop.permute.xlu0 %821 }
  0xfc   : > { %825 = vst.msk [vmem:[#allocation2 + $0x8] sm:$0xf] %vm824_vm14, %v822_v6  ;;  %1423 = vrot.lane.b32.xlu0 %v6868_v50, %s6293_s20  ;;  %1362 = vrot.lane.b32.xlu1 %v6868_v50, %s6313_s15  ;;  %vm1673_vm14 = vcmask 826368  }
  0xfd   : > { %1301 = vrot.lane.b32.xlu2 %v6868_v50, %s6312_s3  ;;  %869 = vst.msk [vmem:[#allocation2 + $0x8] sm:$0xf] %vm868_vm15, %v866_v5  ;;  %s6041_s3 = smul.u32 264, %s8373_s13  ;;  %s6319_s13 = smov 97   ;;  %vm1734_vm15 = vcmask 818176  }
 0x101   : > { %v936_v7 = vld [vmem:[#allocation2] sm:$0xff] }
 0x102   : > { %v6894_v8 = vmul.f32 0.25, %v936_v7 }
 0x103   : > { %v910_v9 = vpop.permute.xlu0 %909 }
 0x104   : > { %913 = vst.msk [vmem:[#allocation2 + $0x8] sm:$0xf] %vm912_vm6, %v910_v9  ;;  %1485 = vrot.lane.b32.xlu0 %v6874_v59, %s6304_s12  ;;  %1425 = vrot.lane.b32.xlu1 %v6874_v59, %s6293_s20  ;;  %v942_v10 = vmul.f32 %v6868_v50, %v6894_v8  ;;  %s6316_s20 = smov 101   ;;  %vm1795_vm6 = vcmask 809984  }
 0x105   : > { %1364 = vrot.lane.b32.xlu2 %v6874_v59, %s6313_s15  ;;  %s6318_s15 = smov 98  }
 0x106   : > { %946 = vst [vmem:[#allocation1] ss:$2 sm:$0xff] %v942_v10 }
 0x10b   : > { %v937_v11 = vld [vmem:[#allocation2 + $0x8] sm:$0xf] }
 0x10c   : > { %v6903_v12 = vmul.f32 0.25, %v937_v11  ;;  %1605 = vrot.lane.b32.xlu0 %v6868_v50, %s6314_s29  ;;  %1544 = vrot.lane.b32.xlu1 %v6868_v50, %s6315_s27 }
 0x10d   : > { %1483 = vrot.lane.b32.xlu2 %v6868_v50, %s6304_s12  ;;  %v949_v14 = vld.sshfl [vmem:[#allocation1] sm:$0xff pattern:$0x75316420]  ;;  %v950_v15 = vld.sshfl [vmem:[#allocation1 + $0x8] sm:$0xff pattern:$0x75316420] }
 0x10e   : > { %v943_v16 = vmul.f32 %v941_v13, %v6903_v12  ;;  %v956_v17 = vsel %vm955_vm7, %v949_v14, 0.0  ;;  %v963_v18 = vsel %vm955_vm7, %v950_v15, 0.0 }
 0x10f   : > { %v964_v19 = vrot.slane %v963_v18, 4  ;;  %v957_v20 = vrot.slane %v956_v17, 4 }
 0x110   : > { %948 = vst [vmem:[#allocation1 + $0x10] ss:$2 sm:$0xff] %v943_v16 }
 0x111   : > { %v965_v21 = vadd.f32 %v964_v19, %v963_v18  ;;  %v958_v23 = vadd.f32 %v957_v20, %v956_v17 }
 0x113   : > { %v966_v22 = vrot.slane %v965_v21, 2  ;;  %v959_v27 = vrot.slane %v958_v23, 2 }
 0x114   : > { %1668 = vrot.lane.b32.xlu0 %v6874_v59, %s6316_s20  ;;  %1607 = vrot.lane.b32.xlu1 %v6874_v59, %s6314_s29  ;;  %s6327_s29 = smov 55  }
 0x115   : > { %1546 = vrot.lane.b32.xlu2 %v6874_v59, %s6315_s27  ;;  %v967_v24 = vadd.f32 %v966_v22, %v965_v21  ;;  %v960_v31 = vadd.f32 %v959_v27, %v958_v23  ;;  %s6328_s27 = smov 53  }
 0x117   : > { %v951_v25 = vld.sshfl [vmem:[#allocation1 + $0x10] sm:$0xff pattern:$0x75316420]  ;;  %v968_v29 = vrot.slane %v967_v24, 1  ;;  %v961_v35 = vrot.slane %v960_v31, 1 }
 0x118   : > { %v970_v26 = vsel %vm955_vm7, %v951_v25, 0.0 }
 0x119   : > { %v971_v28 = vrot.slane %v970_v26, 4  ;;  %v969_v33 = vadd.f32 %v968_v29, %v967_v24  ;;  %v962_v40 = vadd.f32 %v961_v35, %v960_v31 }
 0x11b   : > { %v972_v30 = vadd.f32 %v971_v28, %v970_v26  ;;  %v980_v38 = vrot.slane %v969_v33, 7 }
 0x11c   : > { %1788 = vrot.lane.b32.xlu0 %v6868_v50, %s6317_s9  ;;  %1727 = vrot.lane.b32.xlu1 %v6868_v50, %s6279_s16 }
 0x11d   : > { %1666 = vrot.lane.b32.xlu2 %v6868_v50, %s6316_s20  ;;  %v973_v32 = vrot.slane %v972_v30, 2  ;;  %s6929_s20 = scalar_lea.vmem %s8352_s2, %s6041_s3  ;;  %v983_v43 = vsel %vm982_vm0, %v962_v40, %v980_v38  ;;  %s6323_s3 = smov 75  }
 0x11f   : > { %v974_v34 = vadd.f32 %v973_v32, %v972_v30 }
 0x121   : > { %v975_v36 = vrot.slane %v974_v34, 1 }
 0x123   : > { %v976_v39 = vadd.f32 %v975_v36, %v974_v34 }
 0x124   : > { %1851 = vrot.lane.b32.xlu0 %v6874_v59, %s6318_s15  ;;  %1790 = vrot.lane.b32.xlu1 %v6874_v59, %s6317_s9  ;;  %s6321_s9 = smov 79  }
 0x125   : > { %1729 = vrot.lane.b32.xlu2 %v6874_v59, %s6279_s16  ;;  %v981_v41 = vrot.slane %v976_v39, 6  ;;  %s6320_s16 = smov 78  }
 0x127   : > { %v985_v44 = vsel %vm984_vm9, %v983_v43, %v981_v41 }
 0x128   : > { %991 = vst.msk [vmem:[%s6929_s20] ss:$8 sm:$0x7] %vm6931_vm1, %v985_v44 }
 0x12c   : > { %1971 = vrot.lane.b32.xlu0 %v6868_v50, %s6300_s24  ;;  %1910 = vrot.lane.b32.xlu1 %v6868_v50, %s6319_s13 }
 0x12d   : > { %1849 = vrot.lane.b32.xlu2 %v6868_v50, %s6318_s15  ;;  %s6324_s15 = smov 74  }
 0x134   : > { %2034 = vrot.lane.b32.xlu0 %v6874_v59, %s6306_s18  ;;  %1973 = vrot.lane.b32.xlu1 %v6874_v59, %s6300_s24  ;;  %s6322_s24 = smov 77  }
 0x135   : > { %1912 = vrot.lane.b32.xlu2 %v6874_v59, %s6319_s13  ;;  %s6329_s13 = smov 51  }
 0x13c   : > { %2154 = vrot.lane.b32.xlu0 %v6868_v50, %s6320_s16  ;;  %2093 = vrot.lane.b32.xlu1 %v6868_v50, %s6321_s9 }
 0x13d   : > { %2032 = vrot.lane.b32.xlu2 %v6868_v50, %s6306_s18 }
 0x13f   : > { %v1000_v45 = vpop.permute.xlu2 %999  ;;  %v998_v47 = vpop.permute.xlu1 %997 }
 0x140   : > { %v1002_v46 = vrot.slane %v1000_v45, 4  ;;  %v1001_v48 = vrot.slane %v998_v47, 4  ;;  %v1059_v63 = vpop.permute.xlu0 %1058 }
 0x141   : > { %v1062_v14 = vrot.slane %v1059_v63, 4 }
 0x142   : > { %v1006_v49 = vsel %vm1004_vm3, %v1000_v45, %v1002_v46  ;;  %v1003_v52 = vsel %vm955_vm7, %v1001_v48, %v1002_v46 }
 0x143   : > { %v1010_v51 = vmul.f32 %v1006_v49, %v6903_v12  ;;  %v1005_v53 = vsel %vm1004_vm3, %v998_v47, %v1003_v52  ;;  %vm1856_vm3 = vcmask 801792  }
 0x144   : > { %2217 = vrot.lane.b32.xlu0 %v6874_v59, %s6322_s24  ;;  %2156 = vrot.lane.b32.xlu1 %v6874_v59, %s6320_s16  ;;  %v1009_v54 = vmul.f32 %v1005_v53, %v6894_v8  ;;  %s6330_s16 = smov 50  }
 0x145   : > { %1015 = vst [vmem:[#allocation1 + $0x10] ss:$2 sm:$0xff] %v1010_v51  ;;  %2095 = vrot.lane.b32.xlu2 %v6874_v59, %s6321_s9  ;;  %s6333_s9 = smov 31  }
 0x146   : > { %1013 = vst [vmem:[#allocation1] ss:$2 sm:$0xff] %v1009_v54 }
 0x147   : > { %v1120_v22 = vpop.permute.xlu2 %1119 }
 0x148   : > { %v1123_v31 = vrot.slane %v1120_v22, 4 }
 0x14c   : > { %v1018_v55 = vld.sshfl [vmem:[#allocation1 + $0x10] sm:$0xff pattern:$0x75316420]  ;;  %2337 = vrot.lane.b32.xlu0 %v6868_v50, %s6323_s3  ;;  %2276 = vrot.lane.b32.xlu1 %v6868_v50, %s6290_s28 }
 0x14d   : > { %v1036_v56 = vsel %vm955_vm7, %v1018_v55, 0.0  ;;  %2215 = vrot.lane.b32.xlu2 %v6868_v50, %s6322_s24  ;;  %v1016_v58 = vld.sshfl [vmem:[#allocation1] sm:$0xff pattern:$0x75316420]  ;;  %s6335_s24 = smov 27  }
 0x14e   : > { %v1037_v57 = vrot.slane %v1036_v56, 4  ;;  %v1017_v60 = vld.sshfl [vmem:[#allocation1 + $0x8] sm:$0xff pattern:$0x75316420]  ;;  %v1022_v61 = vsel %vm955_vm7, %v1016_v58, 0.0 }
 0x14f   : > { %v1023_v0 = vrot.slane %v1022_v61, 4  ;;  %v1029_v1 = vsel %vm955_vm7, %v1017_v60, 0.0  ;;  %v1183_v39 = vpop.permute.xlu2 %1182 }
 0x150   : > { %v1038_v62 = vadd.f32 %v1037_v57, %v1036_v56  ;;  %v1030_v2 = vrot.slane %v1029_v1, 4  ;;  %v1185_v48 = vrot.slane %v1183_v39, 4 }
 0x151   : > { %v1024_v4 = vadd.f32 %v1023_v0, %v1022_v61  ;;  %v6995_v0 = vld [vmem:[#allocation3] sm:$0xff] }
 0x152   : > { %v1039_v3 = vrot.slane %v1038_v62, 2  ;;  %v1031_v5 = vadd.f32 %v1030_v2, %v1029_v1  ;;  %v1188_v61 = vsel %vm303_vm8, %v1183_v39, %v1185_v48 }
 0x153   : > { %v1025_v7 = vrot.slane %v1024_v4, 2 }
 0x154   : > { %v1040_v6 = vadd.f32 %v1039_v3, %v1038_v62  ;;  %2400 = vrot.lane.b32.xlu0 %v6874_v59, %s6324_s15  ;;  %2339 = vrot.lane.b32.xlu1 %v6874_v59, %s6323_s3  ;;  %v1032_v9 = vrot.slane %v1031_v5, 2  ;;  %s6336_s3 = smov 26  }
 0x155   : > { %2278 = vrot.lane.b32.xlu2 %v6874_v59, %s6290_s28  ;;  %v1026_v11 = vadd.f32 %v1025_v7, %v1024_v4  ;;  %s6325_s28 = smov 73   ;;  %v1192_v7 = vmul.f32 %v1188_v61, %v6903_v12 }
 0x156   : > { %v1041_v10 = vrot.slane %v1040_v6, 1  ;;  %v1061_v13 = vpop.permute.xlu1 %1060  ;;  %v1033_v15 = vadd.f32 %v1032_v9, %v1031_v5  ;;  %v1122_v17 = vpop.permute.xlu0 %1121 }
 0x157   : > { %v1063_v16 = vrot.slane %v1061_v13, 4  ;;  %v1027_v18 = vrot.slane %v1026_v11, 1  ;;  %v1124_v24 = vrot.slane %v1122_v17, 4 }
 0x158   : > { %v1034_v19 = vrot.slane %v1033_v15, 1  ;;  %v1042_v21 = vadd.f32 %v1041_v10, %v1040_v6 }
 0x159   : > { %v1064_v20 = vsel %vm955_vm7, %v1062_v14, %v1063_v16  ;;  %v1067_v26 = vsel %vm1065_vm10, %v1061_v13, %v1063_v16  ;;  %v1028_v29 = vadd.f32 %v1027_v18, %v1026_v11  ;;  %v1125_v34 = vsel %vm955_vm7, %v1123_v31, %v1124_v24 }
 0x15a   : > { %v1035_v23 = vadd.f32 %v1034_v19, %v1033_v15  ;;  %v1066_v25 = vsel %vm1065_vm10, %v1059_v63, %v1064_v20  ;;  %v1071_v28 = vmul.f32 %v1067_v26, %v6903_v12  ;;  %v1047_v32 = vrot.slane %v1042_v21, 6 }
 0x15b   : > { %v1070_v27 = vmul.f32 %v1066_v25, %v6894_v8  ;;  %v1127_v37 = vsel %vm1126_vm4, %v1120_v22, %v1125_v34  ;;  %v1128_v38 = vsel %vm1126_vm4, %v1122_v17, %v1124_v24  ;;  %vm1917_vm10 = vcmask 793600  }
 0x15c   : > { %2520 = vrot.lane.b32.xlu0 %v6868_v50, %s6292_s7  ;;  %2459 = vrot.lane.b32.xlu1 %v6868_v50, %s6325_s28  ;;  %v1046_v30 = vrot.slane %v1035_v23, 7  ;;  %1076 = vst [vmem:[#allocation1 + $0x10] ss:$2 sm:$0xff] %v1071_v28  ;;  %v1132_v44 = vmul.f32 %v1128_v38, %v6903_v12  ;;  %vm1978_vm4 = vcmask 785408  }
 0x15d   : > { %2398 = vrot.lane.b32.xlu2 %v6868_v50, %s6324_s15  ;;  %1074 = vst [vmem:[#allocation1] ss:$2 sm:$0xff] %v1070_v27  ;;  %v1131_v50 = vmul.f32 %v1127_v37, %v6894_v8  ;;  %s6339_s15 = smov 7  }
 0x15e   : > { %v1048_v33 = vsel %vm982_vm0, %v1028_v29, %v1046_v30  ;;  %v1181_v36 = vpop.permute.xlu1 %1180  ;;  %v1241_v58 = vpop.permute.xlu0 %1240 }
 0x15f   : > { %v1049_v35 = vsel %vm984_vm9, %v1048_v33, %v1047_v32  ;;  %v1184_v40 = vrot.slane %v1181_v36, 4  ;;  %v1244_v5 = vrot.slane %v1241_v58, 4  ;;  %v7010_v32 = vld [vmem:[#allocation3 + $0x8] sm:$0xff] }
 0x160   : > { %5957 = vst.msk [vmem:[%s6929_s20 + $0x1] ss:$8 sm:$0x7] %vm6931_vm1, %v1049_v35  ;;  %v1302_v35 = vpop.permute.xlu2 %1301 }
 0x161   : > { %v1186_v56 = vsel %vm955_vm7, %v1184_v40, %v1185_v48 }
 0x162   : > { %v1187_v2 = vsel %vm303_vm8, %v1181_v36, %v1186_v56  ;;  %vm1247_vm8 = vcmask 1006592  }
 0x163   : > { %v1079_v45 = vld.sshfl [vmem:[#allocation1 + $0x10] sm:$0xff pattern:$0x75316420]  ;;  %v1191_v17 = vmul.f32 %v1187_v2, %v6894_v8 }
 0x164   : > { %2583 = vrot.lane.b32.xlu0 %v6874_v59, %s6302_s26  ;;  %2522 = vrot.lane.b32.xlu1 %v6874_v59, %s6292_s7  ;;  %v1077_v41 = vld.sshfl [vmem:[#allocation1] sm:$0xff pattern:$0x75316420]  ;;  %v1078_v43 = vld.sshfl [vmem:[#allocation1 + $0x8] sm:$0xff pattern:$0x75316420] }
 0x165   : > { %2461 = vrot.lane.b32.xlu2 %v6874_v59, %s6325_s28  ;;  %v1083_v46 = vsel %vm955_vm7, %v1077_v41, 0.0  ;;  %v1090_v47 = vsel %vm955_vm7, %v1078_v43, 0.0  ;;  %v1097_v52 = vsel %vm955_vm7, %v1079_v45, 0.0  ;;  %1135 = vst [vmem:[#allocation1] ss:$2 sm:$0xff] %v1131_v50  ;;  %s6326_s7 = smov 54  }
 0x166   : > { %v1084_v49 = vrot.slane %v1083_v46, 4  ;;  %v1091_v51 = vrot.slane %v1090_v47, 4  ;;  %v1098_v53 = vrot.slane %v1097_v52, 4  ;;  %1137 = vst [vmem:[#allocation1 + $0x10] ss:$2 sm:$0xff] %v1132_v44  ;;  %v1243_v60 = vpop.permute.xlu1 %1242  ;;  %v1304_v39 = vpop.permute.xlu0 %1303  ;;  %s6341_s28 = smov 3  }
 0x167   : > { %v1245_v6 = vrot.slane %v1243_v60, 4 }
 0x168   : > { %v1085_v54 = vadd.f32 %v1084_v49, %v1083_v46  ;;  %v1092_v55 = vadd.f32 %v1091_v51, %v1090_v47  ;;  %v1099_v57 = vadd.f32 %v1098_v53, %v1097_v52  ;;  %v1306_v49 = vrot.slane %v1304_v39, 4 }
 0x169   : > { %v1246_v27 = vsel %vm955_vm7, %v1244_v5, %v1245_v6  ;;  %v1249_v43 = vsel %vm1247_vm8, %v1243_v60, %v1245_v6 }
 0x16a   : > { %v1086_v62 = vrot.slane %v1085_v54, 2  ;;  %v1093_v63 = vrot.slane %v1092_v55, 2  ;;  %v1100_v1 = vrot.slane %v1099_v57, 2  ;;  %v1248_v40 = vsel %vm1247_vm8, %v1241_v58, %v1246_v27 }
 0x16b   : > { %v1252_v51 = vmul.f32 %v1248_v40, %v6894_v8  ;;  %v1253_v56 = vmul.f32 %v1249_v43, %v6903_v12  ;;  %vm2039_vm8 = vcmask 654336  }
 0x16c   : > { %2703 = vrot.lane.b32.xlu0 %v6995_v0, %s6326_s7  ;;  %2642 = vrot.lane.b32.xlu1 %v6995_v0, %s6327_s29  ;;  %v1087_v3 = vadd.f32 %v1086_v62, %v1085_v54  ;;  %v1094_v4 = vadd.f32 %v1093_v63, %v1092_v55  ;;  %v1101_v9 = vadd.f32 %v1100_v1, %v1099_v57  ;;  %v1138_v10 = vld.sshfl [vmem:[#allocation1] sm:$0xff pattern:$0x75316420]  ;;  %v1139_v11 = vld.sshfl [vmem:[#allocation1 + $0x8] sm:$0xff pattern:$0x75316420] }
 0x16d   : > { %2581 = vrot.lane.b32.xlu2 %v6995_v0, %s6302_s26  ;;  %v1140_v15 = vld.sshfl [vmem:[#allocation1 + $0x10] sm:$0xff pattern:$0x75316420]  ;;  %v1144_v16 = vsel %vm955_vm7, %v1138_v10, 0.0  ;;  %v1151_v20 = vsel %vm955_vm7, %v1139_v11, 0.0  ;;  %v1305_v57 = vrot.slane %v1302_v35, 4 }
 0x16e   : > { %v1088_v13 = vrot.slane %v1087_v3, 1  ;;  %v1095_v14 = vrot.slane %v1094_v4, 1  ;;  %v1102_v18 = vrot.slane %v1101_v9, 1  ;;  %v1145_v19 = vrot.slane %v1144_v16, 4  ;;  %1197 = vst [vmem:[#allocation1 + $0x10] ss:$2 sm:$0xff] %v1192_v7 }
 0x16f   : > { %v1158_v21 = vsel %vm955_vm7, %v1140_v15, 0.0  ;;  %v1152_v23 = vrot.slane %v1151_v20, 4  ;;  %1195 = vst [vmem:[#allocation1] ss:$2 sm:$0xff] %v1191_v17 }
 0x170   : > { %v1096_v22 = vadd.f32 %v1095_v14, %v1094_v4  ;;  %v1159_v24 = vrot.slane %v1158_v21, 4  ;;  %v1103_v25 = vadd.f32 %v1102_v18, %v1101_v9  ;;  %v1146_v26 = vadd.f32 %v1145_v19, %v1144_v16  ;;  %v1363_v9 = vpop.permute.xlu1 %1362 }
 0x171   : > { %v1089_v28 = vadd.f32 %v1088_v13, %v1087_v3  ;;  %v1153_v30 = vadd.f32 %v1152_v23, %v1151_v20  ;;  %v1307_v3 = vsel %vm955_vm7, %v1305_v57, %v1306_v49  ;;  %v1365_v13 = vpop.permute.xlu2 %1364  ;;  %v1310_v20 = vsel %vm1308_vm5, %v1304_v39, %v1306_v49 }
 0x172   : > { %v1107_v29 = vrot.slane %v1096_v22, 7  ;;  %v1160_v31 = vadd.f32 %v1159_v24, %v1158_v21  ;;  %v1108_v33 = vrot.slane %v1103_v25, 6  ;;  %v1147_v34 = vrot.slane %v1146_v26, 2 }
 0x173   : > { %v1154_v37 = vrot.slane %v1153_v30, 2  ;;  %v1309_v17 = vsel %vm1308_vm5, %v1302_v35, %v1307_v3  ;;  %v1367_v23 = vrot.slane %v1365_v13, 4  ;;  %v1366_v24 = vrot.slane %v1363_v9, 4 }
 0x174   : > { %2766 = vrot.lane.b32.xlu0 %v6874_v59, %s6328_s27  ;;  %2705 = vrot.lane.b32.xlu1 %v7010_v32, %s6326_s7  ;;  %v1109_v36 = vsel %vm982_vm0, %v1089_v28, %v1107_v29  ;;  %v1161_v38 = vrot.slane %v1160_v31, 2  ;;  %v1148_v41 = vadd.f32 %v1147_v34, %v1146_v26  ;;  %v1313_v26 = vmul.f32 %v1309_v17, %v6894_v8  ;;  %s6342_s7 = smov 2  }
 0x175   : > { %2644 = vrot.lane.b32.xlu2 %v7010_v32, %s6327_s29  ;;  %v1110_v50 = vsel %vm984_vm9, %v1109_v36, %v1108_v33  ;;  %v1155_v59 = vadd.f32 %v1154_v37, %v1153_v30  ;;  %v1200_v45 = vld.sshfl [vmem:[#allocation1 + $0x10] sm:$0xff pattern:$0x75316420]  ;;  %v1314_v30 = vmul.f32 %v1310_v20, %v6903_v12  ;;  %s6344_s29 = smov 111   ;;  %vm2100_vm5 = vcmask 646144  }
 0x176   : > { %5958 = vst.msk [vmem:[%s6929_s20 + $0x2] ss:$8 sm:$0x7] %vm6931_vm1, %v1110_v50  ;;  %v1162_v44 = vadd.f32 %v1161_v38, %v1160_v31  ;;  %v1149_v46 = vrot.slane %v1148_v41, 1  ;;  %v1218_v47 = vsel %vm955_vm7, %v1200_v45, 0.0 }
 0x177   : > { %v1198_v48 = vld.sshfl [vmem:[#allocation1] sm:$0xff pattern:$0x75316420]  ;;  %v1156_v52 = vrot.slane %v1155_v59, 1  ;;  %v1219_v54 = vrot.slane %v1218_v47, 4 }
 0x178   : > { %v1163_v53 = vrot.slane %v1162_v44, 1  ;;  %v1199_v55 = vld.sshfl [vmem:[#allocation1 + $0x8] sm:$0xff pattern:$0x75316420]  ;;  %v1204_v58 = vsel %vm955_vm7, %v1198_v48, 0.0  ;;  %v1150_v4 = vadd.f32 %v1149_v46, %v1148_v41  ;;  %v1426_v45 = vpop.permute.xlu1 %1425 }
 0x179   : > { %v1211_v60 = vsel %vm955_vm7, %v1199_v55, 0.0  ;;  %1256 = vst [vmem:[#allocation1] ss:$2 sm:$0xff] %v1252_v51  ;;  %v1157_v61 = vadd.f32 %v1156_v52, %v1155_v59  ;;  %v1220_v63 = vadd.f32 %v1219_v54, %v1218_v47  ;;  %v1205_v1 = vrot.slane %v1204_v58, 4  ;;  %v1424_v51 = vpop.permute.xlu0 %1423 }
 0x17a   : > { %v1164_v62 = vadd.f32 %v1163_v53, %v1162_v44  ;;  %1258 = vst [vmem:[#allocation1 + $0x10] ss:$2 sm:$0xff] %v1253_v56  ;;  %v1212_v2 = vrot.slane %v1211_v60, 4  ;;  %v1368_v59 = vsel %vm955_vm7, %v1366_v24, %v1367_v23  ;;  %v1371_v53 = vsel %vm1369_vm11, %v1365_v13, %v1367_v23 }
 0x17b   : > { %v1168_v5 = vrot.slane %v1157_v61, 7  ;;  %v1221_v6 = vrot.slane %v1220_v63, 2  ;;  %v1206_v7 = vadd.f32 %v1205_v1, %v1204_v58  ;;  %v1370_v55 = vsel %vm1369_vm11, %v1363_v9, %v1368_v59 }
 0x17c   : > { %2886 = vrot.lane.b32.xlu0 %v6995_v0, %s6329_s13  ;;  %2825 = vrot.lane.b32.xlu1 %v6995_v0, %s6286_s6  ;;  %v1169_v10 = vrot.slane %v1164_v62, 6  ;;  %v1213_v11 = vadd.f32 %v1212_v2, %v1211_v60  ;;  %v1428_v60 = vrot.slane %v1426_v45, 4  ;;  %v1375_v2 = vmul.f32 %v1371_v53, %v6903_v12 }
 0x17d   : > { %2764 = vrot.lane.b32.xlu2 %v6995_v0, %s6328_s27  ;;  %v1170_v14 = vsel %vm982_vm0, %v1150_v4, %v1168_v5  ;;  %v1222_v15 = vadd.f32 %v1221_v6, %v1220_v63  ;;  %v1207_v16 = vrot.slane %v1206_v7, 2  ;;  %s6346_s27 = smov 110   ;;  %vm2161_vm11 = vcmask 637952  }
 0x17e   : > { %v1171_v18 = vsel %vm984_vm9, %v1170_v14, %v1169_v10  ;;  %v1214_v19 = vrot.slane %v1213_v11, 2 }
 0x17f   : > { %5959 = vst.msk [vmem:[%s6929_s20 + $0x3] ss:$8 sm:$0x7] %vm6931_vm1, %v1171_v18  ;;  %v1223_v21 = vrot.slane %v1222_v15, 1  ;;  %v1208_v22 = vadd.f32 %v1207_v16, %v1206_v7  ;;  %v1427_v16 = vrot.slane %v1424_v51, 4 }
 0x180   : > { %v1215_v25 = vadd.f32 %v1214_v19, %v1213_v11  ;;  %v1259_v27 = vld.sshfl [vmem:[#allocation1] sm:$0xff pattern:$0x75316420]  ;;  %v1260_v28 = vld.sshfl [vmem:[#allocation1 + $0x8] sm:$0xff pattern:$0x75316420]  ;;  %v1374_v11 = vmul.f32 %v1370_v55, %v6894_v8 }
 0x181   : > { %v1209_v29 = vrot.slane %v1208_v22, 1  ;;  %v1261_v31 = vld.sshfl [vmem:[#allocation1 + $0x10] sm:$0xff pattern:$0x75316420]  ;;  %v1265_v33 = vsel %vm955_vm7, %v1259_v27, 0.0  ;;  %v1272_v34 = vsel %vm955_vm7, %v1260_v28, 0.0  ;;  %v1224_v39 = vadd.f32 %v1223_v21, %v1222_v15 }
 0x182   : > { %v1216_v35 = vrot.slane %v1215_v25, 1  ;;  %v1266_v36 = vrot.slane %v1265_v33, 4  ;;  %v1273_v37 = vrot.slane %v1272_v34, 4  ;;  %v1279_v38 = vsel %vm955_vm7, %v1261_v31, 0.0  ;;  %1317 = vst [vmem:[#allocation1] ss:$2 sm:$0xff] %v1313_v26 }
 0x183   : > { %v1280_v40 = vrot.slane %v1279_v38, 4  ;;  %1319 = vst [vmem:[#allocation1 + $0x10] ss:$2 sm:$0xff] %v1314_v30  ;;  %v1210_v46 = vadd.f32 %v1209_v29, %v1208_v22  ;;  %v1229_v52 = vrot.slane %v1224_v39, 6  ;;  %v1429_v23 = vsel %vm955_vm7, %v1427_v16, %v1428_v60  ;;  %v1486_v29 = vpop.permute.xlu0 %1485  ;;  %v1484_v39 = vpop.permute.xlu2 %1483 }
 0x184   : > { %2949 = vrot.lane.b32.xlu0 %v7010_v32, %s6330_s16  ;;  %2888 = vrot.lane.b32.xlu1 %v7010_v32, %s6329_s13  ;;  %v1217_v50 = vadd.f32 %v1216_v35, %v1215_v25  ;;  %v1267_v41 = vadd.f32 %v1266_v36, %v1265_v33  ;;  %v1274_v43 = vadd.f32 %v1273_v37, %v1272_v34  ;;  %s6347_s13 = smov 106  }
 0x185   : > { %2827 = vrot.lane.b32.xlu2 %v7010_v32, %s6286_s6  ;;  %v1281_v44 = vadd.f32 %v1280_v40, %v1279_v38  ;;  %s6331_s6 = smov 49   ;;  %v1430_v34 = vsel %vm462_vm2, %v1424_v51, %v1429_v23  ;;  %v1431_v36 = vsel %vm462_vm2, %v1426_v45, %v1428_v60  ;;  %v1488_v40 = vrot.slane %v1486_v29, 4 }
 0x186   : > { %v1228_v47 = vrot.slane %v1217_v50, 7  ;;  %v1268_v48 = vrot.slane %v1267_v41, 2  ;;  %v1275_v49 = vrot.slane %v1274_v43, 2  ;;  %vm1490_vm2 = vcmask 850944  }
 0x187   : > { %v1282_v54 = vrot.slane %v1281_v44, 2 }
 0x188   : > { %v1230_v56 = vsel %vm982_vm0, %v1210_v46, %v1228_v47  ;;  %v1269_v57 = vadd.f32 %v1268_v48, %v1267_v41  ;;  %v1276_v58 = vadd.f32 %v1275_v49, %v1274_v43  ;;  %v1435_v49 = vmul.f32 %v1431_v36, %v6903_v12 }
 0x189   : > { %v1231_v61 = vsel %vm984_vm9, %v1230_v56, %v1229_v52  ;;  %v1283_v62 = vadd.f32 %v1282_v54, %v1281_v44  ;;  %v1320_v63 = vld.sshfl [vmem:[#allocation1] sm:$0xff pattern:$0x75316420]  ;;  %v1321_v1 = vld.sshfl [vmem:[#allocation1 + $0x8] sm:$0xff pattern:$0x75316420]  ;;  %v1434_v44 = vmul.f32 %v1430_v34, %v6894_v8 }
 0x18a   : > { %5960 = vst.msk [vmem:[%s6929_s20 + $0x4] ss:$8 sm:$0x7] %vm6931_vm1, %v1231_v61  ;;  %v1270_v3 = vrot.slane %v1269_v57, 1  ;;  %v1277_v4 = vrot.slane %v1276_v58, 1  ;;  %v1326_v5 = vsel %vm955_vm7, %v1320_v63, 0.0 }
 0x18b   : > { %v1284_v6 = vrot.slane %v1283_v62, 1  ;;  %v1322_v7 = vld.sshfl [vmem:[#allocation1 + $0x10] sm:$0xff pattern:$0x75316420]  ;;  %v1327_v9 = vrot.slane %v1326_v5, 4  ;;  %v1333_v10 = vsel %vm955_vm7, %v1321_v1, 0.0 }
 0x18c   : > { %3069 = vrot.lane.b32.xlu0 %v6995_v0, %s6297_s23  ;;  %3008 = vrot.lane.b32.xlu1 %v6995_v0, %s6331_s6  ;;  %v1278_v13 = vadd.f32 %v1277_v4, %v1276_v58  ;;  %v1334_v14 = vrot.slane %v1333_v10, 4  ;;  %v1340_v15 = vsel %vm955_vm7, %v1322_v7, 0.0  ;;  %1380 = vst [vmem:[#allocation1 + $0x10] ss:$2 sm:$0xff] %v1375_v2  ;;  %v1271_v20 = vadd.f32 %v1270_v3, %v1269_v57 }
 0x18d   : > { %2947 = vrot.lane.b32.xlu2 %v6995_v0, %s6330_s16  ;;  %v1285_v17 = vadd.f32 %v1284_v6, %v1283_v62  ;;  %v1328_v18 = vadd.f32 %v1327_v9, %v1326_v5  ;;  %v1341_v19 = vrot.slane %v1340_v15, 4  ;;  %1378 = vst [vmem:[#allocation1] ss:$2 sm:$0xff] %v1374_v11  ;;  %v1487_v52 = vrot.slane %v1484_v39, 4  ;;  %s6348_s16 = smov 107  }
 0x18e   : > { %v1289_v21 = vrot.slane %v1278_v13, 7  ;;  %v1335_v22 = vadd.f32 %v1334_v14, %v1333_v10  ;;  %v1492_v11 = vsel %vm1490_vm2, %v1486_v29, %v1488_v40  ;;  %v1545_v13 = vpop.permute.xlu1 %1544 }
 0x18f   : > { %v1290_v24 = vrot.slane %v1285_v17, 6  ;;  %v1329_v25 = vrot.slane %v1328_v18, 2  ;;  %v1342_v26 = vadd.f32 %v1341_v19, %v1340_v15  ;;  %v1489_v62 = vsel %vm955_vm7, %v1487_v52, %v1488_v40 }
 0x190   : > { %v1291_v27 = vsel %vm982_vm0, %v1271_v20, %v1289_v21  ;;  %v1336_v28 = vrot.slane %v1335_v22, 2  ;;  %v1491_v9 = vsel %vm1490_vm2, %v1484_v39, %v1489_v62  ;;  %v1548_v29 = vrot.slane %v1545_v13, 4 }
 0x191   : > { %v1292_v30 = vsel %vm984_vm9, %v1291_v27, %v1290_v24  ;;  %v1330_v31 = vadd.f32 %v1329_v25, %v1328_v18  ;;  %v1343_v33 = vrot.slane %v1342_v26, 2  ;;  %v1495_v18 = vmul.f32 %v1491_v9, %v6894_v8 }
 0x192   : > { %5961 = vst.msk [vmem:[%s6929_s20 + $0x5] ss:$8 sm:$0x7] %vm6931_vm1, %v1292_v30  ;;  %v1337_v35 = vadd.f32 %v1336_v28, %v1335_v22  ;;  %v1547_v22 = vpop.permute.xlu2 %1546 }
 0x193   : > { %v1344_v37 = vadd.f32 %v1343_v33, %v1342_v26  ;;  %v1383_v38 = vld.sshfl [vmem:[#allocation1 + $0x10] sm:$0xff pattern:$0x75316420]  ;;  %v1331_v50 = vrot.slane %v1330_v31, 1  ;;  %v1549_v34 = vrot.slane %v1547_v22, 4 }
 0x194   : > { %3132 = vrot.lane.b32.xlu0 %v7010_v32, %s6298_s19  ;;  %3071 = vrot.lane.b32.xlu1 %v7010_v32, %s6297_s23  ;;  %v1338_v41 = vrot.slane %v1337_v35, 1  ;;  %v1401_v43 = vsel %vm955_vm7, %v1383_v38, 0.0  ;;  %v1381_v59 = vld.sshfl [vmem:[#allocation1] sm:$0xff pattern:$0x75316420]  ;;  %s6332_s23 = smov 30  }
 0x195   : > { %3010 = vrot.lane.b32.xlu2 %v7010_v32, %s6331_s6  ;;  %v1345_v45 = vrot.slane %v1344_v37, 1  ;;  %v1402_v46 = vrot.slane %v1401_v43, 4  ;;  %v1382_v47 = vld.sshfl [vmem:[#allocation1 + $0x8] sm:$0xff pattern:$0x75316420]  ;;  %v1387_v48 = vsel %vm955_vm7, %v1381_v59, 0.0  ;;  %v1332_v58 = vadd.f32 %v1331_v50, %v1330_v31 }
 0x196   : > { %v1339_v51 = vadd.f32 %v1338_v41, %v1337_v35  ;;  %v1388_v53 = vrot.slane %v1387_v48, 4  ;;  %v1394_v54 = vsel %vm955_vm7, %v1382_v47, 0.0  ;;  %1438 = vst [vmem:[#allocation1] ss:$2 sm:$0xff] %v1434_v44  ;;  %v1550_v41 = vsel %vm955_vm7, %v1548_v29, %v1549_v34  ;;  %s6350_s6 = smov 87  }
 0x197   : > { %v1346_v55 = vadd.f32 %v1345_v45, %v1344_v37  ;;  %v1403_v56 = vadd.f32 %v1402_v46, %v1401_v43  ;;  %v1395_v57 = vrot.slane %v1394_v54, 4  ;;  %1440 = vst [vmem:[#allocation1 + $0x10] ss:$2 sm:$0xff] %v1435_v49  ;;  %v1606_v45 = vpop.permute.xlu0 %1605  ;;  %v1553_v47 = vsel %vm1551_vm12, %v1547_v22, %v1549_v34  ;;  %v1608_v49 = vpop.permute.xlu1 %1607 }
 0x198   : > { %v1350_v60 = vrot.slane %v1339_v51, 7  ;;  %v1389_v61 = vadd.f32 %v1388_v53, %v1387_v48 }
 0x199   : > { %v1351_v63 = vrot.slane %v1346_v55, 6  ;;  %v1404_v1 = vrot.slane %v1403_v56, 2  ;;  %v1396_v2 = vadd.f32 %v1395_v57, %v1394_v54  ;;  %v7126_v55 = vld [vmem:[#allocation3] sm:$0xff] }
 0x19a   : > { %v1352_v3 = vsel %vm982_vm0, %v1332_v58, %v1350_v60  ;;  %v1390_v4 = vrot.slane %v1389_v61, 2 }
 0x19b   : > { %v1353_v5 = vsel %vm984_vm9, %v1352_v3, %v1351_v63  ;;  %v1405_v6 = vadd.f32 %v1404_v1, %v1403_v56  ;;  %v1397_v7 = vrot.slane %v1396_v2, 2  ;;  %v1557_v56 = vmul.f32 %v1553_v47, %v6903_v12 }
 0x19c   : > { %3252 = vrot.lane.b32.xlu0 %v6995_v0, %s6332_s23  ;;  %3191 = vrot.lane.b32.xlu1 %v6995_v0, %s6333_s9  ;;  %5962 = vst.msk [vmem:[%s6929_s20 + $0x6] ss:$8 sm:$0x7] %vm6931_vm1, %v1353_v5  ;;  %v1391_v10 = vadd.f32 %v1390_v4, %v1389_v61  ;;  %v1610_v61 = vrot.slane %v1608_v49, 4 }
 0x19d   : > { %3130 = vrot.lane.b32.xlu2 %v6995_v0, %s6298_s19  ;;  %v1406_v14 = vrot.slane %v1405_v6, 1  ;;  %v1398_v15 = vadd.f32 %v1397_v7, %v1396_v2  ;;  %v1441_v16 = vld.sshfl [vmem:[#allocation1] sm:$0xff pattern:$0x75316420]  ;;  %v1496_v0 = vmul.f32 %v1492_v11, %v6903_v12  ;;  %s6334_s19 = smov 29   ;;  %v1609_v7 = vrot.slane %v1606_v45, 4 }
 0x19e   : > { %v1392_v17 = vrot.slane %v1391_v10, 1  ;;  %v1442_v19 = vld.sshfl [vmem:[#allocation1 + $0x8] sm:$0xff pattern:$0x75316420]  ;;  %v1447_v20 = vsel %vm955_vm7, %v1441_v16, 0.0 }
 0x19f   : > { %v1399_v21 = vrot.slane %v1398_v15, 1  ;;  %v1443_v23 = vld.sshfl [vmem:[#allocation1 + $0x10] sm:$0xff pattern:$0x75316420]  ;;  %v1448_v24 = vrot.slane %v1447_v20, 4  ;;  %v1454_v25 = vsel %vm955_vm7, %v1442_v19, 0.0  ;;  %v1407_v26 = vadd.f32 %v1406_v14, %v1405_v6  ;;  %v1669_v22 = vpop.permute.xlu0 %1668 }
 0x1a0   : > { %v1455_v27 = vrot.slane %v1454_v25, 4  ;;  %v1461_v28 = vsel %vm955_vm7, %v1443_v23, 0.0  ;;  %1499 = vst [vmem:[#allocation1] ss:$2 sm:$0xff] %v1495_v18  ;;  %v1393_v36 = vadd.f32 %v1392_v17, %v1391_v10  ;;  %v1611_v16 = vsel %vm955_vm7, %v1609_v7, %v1610_v61 }
 0x1a1   : > { %v1400_v30 = vadd.f32 %v1399_v21, %v1398_v15  ;;  %v1449_v31 = vadd.f32 %v1448_v24, %v1447_v20  ;;  %v1462_v33 = vrot.slane %v1461_v28, 4  ;;  %1501 = vst [vmem:[#allocation1 + $0x10] ss:$2 sm:$0xff] %v1496_v0  ;;  %v1412_v40 = vrot.slane %v1407_v26, 6 }
 0x1a2   : > { %v1456_v35 = vadd.f32 %v1455_v27, %v1454_v25  ;;  %v1613_v24 = vsel %vm1612_vm13, %v1606_v45, %v1611_v16  ;;  %v1614_v26 = vsel %vm1612_vm13, %v1608_v49, %v1610_v61  ;;  %v7145_v27 = vld [vmem:[#allocation3 + $0x8] sm:$0xff]  ;;  %vm2283_vm13 = vcmask 621568  }
 0x1a3   : > { %v1411_v37 = vrot.slane %v1400_v30, 7  ;;  %v1450_v38 = vrot.slane %v1449_v31, 2  ;;  %v1463_v39 = vadd.f32 %v1462_v33, %v1461_v28  ;;  %v1667_v30 = vpop.permute.xlu2 %1666 }
 0x1a4   : > { %3315 = vrot.lane.b32.xlu0 %v7010_v32, %s6334_s19  ;;  %3254 = vrot.lane.b32.xlu1 %v7010_v32, %s6332_s23  ;;  %v1457_v50 = vrot.slane %v1456_v35, 2  ;;  %s8365_s23 = smov 84  }
 0x1a5   : > { %3193 = vrot.lane.b32.xlu2 %v7010_v32, %s6333_s9  ;;  %v1413_v43 = vsel %vm982_vm0, %v1393_v36, %v1411_v37  ;;  %v1451_v59 = vadd.f32 %v1450_v38, %v1449_v31  ;;  %v1464_v44 = vrot.slane %v1463_v39, 2  ;;  %v1552_v32 = vsel %vm1551_vm12, %v1545_v13, %v1550_v41  ;;  %s6353_s9 = smov 82  }
 0x1a6   : > { %v1414_v46 = vsel %vm984_vm9, %v1413_v43, %v1412_v40  ;;  %v1458_v48 = vadd.f32 %v1457_v50, %v1456_v35  ;;  %v1556_v3 = vmul.f32 %v1552_v32, %v6894_v8  ;;  %v1671_v31 = vrot.slane %v1669_v22, 4 }
 0x1a7   : > { %5963 = vst.msk [vmem:[%s6929_s20 + $0x7] ss:$8 sm:$0x7] %vm6931_vm1, %v1414_v46  ;;  %v1465_v51 = vadd.f32 %v1464_v44, %v1463_v39  ;;  %v1452_v52 = vrot.slane %v1451_v59, 1  ;;  %v1617_v37 = vmul.f32 %v1613_v24, %v6894_v8  ;;  %v1618_v41 = vmul.f32 %v1614_v26, %v6903_v12 }
 0x1a8   : > { %v1459_v53 = vrot.slane %v1458_v48, 1  ;;  %v1502_v54 = vld.sshfl [vmem:[#allocation1] sm:$0xff pattern:$0x75316420]  ;;  %vm2222_vm12 = vcmask 629760  }
 0x1a9   : > { %v1466_v57 = vrot.slane %v1465_v51, 1  ;;  %v1503_v58 = vld.sshfl [vmem:[#allocation1 + $0x8] sm:$0xff pattern:$0x75316420]  ;;  %v1508_v60 = vsel %vm955_vm7, %v1502_v54, 0.0  ;;  %v1453_v9 = vadd.f32 %v1452_v52, %v1451_v59  ;;  %v1670_v59 = vrot.slane %v1667_v30, 4 }
 0x1aa   : > { %v1460_v62 = vadd.f32 %v1459_v53, %v1458_v48  ;;  %v1504_v63 = vld.sshfl [vmem:[#allocation1 + $0x10] sm:$0xff pattern:$0x75316420]  ;;  %v1509_v1 = vrot.slane %v1508_v60, 4  ;;  %v1515_v2 = vsel %vm955_vm7, %v1503_v58, 0.0 }
 0x1ab   : > { %v1467_v4 = vadd.f32 %v1466_v57, %v1465_v51  ;;  %v1516_v5 = vrot.slane %v1515_v2, 4  ;;  %v1522_v6 = vsel %vm955_vm7, %v1504_v63, 0.0  ;;  %1562 = vst [vmem:[#allocation1 + $0x10] ss:$2 sm:$0xff] %v1557_v56  ;;  %v1672_v52 = vsel %vm955_vm7, %v1670_v59, %v1671_v31 }
 0x1ac   : > { %3435 = vrot.lane.b32.xlu0 %v7126_v55, %s6335_s24  ;;  %3374 = vrot.lane.b32.xlu1 %v7126_v55, %s6291_s30  ;;  %v1471_v10 = vrot.slane %v1460_v62, 7  ;;  %v1510_v11 = vadd.f32 %v1509_v1, %v1508_v60  ;;  %v1523_v13 = vrot.slane %v1522_v6, 4  ;;  %1560 = vst [vmem:[#allocation1] ss:$2 sm:$0xff] %v1556_v3  ;;  %v1674_v63 = vsel %vm1673_vm14, %v1667_v30, %v1672_v52  ;;  %v1728_v3 = vpop.permute.xlu1 %1727 }
 0x1ad   : > { %3313 = vrot.lane.b32.xlu2 %v7126_v55, %s6334_s19  ;;  %v1472_v14 = vrot.slane %v1467_v4, 6  ;;  %v1517_v15 = vadd.f32 %v1516_v5, %v1515_v2  ;;  %v1675_v2 = vsel %vm1673_vm14, %v1669_v22, %v1671_v31  ;;  %v1731_v22 = vrot.slane %v1728_v3, 4  ;;  %s6354_s19 = smov 83  }
 0x1ae   : > { %v1473_v17 = vsel %vm982_vm0, %v1453_v9, %v1471_v10  ;;  %v1511_v18 = vrot.slane %v1510_v11, 2  ;;  %v1524_v19 = vadd.f32 %v1523_v13, %v1522_v6  ;;  %v1678_v9 = vmul.f32 %v1674_v63, %v6894_v8 }
 0x1af   : > { %v1474_v20 = vsel %vm984_vm9, %v1473_v17, %v1472_v14  ;;  %v1518_v21 = vrot.slane %v1517_v15, 2  ;;  %v1730_v14 = vpop.permute.xlu2 %1729  ;;  %vm2344_vm14 = vcmask 613376  }
 0x1b0   : > { %5964 = vst.msk [vmem:[%s6929_s20 + $0x18] ss:$8 sm:$0x7] %vm6931_vm1, %v1474_v20  ;;  %v1512_v0 = vadd.f32 %v1511_v18, %v1510_v11  ;;  %v1525_v23 = vrot.slane %v1524_v19, 2 }
 0x1b1   : > { %v1519_v25 = vadd.f32 %v1518_v21, %v1517_v15  ;;  %v1679_v15 = vmul.f32 %v1675_v2, %v6903_v12 }
 0x1b2   : > { %v1526_v28 = vadd.f32 %v1525_v23, %v1524_v19  ;;  %v1565_v29 = vld.sshfl [vmem:[#allocation1 + $0x10] sm:$0xff pattern:$0x75316420]  ;;  %v1513_v33 = vrot.slane %v1512_v0, 1 }
 0x1b3   : > { %v1520_v34 = vrot.slane %v1519_v25, 1  ;;  %v1583_v35 = vsel %vm955_vm7, %v1565_v29, 0.0  ;;  %v1563_v36 = vld.sshfl [vmem:[#allocation1] sm:$0xff pattern:$0x75316420] }
 0x1b4   : > { %3498 = vrot.lane.b32.xlu0 %v7145_v27, %s6336_s3  ;;  %3437 = vrot.lane.b32.xlu1 %v7145_v27, %s6335_s24  ;;  %v1527_v38 = vrot.slane %v1526_v28, 1  ;;  %v1584_v39 = vrot.slane %v1583_v35, 4  ;;  %v1564_v40 = vld.sshfl [vmem:[#allocation1 + $0x8] sm:$0xff pattern:$0x75316420]  ;;  %v1569_v50 = vsel %vm955_vm7, %v1563_v36, 0.0  ;;  %v1514_v49 = vadd.f32 %v1513_v33, %v1512_v0 }
 0x1b5   : > { %3376 = vrot.lane.b32.xlu2 %v7145_v27, %s6291_s30  ;;  %v1521_v43 = vadd.f32 %v1520_v34, %v1519_v25  ;;  %v1570_v44 = vrot.slane %v1569_v50, 4  ;;  %v1576_v45 = vsel %vm955_vm7, %v1564_v40, 0.0  ;;  %1621 = vst [vmem:[#allocation1] ss:$2 sm:$0xff] %v1617_v37  ;;  %s6337_s30 = smov 25   ;;  %v1732_v25 = vrot.slane %v1730_v14, 4 }
 0x1b6   : > { %v1528_v46 = vadd.f32 %v1527_v38, %v1526_v28  ;;  %v1585_v47 = vadd.f32 %v1584_v39, %v1583_v35  ;;  %v1577_v48 = vrot.slane %v1576_v45, 4  ;;  %1623 = vst [vmem:[#allocation1 + $0x10] ss:$2 sm:$0xff] %v1618_v41  ;;  %v1789_v39 = vpop.permute.xlu0 %1788  ;;  %s6355_s24 = smov 81  }
 0x1b7   : > { %v1532_v51 = vrot.slane %v1521_v43, 7  ;;  %v1571_v32 = vadd.f32 %v1570_v44, %v1569_v50  ;;  %v1733_v35 = vsel %vm955_vm7, %v1731_v22, %v1732_v25  ;;  %v1736_v50 = vsel %vm1734_vm15, %v1730_v14, %v1732_v25  ;;  %v1791_v43 = vpop.permute.xlu1 %1790  ;;  %v1850_v22 = vpop.permute.xlu2 %1849 }
 0x1b8   : > { %v1533_v53 = vrot.slane %v1528_v46, 6  ;;  %v1586_v54 = vrot.slane %v1585_v47, 2  ;;  %v1578_v56 = vadd.f32 %v1577_v48, %v1576_v45  ;;  %v1735_v44 = vsel %vm1734_vm15, %v1728_v3, %v1733_v35 }
 0x1b9   : > { %v1534_v57 = vsel %vm982_vm0, %v1514_v49, %v1532_v51  ;;  %v1572_v58 = vrot.slane %v1571_v32, 2  ;;  %v1740_v48 = vmul.f32 %v1736_v50, %v6903_v12  ;;  %v1793_v52 = vrot.slane %v1791_v43, 4 }
 0x1ba   : > { %v1535_v60 = vsel %vm984_vm9, %v1534_v57, %v1533_v53  ;;  %v1587_v61 = vadd.f32 %v1586_v54, %v1585_v47  ;;  %v1579_v62 = vrot.slane %v1578_v56, 2  ;;  %v1792_v63 = vrot.slane %v1789_v39, 4 }
 0x1bb   : > { %5965 = vst.msk [vmem:[%s6929_s20 + $0x19] ss:$8 sm:$0x7] %vm6931_vm1, %v1535_v60  ;;  %v1573_v1 = vadd.f32 %v1572_v58, %v1571_v32  ;;  %v1739_v58 = vmul.f32 %v1735_v44, %v6894_v8  ;;  %vm2405_vm15 = vcmask 605184  }
 0x1bc   : > { %3618 = vrot.lane.b32.xlu0 %v7126_v55, %s6289_s22  ;;  %3557 = vrot.lane.b32.xlu1 %v7126_v55, %s6337_s30  ;;  %v1588_v4 = vrot.slane %v1587_v61, 1  ;;  %v1580_v5 = vadd.f32 %v1579_v62, %v1578_v56  ;;  %v1624_v6 = vld.sshfl [vmem:[#allocation1] sm:$0xff pattern:$0x75316420] }
 0x1bd   : > { %3496 = vrot.lane.b32.xlu2 %v7126_v55, %s6336_s3  ;;  %v1574_v7 = vrot.slane %v1573_v1, 1  ;;  %v1625_v10 = vld.sshfl [vmem:[#allocation1 + $0x8] sm:$0xff pattern:$0x75316420]  ;;  %v1630_v11 = vsel %vm955_vm7, %v1624_v6, 0.0  ;;  %s8366_s3 = smov 64  }
 0x1be   : > { %v1581_v13 = vrot.slane %v1580_v5, 1  ;;  %v1626_v16 = vld.sshfl [vmem:[#allocation1 + $0x10] sm:$0xff pattern:$0x75316420]  ;;  %v1631_v17 = vrot.slane %v1630_v11, 4  ;;  %v1637_v18 = vsel %vm955_vm7, %v1625_v10, 0.0  ;;  %v1589_v19 = vadd.f32 %v1588_v4, %v1587_v61 }
 0x1bf   : > { %v1638_v20 = vrot.slane %v1637_v18, 4  ;;  %v1644_v21 = vsel %vm955_vm7, %v1626_v16, 0.0  ;;  %1682 = vst [vmem:[#allocation1] ss:$2 sm:$0xff] %v1678_v9  ;;  %v1575_v28 = vadd.f32 %v1574_v7, %v1573_v1  ;;  %v1794_v7 = vsel %vm955_vm7, %v1792_v63, %v1793_v52 }
 0x1c0   : > { %v1582_v0 = vadd.f32 %v1581_v13, %v1580_v5  ;;  %v1632_v23 = vadd.f32 %v1631_v17, %v1630_v11  ;;  %v1645_v24 = vrot.slane %v1644_v21, 4  ;;  %1684 = vst [vmem:[#allocation1 + $0x10] ss:$2 sm:$0xff] %v1679_v15  ;;  %v1594_v33 = vrot.slane %v1589_v19, 6  ;;  %v1852_v15 = vpop.permute.xlu0 %1851 }
 0x1c1   : > { %v1639_v26 = vadd.f32 %v1638_v20, %v1637_v18  ;;  %v1796_v18 = vsel %vm1795_vm6, %v1789_v39, %v1794_v7  ;;  %v1797_v20 = vsel %vm1795_vm6, %v1791_v43, %v1793_v52  ;;  %vm2466_vm6 = vcmask 596992  }
 0x1c2   : > { %v1593_v29 = vrot.slane %v1582_v0, 7  ;;  %v1633_v30 = vrot.slane %v1632_v23, 2  ;;  %v1646_v31 = vadd.f32 %v1645_v24, %v1644_v21  ;;  %v1854_v0 = vrot.slane %v1852_v15, 4 }
 0x1c3   : > { %v1640_v34 = vrot.slane %v1639_v26, 2  ;;  %v1801_v35 = vmul.f32 %v1797_v20, %v6903_v12 }
 0x1c4   : > { %3681 = vrot.lane.b32.xlu0 %v7145_v27, %s6303_s5  ;;  %3620 = vrot.lane.b32.xlu1 %v7145_v27, %s6289_s22  ;;  %v1595_v36 = vsel %vm982_vm0, %v1575_v28, %v1593_v29  ;;  %v1634_v37 = vadd.f32 %v1633_v30, %v1632_v23  ;;  %v1647_v38 = vrot.slane %v1646_v31, 2  ;;  %s6338_s22 = smov 6   ;;  %v1800_v29 = vmul.f32 %v1796_v18, %v6894_v8 }
 0x1c5   : > { %3559 = vrot.lane.b32.xlu2 %v7145_v27, %s6337_s30  ;;  %v1596_v40 = vsel %vm984_vm9, %v1595_v36, %v1594_v33  ;;  %v1641_v41 = vadd.f32 %v1640_v34, %v1639_v26  ;;  %s6356_s30 = smov 63  }
 0x1c6   : > { %5966 = vst.msk [vmem:[%s6929_s20 + $0x1a] ss:$8 sm:$0x7] %vm6931_vm1, %v1596_v40  ;;  %v1648_v59 = vadd.f32 %v1647_v38, %v1646_v31  ;;  %v1635_v45 = vrot.slane %v1634_v37, 1 }
 0x1c7   : > { %v1642_v46 = vrot.slane %v1641_v41, 1  ;;  %v1685_v47 = vld.sshfl [vmem:[#allocation1] sm:$0xff pattern:$0x75316420] }
 0x1c8   : > { %v1649_v49 = vrot.slane %v1648_v59, 1  ;;  %v1686_v51 = vld.sshfl [vmem:[#allocation1 + $0x8] sm:$0xff pattern:$0x75316420]  ;;  %v1691_v32 = vsel %vm955_vm7, %v1685_v47, 0.0  ;;  %v1636_v1 = vadd.f32 %v1635_v45, %v1634_v37  ;;  %v1853_v37 = vrot.slane %v1850_v22, 4 }
 0x1c9   : > { %v1643_v53 = vadd.f32 %v1642_v46, %v1641_v41  ;;  %v1687_v54 = vld.sshfl [vmem:[#allocation1 + $0x10] sm:$0xff pattern:$0x75316420]  ;;  %v1692_v56 = vrot.slane %v1691_v32, 4  ;;  %v1698_v57 = vsel %vm955_vm7, %v1686_v51, 0.0 }
 0x1ca   : > { %v1650_v60 = vadd.f32 %v1649_v49, %v1648_v59  ;;  %v1699_v61 = vrot.slane %v1698_v57, 4  ;;  %v1705_v62 = vsel %vm955_vm7, %v1687_v54, 0.0  ;;  %1745 = vst [vmem:[#allocation1 + $0x10] ss:$2 sm:$0xff] %v1740_v48  ;;  %v1855_v44 = vsel %vm955_vm7, %v1853_v37, %v1854_v0 }
 0x1cb   : > { %v1654_v2 = vrot.slane %v1643_v53, 7  ;;  %v1693_v3 = vadd.f32 %v1692_v56, %v1691_v32  ;;  %v1706_v4 = vrot.slane %v1705_v62, 4  ;;  %1743 = vst [vmem:[#allocation1] ss:$2 sm:$0xff] %v1739_v58  ;;  %v1857_v52 = vsel %vm1856_vm3, %v1850_v22, %v1855_v44  ;;  %v1911_v58 = vpop.permute.xlu1 %1910 }
 0x1cc   : > { %3801 = vrot.lane.b32.xlu0 %v7126_v55, %s6338_s22  ;;  %3740 = vrot.lane.b32.xlu1 %v7126_v55, %s6339_s15  ;;  %v1655_v5 = vrot.slane %v1650_v60, 6  ;;  %v1700_v6 = vadd.f32 %v1699_v61, %v1698_v57  ;;  %v1858_v56 = vsel %vm1856_vm3, %v1852_v15, %v1854_v0  ;;  %v1861_v63 = vmul.f32 %v1857_v52, %v6894_v8 }
 0x1cd   : > { %3679 = vrot.lane.b32.xlu2 %v7126_v55, %s6303_s5  ;;  %v1656_v9 = vsel %vm982_vm0, %v1636_v1, %v1654_v2  ;;  %v1694_v10 = vrot.slane %v1693_v3, 2  ;;  %v1707_v11 = vadd.f32 %v1706_v4, %v1705_v62  ;;  %s6340_s5 = smov 5   ;;  %v1913_v4 = vpop.permute.xlu2 %1912  ;;  %v1914_v15 = vrot.slane %v1911_v58, 4 }
 0x1ce   : > { %v1657_v13 = vsel %vm984_vm9, %v1656_v9, %v1655_v5  ;;  %v1701_v14 = vrot.slane %v1700_v6, 2  ;;  %v1862_v5 = vmul.f32 %v1858_v56, %v6903_v12  ;;  %vm2527_vm3 = vcmask 588800  }
 0x1cf   : > { %5967 = vst.msk [vmem:[%s6929_s20 + $0x1b] ss:$8 sm:$0x7] %vm6931_vm1, %v1657_v13  ;;  %v1695_v16 = vadd.f32 %v1694_v10, %v1693_v3  ;;  %v1708_v17 = vrot.slane %v1707_v11, 2 }
 0x1d0   : > { %v1702_v19 = vadd.f32 %v1701_v14, %v1700_v6 }
 0x1d1   : > { %v1709_v21 = vadd.f32 %v1708_v17, %v1707_v11  ;;  %v1748_v23 = vld.sshfl [vmem:[#allocation1 + $0x10] sm:$0xff pattern:$0x75316420]  ;;  %v1696_v24 = vrot.slane %v1695_v16, 1 }
 0x1d2   : > { %v1703_v25 = vrot.slane %v1702_v19, 1  ;;  %v1746_v26 = vld.sshfl [vmem:[#allocation1] sm:$0xff pattern:$0x75316420]  ;;  %v1766_v28 = vsel %vm955_vm7, %v1748_v23, 0.0 }
 0x1d3   : > { %v1710_v30 = vrot.slane %v1709_v21, 1  ;;  %v1747_v31 = vld.sshfl [vmem:[#allocation1 + $0x8] sm:$0xff pattern:$0x75316420]  ;;  %v1752_v33 = vsel %vm955_vm7, %v1746_v26, 0.0  ;;  %v1767_v34 = vrot.slane %v1766_v28, 4  ;;  %v1697_v43 = vadd.f32 %v1696_v24, %v1695_v16 }
 0x1d4   : > { %3864 = vrot.lane.b32.xlu0 %v7145_v27, %s6340_s5  ;;  %3803 = vrot.lane.b32.xlu1 %v7145_v27, %s6338_s22  ;;  %v1704_v36 = vadd.f32 %v1703_v25, %v1702_v19  ;;  %v1753_v38 = vrot.slane %v1752_v33, 4  ;;  %v1759_v39 = vsel %vm955_vm7, %v1747_v31, 0.0  ;;  %1804 = vst [vmem:[#allocation1] ss:$2 sm:$0xff] %v1800_v29  ;;  %s6358_s22 = smov 62  }
 0x1d5   : > { %3742 = vrot.lane.b32.xlu2 %v7145_v27, %s6339_s15  ;;  %v1711_v40 = vadd.f32 %v1710_v30, %v1709_v21  ;;  %v1760_v50 = vrot.slane %v1759_v39, 4  ;;  %v1768_v41 = vadd.f32 %v1767_v34, %v1766_v28  ;;  %1806 = vst [vmem:[#allocation1 + $0x10] ss:$2 sm:$0xff] %v1801_v35  ;;  %v1972_v30 = vpop.permute.xlu0 %1971  ;;  %v1974_v35 = vpop.permute.xlu1 %1973  ;;  %s8367_s15 = smov 60  }
 0x1d6   : > { %v1715_v59 = vrot.slane %v1704_v36, 7  ;;  %v1754_v45 = vadd.f32 %v1753_v38, %v1752_v33  ;;  %v1976_v44 = vrot.slane %v1974_v35, 4  ;;  %v1975_v52 = vrot.slane %v1972_v30, 4 }
 0x1d7   : > { %v1716_v46 = vrot.slane %v1711_v40, 6  ;;  %v1761_v47 = vadd.f32 %v1760_v50, %v1759_v39  ;;  %v1769_v48 = vrot.slane %v1768_v41, 2 }
 0x1d8   : > { %v1717_v49 = vsel %vm982_vm0, %v1697_v43, %v1715_v59  ;;  %v1755_v51 = vrot.slane %v1754_v45, 2 }
 0x1d9   : > { %v1718_v32 = vsel %vm984_vm9, %v1717_v49, %v1716_v46  ;;  %v1762_v53 = vrot.slane %v1761_v47, 2  ;;  %v1770_v54 = vadd.f32 %v1769_v48, %v1768_v41 }
 0x1da   : > { %5968 = vst.msk [vmem:[%s6929_s20 + $0x1c] ss:$8 sm:$0x7] %vm6931_vm1, %v1718_v32  ;;  %v1756_v57 = vadd.f32 %v1755_v51, %v1754_v45 }
 0x1db   : > { %v1763_v60 = vadd.f32 %v1762_v53, %v1761_v47  ;;  %v1771_v61 = vrot.slane %v1770_v54, 1  ;;  %v1807_v62 = vld.sshfl [vmem:[#allocation1] sm:$0xff pattern:$0x75316420] }
 0x1dc   : > { %3984 = vrot.lane.b32.xlu0 %v7126_v55, %s6341_s28  ;;  %3923 = vrot.lane.b32.xlu1 %v7126_v55, %s6284_s4  ;;  %v1757_v1 = vrot.slane %v1756_v57, 1  ;;  %v1808_v2 = vld.sshfl [vmem:[#allocation1 + $0x8] sm:$0xff pattern:$0x75316420]  ;;  %v1813_v3 = vsel %vm955_vm7, %v1807_v62, 0.0 }
 0x1dd   : > { %3862 = vrot.lane.b32.xlu2 %v7126_v55, %s6340_s5  ;;  %v1764_v6 = vrot.slane %v1763_v60, 1  ;;  %v1809_v7 = vld.sshfl [vmem:[#allocation1 + $0x10] sm:$0xff pattern:$0x75316420]  ;;  %v1814_v9 = vrot.slane %v1813_v3, 4  ;;  %v1820_v10 = vsel %vm955_vm7, %v1808_v2, 0.0  ;;  %v1772_v11 = vadd.f32 %v1771_v61, %v1770_v54 }
 0x1de   : > { %v1821_v13 = vrot.slane %v1820_v10, 4  ;;  %v1827_v14 = vsel %vm955_vm7, %v1809_v7, 0.0  ;;  %1865 = vst [vmem:[#allocation1] ss:$2 sm:$0xff] %v1861_v63  ;;  %v1915_v55 = vrot.slane %v1913_v4, 4  ;;  %v1758_v20 = vadd.f32 %v1757_v1, %v1756_v57  ;;  %s6359_s5 = smov 58  }
 0x1df   : > { %v1765_v16 = vadd.f32 %v1764_v6, %v1763_v60  ;;  %v1815_v17 = vadd.f32 %v1814_v9, %v1813_v3  ;;  %v1828_v18 = vrot.slane %v1827_v14, 4  ;;  %1867 = vst [vmem:[#allocation1 + $0x10] ss:$2 sm:$0xff] %v1862_v5  ;;  %v1777_v23 = vrot.slane %v1772_v11, 6  ;;  %v4102_v60 = vld [vmem:[#allocation3] sm:$0xff]  ;;  %v2035_v6 = vpop.permute.xlu0 %2034 }
 0x1e0   : > { %v1822_v19 = vadd.f32 %v1821_v13, %v1820_v10  ;;  %v1916_v25 = vsel %vm955_vm7, %v1914_v15, %v1915_v55  ;;  %v1919_v31 = vsel %vm1917_vm10, %v1913_v4, %v1915_v55  ;;  %v1977_v63 = vsel %vm955_vm7, %v1975_v52, %v1976_v44  ;;  %v2033_v15 = vpop.permute.xlu2 %2032 }
 0x1e1   : > { %v1776_v21 = vrot.slane %v1765_v16, 7  ;;  %v1816_v22 = vrot.slane %v1815_v17, 2  ;;  %v1829_v0 = vadd.f32 %v1828_v18, %v1827_v14  ;;  %v1918_v37 = vsel %vm1917_vm10, %v1911_v58, %v1916_v25  ;;  %v7257_v58 = vld [vmem:[#allocation3 + $0x4] sm:$0xff]  ;;  %v7271_v18 = vld [vmem:[#allocation3 + $0xc] sm:$0xff] }
 0x1e2   : > { %v1823_v24 = vrot.slane %v1822_v19, 2  ;;  %v1923_v50 = vmul.f32 %v1919_v31, %v6903_v12  ;;  %v1922_v48 = vmul.f32 %v1918_v37, %v6894_v8  ;;  %v1979_v10 = vsel %vm1978_vm4, %v1972_v30, %v1977_v63 }
 0x1e3   : > { %v1778_v26 = vsel %vm982_vm0, %v1758_v20, %v1776_v21  ;;  %v1817_v28 = vadd.f32 %v1816_v22, %v1815_v17  ;;  %v1830_v29 = vrot.slane %v1829_v0, 2  ;;  %v1980_v13 = vsel %vm1978_vm4, %v1974_v35, %v1976_v44 }
 0x1e4   : > { %4047 = vrot.lane.b32.xlu0 %v7145_v27, %s6342_s7  ;;  %3986 = vrot.lane.b32.xlu1 %v7145_v27, %s6341_s28  ;;  %v1779_v33 = vsel %vm984_vm9, %v1778_v26, %v1777_v23  ;;  %v1824_v34 = vadd.f32 %v1823_v24, %v1822_v19  ;;  %v2037_v16 = vrot.slane %v2035_v6, 4  ;;  %v1983_v22 = vmul.f32 %v1979_v10, %v6894_v8  ;;  %s6360_s28 = smov 59  }
 0x1e5   : > { %3925 = vrot.lane.b32.xlu2 %v7145_v27, %s6284_s4  ;;  %5969 = vst.msk [vmem:[%s6929_s20 + $0x1d] ss:$8 sm:$0x7] %vm6931_vm1, %v1779_v33  ;;  %v1831_v36 = vadd.f32 %v1830_v29, %v1829_v0  ;;  %v1818_v38 = vrot.slane %v1817_v28, 1  ;;  %s6343_s4 = smov 1   ;;  %v1984_v26 = vmul.f32 %v1980_v13, %v6903_v12  ;;  %v2036_v29 = vrot.slane %v2033_v15, 4 }
 0x1e6   : > { %v1825_v39 = vrot.slane %v1824_v34, 1  ;;  %v1868_v40 = vld.sshfl [vmem:[#allocation1] sm:$0xff pattern:$0x75316420]  ;;  %vm2588_vm10 = vcmask 457728   ;;  %vm2649_vm4 = vcmask 449536  }
 0x1e7   : > { %v1832_v41 = vrot.slane %v1831_v36, 1  ;;  %v1869_v43 = vld.sshfl [vmem:[#allocation1 + $0x8] sm:$0xff pattern:$0x75316420]  ;;  %v1874_v59 = vsel %vm955_vm7, %v1868_v40, 0.0  ;;  %v1819_v53 = vadd.f32 %v1818_v38, %v1817_v28  ;;  %v4103_v33 = vld [vmem:[#allocation3 + $0x8] sm:$0xff] }
 0x1e8   : > { %v1826_v45 = vadd.f32 %v1825_v39, %v1824_v34  ;;  %v1870_v46 = vld.sshfl [vmem:[#allocation1 + $0x10] sm:$0xff pattern:$0x75316420]  ;;  %v1875_v47 = vrot.slane %v1874_v59, 4  ;;  %v1881_v27 = vsel %vm955_vm7, %v1869_v43, 0.0  ;;  %v2038_v39 = vsel %vm955_vm7, %v2036_v29, %v2037_v16 }
 0x1e9   : > { %v1833_v49 = vadd.f32 %v1832_v41, %v1831_v36  ;;  %v1882_v51 = vrot.slane %v1881_v27, 4  ;;  %v1888_v32 = vsel %vm955_vm7, %v1870_v46, 0.0  ;;  %1928 = vst [vmem:[#allocation1 + $0x10] ss:$2 sm:$0xff] %v1923_v50  ;;  %v2040_v46 = vsel %vm2039_vm8, %v2033_v15, %v2038_v39 }
 0x1ea   : > { %v1837_v54 = vrot.slane %v1826_v45, 7  ;;  %v1876_v56 = vadd.f32 %v1875_v47, %v1874_v59  ;;  %v1889_v57 = vrot.slane %v1888_v32, 4  ;;  %1926 = vst [vmem:[#allocation1] ss:$2 sm:$0xff] %v1922_v48  ;;  %v2041_v48 = vsel %vm2039_vm8, %v2035_v6, %v2037_v16 }
 0x1eb   : > { %v1838_v61 = vrot.slane %v1833_v49, 6  ;;  %v1883_v62 = vadd.f32 %v1882_v51, %v1881_v27  ;;  %v2094_v51 = vpop.permute.xlu1 %2093 }
 0x1ec   : > { %4214 = vrot.lane.b32.xlu0 %v7257_v58, %s6301_s25  ;;  %4106 = vrot.lane.b32.xlu1 %v4102_v60, %s6343_s4  ;;  %v1839_v1 = vsel %vm982_vm0, %v1819_v53, %v1837_v54  ;;  %v1877_v2 = vrot.slane %v1876_v56, 2  ;;  %v1890_v3 = vadd.f32 %v1889_v57, %v1888_v32  ;;  %v2044_v54 = vmul.f32 %v2040_v46, %v6894_v8 }
 0x1ed   : > { %4045 = vrot.lane.b32.xlu2 %v4102_v60, %s6342_s7  ;;  %v1840_v4 = vsel %vm984_vm9, %v1839_v1, %v1838_v61  ;;  %v1884_v5 = vrot.slane %v1883_v62, 2  ;;  %v2096_v61 = vpop.permute.xlu2 %2095  ;;  %s6361_s7 = smov 57  }
 0x1ee   : > { %5970 = vst.msk [vmem:[%s6929_s20 + $0x1e] ss:$8 sm:$0x7] %vm6931_vm1, %v1840_v4  ;;  %v1878_v7 = vadd.f32 %v1877_v2, %v1876_v56  ;;  %v1891_v9 = vrot.slane %v1890_v3, 2  ;;  %v2098_v13 = vrot.slane %v2096_v61, 4 }
 0x1ef   : > { %v1885_v11 = vadd.f32 %v1884_v5, %v1883_v62  ;;  %v2045_v62 = vmul.f32 %v2041_v48, %v6903_v12 }
 0x1f0   : > { %v1892_v14 = vadd.f32 %v1891_v9, %v1890_v3  ;;  %v1931_v17 = vld.sshfl [vmem:[#allocation1 + $0x10] sm:$0xff pattern:$0x75316420]  ;;  %v1879_v55 = vrot.slane %v1878_v7, 1 }
 0x1f1   : > { %v1886_v19 = vrot.slane %v1885_v11, 1  ;;  %v1929_v20 = vld.sshfl [vmem:[#allocation1] sm:$0xff pattern:$0x75316420]  ;;  %v1949_v21 = vsel %vm955_vm7, %v1931_v17, 0.0 }
 0x1f2   : > { %v1893_v0 = vrot.slane %v1892_v14, 1  ;;  %v1930_v23 = vld.sshfl [vmem:[#allocation1 + $0x8] sm:$0xff pattern:$0x75316420]  ;;  %v1935_v24 = vsel %vm955_vm7, %v1929_v20, 0.0  ;;  %v1950_v25 = vrot.slane %v1949_v21, 4  ;;  %v1880_v37 = vadd.f32 %v1879_v55, %v1878_v7 }
 0x1f3   : > { %v1887_v28 = vadd.f32 %v1886_v19, %v1885_v11  ;;  %v1936_v30 = vrot.slane %v1935_v24, 4  ;;  %v1942_v31 = vsel %vm955_vm7, %v1930_v23, 0.0  ;;  %1987 = vst [vmem:[#allocation1] ss:$2 sm:$0xff] %v1983_v22  ;;  %v2097_v7 = vrot.slane %v2094_v51, 4  ;;  %v2157_v29 = vpop.permute.xlu1 %2156 }
 0x1f4   : > { %4277 = vrot.lane.b32.xlu0 %v7271_v18, %s6344_s29  ;;  %4216 = vrot.lane.b32.xlu1 %v7271_v18, %s6301_s25  ;;  %v1894_v34 = vadd.f32 %v1893_v0, %v1892_v14  ;;  %v1943_v35 = vrot.slane %v1942_v31, 4  ;;  %v1951_v36 = vadd.f32 %v1950_v25, %v1949_v21  ;;  %1989 = vst [vmem:[#allocation1 + $0x10] ss:$2 sm:$0xff] %v1984_v26  ;;  %s6345_s25 = smov 109  }
 0x1f5   : > { %4108 = vrot.lane.b32.xlu2 %v4103_v33, %s6343_s4  ;;  %v1898_v38 = vrot.slane %v1887_v28, 7  ;;  %v1937_v40 = vadd.f32 %v1936_v30, %v1935_v24  ;;  %v2099_v21 = vsel %vm955_vm7, %v2097_v7, %v2098_v13  ;;  %v2155_v24 = vpop.permute.xlu0 %2154  ;;  %v2102_v25 = vsel %vm2100_vm5, %v2096_v61, %v2098_v13  ;;  %v2216_v7 = vpop.permute.xlu2 %2215 }
 0x1f6   : > { %v1899_v50 = vrot.slane %v1894_v34, 6  ;;  %v1944_v41 = vadd.f32 %v1943_v35, %v1942_v31  ;;  %v1952_v43 = vrot.slane %v1951_v36, 2  ;;  %v2101_v31 = vsel %vm2100_vm5, %v2094_v51, %v2099_v21 }
 0x1f7   : > { %v1900_v59 = vsel %vm982_vm0, %v1880_v37, %v1898_v38  ;;  %v1938_v44 = vrot.slane %v1937_v40, 2  ;;  %vm2710_vm5 = vcmask 441344  }
 0x1f8   : > { %v1901_v45 = vsel %vm984_vm9, %v1900_v59, %v1899_v50  ;;  %v1945_v47 = vrot.slane %v1944_v41, 2  ;;  %v1953_v27 = vadd.f32 %v1952_v43, %v1951_v36  ;;  %v2106_v36 = vmul.f32 %v2102_v25, %v6903_v12 }
 0x1f9   : > { %5971 = vst.msk [vmem:[%s6929_s20 + $0x1f] ss:$8 sm:$0x7] %vm6931_vm1, %v1901_v45  ;;  %v1939_v49 = vadd.f32 %v1938_v44, %v1937_v40  ;;  %v2159_v40 = vrot.slane %v2157_v29, 4  ;;  %v2105_v44 = vmul.f32 %v2101_v31, %v6894_v8 }
 0x1fa   : > { %v1946_v32 = vadd.f32 %v1945_v47, %v1944_v41  ;;  %v1954_v52 = vrot.slane %v1953_v27, 1  ;;  %v1990_v53 = vld.sshfl [vmem:[#allocation1] sm:$0xff pattern:$0x75316420] }
 0x1fb   : > { %v1940_v56 = vrot.slane %v1939_v49, 1  ;;  %v1991_v57 = vld.sshfl [vmem:[#allocation1 + $0x8] sm:$0xff pattern:$0x75316420]  ;;  %v1996_v60 = vsel %vm955_vm7, %v1990_v53, 0.0 }
 0x1fc   : > { %4397 = vrot.lane.b32.xlu0 %v7257_v58, %s6345_s25  ;;  %4336 = vrot.lane.b32.xlu1 %v7257_v58, %s6346_s27  ;;  %v1947_v63 = vrot.slane %v1946_v32, 1  ;;  %v1992_v1 = vld.sshfl [vmem:[#allocation1 + $0x10] sm:$0xff pattern:$0x75316420]  ;;  %v1997_v2 = vrot.slane %v1996_v60, 4  ;;  %v2003_v3 = vsel %vm955_vm7, %v1991_v57, 0.0  ;;  %v1955_v4 = vadd.f32 %v1954_v52, %v1953_v27 }
 0x1fd   : > { %4275 = vrot.lane.b32.xlu2 %v7257_v58, %s6344_s29  ;;  %v2004_v5 = vrot.slane %v2003_v3, 4  ;;  %v2010_v6 = vsel %vm955_vm7, %v1992_v1, 0.0  ;;  %2048 = vst [vmem:[#allocation1] ss:$2 sm:$0xff] %v2044_v54  ;;  %v1941_v15 = vadd.f32 %v1940_v56, %v1939_v49  ;;  %v2158_v27 = vrot.slane %v2155_v24, 4 }
 0x1fe   : > { %v1948_v9 = vadd.f32 %v1947_v63, %v1946_v32  ;;  %v1998_v10 = vadd.f32 %v1997_v2, %v1996_v60  ;;  %v2011_v11 = vrot.slane %v2010_v6, 4  ;;  %2050 = vst [vmem:[#allocation1 + $0x10] ss:$2 sm:$0xff] %v2045_v62  ;;  %v1960_v19 = vrot.slane %v1955_v4, 6  ;;  %v2218_v63 = vpop.permute.xlu0 %2217 }
 0x1ff   : > { %v2005_v14 = vadd.f32 %v2004_v5, %v2003_v3  ;;  %v2160_v54 = vsel %vm955_vm7, %v2158_v27, %v2159_v40  ;;  %v2163_v5 = vsel %vm2161_vm11, %v2157_v29, %v2159_v40 }
 0x200   : > { %v1959_v16 = vrot.slane %v1948_v9, 7  ;;  %v1999_v17 = vrot.slane %v1998_v10, 2  ;;  %v2012_v55 = vadd.f32 %v2011_v11, %v2010_v6  ;;  %v2162_v3 = vsel %vm2161_vm11, %v2155_v24, %v2160_v54 }
 0x201   : > { %v2006_v20 = vrot.slane %v2005_v14, 2  ;;  %v2220_v9 = vrot.slane %v2218_v63, 4  ;;  %v2167_v21 = vmul.f32 %v2163_v5, %v6903_v12  ;;  %vm2771_vm11 = vcmask 433152  }
 0x202   : > { %v1961_v22 = vsel %vm982_vm0, %v1941_v15, %v1959_v16  ;;  %v2000_v0 = vadd.f32 %v1999_v17, %v1998_v10  ;;  %v2013_v23 = vrot.slane %v2012_v55, 2  ;;  %v2166_v16 = vmul.f32 %v2162_v3, %v6894_v8 }
 0x203   : > { %v1962_v26 = vsel %vm984_vm9, %v1961_v22, %v1960_v19  ;;  %v2007_v28 = vadd.f32 %v2006_v20, %v2005_v14 }
 0x204   : > { %4460 = vrot.lane.b32.xlu0 %v7271_v18, %s6294_s21  ;;  %5972 = vst.msk [vmem:[%s6929_s20 + $0x30] ss:$8 sm:$0x7] %vm6931_vm1, %v1962_v26  ;;  %v2014_v30 = vadd.f32 %v2013_v23, %v2012_v55  ;;  %4399 = vrot.lane.b32.xlu1 %v7271_v18, %s6345_s25  ;;  %v2001_v33 = vrot.slane %v2000_v0, 1 }
 0x205   : > { %v2008_v34 = vrot.slane %v2007_v28, 1  ;;  %v2051_v35 = vld.sshfl [vmem:[#allocation1] sm:$0xff pattern:$0x75316420]  ;;  %4338 = vrot.lane.b32.xlu2 %v7271_v18, %s6346_s27 }
 0x206   : > { %v2015_v37 = vrot.slane %v2014_v30, 1  ;;  %v2052_v38 = vld.sshfl [vmem:[#allocation1 + $0x8] sm:$0xff pattern:$0x75316420]  ;;  %v2057_v39 = vsel %vm955_vm7, %v2051_v35, 0.0  ;;  %v2002_v48 = vadd.f32 %v2001_v33, %v2000_v0  ;;  %v2219_v0 = vrot.slane %v2216_v7, 4 }
 0x207   : > { %v2009_v50 = vadd.f32 %v2008_v34, %v2007_v28  ;;  %v2053_v41 = vld.sshfl [vmem:[#allocation1 + $0x10] sm:$0xff pattern:$0x75316420]  ;;  %v2058_v43 = vrot.slane %v2057_v39, 4  ;;  %v2064_v59 = vsel %vm955_vm7, %v2052_v38, 0.0 }
 0x208   : > { %v2016_v45 = vadd.f32 %v2015_v37, %v2014_v30  ;;  %v2065_v46 = vrot.slane %v2064_v59, 4  ;;  %v2071_v47 = vsel %vm955_vm7, %v2053_v41, 0.0  ;;  %2111 = vst [vmem:[#allocation1 + $0x10] ss:$2 sm:$0xff] %v2106_v36  ;;  %v2221_v31 = vsel %vm955_vm7, %v2219_v0, %v2220_v9 }
 0x209   : > { %v2020_v49 = vrot.slane %v2009_v50, 7  ;;  %v2059_v51 = vadd.f32 %v2058_v43, %v2057_v39  ;;  %v2072_v32 = vrot.slane %v2071_v47, 4  ;;  %2109 = vst [vmem:[#allocation1] ss:$2 sm:$0xff] %v2105_v44  ;;  %v2223_v40 = vsel %vm2222_vm12, %v2216_v7, %v2221_v31  ;;  %v2277_v44 = vpop.permute.xlu1 %2276 }
 0x20a   : > { %v2021_v52 = vrot.slane %v2016_v45, 6  ;;  %v2066_v53 = vadd.f32 %v2065_v46, %v2064_v59  ;;  %v2224_v43 = vsel %vm2222_vm12, %v2218_v63, %v2220_v9  ;;  %v2227_v27 = vmul.f32 %v2223_v40, %v6894_v8 }
 0x20b   : > { %v2022_v56 = vsel %vm982_vm0, %v2002_v48, %v2020_v49  ;;  %v2060_v57 = vrot.slane %v2059_v51, 2  ;;  %v2073_v60 = vadd.f32 %v2072_v32, %v2071_v47  ;;  %v2279_v32 = vpop.permute.xlu2 %2278  ;;  %v2280_v63 = vrot.slane %v2277_v44, 4 }
 0x20c   : > { %4580 = vrot.lane.b32.xlu0 %v7257_v58, %s6347_s13  ;;  %v2023_v61 = vsel %vm984_vm9, %v2022_v56, %v2021_v52  ;;  %v2067_v62 = vrot.slane %v2066_v53, 2  ;;  %4519 = vrot.lane.b32.xlu1 %v7257_v58, %s6348_s16  ;;  %v2228_v52 = vmul.f32 %v2224_v43, %v6903_v12  ;;  %vm2832_vm12 = vcmask 424960  }
 0x20d   : > { %5973 = vst.msk [vmem:[%s6929_s20 + $0x31] ss:$8 sm:$0x7] %vm6931_vm1, %v2023_v61  ;;  %v2061_v1 = vadd.f32 %v2060_v57, %v2059_v51  ;;  %v2074_v2 = vrot.slane %v2073_v60, 2  ;;  %4458 = vrot.lane.b32.xlu2 %v7257_v58, %s6294_s21  ;;  %s6349_s21 = smov 105  }
 0x20e   : > { %v2068_v4 = vadd.f32 %v2067_v62, %v2066_v53 }
 0x20f   : > { %v2075_v6 = vadd.f32 %v2074_v2, %v2073_v60  ;;  %v2114_v10 = vld.sshfl [vmem:[#allocation1 + $0x10] sm:$0xff pattern:$0x75316420]  ;;  %v2062_v11 = vrot.slane %v2061_v1, 1 }
 0x210   : > { %v2069_v13 = vrot.slane %v2068_v4, 1  ;;  %v2112_v14 = vld.sshfl [vmem:[#allocation1] sm:$0xff pattern:$0x75316420]  ;;  %v2132_v15 = vsel %vm955_vm7, %v2114_v10, 0.0 }
 0x211   : > { %v2076_v17 = vrot.slane %v2075_v6, 1  ;;  %v2113_v55 = vld.sshfl [vmem:[#allocation1 + $0x8] sm:$0xff pattern:$0x75316420]  ;;  %v2118_v19 = vsel %vm955_vm7, %v2112_v14, 0.0  ;;  %v2133_v20 = vrot.slane %v2132_v15, 4  ;;  %v2063_v29 = vadd.f32 %v2062_v11, %v2061_v1 }
 0x212   : > { %v2070_v22 = vadd.f32 %v2069_v13, %v2068_v4  ;;  %v2119_v23 = vrot.slane %v2118_v19, 4  ;;  %v2125_v24 = vsel %vm955_vm7, %v2113_v55, 0.0  ;;  %2170 = vst [vmem:[#allocation1] ss:$2 sm:$0xff] %v2166_v16  ;;  %v2281_v4 = vrot.slane %v2279_v32, 4  ;;  %v2338_v55 = vpop.permute.xlu0 %2337 }
 0x213   : > { %v2077_v25 = vadd.f32 %v2076_v17, %v2075_v6  ;;  %v2126_v26 = vrot.slane %v2125_v24, 4  ;;  %v2134_v28 = vadd.f32 %v2133_v20, %v2132_v15  ;;  %2172 = vst [vmem:[#allocation1 + $0x10] ss:$2 sm:$0xff] %v2167_v21  ;;  %v2340_v21 = vpop.permute.xlu1 %2339 }
 0x214   : > { %4643 = vrot.lane.b32.xlu0 %v7271_v18, %s6349_s21  ;;  %v2081_v30 = vrot.slane %v2070_v22, 7  ;;  %v2120_v33 = vadd.f32 %v2119_v23, %v2118_v19  ;;  %4582 = vrot.lane.b32.xlu1 %v7271_v18, %s6347_s13  ;;  %v2282_v14 = vsel %vm955_vm7, %v2280_v63, %v2281_v4  ;;  %v2285_v19 = vsel %vm2283_vm13, %v2279_v32, %v2281_v4  ;;  %v2399_v63 = vpop.permute.xlu2 %2398 }
 0x215   : > { %v2082_v34 = vrot.slane %v2077_v25, 6  ;;  %v2127_v35 = vadd.f32 %v2126_v26, %v2125_v24  ;;  %v2135_v36 = vrot.slane %v2134_v28, 2  ;;  %4521 = vrot.lane.b32.xlu2 %v7271_v18, %s6348_s16  ;;  %v2284_v0 = vsel %vm2283_vm13, %v2277_v44, %v2282_v14 }
 0x216   : > { %v2083_v37 = vsel %vm982_vm0, %v2063_v29, %v2081_v30  ;;  %v2121_v38 = vrot.slane %v2120_v33, 2  ;;  %v2289_v26 = vmul.f32 %v2285_v19, %v6903_v12  ;;  %v2342_v31 = vrot.slane %v2340_v21, 4 }
 0x217   : > { %v2084_v39 = vsel %vm984_vm9, %v2083_v37, %v2082_v34  ;;  %v2128_v50 = vrot.slane %v2127_v35, 2  ;;  %v2136_v41 = vadd.f32 %v2135_v36, %v2134_v28  ;;  %v2288_v37 = vmul.f32 %v2284_v0, %v6894_v8 }
 0x218   : > { %5974 = vst.msk [vmem:[%s6929_s20 + $0x32] ss:$8 sm:$0x7] %vm6931_vm1, %v2084_v39  ;;  %v2122_v59 = vadd.f32 %v2121_v38, %v2120_v33  ;;  %vm2893_vm13 = vcmask 416768  }
 0x219   : > { %v2129_v45 = vadd.f32 %v2128_v50, %v2127_v35  ;;  %v2137_v46 = vrot.slane %v2136_v41, 1  ;;  %v2173_v47 = vld.sshfl [vmem:[#allocation1] sm:$0xff pattern:$0x75316420]  ;;  %v2341_v50 = vrot.slane %v2338_v55, 4 }
 0x21a   : > { %v2123_v48 = vrot.slane %v2122_v59, 1  ;;  %v2174_v49 = vld.sshfl [vmem:[#allocation1 + $0x8] sm:$0xff pattern:$0x75316420]  ;;  %v2179_v51 = vsel %vm955_vm7, %v2173_v47, 0.0 }
 0x21b   : > { %v2130_v53 = vrot.slane %v2129_v45, 1  ;;  %v2175_v54 = vld.sshfl [vmem:[#allocation1 + $0x10] sm:$0xff pattern:$0x75316420]  ;;  %v2180_v56 = vrot.slane %v2179_v51, 4  ;;  %v2186_v57 = vsel %vm955_vm7, %v2174_v49, 0.0  ;;  %v2138_v60 = vadd.f32 %v2137_v46, %v2136_v41 }
 0x21c   : > { %4762 = vrot.lane.b32.xlu0 %v7257_v58, %s6305_s8  ;;  %v2187_v61 = vrot.slane %v2186_v57, 4  ;;  %v2193_v62 = vsel %vm955_vm7, %v2175_v54, 0.0  ;;  %2231 = vst [vmem:[#allocation1] ss:$2 sm:$0xff] %v2227_v27  ;;  %4702 = vrot.lane.b32.xlu1 %v7257_v58, %s6304_s12  ;;  %v2124_v6 = vadd.f32 %v2123_v48, %v2122_v59  ;;  %v2343_v46 = vsel %vm955_vm7, %v2341_v50, %v2342_v31  ;;  %v7386_v49 = vld [vmem:[#allocation3 + $0x4] sm:$0xff] }
 0x21d   : > { %v2131_v1 = vadd.f32 %v2130_v53, %v2129_v45  ;;  %v2181_v2 = vadd.f32 %v2180_v56, %v2179_v51  ;;  %v2194_v3 = vrot.slane %v2193_v62, 4  ;;  %2233 = vst [vmem:[#allocation1 + $0x10] ss:$2 sm:$0xff] %v2228_v52  ;;  %4641 = vrot.lane.b32.xlu2 %v7257_v58, %s6349_s21  ;;  %v2143_v11 = vrot.slane %v2138_v60, 6  ;;  %v2401_v52 = vpop.permute.xlu0 %2400 }
 0x21e   : > { %v2188_v5 = vadd.f32 %v2187_v61, %v2186_v57  ;;  %v2345_v56 = vsel %vm2344_vm14, %v2338_v55, %v2343_v46  ;;  %v2346_v60 = vsel %vm2344_vm14, %v2340_v21, %v2342_v31  ;;  %vm2954_vm14 = vcmask 408576  }
 0x21f   : > { %v2142_v7 = vrot.slane %v2131_v1, 7  ;;  %v2182_v9 = vrot.slane %v2181_v2, 2  ;;  %v2195_v10 = vadd.f32 %v2194_v3, %v2193_v62  ;;  %v2403_v1 = vrot.slane %v2401_v52, 4 }
 0x220   : > { %v2189_v13 = vrot.slane %v2188_v5, 2 }
 0x221   : > { %v2144_v15 = vsel %vm982_vm0, %v2124_v6, %v2142_v7  ;;  %v2183_v16 = vadd.f32 %v2182_v9, %v2181_v2  ;;  %v2196_v17 = vrot.slane %v2195_v10, 2  ;;  %v2349_v6 = vmul.f32 %v2345_v56, %v6894_v8 }
 0x222   : > { %v2145_v58 = vsel %vm984_vm9, %v2144_v15, %v2143_v11  ;;  %v2190_v20 = vadd.f32 %v2189_v13, %v2188_v5  ;;  %v2350_v13 = vmul.f32 %v2346_v60, %v6903_v12  ;;  %v2402_v15 = vrot.slane %v2399_v63, 4 }
 0x223   : > { %5975 = vst.msk [vmem:[%s6929_s20 + $0x33] ss:$8 sm:$0x7] %vm6931_vm1, %v2145_v58  ;;  %v2197_v22 = vadd.f32 %v2196_v17, %v2195_v10  ;;  %v2184_v23 = vrot.slane %v2183_v16, 1 }
 0x224   : > { %4825 = vrot.lane.b32.xlu0 %v7271_v18, %s6350_s6  ;;  %v2191_v24 = vrot.slane %v2190_v20, 1  ;;  %v2234_v25 = vld.sshfl [vmem:[#allocation1] sm:$0xff pattern:$0x75316420]  ;;  %4764 = vrot.lane.b32.xlu1 %v7271_v18, %s6305_s8  ;;  %s6352_s8 = smov 86  }
 0x225   : > { %v2198_v28 = vrot.slane %v2197_v22, 1  ;;  %v2235_v29 = vld.sshfl [vmem:[#allocation1 + $0x8] sm:$0xff pattern:$0x75316420]  ;;  %v2240_v30 = vsel %vm955_vm7, %v2234_v25, 0.0  ;;  %4704 = vrot.lane.b32.xlu2 %v7271_v18, %s6304_s12  ;;  %v2185_v41 = vadd.f32 %v2184_v23, %v2183_v16  ;;  %s6351_s12 = smov 85   ;;  %v2404_v23 = vsel %vm955_vm7, %v2402_v15, %v2403_v1 }
 0x226   : > { %v2192_v33 = vadd.f32 %v2191_v24, %v2190_v20  ;;  %v2236_v34 = vld.sshfl [vmem:[#allocation1 + $0x10] sm:$0xff pattern:$0x75316420]  ;;  %v2241_v35 = vrot.slane %v2240_v30, 4  ;;  %v2247_v36 = vsel %vm955_vm7, %v2235_v29, 0.0  ;;  %v7405_v20 = vld [vmem:[#allocation3 + $0xc] sm:$0xff] }
 0x227   : > { %v2199_v38 = vadd.f32 %v2198_v28, %v2197_v22  ;;  %v2248_v39 = vrot.slane %v2247_v36, 4  ;;  %v2254_v40 = vsel %vm955_vm7, %v2236_v34, 0.0  ;;  %2294 = vst [vmem:[#allocation1 + $0x10] ss:$2 sm:$0xff] %v2289_v26  ;;  %v2406_v34 = vsel %vm2405_vm15, %v2399_v63, %v2404_v23 }
 0x228   : > { %v2203_v43 = vrot.slane %v2192_v33, 7  ;;  %v2242_v59 = vadd.f32 %v2241_v35, %v2240_v30  ;;  %v2255_v44 = vrot.slane %v2254_v40, 4  ;;  %2292 = vst [vmem:[#allocation1] ss:$2 sm:$0xff] %v2288_v37  ;;  %v2460_v37 = vpop.permute.xlu1 %2459 }
 0x229   : > { %v2204_v18 = vrot.slane %v2199_v38, 6  ;;  %v2249_v45 = vadd.f32 %v2248_v39, %v2247_v36  ;;  %v2407_v36 = vsel %vm2405_vm15, %v2401_v52, %v2403_v1  ;;  %v2463_v52 = vrot.slane %v2460_v37, 4 }
 0x22a   : > { %v2205_v47 = vsel %vm982_vm0, %v2185_v41, %v2203_v43  ;;  %v2243_v27 = vrot.slane %v2242_v59, 2  ;;  %v2256_v48 = vadd.f32 %v2255_v44, %v2254_v40  ;;  %v2410_v41 = vmul.f32 %v2406_v34, %v6894_v8 }
 0x22b   : > { %v2206_v51 = vsel %vm984_vm9, %v2205_v47, %v2204_v18  ;;  %v2250_v32 = vrot.slane %v2249_v45, 2  ;;  %v2462_v18 = vpop.permute.xlu2 %2461  ;;  %vm3015_vm15 = vcmask 400384  }
 0x22c   : > { %4945 = vrot.lane.b32.xlu0 %v7386_v49, %s6351_s12  ;;  %5976 = vst.msk [vmem:[%s6929_s20 + $0x34] ss:$8 sm:$0x7] %vm6931_vm1, %v2206_v51  ;;  %v2244_v53 = vadd.f32 %v2243_v27, %v2242_v59  ;;  %v2257_v54 = vrot.slane %v2256_v48, 2  ;;  %4884 = vrot.lane.b32.xlu1 %v7386_v49, %s6352_s8 }
 0x22d   : > { %v2251_v57 = vadd.f32 %v2250_v32, %v2249_v45  ;;  %4823 = vrot.lane.b32.xlu2 %v7386_v49, %s6350_s6  ;;  %v2411_v45 = vmul.f32 %v2407_v36, %v6903_v12 }
 0x22e   : > { %v2258_v61 = vadd.f32 %v2257_v54, %v2256_v48  ;;  %v2297_v62 = vld.sshfl [vmem:[#allocation1 + $0x10] sm:$0xff pattern:$0x75316420]  ;;  %v2245_v2 = vrot.slane %v2244_v53, 1 }
 0x22f   : > { %v2252_v3 = vrot.slane %v2251_v57, 1  ;;  %v2315_v4 = vsel %vm955_vm7, %v2297_v62, 0.0  ;;  %v2295_v5 = vld.sshfl [vmem:[#allocation1] sm:$0xff pattern:$0x75316420] }
 0x230   : > { %v2259_v7 = vrot.slane %v2258_v61, 1  ;;  %v2316_v9 = vrot.slane %v2315_v4, 4  ;;  %v2296_v10 = vld.sshfl [vmem:[#allocation1 + $0x8] sm:$0xff pattern:$0x75316420]  ;;  %v2301_v11 = vsel %vm955_vm7, %v2295_v5, 0.0  ;;  %v2246_v21 = vadd.f32 %v2245_v2, %v2244_v53 }
 0x231   : > { %v2253_v14 = vadd.f32 %v2252_v3, %v2251_v57  ;;  %v2302_v16 = vrot.slane %v2301_v11, 4  ;;  %v2308_v17 = vsel %vm955_vm7, %v2296_v10, 0.0  ;;  %2353 = vst [vmem:[#allocation1] ss:$2 sm:$0xff] %v2349_v6  ;;  %v2464_v57 = vrot.slane %v2462_v18, 4 }
 0x232   : > { %v2260_v55 = vadd.f32 %v2259_v7, %v2258_v61  ;;  %v2317_v19 = vadd.f32 %v2316_v9, %v2315_v4  ;;  %v2309_v58 = vrot.slane %v2308_v17, 4  ;;  %2355 = vst [vmem:[#allocation1 + $0x10] ss:$2 sm:$0xff] %v2350_v13  ;;  %v2521_v9 = vpop.permute.xlu0 %2520 }
 0x233   : > { %v2264_v22 = vrot.slane %v2253_v14, 7  ;;  %v2303_v0 = vadd.f32 %v2302_v16, %v2301_v11  ;;  %v2465_v4 = vsel %vm955_vm7, %v2463_v52, %v2464_v57  ;;  %v2468_v11 = vsel %vm2466_vm6, %v2462_v18, %v2464_v57  ;;  %v2523_v14 = vpop.permute.xlu1 %2522 }
 0x234   : > { %5008 = vrot.lane.b32.xlu0 %v7405_v20, %s8365_s23  ;;  %v2265_v24 = vrot.slane %v2260_v55, 6  ;;  %v2318_v25 = vrot.slane %v2317_v19, 2  ;;  %v2310_v26 = vadd.f32 %v2309_v58, %v2308_v17  ;;  %4947 = vrot.lane.b32.xlu1 %v7405_v20, %s6351_s12  ;;  %v2467_v16 = vsel %vm2466_vm6, %v2460_v37, %v2465_v4 }
 0x235   : > { %v2266_v28 = vsel %vm982_vm0, %v2246_v21, %v2264_v22  ;;  %v2304_v29 = vrot.slane %v2303_v0, 2  ;;  %4886 = vrot.lane.b32.xlu2 %v7405_v20, %s6352_s8  ;;  %v2472_v58 = vmul.f32 %v2468_v11, %v6903_v12  ;;  %v2525_v23 = vrot.slane %v2523_v14, 4 }
 0x236   : > { %v2267_v30 = vsel %vm984_vm9, %v2266_v28, %v2265_v24  ;;  %v2319_v31 = vadd.f32 %v2318_v25, %v2317_v19  ;;  %v2311_v33 = vrot.slane %v2310_v26, 2  ;;  %v2524_v34 = vrot.slane %v2521_v9, 4 }
 0x237   : > { %5977 = vst.msk [vmem:[%s6929_s20 + $0x35] ss:$8 sm:$0x7] %vm6931_vm1, %v2267_v30  ;;  %v2305_v35 = vadd.f32 %v2304_v29, %v2303_v0  ;;  %v2471_v29 = vmul.f32 %v2467_v16, %v6894_v8  ;;  %vm3076_vm6 = vcmask 392192  }
 0x238   : > { %v2320_v38 = vrot.slane %v2319_v31, 1  ;;  %v2312_v39 = vadd.f32 %v2311_v33, %v2310_v26  ;;  %v2356_v40 = vld.sshfl [vmem:[#allocation1] sm:$0xff pattern:$0x75316420] }
 0x239   : > { %v2306_v50 = vrot.slane %v2305_v35, 1  ;;  %v2357_v43 = vld.sshfl [vmem:[#allocation1 + $0x8] sm:$0xff pattern:$0x75316420]  ;;  %v2362_v59 = vsel %vm955_vm7, %v2356_v40, 0.0 }
 0x23a   : > { %v2313_v44 = vrot.slane %v2312_v39, 1  ;;  %v2358_v46 = vld.sshfl [vmem:[#allocation1 + $0x10] sm:$0xff pattern:$0x75316420]  ;;  %v2363_v47 = vrot.slane %v2362_v59, 4  ;;  %v2369_v27 = vsel %vm955_vm7, %v2357_v43, 0.0  ;;  %v2321_v48 = vadd.f32 %v2320_v38, %v2319_v31 }
 0x23b   : > { %v2370_v51 = vrot.slane %v2369_v27, 4  ;;  %v2376_v32 = vsel %vm955_vm7, %v2358_v46, 0.0  ;;  %2414 = vst [vmem:[#allocation1] ss:$2 sm:$0xff] %v2410_v41  ;;  %v2307_v61 = vadd.f32 %v2306_v50, %v2305_v35  ;;  %v2526_v50 = vsel %vm955_vm7, %v2524_v34, %v2525_v23 }
 0x23c   : > { %5128 = vrot.lane.b32.xlu0 %v7386_v49, %s6353_s9  ;;  %v2314_v53 = vadd.f32 %v2313_v44, %v2312_v39  ;;  %v2364_v54 = vadd.f32 %v2363_v47, %v2362_v59  ;;  %v2377_v56 = vrot.slane %v2376_v32, 4  ;;  %2416 = vst [vmem:[#allocation1 + $0x10] ss:$2 sm:$0xff] %v2411_v45  ;;  %5067 = vrot.lane.b32.xlu1 %v7386_v49, %s6354_s19  ;;  %v2326_v2 = vrot.slane %v2321_v48, 6  ;;  %v2584_v45 = vpop.permute.xlu0 %2583 }
 0x23d   : > { %v2371_v60 = vadd.f32 %v2370_v51, %v2369_v27  ;;  %5006 = vrot.lane.b32.xlu2 %v7386_v49, %s8365_s23  ;;  %v2528_v27 = vsel %vm2527_vm3, %v2521_v9, %v2526_v50  ;;  %v2529_v51 = vsel %vm2527_vm3, %v2523_v14, %v2525_v23  ;;  %vm3137_vm3 = vcmask 261120  }
 0x23e   : > { %v2325_v62 = vrot.slane %v2314_v53, 7  ;;  %v2365_v63 = vrot.slane %v2364_v54, 2  ;;  %v2378_v1 = vadd.f32 %v2377_v56, %v2376_v32  ;;  %v2582_v53 = vpop.permute.xlu2 %2581  ;;  %v2533_v4 = vmul.f32 %v2529_v51, %v6903_v12 }
 0x23f   : > { %v2372_v3 = vrot.slane %v2371_v60, 2 }
 0x240   : > { %v2327_v5 = vsel %vm982_vm0, %v2307_v61, %v2325_v62  ;;  %v2366_v6 = vadd.f32 %v2365_v63, %v2364_v54  ;;  %v2379_v7 = vrot.slane %v2378_v1, 2  ;;  %v2586_v54 = vrot.slane %v2584_v45, 4 }
 0x241   : > { %v2328_v10 = vsel %vm984_vm9, %v2327_v5, %v2326_v2  ;;  %v2373_v13 = vadd.f32 %v2372_v3, %v2371_v60  ;;  %v2532_v62 = vmul.f32 %v2528_v27, %v6894_v8 }
 0x242   : > { %5978 = vst.msk [vmem:[%s6929_s20 + $0x36] ss:$8 sm:$0x7] %vm6931_vm1, %v2328_v10  ;;  %v2380_v15 = vadd.f32 %v2379_v7, %v2378_v1  ;;  %v2367_v17 = vrot.slane %v2366_v6, 1 }
 0x243   : > { %v2374_v55 = vrot.slane %v2373_v13, 1  ;;  %v2417_v19 = vld.sshfl [vmem:[#allocation1] sm:$0xff pattern:$0x75316420] }
 0x244   : > { %5191 = vrot.lane.b32.xlu0 %v7405_v20, %s6355_s24  ;;  %v2381_v21 = vrot.slane %v2380_v15, 1  ;;  %v2418_v22 = vld.sshfl [vmem:[#allocation1 + $0x8] sm:$0xff pattern:$0x75316420]  ;;  %v2423_v0 = vsel %vm955_vm7, %v2417_v19, 0.0  ;;  %5130 = vrot.lane.b32.xlu1 %v7405_v20, %s6353_s9  ;;  %v2368_v35 = vadd.f32 %v2367_v17, %v2366_v6  ;;  %v2585_v6 = vrot.slane %v2582_v53, 4 }
 0x245   : > { %v2375_v24 = vadd.f32 %v2374_v55, %v2373_v13  ;;  %v2419_v25 = vld.sshfl [vmem:[#allocation1 + $0x10] sm:$0xff pattern:$0x75316420]  ;;  %v2424_v26 = vrot.slane %v2423_v0, 4  ;;  %v2430_v28 = vsel %vm955_vm7, %v2418_v22, 0.0  ;;  %5069 = vrot.lane.b32.xlu2 %v7405_v20, %s6354_s19 }
 0x246   : > { %v2382_v30 = vadd.f32 %v2381_v21, %v2380_v15  ;;  %v2431_v31 = vrot.slane %v2430_v28, 4  ;;  %v2437_v33 = vsel %vm955_vm7, %v2419_v25, 0.0  ;;  %2477 = vst [vmem:[#allocation1 + $0x10] ss:$2 sm:$0xff] %v2472_v58  ;;  %v2587_v17 = vsel %vm955_vm7, %v2585_v6, %v2586_v54 }
 0x247   : > { %v2386_v36 = vrot.slane %v2375_v24, 7  ;;  %v2425_v37 = vadd.f32 %v2424_v26, %v2423_v0  ;;  %v2438_v38 = vrot.slane %v2437_v33, 4  ;;  %2475 = vst [vmem:[#allocation1] ss:$2 sm:$0xff] %v2471_v29  ;;  %v2589_v25 = vsel %vm2588_vm10, %v2582_v53, %v2587_v17  ;;  %v2643_v29 = vpop.permute.xlu1 %2642 }
 0x248   : > { %v2387_v39 = vrot.slane %v2382_v30, 6  ;;  %v2432_v40 = vadd.f32 %v2431_v31, %v2430_v28  ;;  %v2590_v28 = vsel %vm2588_vm10, %v2584_v45, %v2586_v54  ;;  %v2646_v45 = vrot.slane %v2643_v29, 4 }
 0x249   : > { %v2388_v41 = vsel %vm982_vm0, %v2368_v35, %v2386_v36  ;;  %v2426_v43 = vrot.slane %v2425_v37, 2  ;;  %v2439_v59 = vadd.f32 %v2438_v38, %v2437_v33  ;;  %v2593_v35 = vmul.f32 %v2589_v25, %v6894_v8 }
 0x24a   : > { %v2389_v44 = vsel %vm984_vm9, %v2388_v41, %v2387_v39  ;;  %v2433_v18 = vrot.slane %v2432_v40, 2  ;;  %v2645_v39 = vpop.permute.xlu2 %2644 }
 0x24b   : > { %5979 = vst.msk [vmem:[%s6929_s20 + $0x37] ss:$8 sm:$0x7] %vm6931_vm1, %v2389_v44  ;;  %v2427_v46 = vadd.f32 %v2426_v43, %v2425_v37  ;;  %v2440_v47 = vrot.slane %v2439_v59, 2 }
 0x24c   : > { %5310 = vrot.lane.b32.xlu0 %v7386_v49, %s8366_s3  ;;  %v2434_v48 = vadd.f32 %v2433_v18, %v2432_v40  ;;  %5250 = vrot.lane.b32.xlu1 %v7386_v49, %s6306_s18  ;;  %v2594_v40 = vmul.f32 %v2590_v28, %v6903_v12 }
 0x24d   : > { %v2441_v32 = vadd.f32 %v2440_v47, %v2439_v59  ;;  %v2480_v52 = vld.sshfl [vmem:[#allocation1 + $0x10] sm:$0xff pattern:$0x75316420]  ;;  %5189 = vrot.lane.b32.xlu2 %v7386_v49, %s6355_s24  ;;  %v2428_v56 = vrot.slane %v2427_v46, 1 }
 0x24e   : > { %v2435_v57 = vrot.slane %v2434_v48, 1  ;;  %v2498_v60 = vsel %vm955_vm7, %v2480_v52, 0.0  ;;  %v2478_v61 = vld.sshfl [vmem:[#allocation1] sm:$0xff pattern:$0x75316420] }
 0x24f   : > { %v2442_v63 = vrot.slane %v2441_v32, 1  ;;  %v2499_v1 = vrot.slane %v2498_v60, 4  ;;  %v2479_v2 = vld.sshfl [vmem:[#allocation1 + $0x8] sm:$0xff pattern:$0x75316420]  ;;  %v2484_v3 = vsel %vm955_vm7, %v2478_v61, 0.0  ;;  %v2429_v14 = vadd.f32 %v2428_v56, %v2427_v46 }
 0x250   : > { %v2436_v5 = vadd.f32 %v2435_v57, %v2434_v48  ;;  %v2485_v7 = vrot.slane %v2484_v3, 4  ;;  %v2491_v9 = vsel %vm955_vm7, %v2479_v2, 0.0  ;;  %2536 = vst [vmem:[#allocation1] ss:$2 sm:$0xff] %v2532_v62  ;;  %v2647_v48 = vrot.slane %v2645_v39, 4 }
 0x251   : > { %v2443_v10 = vadd.f32 %v2442_v63, %v2441_v32  ;;  %v2500_v11 = vadd.f32 %v2499_v1, %v2498_v60  ;;  %v2492_v13 = vrot.slane %v2491_v9, 4  ;;  %2538 = vst [vmem:[#allocation1 + $0x10] ss:$2 sm:$0xff] %v2533_v4  ;;  %v2704_v1 = vpop.permute.xlu0 %2703 }
 0x252   : > { %v2447_v15 = vrot.slane %v2436_v5, 7  ;;  %v2486_v16 = vadd.f32 %v2485_v7, %v2484_v3  ;;  %v2648_v60 = vsel %vm955_vm7, %v2646_v45, %v2647_v48  ;;  %v2651_v3 = vsel %vm2649_vm4, %v2645_v39, %v2647_v48  ;;  %v2706_v5 = vpop.permute.xlu1 %2705  ;;  %v2765_v45 = vpop.permute.xlu2 %2764 }
 0x253   : > { %v2448_v55 = vrot.slane %v2443_v10, 6  ;;  %v2501_v19 = vrot.slane %v2500_v11, 2  ;;  %v2493_v58 = vadd.f32 %v2492_v13, %v2491_v9 }
 0x254   : > { %5373 = vrot.lane.b32.xlu0 %v7405_v20, %s6356_s30  ;;  %v2449_v21 = vsel %vm982_vm0, %v2429_v14, %v2447_v15  ;;  %v2487_v22 = vrot.slane %v2486_v16, 2  ;;  %5312 = vrot.lane.b32.xlu1 %v7405_v20, %s8366_s3 }
 0x255   : > { %v2450_v0 = vsel %vm984_vm9, %v2449_v21, %v2448_v55  ;;  %v2502_v23 = vadd.f32 %v2501_v19, %v2500_v11  ;;  %v2494_v24 = vrot.slane %v2493_v58, 2  ;;  %5252 = vrot.lane.b32.xlu2 %v7405_v20, %s6306_s18  ;;  %s6357_s18 = smov 61   ;;  %v2655_v11 = vmul.f32 %v2651_v3, %v6903_v12 }
 0x256   : > { %5980 = vst.msk [vmem:[%s6929_s20 + $0x48] ss:$8 sm:$0x7] %vm6931_vm1, %v2450_v0  ;;  %v2488_v26 = vadd.f32 %v2487_v22, %v2486_v16  ;;  %v2708_v16 = vrot.slane %v2706_v5, 4 }
 0x257   : > { %v2503_v30 = vrot.slane %v2502_v23, 1  ;;  %v2495_v31 = vadd.f32 %v2494_v24, %v2493_v58  ;;  %v2539_v33 = vld.sshfl [vmem:[#allocation1] sm:$0xff pattern:$0x75316420]  ;;  %v2707_v24 = vrot.slane %v2704_v1, 4 }
 0x258   : > { %v2489_v34 = vrot.slane %v2488_v26, 1  ;;  %v2540_v36 = vld.sshfl [vmem:[#allocation1 + $0x8] sm:$0xff pattern:$0x75316420]  ;;  %v2545_v37 = vsel %vm955_vm7, %v2539_v33, 0.0 }
 0x259   : > { %v2496_v38 = vrot.slane %v2495_v31, 1  ;;  %v2541_v50 = vld.sshfl [vmem:[#allocation1 + $0x10] sm:$0xff pattern:$0x75316420]  ;;  %v2546_v41 = vrot.slane %v2545_v37, 4  ;;  %v2552_v43 = vsel %vm955_vm7, %v2540_v36, 0.0  ;;  %v2504_v59 = vadd.f32 %v2503_v30, %v2502_v23  ;;  %v2767_v39 = vpop.permute.xlu0 %2766 }
 0x25a   : > { %v2553_v44 = vrot.slane %v2552_v43, 4  ;;  %v2559_v18 = vsel %vm955_vm7, %v2541_v50, 0.0  ;;  %2597 = vst [vmem:[#allocation1] ss:$2 sm:$0xff] %v2593_v35  ;;  %v2490_v32 = vadd.f32 %v2489_v34, %v2488_v26  ;;  %v2709_v33 = vsel %vm955_vm7, %v2707_v24, %v2708_v16 }
 0x25b   : > { %v2497_v46 = vadd.f32 %v2496_v38, %v2495_v31  ;;  %v2547_v47 = vadd.f32 %v2546_v41, %v2545_v37  ;;  %v2560_v27 = vrot.slane %v2559_v18, 4  ;;  %2599 = vst [vmem:[#allocation1 + $0x10] ss:$2 sm:$0xff] %v2594_v40  ;;  %v2509_v56 = vrot.slane %v2504_v59, 6  ;;  %v7518_v41 = vld [vmem:[#allocation3 + $0x4] sm:$0xff] }
 0x25c   : > { %5493 = vrot.lane.b32.xlu0 %v7386_v49, %s6357_s18  ;;  %v2554_v51 = vadd.f32 %v2553_v44, %v2552_v43  ;;  %5432 = vrot.lane.b32.xlu1 %v7386_v49, %s6358_s22  ;;  %v2711_v50 = vsel %vm2710_vm5, %v2704_v1, %v2709_v33  ;;  %v2712_v59 = vsel %vm2710_vm5, %v2706_v5, %v2708_v16  ;;  %vm3259_vm5 = vcmask 244736  }
 0x25d   : > { %v2508_v52 = vrot.slane %v2497_v46, 7  ;;  %v2548_v53 = vrot.slane %v2547_v47, 2  ;;  %v2561_v54 = vadd.f32 %v2560_v27, %v2559_v18  ;;  %5371 = vrot.lane.b32.xlu2 %v7386_v49, %s6356_s30  ;;  %v2650_v49 = vsel %vm2649_vm4, %v2643_v29, %v2648_v60 }
 0x25e   : > { %v2555_v57 = vrot.slane %v2554_v51, 2  ;;  %v2654_v21 = vmul.f32 %v2650_v49, %v6894_v8  ;;  %v2769_v46 = vrot.slane %v2767_v39, 4  ;;  %vm3198_vm4 = vcmask 252928  }
 0x25f   : > { %v2510_v61 = vsel %vm982_vm0, %v2490_v32, %v2508_v52  ;;  %v2549_v62 = vadd.f32 %v2548_v53, %v2547_v47  ;;  %v2562_v63 = vrot.slane %v2561_v54, 2  ;;  %v2715_v32 = vmul.f32 %v2711_v50, %v6894_v8 }
 0x260   : > { %v2511_v2 = vsel %vm984_vm9, %v2510_v61, %v2509_v56  ;;  %v2556_v4 = vadd.f32 %v2555_v57, %v2554_v51  ;;  %v2716_v57 = vmul.f32 %v2712_v59, %v6903_v12  ;;  %v2768_v61 = vrot.slane %v2765_v45, 4 }
 0x261   : > { %5981 = vst.msk [vmem:[%s6929_s20 + $0x49] ss:$8 sm:$0x7] %vm6931_vm1, %v2511_v2  ;;  %v2563_v6 = vadd.f32 %v2562_v63, %v2561_v54  ;;  %v2550_v7 = vrot.slane %v2549_v62, 1 }
 0x262   : > { %v2557_v9 = vrot.slane %v2556_v4, 1  ;;  %v2600_v10 = vld.sshfl [vmem:[#allocation1] sm:$0xff pattern:$0x75316420]  ;;  %v2770_v49 = vsel %vm955_vm7, %v2768_v61, %v2769_v46 }
 0x263   : > { %v2564_v13 = vrot.slane %v2563_v6, 1  ;;  %v2601_v14 = vld.sshfl [vmem:[#allocation1 + $0x8] sm:$0xff pattern:$0x75316420]  ;;  %v2606_v15 = vsel %vm955_vm7, %v2600_v10, 0.0  ;;  %v2551_v25 = vadd.f32 %v2550_v7, %v2549_v62 }
 0x264   : > { %5556 = vrot.lane.b32.xlu0 %v7405_v20, %s8367_s15  ;;  %v2558_v17 = vadd.f32 %v2557_v9, %v2556_v4  ;;  %v2602_v55 = vld.sshfl [vmem:[#allocation1 + $0x10] sm:$0xff pattern:$0x75316420]  ;;  %v2607_v19 = vrot.slane %v2606_v15, 4  ;;  %v2613_v58 = vsel %vm955_vm7, %v2601_v14, 0.0  ;;  %5495 = vrot.lane.b32.xlu1 %v7405_v20, %s6357_s18 }
 0x265   : > { %v2565_v22 = vadd.f32 %v2564_v13, %v2563_v6  ;;  %v2614_v0 = vrot.slane %v2613_v58, 4  ;;  %v2620_v23 = vsel %vm955_vm7, %v2602_v55, 0.0  ;;  %2660 = vst [vmem:[#allocation1 + $0x10] ss:$2 sm:$0xff] %v2655_v11  ;;  %5434 = vrot.lane.b32.xlu2 %v7405_v20, %s6358_s22  ;;  %v7532_v11 = vld [vmem:[#allocation3 + $0xc] sm:$0xff]  ;;  %v2772_v55 = vsel %vm2771_vm11, %v2765_v45, %v2770_v49 }
 0x266   : > { %v2569_v26 = vrot.slane %v2558_v17, 7  ;;  %v2608_v28 = vadd.f32 %v2607_v19, %v2606_v15  ;;  %v2621_v29 = vrot.slane %v2620_v23, 4  ;;  %2658 = vst [vmem:[#allocation1] ss:$2 sm:$0xff] %v2654_v21  ;;  %v2826_v21 = vpop.permute.xlu1 %2825 }
 0x267   : > { %v2570_v30 = vrot.slane %v2565_v22, 6  ;;  %v2615_v31 = vadd.f32 %v2614_v0, %v2613_v58  ;;  %v2773_v58 = vsel %vm2771_vm11, %v2767_v39, %v2769_v46  ;;  %v2829_v39 = vrot.slane %v2826_v21, 4 }
 0x268   : > { %v2571_v34 = vsel %vm982_vm0, %v2551_v25, %v2569_v26  ;;  %v2609_v35 = vrot.slane %v2608_v28, 2  ;;  %v2622_v36 = vadd.f32 %v2621_v29, %v2620_v23  ;;  %v2776_v25 = vmul.f32 %v2772_v55, %v6894_v8 }
 0x269   : > { %v2572_v37 = vsel %vm984_vm9, %v2571_v34, %v2570_v30  ;;  %v2616_v38 = vrot.slane %v2615_v31, 2  ;;  %v2828_v30 = vpop.permute.xlu2 %2827  ;;  %vm3320_vm11 = vcmask 236544  }
 0x26a   : > { %5982 = vst.msk [vmem:[%s6929_s20 + $0x4a] ss:$8 sm:$0x7] %vm6931_vm1, %v2572_v37  ;;  %v2610_v20 = vadd.f32 %v2609_v35, %v2608_v28  ;;  %v2623_v40 = vrot.slane %v2622_v36, 2 }
 0x26b   : > { %v2617_v43 = vadd.f32 %v2616_v38, %v2615_v31  ;;  %v2777_v31 = vmul.f32 %v2773_v58, %v6903_v12 }
 0x26c   : > { %5676 = vrot.lane.b32.xlu0 %v7518_v41, %s6359_s5  ;;  %v2624_v44 = vadd.f32 %v2623_v40, %v2622_v36  ;;  %v2663_v18 = vld.sshfl [vmem:[#allocation1 + $0x10] sm:$0xff pattern:$0x75316420]  ;;  %5615 = vrot.lane.b32.xlu1 %v7518_v41, %s6360_s28  ;;  %v2611_v47 = vrot.slane %v2610_v20, 1 }
 0x26d   : > { %v2618_v27 = vrot.slane %v2617_v43, 1  ;;  %v2681_v48 = vsel %vm955_vm7, %v2663_v18, 0.0  ;;  %v2661_v51 = vld.sshfl [vmem:[#allocation1] sm:$0xff pattern:$0x75316420]  ;;  %5554 = vrot.lane.b32.xlu2 %v7518_v41, %s8367_s15 }
 0x26e   : > { %v2625_v52 = vrot.slane %v2624_v44, 1  ;;  %v2682_v53 = vrot.slane %v2681_v48, 4  ;;  %v2662_v54 = vld.sshfl [vmem:[#allocation1 + $0x8] sm:$0xff pattern:$0x75316420]  ;;  %v2667_v56 = vsel %vm955_vm7, %v2661_v51, 0.0  ;;  %v2612_v4 = vadd.f32 %v2611_v47, %v2610_v20 }
 0x26f   : > { %v2619_v60 = vadd.f32 %v2618_v27, %v2617_v43  ;;  %v2668_v62 = vrot.slane %v2667_v56, 4  ;;  %v2674_v63 = vsel %vm955_vm7, %v2662_v54, 0.0  ;;  %2719 = vst [vmem:[#allocation1] ss:$2 sm:$0xff] %v2715_v32  ;;  %v2830_v43 = vrot.slane %v2828_v30, 4 }
 0x270   : > { %v2626_v1 = vadd.f32 %v2625_v52, %v2624_v44  ;;  %v2683_v2 = vadd.f32 %v2682_v53, %v2681_v48  ;;  %v2675_v3 = vrot.slane %v2674_v63, 4  ;;  %2721 = vst [vmem:[#allocation1 + $0x10] ss:$2 sm:$0xff] %v2716_v57  ;;  %v2887_v53 = vpop.permute.xlu0 %2886 }
 0x271   : > { %v2630_v5 = vrot.slane %v2619_v60, 7  ;;  %v2669_v6 = vadd.f32 %v2668_v62, %v2667_v56  ;;  %v2831_v48 = vsel %vm955_vm7, %v2829_v39, %v2830_v43  ;;  %v2834_v56 = vsel %vm2832_vm12, %v2828_v30, %v2830_v43  ;;  %v2889_v60 = vpop.permute.xlu1 %2888 }
 0x272   : > { %v2631_v7 = vrot.slane %v2626_v1, 6  ;;  %v2684_v9 = vrot.slane %v2683_v2, 2  ;;  %v2676_v10 = vadd.f32 %v2675_v3, %v2674_v63  ;;  %v2833_v62 = vsel %vm2832_vm12, %v2826_v21, %v2831_v48 }
 0x273   : > { %v2632_v13 = vsel %vm982_vm0, %v2612_v4, %v2630_v5  ;;  %v2670_v14 = vrot.slane %v2669_v6, 2  ;;  %vm3381_vm12 = vcmask 228352  }
 0x274   : > { %5739 = vrot.lane.b32.xlu0 %v7532_v11, %s6361_s7  ;;  %v2633_v15 = vsel %vm984_vm9, %v2632_v13, %v2631_v7  ;;  %v2685_v16 = vadd.f32 %v2684_v9, %v2683_v2  ;;  %v2677_v17 = vrot.slane %v2676_v10, 2  ;;  %5678 = vrot.lane.b32.xlu1 %v7532_v11, %s6359_s5  ;;  %v2838_v2 = vmul.f32 %v2834_v56, %v6903_v12 }
 0x275   : > { %5983 = vst.msk [vmem:[%s6929_s20 + $0x4b] ss:$8 sm:$0x7] %vm6931_vm1, %v2633_v15  ;;  %v2671_v19 = vadd.f32 %v2670_v14, %v2669_v6  ;;  %5617 = vrot.lane.b32.xlu2 %v7532_v11, %s6360_s28  ;;  %v2891_v6 = vrot.slane %v2889_v60, 4  ;;  %v2837_v13 = vmul.f32 %v2833_v62, %v6894_v8 }
 0x276   : > { %v2686_v22 = vrot.slane %v2685_v16, 1  ;;  %v2678_v0 = vadd.f32 %v2677_v17, %v2676_v10  ;;  %v2722_v23 = vld.sshfl [vmem:[#allocation1] sm:$0xff pattern:$0x75316420]  ;;  %v2890_v17 = vrot.slane %v2887_v53, 4 }
 0x277   : > { %v2672_v24 = vrot.slane %v2671_v19, 1  ;;  %v2723_v26 = vld.sshfl [vmem:[#allocation1 + $0x8] sm:$0xff pattern:$0x75316420]  ;;  %v2728_v28 = vsel %vm955_vm7, %v2722_v23, 0.0 }
 0x278   : > { %v2679_v29 = vrot.slane %v2678_v0, 1  ;;  %v2724_v33 = vld.sshfl [vmem:[#allocation1 + $0x10] sm:$0xff pattern:$0x75316420]  ;;  %v2729_v34 = vrot.slane %v2728_v28, 4  ;;  %v2735_v35 = vsel %vm955_vm7, %v2723_v26, 0.0  ;;  %v2687_v36 = vadd.f32 %v2686_v22, %v2685_v16  ;;  %v2950_v30 = vpop.permute.xlu0 %2949 }
 0x279   : > { %v2736_v37 = vrot.slane %v2735_v35, 4  ;;  %v2742_v38 = vsel %vm955_vm7, %v2724_v33, 0.0  ;;  %2780 = vst [vmem:[#allocation1] ss:$2 sm:$0xff] %v2776_v25  ;;  %v2673_v44 = vadd.f32 %v2672_v24, %v2671_v19  ;;  %v2892_v23 = vsel %vm955_vm7, %v2890_v17, %v2891_v6 }
 0x27a   : > { %v2680_v20 = vadd.f32 %v2679_v29, %v2678_v0  ;;  %v2730_v40 = vadd.f32 %v2729_v34, %v2728_v28  ;;  %v2743_v50 = vrot.slane %v2742_v38, 4  ;;  %2782 = vst [vmem:[#allocation1 + $0x10] ss:$2 sm:$0xff] %v2777_v31  ;;  %v2692_v47 = vrot.slane %v2687_v36, 6 }
 0x27b   : > { %v2737_v59 = vadd.f32 %v2736_v37, %v2735_v35  ;;  %v2894_v34 = vsel %vm2893_vm13, %v2887_v53, %v2892_v23  ;;  %v2895_v35 = vsel %vm2893_vm13, %v2889_v60, %v2891_v6  ;;  %v2952_v39 = vrot.slane %v2950_v30, 4 }
 0x27c   : > { %v2691_v18 = vrot.slane %v2680_v20, 7  ;;  %v2731_v45 = vrot.slane %v2730_v40, 2  ;;  %v2744_v46 = vadd.f32 %v2743_v50, %v2742_v38  ;;  %5798 = vrot.lane.b32.xlu1 %v7518_v41, %s6302_s26  ;;  %v2948_v38 = vpop.permute.xlu2 %2947  ;;  %vm3442_vm13 = vcmask 220160  }
 0x27d   : > { %v2738_v27 = vrot.slane %v2737_v59, 2  ;;  %5737 = vrot.lane.b32.xlu2 %v7518_v41, %s6361_s7  ;;  %v2951_v48 = vrot.slane %v2948_v38, 4 }
 0x27e   : > { %v2693_v51 = vsel %vm982_vm0, %v2673_v44, %v2691_v18  ;;  %v2732_v32 = vadd.f32 %v2731_v45, %v2730_v40  ;;  %v2745_v52 = vrot.slane %v2744_v46, 2 }
 0x27f   : > { %v2694_v54 = vsel %vm984_vm9, %v2693_v51, %v2692_v47  ;;  %v2739_v57 = vadd.f32 %v2738_v27, %v2737_v59  ;;  %v2898_v59 = vmul.f32 %v2894_v34, %v6894_v8  ;;  %v2899_v47 = vmul.f32 %v2895_v35, %v6903_v12 }
 0x280   : > { %5984 = vst.msk [vmem:[%s6929_s20 + $0x4c] ss:$8 sm:$0x7] %vm6931_vm1, %v2694_v54  ;;  %v2746_v61 = vadd.f32 %v2745_v52, %v2744_v46  ;;  %v2733_v63 = vrot.slane %v2732_v32, 1 }
 0x281   : > { %v2740_v1 = vrot.slane %v2739_v57, 1  ;;  %v2783_v41 = vld.sshfl [vmem:[#allocation1] sm:$0xff pattern:$0x75316420] }
 0x282   : > { %v2747_v3 = vrot.slane %v2746_v61, 1  ;;  %v2784_v4 = vld.sshfl [vmem:[#allocation1 + $0x8] sm:$0xff pattern:$0x75316420]  ;;  %v2789_v5 = vsel %vm955_vm7, %v2783_v41, 0.0  ;;  %v2734_v55 = vadd.f32 %v2733_v63, %v2732_v32 }
 0x283   : > { %v2741_v49 = vadd.f32 %v2740_v1, %v2739_v57  ;;  %v2785_v7 = vld.sshfl [vmem:[#allocation1 + $0x10] sm:$0xff pattern:$0x75316420]  ;;  %v2790_v9 = vrot.slane %v2789_v5, 4  ;;  %v2796_v10 = vsel %vm955_vm7, %v2784_v4, 0.0 }
 0x284   : > { %v2748_v14 = vadd.f32 %v2747_v3, %v2746_v61  ;;  %v2797_v15 = vrot.slane %v2796_v10, 4  ;;  %v2803_v16 = vsel %vm955_vm7, %v2785_v7, 0.0  ;;  %2843 = vst [vmem:[#allocation1 + $0x10] ss:$2 sm:$0xff] %v2838_v2  ;;  %v2953_v61 = vsel %vm955_vm7, %v2951_v48, %v2952_v39 }
 0x285   : > { %v2752_v19 = vrot.slane %v2741_v49, 7  ;;  %v2791_v58 = vadd.f32 %v2790_v9, %v2789_v5  ;;  %v2804_v21 = vrot.slane %v2803_v16, 4  ;;  %2841 = vst [vmem:[#allocation1] ss:$2 sm:$0xff] %v2837_v13  ;;  %5800 = vrot.lane.b32.xlu2 %v7532_v11, %s6302_s26  ;;  %v2955_v6 = vsel %vm2954_vm14, %v2948_v38, %v2953_v61  ;;  %v3009_v9 = vpop.permute.xlu1 %3008 }
 0x286   : > { %v2753_v22 = vrot.slane %v2748_v14, 6  ;;  %v2798_v0 = vadd.f32 %v2797_v15, %v2796_v10  ;;  %v2956_v7 = vsel %vm2954_vm14, %v2950_v30, %v2952_v39  ;;  %vm3503_vm14 = vcmask 211968  }
 0x287   : > { %v2754_v24 = vsel %vm982_vm0, %v2734_v55, %v2752_v19  ;;  %v2792_v25 = vrot.slane %v2791_v58, 2  ;;  %v2805_v26 = vadd.f32 %v2804_v21, %v2803_v16  ;;  %v2959_v16 = vmul.f32 %v2955_v6, %v6894_v8 }
 0x288   : > { %v2755_v28 = vsel %vm984_vm9, %v2754_v24, %v2753_v22  ;;  %v2799_v29 = vrot.slane %v2798_v0, 2  ;;  %v2960_v21 = vmul.f32 %v2956_v7, %v6903_v12 }
 0x289   : > { %5985 = vst.msk [vmem:[%s6929_s20 + $0x4d] ss:$8 sm:$0x7] %vm6931_vm1, %v2755_v28  ;;  %v2793_v31 = vadd.f32 %v2792_v25, %v2791_v58  ;;  %v2806_v33 = vrot.slane %v2805_v26, 2  ;;  %v3011_v58 = vpop.permute.xlu2 %3010  ;;  %v3012_v28 = vrot.slane %v3009_v9, 4 }
 0x28a   : > { %v2800_v11 = vadd.f32 %v2799_v29, %v2798_v0 }
 0x28b   : > { %v2807_v36 = vadd.f32 %v2806_v33, %v2805_v26  ;;  %v2846_v37 = vld.sshfl [vmem:[#allocation1 + $0x10] sm:$0xff pattern:$0x75316420]  ;;  %v2794_v20 = vrot.slane %v2793_v31, 1  ;;  %v3013_v33 = vrot.slane %v3011_v58, 4 }
 0x28c   : > { %v2801_v40 = vrot.slane %v2800_v11, 1  ;;  %v2864_v50 = vsel %vm955_vm7, %v2846_v37, 0.0  ;;  %v2844_v43 = vld.sshfl [vmem:[#allocation1] sm:$0xff pattern:$0x75316420] }
 0x28d   : > { %v2808_v44 = vrot.slane %v2807_v36, 1  ;;  %v2865_v18 = vrot.slane %v2864_v50, 4  ;;  %v2845_v45 = vld.sshfl [vmem:[#allocation1 + $0x8] sm:$0xff pattern:$0x75316420]  ;;  %v2850_v46 = vsel %vm955_vm7, %v2844_v43, 0.0  ;;  %v2795_v56 = vadd.f32 %v2794_v20, %v2793_v31 }
 0x28e   : > { %v2802_v27 = vadd.f32 %v2801_v40, %v2800_v11  ;;  %v2851_v51 = vrot.slane %v2850_v46, 4  ;;  %v2857_v32 = vsel %vm955_vm7, %v2845_v45, 0.0  ;;  %2902 = vst [vmem:[#allocation1] ss:$2 sm:$0xff] %v2898_v59  ;;  %v3014_v20 = vsel %vm955_vm7, %v3012_v28, %v3013_v33  ;;  %v3070_v59 = vpop.permute.xlu0 %3069 }
 0x28f   : > { %v2809_v52 = vadd.f32 %v2808_v44, %v2807_v36  ;;  %v2866_v53 = vadd.f32 %v2865_v18, %v2864_v50  ;;  %v2858_v54 = vrot.slane %v2857_v32, 4  ;;  %2904 = vst [vmem:[#allocation1 + $0x10] ss:$2 sm:$0xff] %v2899_v47  ;;  %v3017_v18 = vsel %vm3015_vm15, %v3011_v58, %v3013_v33 }
 0x290   : > { %v2813_v57 = vrot.slane %v2802_v27, 7  ;;  %v2852_v60 = vadd.f32 %v2851_v51, %v2850_v46  ;;  %v3072_v46 = vpop.permute.xlu1 %3071  ;;  %v3016_v27 = vsel %vm3015_vm15, %v3009_v9, %v3014_v20  ;;  %vm3564_vm15 = vcmask 203776  }
 0x291   : > { %v2814_v62 = vrot.slane %v2809_v52, 6  ;;  %v2867_v63 = vrot.slane %v2866_v53, 2  ;;  %v2859_v1 = vadd.f32 %v2858_v54, %v2857_v32  ;;  %v3021_v52 = vmul.f32 %v3017_v18, %v6903_v12 }
 0x292   : > { %v2815_v41 = vsel %vm982_vm0, %v2795_v56, %v2813_v57  ;;  %v2853_v2 = vrot.slane %v2852_v60, 2  ;;  %v3074_v57 = vrot.slane %v3072_v46, 4 }
 0x293   : > { %v2816_v3 = vsel %vm984_vm9, %v2815_v41, %v2814_v62  ;;  %v2868_v4 = vadd.f32 %v2867_v63, %v2866_v53  ;;  %v2860_v5 = vrot.slane %v2859_v1, 2 }
 0x294   : > { %5986 = vst.msk [vmem:[%s6929_s20 + $0x4e] ss:$8 sm:$0x7] %vm6931_vm1, %v2816_v3  ;;  %v2854_v49 = vadd.f32 %v2853_v2, %v2852_v60 }
 0x295   : > { %v2869_v10 = vrot.slane %v2868_v4, 1  ;;  %v2861_v13 = vadd.f32 %v2860_v5, %v2859_v1  ;;  %v2905_v14 = vld.sshfl [vmem:[#allocation1] sm:$0xff pattern:$0x75316420]  ;;  %v3020_v1 = vmul.f32 %v3016_v27, %v6894_v8 }
 0x296   : > { %v2855_v15 = vrot.slane %v2854_v49, 1  ;;  %v2906_v17 = vld.sshfl [vmem:[#allocation1 + $0x8] sm:$0xff pattern:$0x75316420]  ;;  %v2911_v55 = vsel %vm955_vm7, %v2905_v14, 0.0 }
 0x297   : > { %v2862_v19 = vrot.slane %v2861_v13, 1  ;;  %v2907_v22 = vld.sshfl [vmem:[#allocation1 + $0x10] sm:$0xff pattern:$0x75316420]  ;;  %v2912_v0 = vrot.slane %v2911_v55, 4  ;;  %v2918_v23 = vsel %vm955_vm7, %v2906_v17, 0.0  ;;  %v2870_v24 = vadd.f32 %v2869_v10, %v2868_v4 }
 0x298   : > { %v2919_v25 = vrot.slane %v2918_v23, 4  ;;  %v2925_v26 = vsel %vm955_vm7, %v2907_v22, 0.0  ;;  %2963 = vst [vmem:[#allocation1] ss:$2 sm:$0xff] %v2959_v16  ;;  %v2856_v11 = vadd.f32 %v2855_v15, %v2854_v49  ;;  %v3073_v4 = vrot.slane %v3070_v59, 4 }
 0x299   : > { %v2863_v29 = vadd.f32 %v2862_v19, %v2861_v13  ;;  %v2913_v30 = vadd.f32 %v2912_v0, %v2911_v55  ;;  %v2926_v31 = vrot.slane %v2925_v26, 4  ;;  %2965 = vst [vmem:[#allocation1 + $0x10] ss:$2 sm:$0xff] %v2960_v21  ;;  %v2875_v38 = vrot.slane %v2870_v24, 6  ;;  %v3133_v19 = vpop.permute.xlu0 %3132 }
 0x29a   : > { %v2920_v34 = vadd.f32 %v2919_v25, %v2918_v23  ;;  %v3075_v13 = vsel %vm955_vm7, %v3073_v4, %v3074_v57  ;;  %v3078_v23 = vsel %vm3076_vm6, %v3072_v46, %v3074_v57  ;;  %v3135_v28 = vrot.slane %v3133_v19, 4 }
 0x29b   : > { %v2874_v35 = vrot.slane %v2863_v29, 7  ;;  %v2914_v36 = vrot.slane %v2913_v30, 2  ;;  %v2927_v37 = vadd.f32 %v2926_v31, %v2925_v26  ;;  %v3077_v22 = vsel %vm3076_vm6, %v3070_v59, %v3075_v13  ;;  %v3131_v26 = vpop.permute.xlu2 %3130 }
 0x29c   : > { %v2921_v39 = vrot.slane %v2920_v34, 2  ;;  %v3134_v20 = vrot.slane %v3131_v26, 4  ;;  %vm3625_vm6 = vcmask 195584  }
 0x29d   : > { %v2876_v40 = vsel %vm982_vm0, %v2856_v11, %v2874_v35  ;;  %v2915_v50 = vadd.f32 %v2914_v36, %v2913_v30  ;;  %v2928_v43 = vrot.slane %v2927_v37, 2 }
 0x29e   : > { %v2877_v44 = vsel %vm984_vm9, %v2876_v40, %v2875_v38  ;;  %v2922_v45 = vadd.f32 %v2921_v39, %v2920_v34  ;;  %v3081_v34 = vmul.f32 %v3077_v22, %v6894_v8  ;;  %v3082_v38 = vmul.f32 %v3078_v23, %v6903_v12 }
 0x29f   : > { %5987 = vst.msk [vmem:[%s6929_s20 + $0x4f] ss:$8 sm:$0x7] %vm6931_vm1, %v2877_v44  ;;  %v2929_v47 = vadd.f32 %v2928_v43, %v2927_v37  ;;  %v2916_v48 = vrot.slane %v2915_v50, 1 }
 0x2a0   : > { %v2923_v51 = vrot.slane %v2922_v45, 1  ;;  %v2966_v32 = vld.sshfl [vmem:[#allocation1] sm:$0xff pattern:$0x75316420] }
 0x2a1   : > { %v2930_v53 = vrot.slane %v2929_v47, 1  ;;  %v2967_v54 = vld.sshfl [vmem:[#allocation1 + $0x8] sm:$0xff pattern:$0x75316420]  ;;  %v2972_v56 = vsel %vm955_vm7, %v2966_v32, 0.0  ;;  %v2917_v5 = vadd.f32 %v2916_v48, %v2915_v50 }
 0x2a2   : > { %v2924_v60 = vadd.f32 %v2923_v51, %v2922_v45  ;;  %v2968_v61 = vld.sshfl [vmem:[#allocation1 + $0x10] sm:$0xff pattern:$0x75316420]  ;;  %v2973_v62 = vrot.slane %v2972_v56, 4  ;;  %v2979_v63 = vsel %vm955_vm7, %v2967_v54, 0.0 }
 0x2a3   : > { %v2931_v41 = vadd.f32 %v2930_v53, %v2929_v47  ;;  %v2980_v2 = vrot.slane %v2979_v63, 4  ;;  %v2986_v3 = vsel %vm955_vm7, %v2968_v61, 0.0  ;;  %3026 = vst [vmem:[#allocation1 + $0x10] ss:$2 sm:$0xff] %v3021_v52  ;;  %v3136_v47 = vsel %vm955_vm7, %v3134_v20, %v3135_v28 }
 0x2a4   : > { %v2935_v6 = vrot.slane %v2924_v60, 7  ;;  %v2974_v49 = vadd.f32 %v2973_v62, %v2972_v56  ;;  %v2987_v7 = vrot.slane %v2986_v3, 4  ;;  %3024 = vst [vmem:[#allocation1] ss:$2 sm:$0xff] %v3020_v1  ;;  %v3138_v57 = vsel %vm3137_vm3, %v3131_v26, %v3136_v47  ;;  %v3192_v62 = vpop.permute.xlu1 %3191 }
 0x2a5   : > { %v2936_v9 = vrot.slane %v2931_v41, 6  ;;  %v2981_v10 = vadd.f32 %v2980_v2, %v2979_v63  ;;  %v3139_v61 = vsel %vm3137_vm3, %v3133_v19, %v3135_v28  ;;  %vm3686_vm3 = vcmask 64512  }
 0x2a6   : > { %v2937_v14 = vsel %vm982_vm0, %v2917_v5, %v2935_v6  ;;  %v2975_v15 = vrot.slane %v2974_v49, 2  ;;  %v2988_v16 = vadd.f32 %v2987_v7, %v2986_v3  ;;  %v3142_v3 = vmul.f32 %v3138_v57, %v6894_v8 }
 0x2a7   : > { %v2938_v17 = vsel %vm984_vm9, %v2937_v14, %v2936_v9  ;;  %v2982_v55 = vrot.slane %v2981_v10, 2  ;;  %v3143_v7 = vmul.f32 %v3139_v61, %v6903_v12 }
 0x2a8   : > { %5988 = vst.msk [vmem:[%s6929_s20 + $0x60] ss:$8 sm:$0x7] %vm6931_vm1, %v2938_v17  ;;  %v2976_v58 = vadd.f32 %v2975_v15, %v2974_v49  ;;  %v2989_v21 = vrot.slane %v2988_v16, 2  ;;  %v3194_v49 = vpop.permute.xlu2 %3193  ;;  %v3195_v17 = vrot.slane %v3192_v62, 4 }
 0x2a9   : > { %v2983_v0 = vadd.f32 %v2982_v55, %v2981_v10 }
 0x2aa   : > { %v2990_v24 = vadd.f32 %v2989_v21, %v2988_v16  ;;  %v3029_v25 = vld.sshfl [vmem:[#allocation1 + $0x10] sm:$0xff pattern:$0x75316420]  ;;  %v2977_v29 = vrot.slane %v2976_v58, 1  ;;  %v3196_v21 = vrot.slane %v3194_v49, 4 }
 0x2ab   : > { %v2984_v30 = vrot.slane %v2983_v0, 1  ;;  %v3047_v31 = vsel %vm955_vm7, %v3029_v25, 0.0  ;;  %v3027_v33 = vld.sshfl [vmem:[#allocation1] sm:$0xff pattern:$0x75316420] }
 0x2ac   : > { %v2991_v11 = vrot.slane %v2990_v24, 1  ;;  %v3048_v35 = vrot.slane %v3047_v31, 4  ;;  %v3028_v36 = vld.sshfl [vmem:[#allocation1 + $0x8] sm:$0xff pattern:$0x75316420]  ;;  %v3033_v37 = vsel %vm955_vm7, %v3027_v33, 0.0  ;;  %v2978_v18 = vadd.f32 %v2977_v29, %v2976_v58 }
 0x2ad   : > { %v2985_v39 = vadd.f32 %v2984_v30, %v2983_v0  ;;  %v3034_v40 = vrot.slane %v3033_v37, 4  ;;  %v3040_v50 = vsel %vm955_vm7, %v3028_v36, 0.0  ;;  %3085 = vst [vmem:[#allocation1] ss:$2 sm:$0xff] %v3081_v34  ;;  %v3197_v29 = vsel %vm955_vm7, %v3195_v17, %v3196_v21  ;;  %v3253_v34 = vpop.permute.xlu0 %3252 }
 0x2ae   : > { %v2992_v43 = vadd.f32 %v2991_v11, %v2990_v24  ;;  %v3049_v59 = vadd.f32 %v3048_v35, %v3047_v31  ;;  %v3041_v44 = vrot.slane %v3040_v50, 4  ;;  %3087 = vst [vmem:[#allocation1 + $0x10] ss:$2 sm:$0xff] %v3082_v38  ;;  %v3200_v35 = vsel %vm3198_vm4, %v3194_v49, %v3196_v21 }
 0x2af   : > { %v2996_v45 = vrot.slane %v2985_v39, 7  ;;  %v3035_v46 = vadd.f32 %v3034_v40, %v3033_v37  ;;  %v3255_v37 = vpop.permute.xlu1 %3254  ;;  %v3199_v39 = vsel %vm3198_vm4, %v3192_v62, %v3197_v29  ;;  %vm3747_vm4 = vcmask 56320  }
 0x2b0   : > { %v2997_v27 = vrot.slane %v2992_v43, 6  ;;  %v3050_v48 = vrot.slane %v3049_v59, 2  ;;  %v3042_v51 = vadd.f32 %v3041_v44, %v3040_v50  ;;  %v3204_v43 = vmul.f32 %v3200_v35, %v6903_v12 }
 0x2b1   : > { %v2998_v32 = vsel %vm982_vm0, %v2978_v18, %v2996_v45  ;;  %v3036_v52 = vrot.slane %v3035_v46, 2  ;;  %v3257_v45 = vrot.slane %v3255_v37, 4 }
 0x2b2   : > { %v2999_v53 = vsel %vm984_vm9, %v2998_v32, %v2997_v27  ;;  %v3051_v54 = vadd.f32 %v3050_v48, %v3049_v59  ;;  %v3043_v56 = vrot.slane %v3042_v51, 2 }
 0x2b3   : > { %5989 = vst.msk [vmem:[%s6929_s20 + $0x61] ss:$8 sm:$0x7] %vm6931_vm1, %v2999_v53  ;;  %v3037_v60 = vadd.f32 %v3036_v52, %v3035_v46 }
 0x2b4   : > { %v3052_v63 = vrot.slane %v3051_v54, 1  ;;  %v3044_v1 = vadd.f32 %v3043_v56, %v3042_v51  ;;  %v3088_v41 = vld.sshfl [vmem:[#allocation1] sm:$0xff pattern:$0x75316420]  ;;  %v3203_v51 = vmul.f32 %v3199_v39, %v6894_v8 }
 0x2b5   : > { %v3038_v2 = vrot.slane %v3037_v60, 1  ;;  %v3089_v4 = vld.sshfl [vmem:[#allocation1 + $0x8] sm:$0xff pattern:$0x75316420]  ;;  %v3094_v5 = vsel %vm955_vm7, %v3088_v41, 0.0 }
 0x2b6   : > { %v3045_v6 = vrot.slane %v3044_v1, 1  ;;  %v3090_v9 = vld.sshfl [vmem:[#allocation1 + $0x10] sm:$0xff pattern:$0x75316420]  ;;  %v3095_v10 = vrot.slane %v3094_v5, 4  ;;  %v3101_v13 = vsel %vm955_vm7, %v3089_v4, 0.0  ;;  %v3053_v14 = vadd.f32 %v3052_v63, %v3051_v54 }
 0x2b7   : > { %v3102_v15 = vrot.slane %v3101_v13, 4  ;;  %v3108_v16 = vsel %vm955_vm7, %v3090_v9, 0.0  ;;  %3146 = vst [vmem:[#allocation1] ss:$2 sm:$0xff] %v3142_v3  ;;  %v3039_v0 = vadd.f32 %v3038_v2, %v3037_v60  ;;  %v3256_v54 = vrot.slane %v3253_v34, 4 }
 0x2b8   : > { %v3046_v55 = vadd.f32 %v3045_v6, %v3044_v1  ;;  %v3096_v19 = vadd.f32 %v3095_v10, %v3094_v5  ;;  %v3109_v58 = vrot.slane %v3108_v16, 4  ;;  %3148 = vst [vmem:[#allocation1 + $0x10] ss:$2 sm:$0xff] %v3143_v7  ;;  %v3058_v26 = vrot.slane %v3053_v14, 6  ;;  %v3316_v6 = vpop.permute.xlu0 %3315 }
 0x2b9   : > { %v3103_v22 = vadd.f32 %v3102_v15, %v3101_v13  ;;  %v3258_v1 = vsel %vm955_vm7, %v3256_v54, %v3257_v45  ;;  %v3261_v13 = vsel %vm3259_vm5, %v3255_v37, %v3257_v45  ;;  %v3318_v17 = vrot.slane %v3316_v6, 4 }
 0x2ba   : > { %v3057_v23 = vrot.slane %v3046_v55, 7  ;;  %v3097_v24 = vrot.slane %v3096_v19, 2  ;;  %v3110_v25 = vadd.f32 %v3109_v58, %v3108_v16  ;;  %v3260_v9 = vsel %vm3259_vm5, %v3253_v34, %v3258_v1  ;;  %v3314_v16 = vpop.permute.xlu2 %3313 }
 0x2bb   : > { %v3104_v28 = vrot.slane %v3103_v22, 2  ;;  %v3317_v29 = vrot.slane %v3314_v16, 4  ;;  %vm3808_vm5 = vcmask 48128  }
 0x2bc   : > { %v3059_v30 = vsel %vm982_vm0, %v3039_v0, %v3057_v23  ;;  %v3098_v31 = vadd.f32 %v3097_v24, %v3096_v19  ;;  %v3111_v33 = vrot.slane %v3110_v25, 2 }
 0x2bd   : > { %v3060_v11 = vsel %vm984_vm9, %v3059_v30, %v3058_v26  ;;  %v3105_v36 = vadd.f32 %v3104_v28, %v3103_v22  ;;  %v3264_v22 = vmul.f32 %v3260_v9, %v6894_v8  ;;  %v3265_v26 = vmul.f32 %v3261_v13, %v6903_v12 }
 0x2be   : > { %5990 = vst.msk [vmem:[%s6929_s20 + $0x62] ss:$8 sm:$0x7] %vm6931_vm1, %v3060_v11  ;;  %v3112_v38 = vadd.f32 %v3111_v33, %v3110_v25  ;;  %v3099_v20 = vrot.slane %v3098_v31, 1 }
 0x2bf   : > { %v3106_v40 = vrot.slane %v3105_v36, 1  ;;  %v3149_v50 = vld.sshfl [vmem:[#allocation1] sm:$0xff pattern:$0x75316420] }
 0x2c0   : > { %v3113_v59 = vrot.slane %v3112_v38, 1  ;;  %v3150_v44 = vld.sshfl [vmem:[#allocation1 + $0x8] sm:$0xff pattern:$0x75316420]  ;;  %v3155_v18 = vsel %vm955_vm7, %v3149_v50, 0.0  ;;  %v3100_v56 = vadd.f32 %v3099_v20, %v3098_v31 }
 0x2c1   : > { %v3107_v46 = vadd.f32 %v3106_v40, %v3105_v36  ;;  %v3151_v47 = vld.sshfl [vmem:[#allocation1 + $0x10] sm:$0xff pattern:$0x75316420]  ;;  %v3156_v27 = vrot.slane %v3155_v18, 4  ;;  %v3162_v48 = vsel %vm955_vm7, %v3150_v44, 0.0 }
 0x2c2   : > { %v3114_v32 = vadd.f32 %v3113_v59, %v3112_v38  ;;  %v3163_v52 = vrot.slane %v3162_v48, 4  ;;  %v3169_v53 = vsel %vm955_vm7, %v3151_v47, 0.0  ;;  %3209 = vst [vmem:[#allocation1 + $0x10] ss:$2 sm:$0xff] %v3204_v43  ;;  %v3319_v38 = vsel %vm955_vm7, %v3317_v29, %v3318_v17 }
 0x2c3   : > { %v3118_v57 = vrot.slane %v3107_v46, 7  ;;  %v3157_v60 = vadd.f32 %v3156_v27, %v3155_v18  ;;  %v3170_v61 = vrot.slane %v3169_v53, 4  ;;  %3207 = vst [vmem:[#allocation1] ss:$2 sm:$0xff] %v3203_v51  ;;  %v3321_v45 = vsel %vm3320_vm11, %v3314_v16, %v3319_v38  ;;  %v3375_v27 = vpop.permute.xlu1 %3374 }
 0x2c4   : > { %v3119_v62 = vrot.slane %v3114_v32, 6  ;;  %v3164_v63 = vadd.f32 %v3163_v52, %v3162_v48  ;;  %v3322_v47 = vsel %vm3320_vm11, %v3316_v6, %v3318_v17  ;;  %vm3869_vm11 = vcmask 39936  }
 0x2c5   : > { %v3120_v41 = vsel %vm982_vm0, %v3100_v56, %v3118_v57  ;;  %v3158_v2 = vrot.slane %v3157_v60, 2  ;;  %v3171_v3 = vadd.f32 %v3170_v61, %v3169_v53  ;;  %v3325_v53 = vmul.f32 %v3321_v45, %v6894_v8 }
 0x2c6   : > { %v3121_v4 = vsel %vm984_vm9, %v3120_v41, %v3119_v62  ;;  %v3165_v5 = vrot.slane %v3164_v63, 2  ;;  %v3326_v61 = vmul.f32 %v3322_v47, %v6903_v12 }
 0x2c7   : > { %5991 = vst.msk [vmem:[%s6929_s20 + $0x63] ss:$8 sm:$0x7] %vm6931_vm1, %v3121_v4  ;;  %v3159_v49 = vadd.f32 %v3158_v2, %v3157_v60  ;;  %v3172_v7 = vrot.slane %v3171_v3, 2  ;;  %v3377_v60 = vpop.permute.xlu2 %3376  ;;  %v3378_v4 = vrot.slane %v3375_v27, 4 }
 0x2c8   : > { %v3166_v10 = vadd.f32 %v3165_v5, %v3164_v63 }
 0x2c9   : > { %v3173_v14 = vadd.f32 %v3172_v7, %v3171_v3  ;;  %v3212_v15 = vld.sshfl [vmem:[#allocation1 + $0x10] sm:$0xff pattern:$0x75316420]  ;;  %v3160_v55 = vrot.slane %v3159_v49, 1  ;;  %v3379_v7 = vrot.slane %v3377_v60, 4 }
 0x2ca   : > { %v3167_v19 = vrot.slane %v3166_v10, 1  ;;  %v3230_v58 = vsel %vm955_vm7, %v3212_v15, 0.0  ;;  %v3210_v21 = vld.sshfl [vmem:[#allocation1] sm:$0xff pattern:$0x75316420] }
 0x2cb   : > { %v3174_v0 = vrot.slane %v3173_v14, 1  ;;  %v3231_v23 = vrot.slane %v3230_v58, 4  ;;  %v3211_v24 = vld.sshfl [vmem:[#allocation1 + $0x8] sm:$0xff pattern:$0x75316420]  ;;  %v3216_v25 = vsel %vm955_vm7, %v3210_v21, 0.0  ;;  %v3161_v35 = vadd.f32 %v3160_v55, %v3159_v49 }
 0x2cc   : > { %v3168_v28 = vadd.f32 %v3167_v19, %v3166_v10  ;;  %v3217_v30 = vrot.slane %v3216_v25, 4  ;;  %v3223_v31 = vsel %vm955_vm7, %v3211_v24, 0.0  ;;  %3268 = vst [vmem:[#allocation1] ss:$2 sm:$0xff] %v3264_v22  ;;  %v3380_v55 = vsel %vm955_vm7, %v3378_v4, %v3379_v7  ;;  %v3436_v22 = vpop.permute.xlu0 %3435 }
 0x2cd   : > { %v3175_v33 = vadd.f32 %v3174_v0, %v3173_v14  ;;  %v3232_v34 = vadd.f32 %v3231_v23, %v3230_v58  ;;  %v3224_v11 = vrot.slane %v3223_v31, 4  ;;  %3270 = vst [vmem:[#allocation1 + $0x10] ss:$2 sm:$0xff] %v3265_v26  ;;  %v3383_v23 = vsel %vm3381_vm12, %v3377_v60, %v3379_v7 }
 0x2ce   : > { %v3179_v36 = vrot.slane %v3168_v28, 7  ;;  %v3218_v37 = vadd.f32 %v3217_v30, %v3216_v25  ;;  %v3438_v25 = vpop.permute.xlu1 %3437  ;;  %v3382_v28 = vsel %vm3381_vm12, %v3375_v27, %v3380_v55  ;;  %vm3930_vm12 = vcmask 31744  }
 0x2cf   : > { %v3180_v39 = vrot.slane %v3175_v33, 6  ;;  %v3233_v20 = vrot.slane %v3232_v34, 2  ;;  %v3225_v40 = vadd.f32 %v3224_v11, %v3223_v31  ;;  %v3387_v33 = vmul.f32 %v3383_v23, %v6903_v12 }
 0x2d0   : > { %v3181_v50 = vsel %vm982_vm0, %v3161_v35, %v3179_v36  ;;  %v3219_v43 = vrot.slane %v3218_v37, 2  ;;  %v3440_v36 = vrot.slane %v3438_v25, 4 }
 0x2d1   : > { %v3182_v59 = vsel %vm984_vm9, %v3181_v50, %v3180_v39  ;;  %v3234_v44 = vadd.f32 %v3233_v20, %v3232_v34  ;;  %v3226_v18 = vrot.slane %v3225_v40, 2 }
 0x2d2   : > { %5992 = vst.msk [vmem:[%s6929_s20 + $0x64] ss:$8 sm:$0x7] %vm6931_vm1, %v3182_v59  ;;  %v3220_v46 = vadd.f32 %v3219_v43, %v3218_v37 }
 0x2d3   : > { %v3235_v48 = vrot.slane %v3234_v44, 1  ;;  %v3227_v51 = vadd.f32 %v3226_v18, %v3225_v40  ;;  %v3271_v32 = vld.sshfl [vmem:[#allocation1] sm:$0xff pattern:$0x75316420]  ;;  %v3386_v40 = vmul.f32 %v3382_v28, %v6894_v8 }
 0x2d4   : > { %v3221_v52 = vrot.slane %v3220_v46, 1  ;;  %v3272_v54 = vld.sshfl [vmem:[#allocation1 + $0x8] sm:$0xff pattern:$0x75316420]  ;;  %v3277_v56 = vsel %vm955_vm7, %v3271_v32, 0.0 }
 0x2d5   : > { %v3228_v57 = vrot.slane %v3227_v51, 1  ;;  %v3273_v62 = vld.sshfl [vmem:[#allocation1 + $0x10] sm:$0xff pattern:$0x75316420]  ;;  %v3278_v63 = vrot.slane %v3277_v56, 4  ;;  %v3284_v1 = vsel %vm955_vm7, %v3272_v54, 0.0  ;;  %v3236_v41 = vadd.f32 %v3235_v48, %v3234_v44 }
 0x2d6   : > { %v3285_v2 = vrot.slane %v3284_v1, 4  ;;  %v3291_v3 = vsel %vm955_vm7, %v3273_v62, 0.0  ;;  %3329 = vst [vmem:[#allocation1] ss:$2 sm:$0xff] %v3325_v53  ;;  %v3222_v10 = vadd.f32 %v3221_v52, %v3220_v46  ;;  %v3439_v44 = vrot.slane %v3436_v22, 4 }
 0x2d7   : > { %v3229_v5 = vadd.f32 %v3228_v57, %v3227_v51  ;;  %v3279_v6 = vadd.f32 %v3278_v63, %v3277_v56  ;;  %v3292_v49 = vrot.slane %v3291_v3, 4  ;;  %3331 = vst [vmem:[#allocation1 + $0x10] ss:$2 sm:$0xff] %v3326_v61  ;;  %v3241_v16 = vrot.slane %v3236_v41, 6  ;;  %v3499_v57 = vpop.permute.xlu0 %3498 }
 0x2d8   : > { %v3286_v9 = vadd.f32 %v3285_v2, %v3284_v1  ;;  %v3441_v51 = vsel %vm955_vm7, %v3439_v44, %v3440_v36  ;;  %v3444_v1 = vsel %vm3442_vm13, %v3438_v25, %v3440_v36  ;;  %v3501_v4 = vrot.slane %v3499_v57, 4 }
 0x2d9   : > { %v3240_v13 = vrot.slane %v3229_v5, 7  ;;  %v3280_v14 = vrot.slane %v3279_v6, 2  ;;  %v3293_v15 = vadd.f32 %v3292_v49, %v3291_v3  ;;  %v3443_v62 = vsel %vm3442_vm13, %v3436_v22, %v3441_v51  ;;  %v3497_v3 = vpop.permute.xlu2 %3496 }
 0x2da   : > { %v3287_v17 = vrot.slane %v3286_v9, 2  ;;  %v3500_v55 = vrot.slane %v3497_v3, 4  ;;  %vm3991_vm13 = vcmask 23552  }
 0x2db   : > { %v3242_v19 = vsel %vm982_vm0, %v3222_v10, %v3240_v13  ;;  %v3281_v58 = vadd.f32 %v3280_v14, %v3279_v6  ;;  %v3294_v21 = vrot.slane %v3293_v15, 2 }
 0x2dc   : > { %v3243_v0 = vsel %vm984_vm9, %v3242_v19, %v3241_v16  ;;  %v3288_v24 = vadd.f32 %v3287_v17, %v3286_v9  ;;  %v3447_v9 = vmul.f32 %v3443_v62, %v6894_v8  ;;  %v3448_v16 = vmul.f32 %v3444_v1, %v6903_v12 }
 0x2dd   : > { %5993 = vst.msk [vmem:[%s6929_s20 + $0x65] ss:$8 sm:$0x7] %vm6931_vm1, %v3243_v0  ;;  %v3295_v26 = vadd.f32 %v3294_v21, %v3293_v15  ;;  %v3282_v29 = vrot.slane %v3281_v58, 1 }
 0x2de   : > { %v3289_v30 = vrot.slane %v3288_v24, 1  ;;  %v3332_v31 = vld.sshfl [vmem:[#allocation1] sm:$0xff pattern:$0x75316420] }
 0x2df   : > { %v3296_v34 = vrot.slane %v3295_v26, 1  ;;  %v3333_v11 = vld.sshfl [vmem:[#allocation1 + $0x8] sm:$0xff pattern:$0x75316420]  ;;  %v3338_v35 = vsel %vm955_vm7, %v3332_v31, 0.0  ;;  %v3283_v18 = vadd.f32 %v3282_v29, %v3281_v58 }
 0x2e0   : > { %v3290_v37 = vadd.f32 %v3289_v30, %v3288_v24  ;;  %v3334_v38 = vld.sshfl [vmem:[#allocation1 + $0x10] sm:$0xff pattern:$0x75316420]  ;;  %v3339_v39 = vrot.slane %v3338_v35, 4  ;;  %v3345_v20 = vsel %vm955_vm7, %v3333_v11, 0.0 }
 0x2e1   : > { %v3297_v50 = vadd.f32 %v3296_v34, %v3295_v26  ;;  %v3346_v43 = vrot.slane %v3345_v20, 4  ;;  %v3352_v59 = vsel %vm955_vm7, %v3334_v38, 0.0  ;;  %3392 = vst [vmem:[#allocation1 + $0x10] ss:$2 sm:$0xff] %v3387_v33  ;;  %v3502_v26 = vsel %vm955_vm7, %v3500_v55, %v3501_v4 }
 0x2e2   : > { %v3301_v45 = vrot.slane %v3290_v37, 7  ;;  %v3340_v46 = vadd.f32 %v3339_v39, %v3338_v35  ;;  %v3353_v47 = vrot.slane %v3352_v59, 4  ;;  %3390 = vst [vmem:[#allocation1] ss:$2 sm:$0xff] %v3386_v40  ;;  %v3504_v36 = vsel %vm3503_vm14, %v3497_v3, %v3502_v26  ;;  %v3558_v39 = vpop.permute.xlu1 %3557 }
 0x2e3   : > { %v3302_v27 = vrot.slane %v3297_v50, 6  ;;  %v3347_v48 = vadd.f32 %v3346_v43, %v3345_v20  ;;  %v3505_v38 = vsel %vm3503_vm14, %v3499_v57, %v3501_v4  ;;  %vm4052_vm14 = vcmask 15360  }
 0x2e4   : > { %v3303_v32 = vsel %vm982_vm0, %v3283_v18, %v3301_v45  ;;  %v3341_v52 = vrot.slane %v3340_v46, 2  ;;  %v3354_v53 = vadd.f32 %v3353_v47, %v3352_v59  ;;  %v3508_v59 = vmul.f32 %v3504_v36, %v6894_v8 }
 0x2e5   : > { %v3304_v54 = vsel %vm984_vm9, %v3303_v32, %v3302_v27  ;;  %v3348_v56 = vrot.slane %v3347_v48, 2  ;;  %v3509_v47 = vmul.f32 %v3505_v38, %v6903_v12 }
 0x2e6   : > { %5994 = vst.msk [vmem:[%s6929_s20 + $0x66] ss:$8 sm:$0x7] %vm6931_vm1, %v3304_v54  ;;  %v3342_v60 = vadd.f32 %v3341_v52, %v3340_v46  ;;  %v3355_v61 = vrot.slane %v3354_v53, 2  ;;  %v3560_v46 = vpop.permute.xlu2 %3559  ;;  %v3561_v54 = vrot.slane %v3558_v39, 4 }
 0x2e7   : > { %v3349_v63 = vadd.f32 %v3348_v56, %v3347_v48 }
 0x2e8   : > { %v3356_v41 = vadd.f32 %v3355_v61, %v3354_v53  ;;  %v3395_v2 = vld.sshfl [vmem:[#allocation1 + $0x10] sm:$0xff pattern:$0x75316420]  ;;  %v3343_v5 = vrot.slane %v3342_v60, 1  ;;  %v3562_v61 = vrot.slane %v3560_v46, 4 }
 0x2e9   : > { %v3350_v6 = vrot.slane %v3349_v63, 1  ;;  %v3413_v49 = vsel %vm955_vm7, %v3395_v2, 0.0  ;;  %v3393_v7 = vld.sshfl [vmem:[#allocation1] sm:$0xff pattern:$0x75316420] }
 0x2ea   : > { %v3357_v10 = vrot.slane %v3356_v41, 1  ;;  %v3414_v13 = vrot.slane %v3413_v49, 4  ;;  %v3394_v14 = vld.sshfl [vmem:[#allocation1 + $0x8] sm:$0xff pattern:$0x75316420]  ;;  %v3399_v15 = vsel %vm955_vm7, %v3393_v7, 0.0  ;;  %v3344_v23 = vadd.f32 %v3343_v5, %v3342_v60 }
 0x2eb   : > { %v3351_v17 = vadd.f32 %v3350_v6, %v3349_v63  ;;  %v3400_v19 = vrot.slane %v3399_v15, 4  ;;  %v3406_v58 = vsel %vm955_vm7, %v3394_v14, 0.0  ;;  %3451 = vst [vmem:[#allocation1] ss:$2 sm:$0xff] %v3447_v9  ;;  %v3563_v5 = vsel %vm955_vm7, %v3561_v54, %v3562_v61  ;;  %v3619_v9 = vpop.permute.xlu0 %3618 }
 0x2ec   : > { %v3358_v21 = vadd.f32 %v3357_v10, %v3356_v41  ;;  %v3415_v22 = vadd.f32 %v3414_v13, %v3413_v49  ;;  %v3407_v0 = vrot.slane %v3406_v58, 4  ;;  %3453 = vst [vmem:[#allocation1 + $0x10] ss:$2 sm:$0xff] %v3448_v16  ;;  %v3566_v13 = vsel %vm3564_vm15, %v3560_v46, %v3562_v61 }
 0x2ed   : > { %v3362_v24 = vrot.slane %v3351_v17, 7  ;;  %v3401_v25 = vadd.f32 %v3400_v19, %v3399_v15  ;;  %v3621_v15 = vpop.permute.xlu1 %3620  ;;  %v3565_v17 = vsel %vm3564_vm15, %v3558_v39, %v3563_v5  ;;  %vm4113_vm15 = vcmask 7168  }
 0x2ee   : > { %v3363_v28 = vrot.slane %v3358_v21, 6  ;;  %v3416_v29 = vrot.slane %v3415_v22, 2  ;;  %v3408_v30 = vadd.f32 %v3407_v0, %v3406_v58  ;;  %v3570_v21 = vmul.f32 %v3566_v13, %v6903_v12 }
 0x2ef   : > { %v3364_v31 = vsel %vm982_vm0, %v3344_v23, %v3362_v24  ;;  %v3402_v33 = vrot.slane %v3401_v25, 2  ;;  %v3623_v24 = vrot.slane %v3621_v15, 4 }
 0x2f0   : > { %v3365_v34 = vsel %vm984_vm9, %v3364_v31, %v3363_v28  ;;  %v3417_v11 = vadd.f32 %v3416_v29, %v3415_v22  ;;  %v3409_v35 = vrot.slane %v3408_v30, 2 }
 0x2f1   : > { %5995 = vst.msk [vmem:[%s6929_s20 + $0x67] ss:$8 sm:$0x7] %vm6931_vm1, %v3365_v34  ;;  %v3403_v37 = vadd.f32 %v3402_v33, %v3401_v25 }
 0x2f2   : > { %v3418_v20 = vrot.slane %v3417_v11, 1  ;;  %v3410_v40 = vadd.f32 %v3409_v35, %v3408_v30  ;;  %v3454_v50 = vld.sshfl [vmem:[#allocation1] sm:$0xff pattern:$0x75316420]  ;;  %v3569_v30 = vmul.f32 %v3565_v17, %v6894_v8 }
 0x2f3   : > { %v3404_v43 = vrot.slane %v3403_v37, 1  ;;  %v3455_v44 = vld.sshfl [vmem:[#allocation1 + $0x8] sm:$0xff pattern:$0x75316420]  ;;  %v3460_v18 = vsel %vm955_vm7, %v3454_v50, 0.0 }
 0x2f4   : > { %v3411_v45 = vrot.slane %v3410_v40, 1  ;;  %v3456_v27 = vld.sshfl [vmem:[#allocation1 + $0x10] sm:$0xff pattern:$0x75316420]  ;;  %v3461_v48 = vrot.slane %v3460_v18, 4  ;;  %v3467_v51 = vsel %vm955_vm7, %v3455_v44, 0.0  ;;  %v3419_v32 = vadd.f32 %v3418_v20, %v3417_v11 }
 0x2f5   : > { %v3468_v52 = vrot.slane %v3467_v51, 4  ;;  %v3474_v53 = vsel %vm955_vm7, %v3456_v27, 0.0  ;;  %3512 = vst [vmem:[#allocation1] ss:$2 sm:$0xff] %v3508_v59  ;;  %v3405_v63 = vadd.f32 %v3404_v43, %v3403_v37  ;;  %v3622_v11 = vrot.slane %v3619_v9, 4 }
 0x2f6   : > { %v3412_v56 = vadd.f32 %v3411_v45, %v3410_v40  ;;  %v3462_v57 = vadd.f32 %v3461_v48, %v3460_v18  ;;  %v3475_v60 = vrot.slane %v3474_v53, 4  ;;  %3514 = vst [vmem:[#allocation1 + $0x10] ss:$2 sm:$0xff] %v3509_v47  ;;  %v3424_v3 = vrot.slane %v3419_v32, 6  ;;  %v3682_v45 = vpop.permute.xlu0 %3681 }
 0x2f7   : > { %v3469_v62 = vadd.f32 %v3468_v52, %v3467_v51  ;;  %v3624_v40 = vsel %vm955_vm7, %v3622_v11, %v3623_v24  ;;  %v3627_v51 = vsel %vm3625_vm6, %v3621_v15, %v3623_v24  ;;  %v3684_v54 = vrot.slane %v3682_v45, 4 }
 0x2f8   : > { %v3423_v1 = vrot.slane %v3412_v56, 7  ;;  %v3463_v41 = vrot.slane %v3462_v57, 2  ;;  %v3476_v2 = vadd.f32 %v3475_v60, %v3474_v53  ;;  %v3626_v27 = vsel %vm3625_vm6, %v3619_v9, %v3624_v40  ;;  %v3680_v53 = vpop.permute.xlu2 %3679 }
 0x2f9   : > { %v3470_v4 = vrot.slane %v3469_v62, 2  ;;  %v3683_v5 = vrot.slane %v3680_v53, 4  ;;  %vm4221_vm6 = vcmask 916480  }
 0x2fa   : > { %v3425_v6 = vsel %vm982_vm0, %v3405_v63, %v3423_v1  ;;  %v3464_v49 = vadd.f32 %v3463_v41, %v3462_v57  ;;  %v3477_v7 = vrot.slane %v3476_v2, 2 }
 0x2fb   : > { %v3426_v10 = vsel %vm984_vm9, %v3425_v6, %v3424_v3  ;;  %v3471_v14 = vadd.f32 %v3470_v4, %v3469_v62  ;;  %v3630_v62 = vmul.f32 %v3626_v27, %v6894_v8  ;;  %v3631_v3 = vmul.f32 %v3627_v51, %v6903_v12 }
 0x2fc   : > { %5996 = vst.msk [vmem:[%s6929_s20 + $0x78] ss:$8 sm:$0x7] %vm6931_vm1, %v3426_v10  ;;  %v3478_v16 = vadd.f32 %v3477_v7, %v3476_v2  ;;  %v3465_v55 = vrot.slane %v3464_v49, 1 }
 0x2fd   : > { %v3472_v19 = vrot.slane %v3471_v14, 1  ;;  %v3515_v58 = vld.sshfl [vmem:[#allocation1] sm:$0xff pattern:$0x75316420] }
 0x2fe   : > { %v3479_v22 = vrot.slane %v3478_v16, 1  ;;  %v3516_v0 = vld.sshfl [vmem:[#allocation1 + $0x8] sm:$0xff pattern:$0x75316420]  ;;  %v3521_v23 = vsel %vm955_vm7, %v3515_v58, 0.0  ;;  %v3466_v35 = vadd.f32 %v3465_v55, %v3464_v49 }
 0x2ff   : > { %v3473_v25 = vadd.f32 %v3472_v19, %v3471_v14  ;;  %v3517_v26 = vld.sshfl [vmem:[#allocation1 + $0x10] sm:$0xff pattern:$0x75316420]  ;;  %v3522_v28 = vrot.slane %v3521_v23, 4  ;;  %v3528_v29 = vsel %vm955_vm7, %v3516_v0, 0.0 }
 0x300   : > { %v3480_v31 = vadd.f32 %v3479_v22, %v3478_v16  ;;  %v3529_v33 = vrot.slane %v3528_v29, 4  ;;  %v3535_v34 = vsel %vm955_vm7, %v3517_v26, 0.0  ;;  %3575 = vst [vmem:[#allocation1 + $0x10] ss:$2 sm:$0xff] %v3570_v21  ;;  %v3685_v16 = vsel %vm955_vm7, %v3683_v5, %v3684_v54 }
 0x301   : > { %v3484_v36 = vrot.slane %v3473_v25, 7  ;;  %v3523_v37 = vadd.f32 %v3522_v28, %v3521_v23  ;;  %v3536_v38 = vrot.slane %v3535_v34, 4  ;;  %3573 = vst [vmem:[#allocation1] ss:$2 sm:$0xff] %v3569_v30  ;;  %v3687_v24 = vsel %vm3686_vm3, %v3680_v53, %v3685_v16  ;;  %v3741_v28 = vpop.permute.xlu1 %3740 }
 0x302   : > { %v3485_v39 = vrot.slane %v3480_v31, 6  ;;  %v3530_v20 = vadd.f32 %v3529_v33, %v3528_v29  ;;  %v3688_v26 = vsel %vm3686_vm3, %v3682_v45, %v3684_v54  ;;  %vm4282_vm3 = vcmask 908288  }
 0x303   : > { %v3486_v50 = vsel %vm982_vm0, %v3466_v35, %v3484_v36  ;;  %v3524_v43 = vrot.slane %v3523_v37, 2  ;;  %v3537_v59 = vadd.f32 %v3536_v38, %v3535_v34  ;;  %v3691_v34 = vmul.f32 %v3687_v24, %v6894_v8 }
 0x304   : > { %v3487_v44 = vsel %vm984_vm9, %v3486_v50, %v3485_v39  ;;  %v3531_v18 = vrot.slane %v3530_v20, 2  ;;  %v3692_v38 = vmul.f32 %v3688_v26, %v6903_v12 }
 0x305   : > { %5997 = vst.msk [vmem:[%s6929_s20 + $0x79] ss:$8 sm:$0x7] %vm6931_vm1, %v3487_v44  ;;  %v3525_v46 = vadd.f32 %v3524_v43, %v3523_v37  ;;  %v3538_v47 = vrot.slane %v3537_v59, 2  ;;  %v3743_v37 = vpop.permute.xlu2 %3742  ;;  %v3744_v44 = vrot.slane %v3741_v28, 4 }
 0x306   : > { %v3532_v48 = vadd.f32 %v3531_v18, %v3530_v20 }
 0x307   : > { %v3539_v32 = vadd.f32 %v3538_v47, %v3537_v59  ;;  %v3578_v52 = vld.sshfl [vmem:[#allocation1 + $0x10] sm:$0xff pattern:$0x75316420]  ;;  %v3526_v56 = vrot.slane %v3525_v46, 1  ;;  %v3745_v47 = vrot.slane %v3743_v37, 4 }
 0x308   : > { %v3533_v57 = vrot.slane %v3532_v48, 1  ;;  %v3596_v60 = vsel %vm955_vm7, %v3578_v52, 0.0  ;;  %v3576_v61 = vld.sshfl [vmem:[#allocation1] sm:$0xff pattern:$0x75316420] }
 0x309   : > { %v3540_v63 = vrot.slane %v3539_v32, 1  ;;  %v3597_v1 = vrot.slane %v3596_v60, 4  ;;  %v3577_v41 = vld.sshfl [vmem:[#allocation1 + $0x8] sm:$0xff pattern:$0x75316420]  ;;  %v3582_v2 = vsel %vm955_vm7, %v3576_v61, 0.0  ;;  %v3527_v13 = vadd.f32 %v3526_v56, %v3525_v46 }
 0x30a   : > { %v3534_v4 = vadd.f32 %v3533_v57, %v3532_v48  ;;  %v3583_v6 = vrot.slane %v3582_v2, 4  ;;  %v3589_v49 = vsel %vm955_vm7, %v3577_v41, 0.0  ;;  %3634 = vst [vmem:[#allocation1] ss:$2 sm:$0xff] %v3630_v62  ;;  %v3746_v56 = vsel %vm955_vm7, %v3744_v44, %v3745_v47  ;;  %v3802_v62 = vpop.permute.xlu0 %3801 }
 0x30b   : > { %v3541_v7 = vadd.f32 %v3540_v63, %v3539_v32  ;;  %v3598_v9 = vadd.f32 %v3597_v1, %v3596_v60  ;;  %v3590_v10 = vrot.slane %v3589_v49, 4  ;;  %3636 = vst [vmem:[#allocation1 + $0x10] ss:$2 sm:$0xff] %v3631_v3  ;;  %v3749_v1 = vsel %vm3747_vm4, %v3743_v37, %v3745_v47 }
 0x30c   : > { %v3545_v14 = vrot.slane %v3534_v4, 7  ;;  %v3584_v15 = vadd.f32 %v3583_v6, %v3582_v2  ;;  %v3804_v2 = vpop.permute.xlu1 %3803  ;;  %v3748_v4 = vsel %vm3747_vm4, %v3741_v28, %v3746_v56  ;;  %vm4343_vm4 = vcmask 900096  }
 0x30d   : > { %v3546_v17 = vrot.slane %v3541_v7, 6  ;;  %v3599_v55 = vrot.slane %v3598_v9, 2  ;;  %v3591_v19 = vadd.f32 %v3590_v10, %v3589_v49  ;;  %v3753_v7 = vmul.f32 %v3749_v1, %v6903_v12 }
 0x30e   : > { %v3547_v58 = vsel %vm982_vm0, %v3527_v13, %v3545_v14  ;;  %v3585_v21 = vrot.slane %v3584_v15, 2  ;;  %v3806_v14 = vrot.slane %v3804_v2, 4 }
 0x30f   : > { %v3548_v22 = vsel %vm984_vm9, %v3547_v58, %v3546_v17  ;;  %v3600_v0 = vadd.f32 %v3599_v55, %v3598_v9  ;;  %v3592_v23 = vrot.slane %v3591_v19, 2 }
 0x310   : > { %5998 = vst.msk [vmem:[%s6929_s20 + $0x7a] ss:$8 sm:$0x7] %vm6931_vm1, %v3548_v22  ;;  %v3586_v25 = vadd.f32 %v3585_v21, %v3584_v15 }
 0x311   : > { %v3601_v29 = vrot.slane %v3600_v0, 1  ;;  %v3593_v30 = vadd.f32 %v3592_v23, %v3591_v19  ;;  %v3637_v31 = vld.sshfl [vmem:[#allocation1] sm:$0xff pattern:$0x75316420]  ;;  %v3752_v19 = vmul.f32 %v3748_v4, %v6894_v8 }
 0x312   : > { %v3587_v33 = vrot.slane %v3586_v25, 1  ;;  %v3638_v11 = vld.sshfl [vmem:[#allocation1 + $0x8] sm:$0xff pattern:$0x75316420]  ;;  %v3643_v35 = vsel %vm955_vm7, %v3637_v31, 0.0 }
 0x313   : > { %v3594_v36 = vrot.slane %v3593_v30, 1  ;;  %v3639_v39 = vld.sshfl [vmem:[#allocation1 + $0x10] sm:$0xff pattern:$0x75316420]  ;;  %v3644_v20 = vrot.slane %v3643_v35, 4  ;;  %v3650_v40 = vsel %vm955_vm7, %v3638_v11, 0.0  ;;  %v3602_v50 = vadd.f32 %v3601_v29, %v3600_v0 }
 0x314   : > { %v3651_v43 = vrot.slane %v3650_v40, 4  ;;  %v3657_v59 = vsel %vm955_vm7, %v3639_v39, 0.0  ;;  %3695 = vst [vmem:[#allocation1] ss:$2 sm:$0xff] %v3691_v34  ;;  %v3588_v48 = vadd.f32 %v3587_v33, %v3586_v25  ;;  %v3805_v0 = vrot.slane %v3802_v62, 4 }
 0x315   : > { %v3595_v18 = vadd.f32 %v3594_v36, %v3593_v30  ;;  %v3645_v45 = vadd.f32 %v3644_v20, %v3643_v35  ;;  %v3658_v46 = vrot.slane %v3657_v59, 4  ;;  %3697 = vst [vmem:[#allocation1 + $0x10] ss:$2 sm:$0xff] %v3692_v38  ;;  %v3607_v53 = vrot.slane %v3602_v50, 6  ;;  %v3865_v36 = vpop.permute.xlu0 %3864 }
 0x316   : > { %v3652_v27 = vadd.f32 %v3651_v43, %v3650_v40  ;;  %v3807_v30 = vsel %vm955_vm7, %v3805_v0, %v3806_v14  ;;  %v3810_v40 = vsel %vm3808_vm5, %v3804_v2, %v3806_v14  ;;  %v3867_v44 = vrot.slane %v3865_v36, 4 }
 0x317   : > { %v3606_v51 = vrot.slane %v3595_v18, 7  ;;  %v3646_v32 = vrot.slane %v3645_v45, 2  ;;  %v3659_v52 = vadd.f32 %v3658_v46, %v3657_v59  ;;  %v3809_v39 = vsel %vm3808_vm5, %v3802_v62, %v3807_v30  ;;  %v3863_v59 = vpop.permute.xlu2 %3862 }
 0x318   : > { %v3653_v54 = vrot.slane %v3652_v27, 2  ;;  %v3866_v56 = vrot.slane %v3863_v59, 4  ;;  %vm4404_vm5 = vcmask 891904  }
 0x319   : > { %v3608_v57 = vsel %vm982_vm0, %v3588_v48, %v3606_v51  ;;  %v3647_v60 = vadd.f32 %v3646_v32, %v3645_v45  ;;  %v3660_v61 = vrot.slane %v3659_v52, 2 }
 0x31a   : > { %v3609_v63 = vsel %vm984_vm9, %v3608_v57, %v3607_v53  ;;  %v3654_v41 = vadd.f32 %v3653_v54, %v3652_v27  ;;  %v3813_v27 = vmul.f32 %v3809_v39, %v6894_v8  ;;  %v3814_v53 = vmul.f32 %v3810_v40, %v6903_v12 }
 0x31b   : > { %5999 = vst.msk [vmem:[%s6929_s20 + $0x7b] ss:$8 sm:$0x7] %vm6931_vm1, %v3609_v63  ;;  %v3661_v3 = vadd.f32 %v3660_v61, %v3659_v52  ;;  %v3648_v5 = vrot.slane %v3647_v60, 1 }
 0x31c   : > { %v3655_v6 = vrot.slane %v3654_v41, 1  ;;  %v3698_v49 = vld.sshfl [vmem:[#allocation1] sm:$0xff pattern:$0x75316420] }
 0x31d   : > { %v3662_v9 = vrot.slane %v3661_v3, 1  ;;  %v3699_v10 = vld.sshfl [vmem:[#allocation1 + $0x8] sm:$0xff pattern:$0x75316420]  ;;  %v3704_v13 = vsel %vm955_vm7, %v3698_v49, 0.0  ;;  %v3649_v23 = vadd.f32 %v3648_v5, %v3647_v60 }
 0x31e   : > { %v3656_v15 = vadd.f32 %v3655_v6, %v3654_v41  ;;  %v3700_v16 = vld.sshfl [vmem:[#allocation1 + $0x10] sm:$0xff pattern:$0x75316420]  ;;  %v3705_v17 = vrot.slane %v3704_v13, 4  ;;  %v3711_v55 = vsel %vm955_vm7, %v3699_v10, 0.0 }
 0x31f   : > { %v3663_v58 = vadd.f32 %v3662_v9, %v3661_v3  ;;  %v3712_v21 = vrot.slane %v3711_v55, 4  ;;  %v3718_v22 = vsel %vm955_vm7, %v3700_v16, 0.0  ;;  %3758 = vst [vmem:[#allocation1 + $0x10] ss:$2 sm:$0xff] %v3753_v7  ;;  %v3868_v3 = vsel %vm955_vm7, %v3866_v56, %v3867_v44 }
 0x320   : > { %v3667_v24 = vrot.slane %v3656_v15, 7  ;;  %v3706_v25 = vadd.f32 %v3705_v17, %v3704_v13  ;;  %v3719_v26 = vrot.slane %v3718_v22, 4  ;;  %3756 = vst [vmem:[#allocation1] ss:$2 sm:$0xff] %v3752_v19  ;;  %v3870_v14 = vsel %vm3869_vm11, %v3863_v59, %v3868_v3  ;;  %v3924_v17 = vpop.permute.xlu1 %3923 }
 0x321   : > { %v3668_v28 = vrot.slane %v3663_v58, 6  ;;  %v3713_v29 = vadd.f32 %v3712_v21, %v3711_v55  ;;  %v3871_v16 = vsel %vm3869_vm11, %v3865_v36, %v3867_v44  ;;  %vm4465_vm11 = vcmask 883712  }
 0x322   : > { %v3669_v31 = vsel %vm982_vm0, %v3649_v23, %v3667_v24  ;;  %v3707_v33 = vrot.slane %v3706_v25, 2  ;;  %v3720_v34 = vadd.f32 %v3719_v26, %v3718_v22  ;;  %v3874_v22 = vmul.f32 %v3870_v14, %v6894_v8 }
 0x323   : > { %v3670_v11 = vsel %vm984_vm9, %v3669_v31, %v3668_v28  ;;  %v3714_v35 = vrot.slane %v3713_v29, 2  ;;  %v3875_v26 = vmul.f32 %v3871_v16, %v6903_v12 }
 0x324   : > { %6000 = vst.msk [vmem:[%s6929_s20 + $0x7c] ss:$8 sm:$0x7] %vm6931_vm1, %v3670_v11  ;;  %v3708_v37 = vadd.f32 %v3707_v33, %v3706_v25  ;;  %v3721_v38 = vrot.slane %v3720_v34, 2  ;;  %v3926_v25 = vpop.permute.xlu2 %3925  ;;  %v3927_v11 = vrot.slane %v3924_v17, 4 }
 0x325   : > { %v3715_v20 = vadd.f32 %v3714_v35, %v3713_v29 }
 0x326   : > { %v3722_v50 = vadd.f32 %v3721_v38, %v3720_v34  ;;  %v3761_v43 = vld.sshfl [vmem:[#allocation1 + $0x10] sm:$0xff pattern:$0x75316420]  ;;  %v3709_v18 = vrot.slane %v3708_v37, 1  ;;  %v3928_v38 = vrot.slane %v3926_v25, 4 }
 0x327   : > { %v3716_v45 = vrot.slane %v3715_v20, 1  ;;  %v3779_v46 = vsel %vm955_vm7, %v3761_v43, 0.0  ;;  %v3759_v47 = vld.sshfl [vmem:[#allocation1] sm:$0xff pattern:$0x75316420] }
 0x328   : > { %v3723_v48 = vrot.slane %v3722_v50, 1  ;;  %v3780_v51 = vrot.slane %v3779_v46, 4  ;;  %v3760_v32 = vld.sshfl [vmem:[#allocation1 + $0x8] sm:$0xff pattern:$0x75316420]  ;;  %v3765_v52 = vsel %vm955_vm7, %v3759_v47, 0.0  ;;  %v3710_v1 = vadd.f32 %v3709_v18, %v3708_v37 }
 0x329   : > { %v3717_v54 = vadd.f32 %v3716_v45, %v3715_v20  ;;  %v3766_v57 = vrot.slane %v3765_v52, 4  ;;  %v3772_v60 = vsel %vm955_vm7, %v3760_v32, 0.0  ;;  %3817 = vst [vmem:[#allocation1] ss:$2 sm:$0xff] %v3813_v27  ;;  %v3929_v18 = vsel %vm955_vm7, %v3927_v11, %v3928_v38  ;;  %v3985_v27 = vpop.permute.xlu0 %3984 }
 0x32a   : > { %v3724_v61 = vadd.f32 %v3723_v48, %v3722_v50  ;;  %v3781_v62 = vadd.f32 %v3780_v51, %v3779_v46  ;;  %v3773_v63 = vrot.slane %v3772_v60, 4  ;;  %3819 = vst [vmem:[#allocation1 + $0x10] ss:$2 sm:$0xff] %v3814_v53  ;;  %v3932_v51 = vsel %vm3930_vm12, %v3926_v25, %v3928_v38 }
 0x32b   : > { %v3728_v41 = vrot.slane %v3717_v54, 7  ;;  %v3767_v2 = vadd.f32 %v3766_v57, %v3765_v52  ;;  %v3987_v52 = vpop.permute.xlu1 %3986  ;;  %v3931_v54 = vsel %vm3930_vm12, %v3924_v17, %v3929_v18  ;;  %vm4526_vm12 = vcmask 875520  }
 0x32c   : > { %v3729_v4 = vrot.slane %v3724_v61, 6  ;;  %v3782_v5 = vrot.slane %v3781_v62, 2  ;;  %v3774_v6 = vadd.f32 %v3773_v63, %v3772_v60  ;;  %v3936_v61 = vmul.f32 %v3932_v51, %v6903_v12 }
 0x32d   : > { %v3730_v49 = vsel %vm982_vm0, %v3710_v1, %v3728_v41  ;;  %v3768_v7 = vrot.slane %v3767_v2, 2  ;;  %v3989_v41 = vrot.slane %v3987_v52, 4 }
 0x32e   : > { %v3731_v9 = vsel %vm984_vm9, %v3730_v49, %v3729_v4  ;;  %v3783_v10 = vadd.f32 %v3782_v5, %v3781_v62  ;;  %v3775_v13 = vrot.slane %v3774_v6, 2 }
 0x32f   : > { %6001 = vst.msk [vmem:[%s6929_s20 + $0x7d] ss:$8 sm:$0x7] %vm6931_vm1, %v3731_v9  ;;  %v3769_v15 = vadd.f32 %v3768_v7, %v3767_v2 }
 0x330   : > { %v3784_v55 = vrot.slane %v3783_v10, 1  ;;  %v3776_v19 = vadd.f32 %v3775_v13, %v3774_v6  ;;  %v3820_v58 = vld.sshfl [vmem:[#allocation1] sm:$0xff pattern:$0x75316420]  ;;  %v3935_v6 = vmul.f32 %v3931_v54, %v6894_v8 }
 0x331   : > { %v3770_v21 = vrot.slane %v3769_v15, 1  ;;  %v3821_v0 = vld.sshfl [vmem:[#allocation1 + $0x8] sm:$0xff pattern:$0x75316420]  ;;  %v3826_v23 = vsel %vm955_vm7, %v3820_v58, 0.0 }
 0x332   : > { %v3777_v24 = vrot.slane %v3776_v19, 1  ;;  %v3822_v28 = vld.sshfl [vmem:[#allocation1 + $0x10] sm:$0xff pattern:$0x75316420]  ;;  %v3827_v29 = vrot.slane %v3826_v23, 4  ;;  %v3833_v30 = vsel %vm955_vm7, %v3821_v0, 0.0  ;;  %v3785_v31 = vadd.f32 %v3784_v55, %v3783_v10 }
 0x333   : > { %v3834_v33 = vrot.slane %v3833_v30, 4  ;;  %v3840_v34 = vsel %vm955_vm7, %v3822_v28, 0.0  ;;  %3878 = vst [vmem:[#allocation1] ss:$2 sm:$0xff] %v3874_v22  ;;  %v3771_v20 = vadd.f32 %v3770_v21, %v3769_v15  ;;  %v3988_v10 = vrot.slane %v3985_v27, 4 }
 0x334   : > { %v3778_v35 = vadd.f32 %v3777_v24, %v3776_v19  ;;  %v3828_v36 = vadd.f32 %v3827_v29, %v3826_v23  ;;  %v3841_v37 = vrot.slane %v3840_v34, 4  ;;  %3880 = vst [vmem:[#allocation1 + $0x10] ss:$2 sm:$0xff] %v3875_v26  ;;  %v3790_v59 = vrot.slane %v3785_v31, 6  ;;  %v4048_v24 = vpop.permute.xlu0 %4047 }
 0x335   : > { %v3835_v39 = vadd.f32 %v3834_v33, %v3833_v30  ;;  %v3990_v19 = vsel %vm955_vm7, %v3988_v10, %v3989_v41  ;;  %v3993_v30 = vsel %vm3991_vm13, %v3987_v52, %v3989_v41  ;;  %v4050_v11 = vrot.slane %v4048_v24, 4 }
 0x336   : > { %v3789_v40 = vrot.slane %v3778_v35, 7  ;;  %v3829_v50 = vrot.slane %v3828_v36, 2  ;;  %v3842_v43 = vadd.f32 %v3841_v37, %v3840_v34  ;;  %v3992_v28 = vsel %vm3991_vm13, %v3985_v27, %v3990_v19  ;;  %v4046_v34 = vpop.permute.xlu2 %4045 }
 0x337   : > { %v3836_v44 = vrot.slane %v3835_v39, 2  ;;  %v4049_v18 = vrot.slane %v4046_v34, 4  ;;  %vm4587_vm13 = vcmask 867328  }
 0x338   : > { %v3791_v45 = vsel %vm982_vm0, %v3771_v20, %v3789_v40  ;;  %v3830_v46 = vadd.f32 %v3829_v50, %v3828_v36  ;;  %v3843_v47 = vrot.slane %v3842_v43, 2 }
 0x339   : > { %v3792_v48 = vsel %vm984_vm9, %v3791_v45, %v3790_v59  ;;  %v3837_v32 = vadd.f32 %v3836_v44, %v3835_v39  ;;  %v3996_v39 = vmul.f32 %v3992_v28, %v6894_v8  ;;  %v3997_v59 = vmul.f32 %v3993_v30, %v6903_v12 }
 0x33a   : > { %6002 = vst.msk [vmem:[%s6929_s20 + $0x7e] ss:$8 sm:$0x7] %vm6931_vm1, %v3792_v48  ;;  %v3844_v53 = vadd.f32 %v3843_v47, %v3842_v43  ;;  %v3831_v56 = vrot.slane %v3830_v46, 1 }
 0x33b   : > { %v3838_v57 = vrot.slane %v3837_v32, 1  ;;  %v3881_v60 = vld.sshfl [vmem:[#allocation1] sm:$0xff pattern:$0x75316420] }
 0x33c   : > { %v3845_v62 = vrot.slane %v3844_v53, 1  ;;  %v3882_v63 = vld.sshfl [vmem:[#allocation1 + $0x8] sm:$0xff pattern:$0x75316420]  ;;  %v3887_v1 = vsel %vm955_vm7, %v3881_v60, 0.0  ;;  %v3832_v13 = vadd.f32 %v3831_v56, %v3830_v46 }
 0x33d   : > { %v3839_v2 = vadd.f32 %v3838_v57, %v3837_v32  ;;  %v3883_v3 = vld.sshfl [vmem:[#allocation1 + $0x10] sm:$0xff pattern:$0x75316420]  ;;  %v3888_v4 = vrot.slane %v3887_v1, 4  ;;  %v3894_v5 = vsel %vm955_vm7, %v3882_v63, 0.0 }
 0x33e   : > { %v3846_v49 = vadd.f32 %v3845_v62, %v3844_v53  ;;  %v3895_v7 = vrot.slane %v3894_v5, 4  ;;  %v3901_v9 = vsel %vm955_vm7, %v3883_v3, 0.0  ;;  %3941 = vst [vmem:[#allocation1 + $0x10] ss:$2 sm:$0xff] %v3936_v61  ;;  %v4051_v53 = vsel %vm955_vm7, %v4049_v18, %v4050_v11 }
 0x33f   : > { %v3850_v14 = vrot.slane %v3839_v2, 7  ;;  %v3889_v15 = vadd.f32 %v3888_v4, %v3887_v1  ;;  %v3902_v16 = vrot.slane %v3901_v9, 4  ;;  %3939 = vst [vmem:[#allocation1] ss:$2 sm:$0xff] %v3935_v6  ;;  %v4053_v41 = vsel %vm4052_vm14, %v4046_v34, %v4051_v53 }
 0x340   : > { %v3851_v17 = vrot.slane %v3846_v49, 6  ;;  %v3896_v55 = vadd.f32 %v3895_v7, %v3894_v5  ;;  %v4054_v3 = vsel %vm4052_vm14, %v4048_v24, %v4050_v11  ;;  %v4107_v49 = vpop.permute.xlu1 %4106  ;;  %vm4648_vm14 = vcmask 859136  }
 0x341   : > { %v3852_v58 = vsel %vm982_vm0, %v3832_v13, %v3850_v14  ;;  %v3890_v21 = vrot.slane %v3889_v15, 2  ;;  %v3903_v22 = vadd.f32 %v3902_v16, %v3901_v9  ;;  %v4057_v9 = vmul.f32 %v4053_v41, %v6894_v8 }
 0x342   : > { %v3853_v0 = vsel %vm984_vm9, %v3852_v58, %v3851_v17  ;;  %v3897_v23 = vrot.slane %v3896_v55, 2  ;;  %v4058_v16 = vmul.f32 %v4054_v3, %v6903_v12 }
 0x343   : > { %6003 = vst.msk [vmem:[%s6929_s20 + $0x7f] ss:$8 sm:$0x7] %vm6931_vm1, %v3853_v0  ;;  %v3891_v25 = vadd.f32 %v3890_v21, %v3889_v15  ;;  %v3904_v26 = vrot.slane %v3903_v22, 2  ;;  %v4109_v15 = vpop.permute.xlu2 %4108  ;;  %v4110_v0 = vrot.slane %v4107_v49, 4 }
 0x344   : > { %v3898_v29 = vadd.f32 %v3897_v23, %v3896_v55 }
 0x345   : > { %v3905_v31 = vadd.f32 %v3904_v26, %v3903_v22  ;;  %v3944_v33 = vld.sshfl [vmem:[#allocation1 + $0x10] sm:$0xff pattern:$0x75316420]  ;;  %v3892_v35 = vrot.slane %v3891_v25, 1  ;;  %v4111_v26 = vrot.slane %v4109_v15, 4 }
 0x346   : > { %v3899_v36 = vrot.slane %v3898_v29, 1  ;;  %v3962_v37 = vsel %vm955_vm7, %v3944_v33, 0.0  ;;  %v3942_v38 = vld.sshfl [vmem:[#allocation1] sm:$0xff pattern:$0x75316420] }
 0x347   : > { %v3906_v20 = vrot.slane %v3905_v31, 1  ;;  %v3963_v40 = vrot.slane %v3962_v37, 4  ;;  %v3943_v50 = vld.sshfl [vmem:[#allocation1 + $0x8] sm:$0xff pattern:$0x75316420]  ;;  %v3948_v43 = vsel %vm955_vm7, %v3942_v38, 0.0  ;;  %v3893_v51 = vadd.f32 %v3892_v35, %v3891_v25 }
 0x348   : > { %v3900_v44 = vadd.f32 %v3899_v36, %v3898_v29  ;;  %v3949_v45 = vrot.slane %v3948_v43, 4  ;;  %v3955_v46 = vsel %vm955_vm7, %v3943_v50, 0.0  ;;  %4000 = vst [vmem:[#allocation1] ss:$2 sm:$0xff] %v3996_v39  ;;  %v4112_v35 = vsel %vm955_vm7, %v4110_v0, %v4111_v26 }
 0x349   : > { %v3907_v47 = vadd.f32 %v3906_v20, %v3905_v31  ;;  %v3964_v27 = vadd.f32 %v3963_v40, %v3962_v37  ;;  %v3956_v48 = vrot.slane %v3955_v46, 4  ;;  %4002 = vst [vmem:[#allocation1 + $0x10] ss:$2 sm:$0xff] %v3997_v59  ;;  %v4115_v20 = vsel %vm4113_vm15, %v4109_v15, %v4111_v26 }
 0x34a   : > { %v3911_v32 = vrot.slane %v3900_v44, 7  ;;  %v3950_v52 = vadd.f32 %v3949_v45, %v3948_v43  ;;  %v4114_v43 = vsel %vm4113_vm15, %v4107_v49, %v4112_v35  ;;  %v7825_v45 = vpop.permute.xlu0 %4214  ;;  %v4217_v49 = vpop.permute.xlu1 %4216  ;;  %vm4891_vm15 = vcmask 703488  }
 0x34b   : > { %v3912_v54 = vrot.slane %v3907_v47, 6  ;;  %v3965_v56 = vrot.slane %v3964_v27, 2  ;;  %v3957_v57 = vadd.f32 %v3956_v48, %v3955_v46  ;;  %v4119_v46 = vmul.f32 %v4115_v20, %v6903_v12 }
 0x34c   : > { %v3913_v60 = vsel %vm982_vm0, %v3893_v51, %v3911_v32  ;;  %v3951_v61 = vrot.slane %v3950_v52, 2 }
 0x34d   : > { %v3914_v62 = vsel %vm984_vm9, %v3913_v60, %v3912_v54  ;;  %v3966_v63 = vadd.f32 %v3965_v56, %v3964_v27  ;;  %v3958_v1 = vrot.slane %v3957_v57, 2  ;;  %v4118_v54 = vmul.f32 %v4114_v43, %v6894_v8 }
 0x34e   : > { %6004 = vst.msk [vmem:[%s6929_s20 + $0x90] ss:$8 sm:$0x7] %vm6931_vm1, %v3914_v62  ;;  %v3952_v2 = vadd.f32 %v3951_v61, %v3950_v52  ;;  %v7832_v61 = vpop.permute.xlu2 %4275 }
 0x34f   : > { %v3967_v4 = vrot.slane %v3966_v63, 1  ;;  %v3959_v5 = vadd.f32 %v3958_v1, %v3957_v57  ;;  %v4003_v6 = vld.sshfl [vmem:[#allocation1] sm:$0xff pattern:$0x75316420] }
 0x350   : > { %v3953_v7 = vrot.slane %v3952_v2, 1  ;;  %v4004_v10 = vld.sshfl [vmem:[#allocation1 + $0x8] sm:$0xff pattern:$0x75316420]  ;;  %v4009_v13 = vsel %vm955_vm7, %v4003_v6, 0.0 }
 0x351   : > { %v3960_v14 = vrot.slane %v3959_v5, 1  ;;  %v4005_v17 = vld.sshfl [vmem:[#allocation1 + $0x10] sm:$0xff pattern:$0x75316420]  ;;  %v4010_v55 = vrot.slane %v4009_v13, 4  ;;  %v4016_v19 = vsel %vm955_vm7, %v4004_v10, 0.0  ;;  %v3968_v58 = vadd.f32 %v3967_v4, %v3966_v63 }
 0x352   : > { %v4017_v21 = vrot.slane %v4016_v19, 4  ;;  %v4023_v22 = vsel %vm955_vm7, %v4005_v17, 0.0  ;;  %4061 = vst [vmem:[#allocation1] ss:$2 sm:$0xff] %v4057_v9  ;;  %v3954_v29 = vadd.f32 %v3953_v7, %v3952_v2  ;;  %v4164_v10 = vld [vmem:[#allocation3 + $0xc] sm:$0xf] }
 0x353   : > { %v3961_v23 = vadd.f32 %v3960_v14, %v3959_v5  ;;  %v4011_v24 = vadd.f32 %v4010_v55, %v4009_v13  ;;  %v4024_v25 = vrot.slane %v4023_v22, 4  ;;  %4063 = vst [vmem:[#allocation1 + $0x10] ss:$2 sm:$0xff] %v4058_v16  ;;  %v3973_v34 = vrot.slane %v3968_v58, 6  ;;  %v4163_v55 = vld [vmem:[#allocation3 + $0x4] sm:$0xff] }
 0x354   : > { %v4018_v28 = vadd.f32 %v4017_v21, %v4016_v19  ;;  %v4166_v15 = vmul.f32 %v4164_v10, %v6903_v12  ;;  %v4219_v17 = vrot.slane %v4217_v49, 4  ;;  %v4279_v21 = vrot.slane %v7832_v61, 4 }
 0x355   : > { %v3972_v30 = vrot.slane %v3961_v23, 7  ;;  %v4012_v31 = vrot.slane %v4011_v24, 2  ;;  %v4025_v33 = vadd.f32 %v4024_v25, %v4023_v22  ;;  %v4278_v22 = vpop.permute.xlu0 %4277  ;;  %v4218_v25 = vrot.slane %v7825_v45, 4 }
 0x356   : > { %v4019_v11 = vrot.slane %v4018_v28, 2  ;;  %v4165_v26 = vmul.f32 %v4163_v55, %v6894_v8  ;;  %v4280_v35 = vrot.slane %v4278_v22, 4 }
 0x357   : > { %v3974_v36 = vsel %vm982_vm0, %v3954_v29, %v3972_v30  ;;  %v4013_v37 = vadd.f32 %v4012_v31, %v4011_v24  ;;  %v4026_v38 = vrot.slane %v4025_v33, 2 }
 0x358   : > { %v3975_v39 = vsel %vm984_vm9, %v3974_v36, %v3973_v34  ;;  %v4020_v40 = vadd.f32 %v4019_v11, %v4018_v28  ;;  %v7845_v11 = vpop.permute.xlu2 %4338  ;;  %v4220_v36 = vsel %vm955_vm7, %v4218_v25, %v4219_v17 }
 0x359   : > { %6005 = vst.msk [vmem:[%s6929_s20 + $0x91] ss:$8 sm:$0x7] %vm6931_vm1, %v3975_v39  ;;  %v4027_v50 = vadd.f32 %v4026_v38, %v4025_v33  ;;  %v4014_v59 = vrot.slane %v4013_v37, 1 }
 0x35a   : > { %v4021_v44 = vrot.slane %v4020_v40, 1  ;;  %v4064_v18 = vld.sshfl [vmem:[#allocation1] sm:$0xff pattern:$0x75316420] }
 0x35b   : > { %v4028_v47 = vrot.slane %v4027_v50, 1  ;;  %v4065_v27 = vld.sshfl [vmem:[#allocation1 + $0x8] sm:$0xff pattern:$0x75316420]  ;;  %v4070_v48 = vsel %vm955_vm7, %v4064_v18, 0.0  ;;  %v4015_v62 = vadd.f32 %v4014_v59, %v4013_v37  ;;  %v4223_v59 = vsel %vm4221_vm6, %v4217_v49, %v4219_v17 }
 0x35c   : > { %v4022_v51 = vadd.f32 %v4021_v44, %v4020_v40  ;;  %v4066_v32 = vld.sshfl [vmem:[#allocation1 + $0x10] sm:$0xff pattern:$0x75316420]  ;;  %v4071_v52 = vrot.slane %v4070_v48, 4  ;;  %v4077_v53 = vsel %vm955_vm7, %v4065_v27, 0.0  ;;  %v4284_v49 = vsel %vm4282_vm3, %v4278_v22, %v4280_v35 }
 0x35d   : > { %v4029_v56 = vadd.f32 %v4028_v47, %v4027_v50  ;;  %v4078_v57 = vrot.slane %v4077_v53, 4  ;;  %v4084_v60 = vsel %vm955_vm7, %v4066_v32, 0.0  ;;  %4124 = vst [vmem:[#allocation1 + $0x10] ss:$2 sm:$0xff] %v4119_v46  ;;  %v4341_v47 = vrot.slane %v7845_v11, 4 }
 0x35e   : > { %v4033_v63 = vrot.slane %v4022_v51, 7  ;;  %v4072_v1 = vadd.f32 %v4071_v52, %v4070_v48  ;;  %v4085_v41 = vrot.slane %v4084_v60, 4  ;;  %4122 = vst [vmem:[#allocation1] ss:$2 sm:$0xff] %v4118_v54  ;;  %v4222_v51 = vsel %vm4221_vm6, %v7825_v45, %v4220_v36 }
 0x35f   : > { %v4034_v2 = vrot.slane %v4029_v56, 6  ;;  %v4079_v3 = vadd.f32 %v4078_v57, %v4077_v53  ;;  %v4227_v56 = vmul.f32 %v4223_v59, %v6903_v12  ;;  %vm4830_vm6 = vcmask 711680  }
 0x360   : > { %v4035_v4 = vsel %vm982_vm0, %v4015_v62, %v4033_v63  ;;  %v4073_v5 = vrot.slane %v4072_v1, 2  ;;  %v4086_v6 = vadd.f32 %v4085_v41, %v4084_v60  ;;  %v4281_v62 = vsel %vm955_vm7, %v4279_v21, %v4280_v35  ;;  %v4337_v63 = vpop.permute.xlu1 %4336  ;;  %v7869_v55 = vpop.permute.xlu2 %4458 }
 0x361   : > { %v4036_v7 = vsel %vm984_vm9, %v4035_v4, %v4034_v2  ;;  %v4080_v9 = vrot.slane %v4079_v3, 2  ;;  %v4226_v2 = vmul.f32 %v4222_v51, %v6894_v8  ;;  %v4283_v10 = vsel %vm4282_vm3, %v7832_v61, %v4281_v62 }
 0x362   : > { %6006 = vst.msk [vmem:[%s6929_s20 + $0x92] ss:$8 sm:$0x7] %vm6931_vm1, %v4036_v7  ;;  %v4074_v13 = vadd.f32 %v4073_v5, %v4072_v1  ;;  %v4087_v14 = vrot.slane %v4086_v6, 2  ;;  %vm4952_vm3 = vcmask 695296  }
 0x363   : > { %v4081_v16 = vadd.f32 %v4080_v9, %v4079_v3  ;;  %v7862_v3 = vpop.permute.xlu0 %4397 }
 0x364   : > { %v4088_v19 = vadd.f32 %v4087_v14, %v4086_v6  ;;  %v4127_v58 = vld.sshfl [vmem:[#allocation1 + $0x10] sm:$0xff pattern:$0x75316420]  ;;  %v4075_v0 = vrot.slane %v4074_v13, 1 }
 0x365   : > { %v4082_v23 = vrot.slane %v4081_v16, 1  ;;  %v4145_v24 = vsel %vm955_vm7, %v4127_v58, 0.0  ;;  %4171 = vst [vmem:[#allocation1 + $0x10] ss:$2 sm:$0xff] %v4166_v15 }
 0x366   : > { %v4089_v28 = vrot.slane %v4088_v19, 1  ;;  %v4146_v29 = vrot.slane %v4145_v24, 4  ;;  %v4125_v30 = vld.sshfl [vmem:[#allocation1] sm:$0xff pattern:$0x75316420]  ;;  %v4076_v40 = vadd.f32 %v4075_v0, %v4074_v13  ;;  %v4340_v13 = vrot.slane %v4337_v63, 4 }
 0x367   : > { %v4083_v31 = vadd.f32 %v4082_v23, %v4081_v16  ;;  %v4126_v33 = vld.sshfl [vmem:[#allocation1 + $0x8] sm:$0xff pattern:$0x75316420]  ;;  %v4131_v34 = vsel %vm955_vm7, %v4125_v30, 0.0  ;;  %v4345_v23 = vsel %vm4343_vm4, %v7845_v11, %v4341_v47 }
 0x368   : > { %v4090_v37 = vadd.f32 %v4089_v28, %v4088_v19  ;;  %v4147_v38 = vadd.f32 %v4146_v29, %v4145_v24  ;;  %v4132_v39 = vrot.slane %v4131_v34, 4  ;;  %v4138_v20 = vsel %vm955_vm7, %v4126_v33, 0.0  ;;  %4169 = vst [vmem:[#allocation1] ss:$2 sm:$0xff] %v4165_v26 }
 0x369   : > { %v4094_v50 = vrot.slane %v4083_v31, 7  ;;  %v4139_v43 = vrot.slane %v4138_v20, 4  ;;  %v4288_v24 = vmul.f32 %v4284_v49, %v6903_v12  ;;  %v4287_v26 = vmul.f32 %v4283_v10, %v6894_v8 }
 0x36a   : > { %v4095_v44 = vrot.slane %v4090_v37, 6  ;;  %v4148_v18 = vrot.slane %v4147_v38, 2  ;;  %v4133_v46 = vadd.f32 %v4132_v39, %v4131_v34  ;;  %v4462_v28 = vrot.slane %v7869_v55, 4 }
 0x36b   : > { %v4096_v27 = vsel %vm982_vm0, %v4076_v40, %v4094_v50  ;;  %v4140_v48 = vadd.f32 %v4139_v43, %v4138_v20  ;;  %v4342_v34 = vsel %vm955_vm7, %v4340_v13, %v4341_v47  ;;  %v4349_v20 = vmul.f32 %v4345_v23, %v6903_v12  ;;  %v4400_v47 = vpop.permute.xlu1 %4399  ;;  %v7898_v23 = vpop.permute.xlu2 %4521 }
 0x36c   : > { %v4097_v32 = vsel %vm984_vm9, %v4096_v27, %v4095_v44  ;;  %v4149_v52 = vadd.f32 %v4148_v18, %v4147_v38  ;;  %v4174_v53 = vld.sshfl [vmem:[#allocation1 + $0x10] sm:$0xff pattern:$0x75316420]  ;;  %v4134_v54 = vrot.slane %v4133_v46, 2  ;;  %v4344_v18 = vsel %vm4343_vm4, %v4337_v63, %v4342_v34 }
 0x36d   : > { %6007 = vst.msk [vmem:[%s6929_s20 + $0x93] ss:$8 sm:$0x7] %vm6931_vm1, %v4097_v32  ;;  %v4192_v57 = vsel %vm955_vm7, %v4174_v53, 0.0  ;;  %v4141_v60 = vrot.slane %v4140_v48, 2  ;;  %v4402_v63 = vrot.slane %v4400_v47, 4 }
 0x36e   : > { %v4150_v1 = vrot.slane %v4149_v52, 1  ;;  %v4193_v41 = vrot.slane %v4192_v57, 4  ;;  %v4135_v45 = vadd.f32 %v4134_v54, %v4133_v46  ;;  %4232 = vst [vmem:[#allocation1 + $0x10] ss:$2 sm:$0xff] %v4227_v56  ;;  %v7883_v46 = vpop.permute.xlu0 %4460  ;;  %v4401_v56 = vrot.slane %v7862_v3, 4 }
 0x36f   : > { %v4142_v4 = vadd.f32 %v4141_v60, %v4140_v48  ;;  %v4172_v5 = vld.sshfl [vmem:[#allocation1] sm:$0xff pattern:$0x75316420]  ;;  %v4173_v6 = vld.sshfl [vmem:[#allocation1 + $0x8] sm:$0xff pattern:$0x75316420]  ;;  %v4348_v60 = vmul.f32 %v4344_v18, %v6894_v8 }
 0x370   : > { %v4194_v7 = vadd.f32 %v4193_v41, %v4192_v57  ;;  %v4178_v9 = vsel %vm955_vm7, %v4172_v5, 0.0  ;;  %4230 = vst [vmem:[#allocation1] ss:$2 sm:$0xff] %v4226_v2  ;;  %v4136_v14 = vrot.slane %v4135_v45, 1  ;;  %v4185_v17 = vsel %vm955_vm7, %v4173_v6, 0.0 }
 0x371   : > { %v4143_v15 = vrot.slane %v4142_v4, 1  ;;  %v4179_v16 = vrot.slane %v4178_v9, 4  ;;  %v4151_v19 = vadd.f32 %v4150_v1, %v4149_v52  ;;  %v4186_v21 = vrot.slane %v4185_v17, 4 }
 0x372   : > { %v4195_v58 = vrot.slane %v4194_v7, 2  ;;  %v4137_v29 = vadd.f32 %v4136_v14, %v4135_v45  ;;  %v4463_v62 = vrot.slane %v7883_v46, 4  ;;  %vm5074_vm4 = vcmask 678912  }
 0x373   : > { %v4144_v0 = vadd.f32 %v4143_v15, %v4142_v4  ;;  %v4180_v22 = vadd.f32 %v4179_v16, %v4178_v9  ;;  %v4187_v25 = vadd.f32 %v4186_v21, %v4185_v17  ;;  %v4156_v35 = vrot.slane %v4151_v19, 6 }
 0x374   : > { %v4196_v61 = vadd.f32 %v4195_v58, %v4194_v7  ;;  %v4464_v16 = vsel %vm955_vm7, %v4462_v28, %v4463_v62  ;;  %v4403_v17 = vsel %vm955_vm7, %v4401_v56, %v4402_v63  ;;  %v4406_v19 = vsel %vm4404_vm5, %v4400_v47, %v4402_v63 }
 0x375   : > { %v4155_v30 = vrot.slane %v4144_v0, 7  ;;  %v4181_v31 = vrot.slane %v4180_v22, 2  ;;  %v4235_v33 = vld.sshfl [vmem:[#allocation1 + $0x10] sm:$0xff pattern:$0x75316420]  ;;  %v4188_v37 = vrot.slane %v4187_v25, 2 }
 0x376   : > { %v4197_v36 = vrot.slane %v4196_v61, 1  ;;  %v4253_v11 = vsel %vm955_vm7, %v4235_v33, 0.0  ;;  %4293 = vst [vmem:[#allocation1 + $0x10] ss:$2 sm:$0xff] %v4288_v24 }
 0x377   : > { %v4157_v38 = vsel %vm982_vm0, %v4137_v29, %v4155_v30  ;;  %v4182_v39 = vadd.f32 %v4181_v31, %v4180_v22  ;;  %v4233_v40 = vld.sshfl [vmem:[#allocation1] sm:$0xff pattern:$0x75316420]  ;;  %v4234_v50 = vld.sshfl [vmem:[#allocation1 + $0x8] sm:$0xff pattern:$0x75316420]  ;;  %v4189_v59 = vadd.f32 %v4188_v37, %v4187_v25  ;;  %v4405_v31 = vsel %vm4404_vm5, %v7862_v3, %v4403_v17 }
 0x378   : > { %v4158_v43 = vsel %vm984_vm9, %v4157_v38, %v4156_v35  ;;  %v4239_v44 = vsel %vm955_vm7, %v4233_v40, 0.0  ;;  %4291 = vst [vmem:[#allocation1] ss:$2 sm:$0xff] %v4287_v26  ;;  %v4198_v27 = vadd.f32 %v4197_v36, %v4196_v61  ;;  %v4246_v32 = vsel %vm955_vm7, %v4234_v50, 0.0 }
 0x379   : > { %6008 = vst.msk [vmem:[%s6929_s20 + $0x94] ss:$8 sm:$0x7] %vm6931_vm1, %v4158_v43  ;;  %v4183_v48 = vrot.slane %v4182_v39, 1  ;;  %v4240_v51 = vrot.slane %v4239_v44, 4  ;;  %v4190_v52 = vrot.slane %v4189_v59, 1  ;;  %v4466_v36 = vsel %vm4465_vm11, %v7869_v55, %v4464_v16 }
 0x37a   : > { %v4247_v53 = vrot.slane %v4246_v32, 4  ;;  %v4254_v54 = vrot.slane %v4253_v11, 4  ;;  %v4203_v2 = vrot.slane %v4198_v27, 6  ;;  %v4524_v35 = vrot.slane %v7898_v23, 4 }
 0x37b   : > { %v4241_v57 = vadd.f32 %v4240_v51, %v4239_v44  ;;  %v4191_v1 = vadd.f32 %v4190_v52, %v4189_v59  ;;  %v4184_v4 = vadd.f32 %v4183_v48, %v4182_v39  ;;  %v4410_v39 = vmul.f32 %v4406_v19, %v6903_v12  ;;  %v4520_v59 = vpop.permute.xlu1 %4519  ;;  %v7926_v19 = vpop.permute.xlu0 %4580 }
 0x37c   : > { %v4248_v41 = vadd.f32 %v4247_v53, %v4246_v32  ;;  %v4255_v45 = vadd.f32 %v4254_v54, %v4253_v11  ;;  %v4467_v43 = vsel %vm4465_vm11, %v7883_v46, %v4463_v62  ;;  %v4409_v3 = vmul.f32 %v4405_v31, %v6894_v8 }
 0x37d   : > { %v4242_v5 = vrot.slane %v4241_v57, 2  ;;  %v4296_v6 = vld.sshfl [vmem:[#allocation1 + $0x10] sm:$0xff pattern:$0x75316420]  ;;  %v4202_v49 = vrot.slane %v4191_v1, 7  ;;  %vm5013_vm5 = vcmask 687104  }
 0x37e   : > { %v4249_v7 = vrot.slane %v4248_v41, 2  ;;  %v4256_v9 = vrot.slane %v4255_v45, 2  ;;  %v4314_v10 = vsel %vm955_vm7, %v4296_v6, 0.0  ;;  %4354 = vst [vmem:[#allocation1 + $0x10] ss:$2 sm:$0xff] %v4349_v20  ;;  %vm5135_vm11 = vcmask 670720  }
 0x37f   : > { %v4243_v13 = vadd.f32 %v4242_v5, %v4241_v57  ;;  %v4294_v14 = vld.sshfl [vmem:[#allocation1] sm:$0xff pattern:$0x75316420]  ;;  %v4295_v15 = vld.sshfl [vmem:[#allocation1 + $0x8] sm:$0xff pattern:$0x75316420]  ;;  %v4204_v58 = vsel %vm982_vm0, %v4184_v4, %v4202_v49  ;;  %v4528_v49 = vsel %vm4526_vm12, %v7898_v23, %v4524_v35 }
 0x380   : > { %v4250_v21 = vadd.f32 %v4249_v7, %v4248_v41  ;;  %v4257_v0 = vadd.f32 %v4256_v9, %v4255_v45  ;;  %v4300_v22 = vsel %vm955_vm7, %v4294_v14, 0.0  ;;  %4352 = vst [vmem:[#allocation1] ss:$2 sm:$0xff] %v4348_v60  ;;  %v4205_v24 = vsel %vm984_vm9, %v4204_v58, %v4203_v2 }
 0x381   : > { %v4244_v61 = vrot.slane %v4243_v13, 1  ;;  %v4301_v25 = vrot.slane %v4300_v22, 4  ;;  %v4307_v26 = vsel %vm955_vm7, %v4295_v15, 0.0  ;;  %6009 = vst.msk [vmem:[%s6929_s20 + $0x95] ss:$8 sm:$0x7] %vm6931_vm1, %v4205_v24  ;;  %v4532_v31 = vmul.f32 %v4528_v49, %v6903_v12 }
 0x382   : > { %v4251_v28 = vrot.slane %v4250_v21, 1  ;;  %v4258_v29 = vrot.slane %v4257_v0, 1  ;;  %v4308_v30 = vrot.slane %v4307_v26, 4  ;;  %v4315_v34 = vrot.slane %v4314_v10, 4 }
 0x383   : > { %v4302_v33 = vadd.f32 %v4301_v25, %v4300_v22  ;;  %v4245_v44 = vadd.f32 %v4244_v61, %v4243_v13  ;;  %v4523_v57 = vrot.slane %v4520_v59, 4  ;;  %v4471_v13 = vmul.f32 %v4467_v43, %v6903_v12 }
 0x384   : > { %v4252_v37 = vadd.f32 %v4251_v28, %v4250_v21  ;;  %v4259_v11 = vadd.f32 %v4258_v29, %v4257_v0  ;;  %v4309_v38 = vadd.f32 %v4308_v30, %v4307_v26  ;;  %v4316_v40 = vadd.f32 %v4315_v34, %v4314_v10  ;;  %v4583_v28 = vpop.permute.xlu1 %4582 }
 0x385   : > { %v4303_v20 = vrot.slane %v4302_v33, 2  ;;  %v4357_v50 = vld.sshfl [vmem:[#allocation1 + $0x10] sm:$0xff pattern:$0x75316420]  ;;  %v4470_v10 = vmul.f32 %v4466_v36, %v6894_v8  ;;  %v4525_v58 = vsel %vm955_vm7, %v4523_v57, %v4524_v35  ;;  %v7932_v35 = vpop.permute.xlu2 %4641 }
 0x386   : > { %v4263_v18 = vrot.slane %v4252_v37, 7  ;;  %v4310_v47 = vrot.slane %v4309_v38, 2  ;;  %v4375_v27 = vsel %vm955_vm7, %v4357_v50, 0.0  ;;  %4415 = vst [vmem:[#allocation1 + $0x10] ss:$2 sm:$0xff] %v4410_v39  ;;  %v4264_v55 = vrot.slane %v4259_v11, 6 }
 0x387   : > { %v4304_v48 = vadd.f32 %v4303_v20, %v4302_v33  ;;  %v4317_v51 = vrot.slane %v4316_v40, 2  ;;  %v4376_v32 = vrot.slane %v4375_v27, 4  ;;  %v4355_v52 = vld.sshfl [vmem:[#allocation1] sm:$0xff pattern:$0x75316420]  ;;  %v4585_v50 = vrot.slane %v4583_v28, 4 }
 0x388   : > { %v4265_v53 = vsel %vm982_vm0, %v4245_v44, %v4263_v18  ;;  %v4311_v54 = vadd.f32 %v4310_v47, %v4309_v38  ;;  %v4356_v56 = vld.sshfl [vmem:[#allocation1 + $0x8] sm:$0xff pattern:$0x75316420]  ;;  %v4361_v46 = vsel %vm955_vm7, %v4355_v52, 0.0  ;;  %v4527_v38 = vsel %vm4526_vm12, %v4520_v59, %v4525_v58 }
 0x389   : > { %v4266_v60 = vsel %vm984_vm9, %v4265_v53, %v4264_v55  ;;  %v4305_v62 = vrot.slane %v4304_v48, 1  ;;  %v4318_v63 = vadd.f32 %v4317_v51, %v4316_v40  ;;  %v4377_v1 = vadd.f32 %v4376_v32, %v4375_v27  ;;  %4413 = vst [vmem:[#allocation1] ss:$2 sm:$0xff] %v4409_v3 }
 0x38a   : > { %6010 = vst.msk [vmem:[%s6929_s20 + $0x96] ss:$8 sm:$0x7] %vm6931_vm1, %v4266_v60  ;;  %v4312_v41 = vrot.slane %v4311_v54, 1  ;;  %v4362_v45 = vrot.slane %v4361_v46, 4  ;;  %v4368_v2 = vsel %vm955_vm7, %v4356_v56, 0.0  ;;  %v4531_v52 = vmul.f32 %v4527_v38, %v6894_v8 }
 0x38b   : > { %v4319_v4 = vrot.slane %v4318_v63, 1  ;;  %v4378_v5 = vrot.slane %v4377_v1, 2  ;;  %v4369_v6 = vrot.slane %v4368_v2, 4  ;;  %v4306_v21 = vadd.f32 %v4305_v62, %v4304_v48 }
 0x38c   : > { %v4313_v7 = vadd.f32 %v4312_v41, %v4311_v54  ;;  %v4363_v9 = vadd.f32 %v4362_v45, %v4361_v46  ;;  %v4645_v18 = vrot.slane %v7932_v35, 4  ;;  %v4584_v48 = vrot.slane %v7926_v19, 4 }
 0x38d   : > { %v4320_v14 = vadd.f32 %v4319_v4, %v4318_v63  ;;  %v4379_v15 = vadd.f32 %v4378_v5, %v4377_v1  ;;  %v4370_v16 = vadd.f32 %v4369_v6, %v4368_v2  ;;  %v4418_v17 = vld.sshfl [vmem:[#allocation1 + $0x10] sm:$0xff pattern:$0x75316420]  ;;  %v4644_v1 = vpop.permute.xlu0 %4643  ;;  %v4589_v5 = vsel %vm4587_vm13, %v4583_v28, %v4585_v50 }
 0x38e   : > { %v4324_v0 = vrot.slane %v4313_v7, 7  ;;  %v4364_v22 = vrot.slane %v4363_v9, 2  ;;  %v4436_v24 = vsel %vm955_vm7, %v4418_v17, 0.0  ;;  %4476 = vst [vmem:[#allocation1 + $0x10] ss:$2 sm:$0xff] %v4471_v13  ;;  %v4586_v46 = vsel %vm955_vm7, %v4584_v48, %v4585_v50 }
 0x38f   : > { %v4325_v23 = vrot.slane %v4320_v14, 6  ;;  %v4380_v61 = vrot.slane %v4379_v15, 1  ;;  %v4371_v25 = vrot.slane %v4370_v16, 2  ;;  %v4437_v26 = vrot.slane %v4436_v24, 4 }
 0x390   : > { %v4326_v29 = vsel %vm982_vm0, %v4306_v21, %v4324_v0  ;;  %v4365_v30 = vadd.f32 %v4364_v22, %v4363_v9  ;;  %v4416_v33 = vld.sshfl [vmem:[#allocation1] sm:$0xff pattern:$0x75316420]  ;;  %v4417_v34 = vld.sshfl [vmem:[#allocation1 + $0x8] sm:$0xff pattern:$0x75316420]  ;;  %v4588_v22 = vsel %vm4587_vm13, %v7926_v19, %v4586_v46 }
 0x391   : > { %v4327_v36 = vsel %vm984_vm9, %v4326_v29, %v4325_v23  ;;  %v4372_v37 = vadd.f32 %v4371_v25, %v4370_v16  ;;  %v4422_v11 = vsel %vm955_vm7, %v4416_v33, 0.0  ;;  %4474 = vst [vmem:[#allocation1] ss:$2 sm:$0xff] %v4470_v10  ;;  %v4429_v20 = vsel %vm955_vm7, %v4417_v34, 0.0  ;;  %v7950_v16 = vpop.permute.xlu2 %4704 }
 0x392   : > { %6011 = vst.msk [vmem:[%s6929_s20 + $0x97] ss:$8 sm:$0x7] %vm6931_vm1, %v4327_v36  ;;  %v4423_v39 = vrot.slane %v4422_v11, 4  ;;  %v4438_v40 = vadd.f32 %v4437_v26, %v4436_v24  ;;  %v4366_v43 = vrot.slane %v4365_v30, 1  ;;  %v4430_v44 = vrot.slane %v4429_v20, 4 }
 0x393   : > { %v4373_v3 = vrot.slane %v4372_v37, 1  ;;  %v4381_v47 = vadd.f32 %v4380_v61, %v4379_v15  ;;  %v4646_v17 = vrot.slane %v4644_v1, 4  ;;  %v4593_v25 = vmul.f32 %v4589_v5, %v6903_v12 }
 0x394   : > { %v4424_v27 = vadd.f32 %v4423_v39, %v4422_v11  ;;  %v4439_v55 = vrot.slane %v4438_v40, 2  ;;  %v4431_v59 = vadd.f32 %v4430_v44, %v4429_v20  ;;  %v4367_v57 = vadd.f32 %v4366_v43, %v4365_v30 }
 0x395   : > { %v4374_v51 = vadd.f32 %v4373_v3, %v4372_v37  ;;  %v4479_v32 = vld.sshfl [vmem:[#allocation1 + $0x10] sm:$0xff pattern:$0x75316420]  ;;  %v4386_v41 = vrot.slane %v4381_v47, 6  ;;  %v4707_v30 = vrot.slane %v7950_v16, 4  ;;  %v4647_v36 = vsel %vm955_vm7, %v4645_v18, %v4646_v17  ;;  %v4703_v37 = vpop.permute.xlu1 %4702 }
 0x396   : > { %v4425_v53 = vrot.slane %v4424_v27, 2  ;;  %v4440_v54 = vadd.f32 %v4439_v55, %v4438_v40  ;;  %v4497_v56 = vsel %vm955_vm7, %v4479_v32, 0.0  ;;  %4537 = vst [vmem:[#allocation1 + $0x10] ss:$2 sm:$0xff] %v4532_v31  ;;  %v4432_v62 = vrot.slane %v4431_v59, 2 }
 0x397   : > { %v4385_v60 = vrot.slane %v4374_v51, 7  ;;  %v4498_v63 = vrot.slane %v4497_v56, 4  ;;  %v4592_v39 = vmul.f32 %v4588_v22, %v6894_v8  ;;  %v4650_v55 = vsel %vm4648_vm14, %v4644_v1, %v4646_v17 }
 0x398   : > { %v4426_v45 = vadd.f32 %v4425_v53, %v4424_v27  ;;  %v4441_v2 = vrot.slane %v4440_v54, 1  ;;  %v4477_v4 = vld.sshfl [vmem:[#allocation1] sm:$0xff pattern:$0x75316420]  ;;  %v4433_v49 = vadd.f32 %v4432_v62, %v4431_v59  ;;  %v4710_v59 = vsel %vm1490_vm2, %v7950_v16, %v4707_v30 }
 0x399   : > { %v4387_v6 = vsel %vm982_vm0, %v4367_v57, %v4385_v60  ;;  %v4478_v7 = vld.sshfl [vmem:[#allocation1 + $0x8] sm:$0xff pattern:$0x75316420]  ;;  %v4483_v9 = vsel %vm955_vm7, %v4477_v4, 0.0  ;;  %v4499_v10 = vadd.f32 %v4498_v63, %v4497_v56  ;;  %v4649_v53 = vsel %vm4648_vm14, %v7932_v35, %v4647_v36 }
 0x39a   : > { %v4388_v13 = vsel %vm984_vm9, %v4387_v6, %v4386_v41  ;;  %v4427_v14 = vrot.slane %v4426_v45, 1  ;;  %v4484_v15 = vrot.slane %v4483_v9, 4  ;;  %4535 = vst [vmem:[#allocation1] ss:$2 sm:$0xff] %v4531_v52  ;;  %v4434_v58 = vrot.slane %v4433_v49, 1 }
 0x39b   : > { %6012 = vst.msk [vmem:[%s6929_s20 + $0xa8] ss:$8 sm:$0x7] %vm6931_vm1, %v4388_v13  ;;  %v4490_v21 = vsel %vm955_vm7, %v4478_v7, 0.0  ;;  %v4500_v0 = vrot.slane %v4499_v10, 2  ;;  %v4442_v24 = vadd.f32 %v4441_v2, %v4440_v54  ;;  %v7974_v54 = vpop.permute.xlu0 %4762  ;;  %v4706_v56 = vrot.slane %v4703_v37, 4 }
 0x39c   : > { %v4485_v23 = vadd.f32 %v4484_v15, %v4483_v9  ;;  %v4491_v61 = vrot.slane %v4490_v21, 4  ;;  %v4435_v26 = vadd.f32 %v4434_v58, %v4433_v49  ;;  %v4428_v19 = vadd.f32 %v4427_v14, %v4426_v45  ;;  %v7980_v9 = vpop.permute.xlu2 %4823 }
 0x39d   : > { %v4501_v28 = vadd.f32 %v4500_v0, %v4499_v10  ;;  %v4540_v29 = vld.sshfl [vmem:[#allocation1 + $0x10] sm:$0xff pattern:$0x75316420]  ;;  %v4447_v20 = vrot.slane %v4442_v24, 6  ;;  %v4654_v62 = vmul.f32 %v4650_v55, %v6903_v12  ;;  %v4714_v5 = vmul.f32 %v4710_v59, %v6903_v12  ;;  %v4765_v17 = vpop.permute.xlu1 %4764 }
 0x39e   : > { %v4486_v31 = vrot.slane %v4485_v23, 2  ;;  %v4492_v33 = vadd.f32 %v4491_v61, %v4490_v21  ;;  %v4558_v34 = vsel %vm955_vm7, %v4540_v29, 0.0  ;;  %4598 = vst [vmem:[#allocation1 + $0x10] ss:$2 sm:$0xff] %v4593_v25  ;;  %v4446_v11 = vrot.slane %v4435_v26, 7 }
 0x39f   : > { %v4559_v38 = vrot.slane %v4558_v34, 4  ;;  %v4502_v43 = vrot.slane %v4501_v28, 1  ;;  %v4708_v10 = vsel %vm955_vm7, %v4706_v56, %v4707_v30  ;;  %v4653_v16 = vmul.f32 %v4649_v53, %v6894_v8 }
 0x3a0   : > { %v4487_v40 = vadd.f32 %v4486_v31, %v4485_v23  ;;  %v4493_v50 = vrot.slane %v4492_v33, 2  ;;  %v4448_v3 = vsel %vm982_vm0, %v4428_v19, %v4446_v11  ;;  %v4827_v26 = vrot.slane %v7980_v9, 4 }
 0x3a1   : > { %v4560_v44 = vadd.f32 %v4559_v38, %v4558_v34  ;;  %v4538_v47 = vld.sshfl [vmem:[#allocation1] sm:$0xff pattern:$0x75316420]  ;;  %v4539_v27 = vld.sshfl [vmem:[#allocation1 + $0x8] sm:$0xff pattern:$0x75316420]  ;;  %v4449_v18 = vsel %vm984_vm9, %v4448_v3, %v4447_v20  ;;  %v4503_v63 = vadd.f32 %v4502_v43, %v4501_v28  ;;  %v4709_v28 = vsel %vm1490_vm2, %v4703_v37, %v4708_v10 }
 0x3a2   : > { %v4494_v48 = vadd.f32 %v4493_v50, %v4492_v33  ;;  %v4544_v51 = vsel %vm955_vm7, %v4538_v47, 0.0  ;;  %4596 = vst [vmem:[#allocation1] ss:$2 sm:$0xff] %v4592_v39  ;;  %v4488_v46 = vrot.slane %v4487_v40, 1  ;;  %v4551_v60 = vsel %vm955_vm7, %v4539_v27, 0.0 }
 0x3a3   : > { %6013 = vst.msk [vmem:[%s6929_s20 + $0xa9] ss:$8 sm:$0x7] %vm6931_vm1, %v4449_v18  ;;  %v4561_v32 = vrot.slane %v4560_v44, 2  ;;  %v4545_v52 = vrot.slane %v4544_v51, 4  ;;  %v4552_v45 = vrot.slane %v4551_v60, 4  ;;  %v4713_v37 = vmul.f32 %v4709_v28, %v6894_v8  ;;  %v7995_v50 = vpop.permute.xlu0 %4825 }
 0x3a4   : > { %v4495_v57 = vrot.slane %v4494_v48, 1  ;;  %v4489_v13 = vadd.f32 %v4488_v46, %v4487_v40  ;;  %v4508_v58 = vrot.slane %v4503_v63, 6  ;;  %v4766_v31 = vrot.slane %v7974_v54, 4 }
 0x3a5   : > { %v4562_v1 = vadd.f32 %v4561_v32, %v4560_v44  ;;  %v4546_v41 = vadd.f32 %v4545_v52, %v4544_v51  ;;  %v4601_v2 = vld.sshfl [vmem:[#allocation1 + $0x10] sm:$0xff pattern:$0x75316420]  ;;  %v4553_v49 = vadd.f32 %v4552_v45, %v4551_v60  ;;  %v4767_v33 = vrot.slane %v4765_v17, 4 }
 0x3a6   : > { %v4496_v4 = vadd.f32 %v4495_v57, %v4494_v48  ;;  %v4619_v6 = vsel %vm955_vm7, %v4601_v2, 0.0  ;;  %4659 = vst [vmem:[#allocation1 + $0x10] ss:$2 sm:$0xff] %v4654_v62  ;;  %vm4769_vm2 = vcmask 719872   ;;  %v4828_v32 = vrot.slane %v7995_v50, 4 }
 0x3a7   : > { %v4547_v35 = vrot.slane %v4546_v41, 2  ;;  %v4620_v7 = vrot.slane %v4619_v6, 4  ;;  %v4563_v15 = vrot.slane %v4562_v1, 1  ;;  %v4554_v0 = vrot.slane %v4553_v49, 2 }
 0x3a8   : > { %v4507_v14 = vrot.slane %v4496_v4, 7  ;;  %v4768_v18 = vsel %vm955_vm7, %v4766_v31, %v4767_v33  ;;  %vm5196_vm12 = vcmask 662528   ;;  %vm5439_vm13 = vcmask 506880  }
 0x3a9   : > { %v4548_v21 = vadd.f32 %v4547_v35, %v4546_v41  ;;  %v4599_v22 = vld.sshfl [vmem:[#allocation1] sm:$0xff pattern:$0x75316420]  ;;  %v4621_v24 = vadd.f32 %v4620_v7, %v4619_v6  ;;  %v4600_v61 = vld.sshfl [vmem:[#allocation1 + $0x8] sm:$0xff pattern:$0x75316420]  ;;  %v4555_v30 = vadd.f32 %v4554_v0, %v4553_v49  ;;  %v4564_v34 = vadd.f32 %v4563_v15, %v4562_v1 }
 0x3aa   : > { %v4509_v23 = vsel %vm982_vm0, %v4489_v13, %v4507_v14  ;;  %v4605_v25 = vsel %vm955_vm7, %v4599_v22, 0.0  ;;  %4657 = vst [vmem:[#allocation1] ss:$2 sm:$0xff] %v4653_v16  ;;  %v4612_v19 = vsel %vm955_vm7, %v4600_v61, 0.0  ;;  %v4770_v63 = vsel %vm4769_vm2, %v7974_v54, %v4768_v18 }
 0x3ab   : > { %v4510_v29 = vsel %vm984_vm9, %v4509_v23, %v4508_v58  ;;  %v4606_v36 = vrot.slane %v4605_v25, 4  ;;  %v4622_v11 = vrot.slane %v4621_v24, 2  ;;  %v4549_v38 = vrot.slane %v4548_v21, 1  ;;  %v4885_v23 = vpop.permute.xlu1 %4884 }
 0x3ac   : > { %6014 = vst.msk [vmem:[%s6929_s20 + $0xaa] ss:$8 sm:$0x7] %vm6931_vm1, %v4510_v29  ;;  %v4556_v39 = vrot.slane %v4555_v30, 1  ;;  %v4613_v20 = vrot.slane %v4612_v19, 4  ;;  %v4569_v48 = vrot.slane %v4564_v34, 6  ;;  %v4771_v1 = vsel %vm4769_vm2, %v4765_v17, %v4767_v33 }
 0x3ad   : > { %v4662_v40 = vld.sshfl [vmem:[#allocation1 + $0x10] sm:$0xff pattern:$0x75316420]  ;;  %v4607_v43 = vadd.f32 %v4606_v36, %v4605_v25  ;;  %v4623_v3 = vadd.f32 %v4622_v11, %v4621_v24  ;;  %v4550_v52 = vadd.f32 %v4549_v38, %v4548_v21  ;;  %v4775_v14 = vmul.f32 %v4771_v1, %v6903_v12 }
 0x3ae   : > { %v4680_v44 = vsel %vm955_vm7, %v4662_v40, 0.0  ;;  %4719 = vst [vmem:[#allocation1 + $0x10] ss:$2 sm:$0xff] %v4714_v5  ;;  %v4557_v47 = vadd.f32 %v4556_v39, %v4555_v30  ;;  %v4614_v27 = vadd.f32 %v4613_v20, %v4612_v19  ;;  %v8006_v5 = vpop.permute.xlu2 %4886  ;;  %v4829_v58 = vsel %vm955_vm7, %v4827_v26, %v4828_v32 }
 0x3af   : > { %v4681_v55 = vrot.slane %v4680_v44, 4  ;;  %v4608_v51 = vrot.slane %v4607_v43, 2  ;;  %v4624_v59 = vrot.slane %v4623_v3, 1  ;;  %v4889_v17 = vrot.slane %v8006_v5, 4 }
 0x3b0   : > { %v4568_v53 = vrot.slane %v4557_v47, 7  ;;  %v4615_v56 = vrot.slane %v4614_v27, 2  ;;  %v4774_v29 = vmul.f32 %v4770_v63, %v6894_v8  ;;  %v4832_v39 = vsel %vm4830_vm6, %v7995_v50, %v4828_v32 }
 0x3b1   : > { %v4682_v46 = vadd.f32 %v4681_v55, %v4680_v44  ;;  %v4609_v57 = vadd.f32 %v4608_v51, %v4607_v43  ;;  %v4660_v60 = vld.sshfl [vmem:[#allocation1] sm:$0xff pattern:$0x75316420]  ;;  %v4661_v62 = vld.sshfl [vmem:[#allocation1 + $0x8] sm:$0xff pattern:$0x75316420]  ;;  %v4625_v49 = vadd.f32 %v4624_v59, %v4623_v3  ;;  %v4893_v38 = vsel %vm4891_vm15, %v8006_v5, %v4889_v17 }
 0x3b2   : > { %v4570_v41 = vsel %vm982_vm0, %v4550_v52, %v4568_v53  ;;  %v4616_v45 = vadd.f32 %v4615_v56, %v4614_v27  ;;  %v4666_v2 = vsel %vm955_vm7, %v4660_v60, 0.0  ;;  %v4673_v4 = vsel %vm955_vm7, %v4661_v62, 0.0  ;;  %4717 = vst [vmem:[#allocation1] ss:$2 sm:$0xff] %v4713_v37  ;;  %v8026_v27 = vpop.permute.xlu0 %4945 }
 0x3b3   : > { %v4571_v6 = vsel %vm984_vm9, %v4570_v41, %v4569_v48  ;;  %v4610_v35 = vrot.slane %v4609_v57, 1  ;;  %v4667_v7 = vrot.slane %v4666_v2, 4  ;;  %v4674_v10 = vrot.slane %v4673_v4, 4 }
 0x3b4   : > { %6015 = vst.msk [vmem:[%s6929_s20 + $0xab] ss:$8 sm:$0x7] %vm6931_vm1, %v4571_v6  ;;  %v4617_v54 = vrot.slane %v4616_v45, 1  ;;  %v4683_v13 = vrot.slane %v4682_v46, 2  ;;  %v4630_v61 = vrot.slane %v4625_v49, 6  ;;  %v4831_v43 = vsel %vm4830_vm6, %v7980_v9, %v4829_v58  ;;  %v4948_v6 = vpop.permute.xlu1 %4947 }
 0x3b5   : > { %v4668_v15 = vadd.f32 %v4667_v7, %v4666_v2  ;;  %v4722_v16 = vld.sshfl [vmem:[#allocation1 + $0x10] sm:$0xff pattern:$0x75316420]  ;;  %v4675_v0 = vadd.f32 %v4674_v10, %v4673_v4  ;;  %v4611_v30 = vadd.f32 %v4610_v35, %v4609_v57  ;;  %v4888_v55 = vrot.slane %v4885_v23, 4 }
 0x3b6   : > { %v4618_v21 = vadd.f32 %v4617_v54, %v4616_v45  ;;  %v4684_v22 = vadd.f32 %v4683_v13, %v4682_v46  ;;  %v4740_v24 = vsel %vm955_vm7, %v4722_v16, 0.0  ;;  %4780 = vst [vmem:[#allocation1 + $0x10] ss:$2 sm:$0xff] %v4775_v14  ;;  %v4836_v51 = vmul.f32 %v4832_v39, %v6903_v12  ;;  %v8035_v1 = vpop.permute.xlu2 %5006 }
 0x3b7   : > { %v4669_v25 = vrot.slane %v4668_v15, 2  ;;  %v4741_v28 = vrot.slane %v4740_v24, 4  ;;  %v4676_v33 = vrot.slane %v4675_v0, 2  ;;  %v4897_v46 = vmul.f32 %v4893_v38, %v6903_v12 }
 0x3b8   : > { %v4629_v31 = vrot.slane %v4618_v21, 7  ;;  %v4685_v34 = vrot.slane %v4684_v22, 1  ;;  %v4890_v41 = vsel %vm955_vm7, %v4888_v55, %v4889_v17  ;;  %v4835_v5 = vmul.f32 %v4831_v43, %v6894_v8 }
 0x3b9   : > { %v4670_v36 = vadd.f32 %v4669_v25, %v4668_v15  ;;  %v4742_v19 = vadd.f32 %v4741_v28, %v4740_v24  ;;  %v4720_v26 = vld.sshfl [vmem:[#allocation1] sm:$0xff pattern:$0x75316420]  ;;  %v4721_v11 = vld.sshfl [vmem:[#allocation1 + $0x8] sm:$0xff pattern:$0x75316420]  ;;  %v4677_v40 = vadd.f32 %v4676_v33, %v4675_v0  ;;  %v4892_v17 = vsel %vm4891_vm15, %v4885_v23, %v4890_v41 }
 0x3ba   : > { %v4631_v20 = vsel %vm982_vm0, %v4611_v30, %v4629_v31  ;;  %v4726_v37 = vsel %vm955_vm7, %v4720_v26, 0.0  ;;  %4778 = vst [vmem:[#allocation1] ss:$2 sm:$0xff] %v4774_v29  ;;  %v4733_v48 = vsel %vm955_vm7, %v4721_v11, 0.0  ;;  %v4686_v59 = vadd.f32 %v4685_v34, %v4684_v22  ;;  %v8050_v34 = vpop.permute.xlu0 %5008 }
 0x3bb   : > { %v4632_v3 = vsel %vm984_vm9, %v4631_v20, %v4630_v61  ;;  %v4743_v44 = vrot.slane %v4742_v19, 2  ;;  %v4727_v47 = vrot.slane %v4726_v37, 4  ;;  %v4671_v50 = vrot.slane %v4670_v36, 1 }
 0x3bc   : > { %6016 = vst.msk [vmem:[%s6929_s20 + $0xac] ss:$8 sm:$0x7] %vm6931_vm1, %v4632_v3  ;;  %v4678_v18 = vrot.slane %v4677_v40, 1  ;;  %v4734_v52 = vrot.slane %v4733_v48, 4  ;;  %v4691_v35 = vrot.slane %v4686_v59, 6  ;;  %v4896_v23 = vmul.f32 %v4892_v17, %v6894_v8 }
 0x3bd   : > { %v4744_v32 = vadd.f32 %v4743_v44, %v4742_v19  ;;  %v4728_v9 = vadd.f32 %v4727_v47, %v4726_v37  ;;  %v4783_v53 = vld.sshfl [vmem:[#allocation1 + $0x10] sm:$0xff pattern:$0x75316420]  ;;  %v4672_v45 = vadd.f32 %v4671_v50, %v4670_v36  ;;  %v5010_v16 = vrot.slane %v8035_v1, 4 }
 0x3be   : > { %v4679_v56 = vadd.f32 %v4678_v18, %v4677_v40  ;;  %v4801_v57 = vsel %vm955_vm7, %v4783_v53, 0.0  ;;  %4841 = vst [vmem:[#allocation1 + $0x10] ss:$2 sm:$0xff] %v4836_v51  ;;  %v4735_v62 = vadd.f32 %v4734_v52, %v4733_v48  ;;  %v4949_v0 = vrot.slane %v8026_v27, 4 }
 0x3bf   : > { %v4729_v60 = vrot.slane %v4728_v9, 2  ;;  %v4802_v63 = vrot.slane %v4801_v57, 4  ;;  %v4745_v4 = vrot.slane %v4744_v32, 1  ;;  %v4950_v22 = vrot.slane %v4948_v6, 4 }
 0x3c0   : > { %v4690_v2 = vrot.slane %v4679_v56, 7  ;;  %v4736_v7 = vrot.slane %v4735_v62, 2  ;;  %v5011_v3 = vrot.slane %v8050_v34, 4  ;;  %vm5378_vm14 = vcmask 515072  }
 0x3c1   : > { %v4730_v49 = vadd.f32 %v4729_v60, %v4728_v9  ;;  %v4781_v54 = vld.sshfl [vmem:[#allocation1] sm:$0xff pattern:$0x75316420]  ;;  %v4803_v10 = vadd.f32 %v4802_v63, %v4801_v57  ;;  %v4782_v14 = vld.sshfl [vmem:[#allocation1 + $0x8] sm:$0xff pattern:$0x75316420]  ;;  %v4746_v24 = vadd.f32 %v4745_v4, %v4744_v32  ;;  %v4951_v20 = vsel %vm955_vm7, %v4949_v0, %v4950_v22 }
 0x3c2   : > { %v4692_v13 = vsel %vm982_vm0, %v4672_v45, %v4690_v2  ;;  %v4787_v15 = vsel %vm955_vm7, %v4781_v54, 0.0  ;;  %v4737_v21 = vadd.f32 %v4736_v7, %v4735_v62  ;;  %4839 = vst [vmem:[#allocation1] ss:$2 sm:$0xff] %v4835_v5  ;;  %v4794_v25 = vsel %vm955_vm7, %v4782_v14, 0.0 }
 0x3c3   : > { %v4693_v58 = vsel %vm984_vm9, %v4692_v13, %v4691_v35  ;;  %v4788_v61 = vrot.slane %v4787_v15, 4  ;;  %v4804_v28 = vrot.slane %v4803_v10, 2  ;;  %v4731_v29 = vrot.slane %v4730_v49, 1  ;;  %v5068_v13 = vpop.permute.xlu1 %5067 }
 0x3c4   : > { %6017 = vst.msk [vmem:[%s6929_s20 + $0xad] ss:$8 sm:$0x7] %vm6931_vm1, %v4693_v58  ;;  %v4738_v30 = vrot.slane %v4737_v21, 1  ;;  %v4795_v31 = vrot.slane %v4794_v25, 4  ;;  %v4751_v40 = vrot.slane %v4746_v24, 6  ;;  %v4953_v59 = vsel %vm4952_vm3, %v8026_v27, %v4951_v20 }
 0x3c5   : > { %v4844_v33 = vld.sshfl [vmem:[#allocation1 + $0x10] sm:$0xff pattern:$0x75316420]  ;;  %v4789_v36 = vadd.f32 %v4788_v61, %v4787_v15  ;;  %v4805_v19 = vadd.f32 %v4804_v28, %v4803_v10  ;;  %v4732_v44 = vadd.f32 %v4731_v29, %v4730_v49  ;;  %v4954_v32 = vsel %vm4952_vm3, %v4948_v6, %v4950_v22 }
 0x3c6   : > { %v4862_v26 = vsel %vm955_vm7, %v4844_v33, 0.0  ;;  %4902 = vst [vmem:[#allocation1 + $0x10] ss:$2 sm:$0xff] %v4897_v46  ;;  %v4739_v11 = vadd.f32 %v4738_v30, %v4737_v21  ;;  %v4796_v38 = vadd.f32 %v4795_v31, %v4794_v25  ;;  %v8061_v46 = vpop.permute.xlu2 %5069  ;;  %v4958_v2 = vmul.f32 %v4954_v32, %v6903_v12 }
 0x3c7   : > { %v4863_v39 = vrot.slane %v4862_v26, 4  ;;  %v4790_v37 = vrot.slane %v4789_v36, 2  ;;  %v4806_v43 = vrot.slane %v4805_v19, 1  ;;  %v5072_v6 = vrot.slane %v8061_v46, 4 }
 0x3c8   : > { %v4750_v47 = vrot.slane %v4739_v11, 7  ;;  %v4797_v55 = vrot.slane %v4796_v38, 2  ;;  %v5012_v35 = vsel %vm955_vm7, %v5010_v16, %v5011_v3  ;;  %v4957_v58 = vmul.f32 %v4953_v59, %v6894_v8 }
 0x3c9   : > { %v4864_v50 = vadd.f32 %v4863_v39, %v4862_v26  ;;  %v4791_v18 = vadd.f32 %v4790_v37, %v4789_v36  ;;  %v4842_v48 = vld.sshfl [vmem:[#allocation1] sm:$0xff pattern:$0x75316420]  ;;  %v4843_v51 = vld.sshfl [vmem:[#allocation1 + $0x8] sm:$0xff pattern:$0x75316420]  ;;  %v4807_v62 = vadd.f32 %v4806_v43, %v4805_v19  ;;  %v5076_v29 = vsel %vm5074_vm4, %v8061_v46, %v5072_v6 }
 0x3ca   : > { %v4752_v9 = vsel %vm982_vm0, %v4732_v44, %v4750_v47  ;;  %v4798_v52 = vadd.f32 %v4797_v55, %v4796_v38  ;;  %v4848_v53 = vsel %vm955_vm7, %v4842_v48, 0.0  ;;  %v4855_v56 = vsel %vm955_vm7, %v4843_v51, 0.0  ;;  %4900 = vst [vmem:[#allocation1] ss:$2 sm:$0xff] %v4896_v23  ;;  %v8081_v38 = vpop.permute.xlu0 %5128 }
 0x3cb   : > { %v4753_v57 = vsel %vm984_vm9, %v4752_v9, %v4751_v40  ;;  %v4792_v60 = vrot.slane %v4791_v18, 1  ;;  %v4849_v63 = vrot.slane %v4848_v53, 4  ;;  %v4856_v41 = vrot.slane %v4855_v56, 4 }
 0x3cc   : > { %6018 = vst.msk [vmem:[%s6929_s20 + $0xae] ss:$8 sm:$0x7] %vm6931_vm1, %v4753_v57  ;;  %v4799_v27 = vrot.slane %v4798_v52, 1  ;;  %v4865_v45 = vrot.slane %v4864_v50, 2  ;;  %v4812_v14 = vrot.slane %v4807_v62, 6  ;;  %v5015_v30 = vsel %vm5013_vm5, %v8050_v34, %v5011_v3  ;;  %v5131_v57 = vpop.permute.xlu1 %5130 }
 0x3cd   : > { %v4850_v4 = vadd.f32 %v4849_v63, %v4848_v53  ;;  %v4905_v5 = vld.sshfl [vmem:[#allocation1 + $0x10] sm:$0xff pattern:$0x75316420]  ;;  %v4857_v7 = vadd.f32 %v4856_v41, %v4855_v56  ;;  %v4793_v21 = vadd.f32 %v4792_v60, %v4791_v18  ;;  %v5014_v36 = vsel %vm5013_vm5, %v8035_v1, %v5012_v35 }
 0x3ce   : > { %v4800_v49 = vadd.f32 %v4799_v27, %v4798_v52  ;;  %v4866_v54 = vadd.f32 %v4865_v45, %v4864_v50  ;;  %v4923_v10 = vsel %vm955_vm7, %v4905_v5, 0.0  ;;  %4963 = vst [vmem:[#allocation1 + $0x10] ss:$2 sm:$0xff] %v4958_v2  ;;  %v5071_v39 = vrot.slane %v5068_v13, 4  ;;  %v8090_v32 = vpop.permute.xlu2 %5189 }
 0x3cf   : > { %v4851_v15 = vrot.slane %v4850_v4, 2  ;;  %v4924_v17 = vrot.slane %v4923_v10, 4  ;;  %v4858_v22 = vrot.slane %v4857_v7, 2  ;;  %v5019_v37 = vmul.f32 %v5015_v30, %v6903_v12 }
 0x3d0   : > { %v4811_v0 = vrot.slane %v4800_v49, 7  ;;  %v4867_v24 = vrot.slane %v4866_v54, 1  ;;  %v5080_v50 = vmul.f32 %v5076_v29, %v6903_v12  ;;  %v5073_v9 = vsel %vm955_vm7, %v5071_v39, %v5072_v6 }
 0x3d1   : > { %v4852_v61 = vadd.f32 %v4851_v15, %v4850_v4  ;;  %v4925_v25 = vadd.f32 %v4924_v17, %v4923_v10  ;;  %v4903_v16 = vld.sshfl [vmem:[#allocation1] sm:$0xff pattern:$0x75316420]  ;;  %v4904_v28 = vld.sshfl [vmem:[#allocation1 + $0x8] sm:$0xff pattern:$0x75316420]  ;;  %v4859_v33 = vadd.f32 %v4858_v22, %v4857_v7  ;;  %v5018_v46 = vmul.f32 %v5014_v36, %v6894_v8 }
 0x3d2   : > { %v4813_v31 = vsel %vm982_vm0, %v4793_v21, %v4811_v0  ;;  %v4909_v23 = vsel %vm955_vm7, %v4903_v16, 0.0  ;;  %4961 = vst [vmem:[#allocation1] ss:$2 sm:$0xff] %v4957_v58  ;;  %v4916_v40 = vsel %vm955_vm7, %v4904_v28, 0.0  ;;  %v4868_v43 = vadd.f32 %v4867_v24, %v4866_v54  ;;  %v8105_v24 = vpop.permute.xlu0 %5191 }
 0x3d3   : > { %v4814_v19 = vsel %vm984_vm9, %v4813_v31, %v4812_v14  ;;  %v4926_v26 = vrot.slane %v4925_v25, 2  ;;  %v4910_v11 = vrot.slane %v4909_v23, 4  ;;  %v4853_v34 = vrot.slane %v4852_v61, 1 }
 0x3d4   : > { %6019 = vst.msk [vmem:[%s6929_s20 + $0xaf] ss:$8 sm:$0x7] %vm6931_vm1, %v4814_v19  ;;  %v4860_v20 = vrot.slane %v4859_v33, 1  ;;  %v4917_v44 = vrot.slane %v4916_v40, 4  ;;  %v4873_v60 = vrot.slane %v4868_v43, 6  ;;  %v5075_v6 = vsel %vm5074_vm4, %v5068_v13, %v5073_v9 }
 0x3d5   : > { %v4927_v3 = vadd.f32 %v4926_v26, %v4925_v25  ;;  %v4911_v1 = vadd.f32 %v4910_v11, %v4909_v23  ;;  %v4966_v47 = vld.sshfl [vmem:[#allocation1 + $0x10] sm:$0xff pattern:$0x75316420]  ;;  %v4854_v52 = vadd.f32 %v4853_v34, %v4852_v61  ;;  %v5193_v5 = vrot.slane %v8090_v32, 4 }
 0x3d6   : > { %v4861_v55 = vadd.f32 %v4860_v20, %v4859_v33  ;;  %v4984_v18 = vsel %vm955_vm7, %v4966_v47, 0.0  ;;  %5024 = vst [vmem:[#allocation1 + $0x10] ss:$2 sm:$0xff] %v5019_v37  ;;  %v4918_v51 = vadd.f32 %v4917_v44, %v4916_v40  ;;  %v5132_v7 = vrot.slane %v8081_v38, 4 }
 0x3d7   : > { %v4912_v48 = vrot.slane %v4911_v1, 2  ;;  %v4985_v59 = vrot.slane %v4984_v18, 4  ;;  %v4928_v56 = vrot.slane %v4927_v3, 1  ;;  %v5133_v54 = vrot.slane %v5131_v57, 4 }
 0x3d8   : > { %v4872_v53 = vrot.slane %v4861_v55, 7  ;;  %v4919_v63 = vrot.slane %v4918_v51, 2  ;;  %v5079_v13 = vmul.f32 %v5075_v6, %v6894_v8  ;;  %v5194_v19 = vrot.slane %v8105_v24, 4 }
 0x3d9   : > { %v4913_v62 = vadd.f32 %v4912_v48, %v4911_v1  ;;  %v4964_v27 = vld.sshfl [vmem:[#allocation1] sm:$0xff pattern:$0x75316420]  ;;  %v4986_v41 = vadd.f32 %v4985_v59, %v4984_v18  ;;  %v4965_v2 = vld.sshfl [vmem:[#allocation1 + $0x8] sm:$0xff pattern:$0x75316420]  ;;  %v4929_v10 = vadd.f32 %v4928_v56, %v4927_v3  ;;  %v5134_v31 = vsel %vm955_vm7, %v5132_v7, %v5133_v54 }
 0x3da   : > { %v4874_v45 = vsel %vm982_vm0, %v4854_v52, %v4872_v53  ;;  %v4970_v4 = vsel %vm955_vm7, %v4964_v27, 0.0  ;;  %v4920_v49 = vadd.f32 %v4919_v63, %v4918_v51  ;;  %5022 = vst [vmem:[#allocation1] ss:$2 sm:$0xff] %v5018_v46  ;;  %v4977_v15 = vsel %vm955_vm7, %v4965_v2, 0.0 }
 0x3db   : > { %v4875_v35 = vsel %vm984_vm9, %v4874_v45, %v4873_v60  ;;  %v4971_v14 = vrot.slane %v4970_v4, 4  ;;  %v4987_v17 = vrot.slane %v4986_v41, 2  ;;  %v4914_v58 = vrot.slane %v4913_v62, 1  ;;  %v5251_v45 = vpop.permute.xlu1 %5250 }
 0x3dc   : > { %6020 = vst.msk [vmem:[%s6929_s20 + $0xc0] ss:$8 sm:$0x7] %vm6931_vm1, %v4875_v35  ;;  %v4921_v21 = vrot.slane %v4920_v49, 1  ;;  %v4978_v0 = vrot.slane %v4977_v15, 4  ;;  %v4934_v33 = vrot.slane %v4929_v10, 6  ;;  %v5136_v43 = vsel %vm5135_vm11, %v8081_v38, %v5134_v31 }
 0x3dd   : > { %v5027_v22 = vld.sshfl [vmem:[#allocation1 + $0x10] sm:$0xff pattern:$0x75316420]  ;;  %v4972_v61 = vadd.f32 %v4971_v14, %v4970_v4  ;;  %v4988_v25 = vadd.f32 %v4987_v17, %v4986_v41  ;;  %v4915_v26 = vadd.f32 %v4914_v58, %v4913_v62  ;;  %v5137_v3 = vsel %vm5135_vm11, %v5131_v57, %v5133_v54 }
 0x3de   : > { %v5045_v16 = vsel %vm955_vm7, %v5027_v22, 0.0  ;;  %5085 = vst [vmem:[#allocation1 + $0x10] ss:$2 sm:$0xff] %v5080_v50  ;;  %v4922_v28 = vadd.f32 %v4921_v21, %v4920_v49  ;;  %v4979_v29 = vadd.f32 %v4978_v0, %v4977_v15  ;;  %v8116_v50 = vpop.permute.xlu2 %5252  ;;  %v5141_v53 = vmul.f32 %v5137_v3, %v6903_v12 }
 0x3df   : > { %v5046_v30 = vrot.slane %v5045_v16, 4  ;;  %v4973_v23 = vrot.slane %v4972_v61, 2  ;;  %v4989_v36 = vrot.slane %v4988_v25, 1  ;;  %v5255_v57 = vrot.slane %v8116_v50, 4 }
 0x3e0   : > { %v4933_v11 = vrot.slane %v4922_v28, 7  ;;  %v4980_v39 = vrot.slane %v4979_v29, 2  ;;  %v5195_v60 = vsel %vm955_vm7, %v5193_v5, %v5194_v19  ;;  %v5140_v35 = vmul.f32 %v5136_v43, %v6894_v8 }
 0x3e1   : > { %v5047_v34 = vadd.f32 %v5046_v30, %v5045_v16  ;;  %v4974_v20 = vadd.f32 %v4973_v23, %v4972_v61  ;;  %v5025_v40 = vld.sshfl [vmem:[#allocation1] sm:$0xff pattern:$0x75316420]  ;;  %v5026_v37 = vld.sshfl [vmem:[#allocation1 + $0x8] sm:$0xff pattern:$0x75316420]  ;;  %v4990_v51 = vadd.f32 %v4989_v36, %v4988_v25  ;;  %v5258_v58 = vsel %vm2039_vm8, %v8116_v50, %v5255_v57 }
 0x3e2   : > { %v4935_v1 = vsel %vm982_vm0, %v4915_v26, %v4933_v11  ;;  %v4981_v44 = vadd.f32 %v4980_v39, %v4979_v29  ;;  %v5031_v47 = vsel %vm955_vm7, %v5025_v40, 0.0  ;;  %v5038_v55 = vsel %vm955_vm7, %v5026_v37, 0.0  ;;  %5083 = vst [vmem:[#allocation1] ss:$2 sm:$0xff] %v5079_v13  ;;  %v8136_v29 = vpop.permute.xlu0 %5310 }
 0x3e3   : > { %v4936_v18 = vsel %vm984_vm9, %v4935_v1, %v4934_v33  ;;  %v4975_v48 = vrot.slane %v4974_v20, 1  ;;  %v5032_v59 = vrot.slane %v5031_v47, 4  ;;  %v5039_v9 = vrot.slane %v5038_v55, 4 }
 0x3e4   : > { %6021 = vst.msk [vmem:[%s6929_s20 + $0xc1] ss:$8 sm:$0x7] %vm6931_vm1, %v4936_v18  ;;  %v4982_v38 = vrot.slane %v4981_v44, 1  ;;  %v5048_v52 = vrot.slane %v5047_v34, 2  ;;  %v4995_v2 = vrot.slane %v4990_v51, 6  ;;  %v5198_v21 = vsel %vm5196_vm12, %v8105_v24, %v5194_v19  ;;  %v5313_v18 = vpop.permute.xlu1 %5312 }
 0x3e5   : > { %v5033_v56 = vadd.f32 %v5032_v59, %v5031_v47  ;;  %v5088_v46 = vld.sshfl [vmem:[#allocation1 + $0x10] sm:$0xff pattern:$0x75316420]  ;;  %v5040_v63 = vadd.f32 %v5039_v9, %v5038_v55  ;;  %v4976_v49 = vadd.f32 %v4975_v48, %v4974_v20  ;;  %v5197_v61 = vsel %vm5196_vm12, %v8090_v32, %v5195_v60 }
 0x3e6   : > { %v4983_v62 = vadd.f32 %v4982_v38, %v4981_v44  ;;  %v5049_v27 = vadd.f32 %v5048_v52, %v5047_v34  ;;  %v5106_v41 = vsel %vm955_vm7, %v5088_v46, 0.0  ;;  %5146 = vst [vmem:[#allocation1 + $0x10] ss:$2 sm:$0xff] %v5141_v53  ;;  %v5254_v30 = vrot.slane %v5251_v45, 4  ;;  %v8145_v3 = vpop.permute.xlu2 %5371 }
 0x3e7   : > { %v5034_v4 = vrot.slane %v5033_v56, 2  ;;  %v5107_v6 = vrot.slane %v5106_v41, 4  ;;  %v5041_v54 = vrot.slane %v5040_v63, 2  ;;  %v5202_v23 = vmul.f32 %v5198_v21, %v6903_v12 }
 0x3e8   : > { %v4994_v7 = vrot.slane %v4983_v62, 7  ;;  %v5050_v10 = vrot.slane %v5049_v27, 1  ;;  %v5262_v34 = vmul.f32 %v5258_v58, %v6903_v12  ;;  %v5256_v1 = vsel %vm955_vm7, %v5254_v30, %v5255_v57 }
 0x3e9   : > { %v5035_v14 = vadd.f32 %v5034_v4, %v5033_v56  ;;  %v5108_v15 = vadd.f32 %v5107_v6, %v5106_v41  ;;  %v5086_v5 = vld.sshfl [vmem:[#allocation1] sm:$0xff pattern:$0x75316420]  ;;  %v5087_v17 = vld.sshfl [vmem:[#allocation1 + $0x8] sm:$0xff pattern:$0x75316420]  ;;  %v5042_v22 = vadd.f32 %v5041_v54, %v5040_v63  ;;  %v5201_v50 = vmul.f32 %v5197_v61, %v6894_v8 }
 0x3ea   : > { %v4996_v0 = vsel %vm982_vm0, %v4976_v49, %v4994_v7  ;;  %v5092_v13 = vsel %vm955_vm7, %v5086_v5, 0.0  ;;  %5144 = vst [vmem:[#allocation1] ss:$2 sm:$0xff] %v5140_v35  ;;  %v5099_v33 = vsel %vm955_vm7, %v5087_v17, 0.0  ;;  %v5051_v36 = vadd.f32 %v5050_v10, %v5049_v27  ;;  %v8160_v10 = vpop.permute.xlu0 %5373 }
 0x3eb   : > { %v4997_v25 = vsel %vm984_vm9, %v4996_v0, %v4995_v2  ;;  %v5109_v16 = vrot.slane %v5108_v15, 2  ;;  %v5093_v28 = vrot.slane %v5092_v13, 4  ;;  %v5036_v24 = vrot.slane %v5035_v14, 1 }
 0x3ec   : > { %6022 = vst.msk [vmem:[%s6929_s20 + $0xc2] ss:$8 sm:$0x7] %vm6931_vm1, %v4997_v25  ;;  %v5043_v31 = vrot.slane %v5042_v22, 1  ;;  %v5100_v26 = vrot.slane %v5099_v33, 4  ;;  %v5056_v48 = vrot.slane %v5051_v36, 6  ;;  %v5257_v57 = vsel %vm2039_vm8, %v5251_v45, %v5256_v1 }
 0x3ed   : > { %v5110_v19 = vadd.f32 %v5109_v16, %v5108_v15  ;;  %v5094_v32 = vadd.f32 %v5093_v28, %v5092_v13  ;;  %v5149_v11 = vld.sshfl [vmem:[#allocation1 + $0x10] sm:$0xff pattern:$0x75316420]  ;;  %v5037_v44 = vadd.f32 %v5036_v24, %v5035_v14  ;;  %v5375_v46 = vrot.slane %v8145_v3, 4 }
 0x3ee   : > { %v5044_v39 = vadd.f32 %v5043_v31, %v5042_v22  ;;  %v5167_v20 = vsel %vm955_vm7, %v5149_v11, 0.0  ;;  %5207 = vst [vmem:[#allocation1 + $0x10] ss:$2 sm:$0xff] %v5202_v23  ;;  %v5101_v37 = vadd.f32 %v5100_v26, %v5099_v33  ;;  %v5314_v63 = vrot.slane %v8136_v29, 4 }
 0x3ef   : > { %v5095_v40 = vrot.slane %v5094_v32, 2  ;;  %v5168_v43 = vrot.slane %v5167_v20, 4  ;;  %v5111_v55 = vrot.slane %v5110_v19, 1  ;;  %v5315_v27 = vrot.slane %v5313_v18, 4 }
 0x3f0   : > { %v5055_v47 = vrot.slane %v5044_v39, 7  ;;  %v5102_v59 = vrot.slane %v5101_v37, 2  ;;  %v5261_v45 = vmul.f32 %v5257_v57, %v6894_v8  ;;  %vm5317_vm8 = vcmask 523264  }
 0x3f1   : > { %v5096_v51 = vadd.f32 %v5095_v40, %v5094_v32  ;;  %v5147_v38 = vld.sshfl [vmem:[#allocation1] sm:$0xff pattern:$0x75316420]  ;;  %v5169_v9 = vadd.f32 %v5168_v43, %v5167_v20  ;;  %v5148_v53 = vld.sshfl [vmem:[#allocation1 + $0x8] sm:$0xff pattern:$0x75316420]  ;;  %v5112_v41 = vadd.f32 %v5111_v55, %v5110_v19  ;;  %v5316_v0 = vsel %vm955_vm7, %v5314_v63, %v5315_v27 }
 0x3f2   : > { %v5057_v52 = vsel %vm982_vm0, %v5037_v44, %v5055_v47  ;;  %v5153_v56 = vsel %vm955_vm7, %v5147_v38, 0.0  ;;  %v5103_v62 = vadd.f32 %v5102_v59, %v5101_v37  ;;  %5205 = vst [vmem:[#allocation1] ss:$2 sm:$0xff] %v5201_v50  ;;  %v5160_v4 = vsel %vm955_vm7, %v5148_v53, 0.0 }
 0x3f3   : > { %v5058_v60 = vsel %vm984_vm9, %v5057_v52, %v5056_v48  ;;  %v5154_v2 = vrot.slane %v5153_v56, 4  ;;  %v5170_v6 = vrot.slane %v5169_v9, 2  ;;  %v5097_v35 = vrot.slane %v5096_v51, 1  ;;  %v5433_v52 = vpop.permute.xlu1 %5432 }
 0x3f4   : > { %6023 = vst.msk [vmem:[%s6929_s20 + $0xc3] ss:$8 sm:$0x7] %vm6931_vm1, %v5058_v60  ;;  %v5104_v49 = vrot.slane %v5103_v62, 1  ;;  %v5161_v7 = vrot.slane %v5160_v4, 4  ;;  %v5117_v22 = vrot.slane %v5112_v41, 6  ;;  %v5318_v36 = vsel %vm5317_vm8, %v8136_v29, %v5316_v0 }
 0x3f5   : > { %v5210_v54 = vld.sshfl [vmem:[#allocation1 + $0x10] sm:$0xff pattern:$0x75316420]  ;;  %v5155_v14 = vadd.f32 %v5154_v2, %v5153_v56  ;;  %v5171_v15 = vadd.f32 %v5170_v6, %v5169_v9  ;;  %v5376_v25 = vrot.slane %v8160_v10, 4  ;;  %v5098_v16 = vadd.f32 %v5097_v35, %v5096_v51 }
 0x3f6   : > { %v5228_v5 = vsel %vm955_vm7, %v5210_v54, 0.0  ;;  %5267 = vst [vmem:[#allocation1 + $0x10] ss:$2 sm:$0xff] %v5262_v34  ;;  %v5105_v17 = vadd.f32 %v5104_v49, %v5103_v62  ;;  %v5162_v58 = vadd.f32 %v5161_v7, %v5160_v4  ;;  %v5319_v19 = vsel %vm5317_vm8, %v5313_v18, %v5315_v27  ;;  %v8171_v34 = vpop.permute.xlu2 %5434 }
 0x3f7   : > { %v5229_v21 = vrot.slane %v5228_v5, 4  ;;  %v5156_v13 = vrot.slane %v5155_v14, 2  ;;  %v5172_v61 = vrot.slane %v5171_v15, 1  ;;  %v5323_v47 = vmul.f32 %v5319_v19, %v6903_v12 }
 0x3f8   : > { %v5116_v28 = vrot.slane %v5105_v17, 7  ;;  %v5163_v30 = vrot.slane %v5162_v58, 2  ;;  %v5437_v18 = vrot.slane %v8171_v34, 4  ;;  %v5377_v48 = vsel %vm955_vm7, %v5375_v46, %v5376_v25 }
 0x3f9   : > { %v5230_v24 = vadd.f32 %v5229_v21, %v5228_v5  ;;  %v5157_v31 = vadd.f32 %v5156_v13, %v5155_v14  ;;  %v5208_v33 = vld.sshfl [vmem:[#allocation1] sm:$0xff pattern:$0x75316420]  ;;  %v5209_v23 = vld.sshfl [vmem:[#allocation1 + $0x8] sm:$0xff pattern:$0x75316420]  ;;  %v5173_v37 = vadd.f32 %v5172_v61, %v5171_v15  ;;  %v5322_v60 = vmul.f32 %v5318_v36, %v6894_v8 }
 0x3fa   : > { %v5118_v32 = vsel %vm982_vm0, %v5098_v16, %v5116_v28  ;;  %v5164_v26 = vadd.f32 %v5163_v30, %v5162_v58  ;;  %v5214_v11 = vsel %vm955_vm7, %v5208_v33, 0.0  ;;  %v5221_v39 = vsel %vm955_vm7, %v5209_v23, 0.0  ;;  %5265 = vst [vmem:[#allocation1] ss:$2 sm:$0xff] %v5261_v45  ;;  %v8191_v58 = vpop.permute.xlu0 %5493 }
 0x3fb   : > { %v5119_v20 = vsel %vm984_vm9, %v5118_v32, %v5117_v22  ;;  %v5158_v40 = vrot.slane %v5157_v31, 1  ;;  %v5215_v43 = vrot.slane %v5214_v11, 4  ;;  %v5222_v1 = vrot.slane %v5221_v39, 4 }
 0x3fc   : > { %6024 = vst.msk [vmem:[%s6929_s20 + $0xc4] ss:$8 sm:$0x7] %vm6931_vm1, %v5119_v20  ;;  %v5165_v29 = vrot.slane %v5164_v26, 1  ;;  %v5231_v44 = vrot.slane %v5230_v24, 2  ;;  %v5178_v53 = vrot.slane %v5173_v37, 6  ;;  %v5441_v35 = vsel %vm5439_vm13, %v8171_v34, %v5437_v18  ;;  %v5496_v20 = vpop.permute.xlu1 %5495 }
 0x3fd   : > { %v5216_v55 = vadd.f32 %v5215_v43, %v5214_v11  ;;  %v5270_v50 = vld.sshfl [vmem:[#allocation1 + $0x10] sm:$0xff pattern:$0x75316420]  ;;  %v5223_v59 = vadd.f32 %v5222_v1, %v5221_v39  ;;  %v5159_v62 = vadd.f32 %v5158_v40, %v5157_v31  ;;  %v5380_v49 = vsel %vm5378_vm14, %v8160_v10, %v5376_v25 }
 0x3fe   : > { %v5166_v51 = vadd.f32 %v5165_v29, %v5164_v26  ;;  %v5232_v38 = vadd.f32 %v5231_v44, %v5230_v24  ;;  %v5288_v9 = vsel %vm955_vm7, %v5270_v50, 0.0  ;;  %5328 = vst [vmem:[#allocation1 + $0x10] ss:$2 sm:$0xff] %v5323_v47  ;;  %v5379_v14 = vsel %vm5378_vm14, %v8145_v3, %v5377_v48  ;;  %v8200_v19 = vpop.permute.xlu2 %5554 }
 0x3ff   : > { %v5217_v56 = vrot.slane %v5216_v55, 2  ;;  %v5289_v57 = vrot.slane %v5288_v9, 4  ;;  %v5224_v27 = vrot.slane %v5223_v59, 2  ;;  %v5436_v21 = vrot.slane %v5433_v52, 4 }
 0x400   : > { %v5177_v63 = vrot.slane %v5166_v51, 7  ;;  %v5233_v41 = vrot.slane %v5232_v38, 1  ;;  %v5384_v13 = vmul.f32 %v5380_v49, %v6903_v12  ;;  %v5445_v24 = vmul.f32 %v5441_v35, %v6903_v12 }
 0x401   : > { %v5218_v2 = vadd.f32 %v5217_v56, %v5216_v55  ;;  %v5290_v4 = vadd.f32 %v5289_v57, %v5288_v9  ;;  %v5268_v46 = vld.sshfl [vmem:[#allocation1] sm:$0xff pattern:$0x75316420]  ;;  %v5269_v6 = vld.sshfl [vmem:[#allocation1 + $0x8] sm:$0xff pattern:$0x75316420]  ;;  %v5225_v54 = vadd.f32 %v5224_v27, %v5223_v59  ;;  %v5438_v32 = vsel %vm955_vm7, %v5436_v21, %v5437_v18 }
 0x402   : > { %v5179_v7 = vsel %vm982_vm0, %v5159_v62, %v5177_v63  ;;  %v5274_v45 = vsel %vm955_vm7, %v5268_v46, 0.0  ;;  %5326 = vst [vmem:[#allocation1] ss:$2 sm:$0xff] %v5322_v60  ;;  %v5281_v22 = vsel %vm955_vm7, %v5269_v6, 0.0  ;;  %v5234_v61 = vadd.f32 %v5233_v41, %v5232_v38  ;;  %v8215_v41 = vpop.permute.xlu0 %5556 }
 0x403   : > { %v5180_v15 = vsel %vm984_vm9, %v5179_v7, %v5178_v53  ;;  %v5291_v5 = vrot.slane %v5290_v4, 2  ;;  %v5275_v17 = vrot.slane %v5274_v45, 4  ;;  %v5219_v10 = vrot.slane %v5218_v2, 1 }
 0x404   : > { %6025 = vst.msk [vmem:[%s6929_s20 + $0xc5] ss:$8 sm:$0x7] %vm6931_vm1, %v5180_v15  ;;  %v5226_v0 = vrot.slane %v5225_v54, 1  ;;  %v5282_v16 = vrot.slane %v5281_v22, 4  ;;  %v5383_v34 = vmul.f32 %v5379_v14, %v6894_v8  ;;  %v5239_v40 = vrot.slane %v5234_v61, 6 }
 0x405   : > { %v5292_v25 = vadd.f32 %v5291_v5, %v5290_v4  ;;  %v5276_v3 = vadd.f32 %v5275_v17, %v5274_v45  ;;  %v5331_v28 = vld.sshfl [vmem:[#allocation1 + $0x10] sm:$0xff pattern:$0x75316420]  ;;  %v5220_v26 = vadd.f32 %v5219_v10, %v5218_v2  ;;  %v5558_v50 = vrot.slane %v8200_v19, 4 }
 0x406   : > { %v5227_v30 = vadd.f32 %v5226_v0, %v5225_v54  ;;  %v5349_v31 = vsel %vm955_vm7, %v5331_v28, 0.0  ;;  %5389 = vst [vmem:[#allocation1 + $0x10] ss:$2 sm:$0xff] %v5384_v13  ;;  %v5283_v23 = vadd.f32 %v5282_v16, %v5281_v22  ;;  %v5440_v18 = vsel %vm5439_vm13, %v5433_v52, %v5438_v32 }
 0x407   : > { %v5277_v33 = vrot.slane %v5276_v3, 2  ;;  %v5350_v36 = vrot.slane %v5349_v31, 4  ;;  %v5293_v39 = vrot.slane %v5292_v25, 1  ;;  %v5497_v59 = vrot.slane %v8191_v58, 4 }
 0x408   : > { %v5238_v11 = vrot.slane %v5227_v30, 7  ;;  %v5284_v43 = vrot.slane %v5283_v23, 2  ;;  %v5498_v38 = vrot.slane %v5496_v20, 4  ;;  %v5444_v52 = vmul.f32 %v5440_v18, %v6894_v8 }
 0x409   : > { %v5278_v37 = vadd.f32 %v5277_v33, %v5276_v3  ;;  %v5329_v29 = vld.sshfl [vmem:[#allocation1] sm:$0xff pattern:$0x75316420]  ;;  %v5351_v1 = vadd.f32 %v5350_v36, %v5349_v31  ;;  %v5330_v47 = vld.sshfl [vmem:[#allocation1 + $0x8] sm:$0xff pattern:$0x75316420]  ;;  %v5294_v9 = vadd.f32 %v5293_v39, %v5292_v25 }
 0x40a   : > { %v5240_v44 = vsel %vm982_vm0, %v5220_v26, %v5238_v11  ;;  %v5335_v55 = vsel %vm955_vm7, %v5329_v29, 0.0  ;;  %v5285_v51 = vadd.f32 %v5284_v43, %v5283_v23  ;;  %5387 = vst [vmem:[#allocation1] ss:$2 sm:$0xff] %v5383_v34  ;;  %v5342_v56 = vsel %vm955_vm7, %v5330_v47, 0.0 }
 0x40b   : > { %v5241_v48 = vsel %vm984_vm9, %v5240_v44, %v5239_v40  ;;  %v5336_v53 = vrot.slane %v5335_v55, 4  ;;  %v5352_v57 = vrot.slane %v5351_v1, 2  ;;  %v5279_v60 = vrot.slane %v5278_v37, 1  ;;  %v5616_v44 = vpop.permute.xlu1 %5615 }
 0x40c   : > { %6026 = vst.msk [vmem:[%s6929_s20 + $0xc6] ss:$8 sm:$0x7] %vm6931_vm1, %v5241_v48  ;;  %v5286_v62 = vrot.slane %v5285_v51, 1  ;;  %v5343_v63 = vrot.slane %v5342_v56, 4  ;;  %vm5500_vm2 = vcmask 498688   ;;  %v5499_v7 = vsel %vm955_vm7, %v5497_v59, %v5498_v38 }
 0x40d   : > { %v5392_v27 = vld.sshfl [vmem:[#allocation1 + $0x10] sm:$0xff pattern:$0x75316420]  ;;  %v5337_v2 = vadd.f32 %v5336_v53, %v5335_v55  ;;  %v5353_v4 = vadd.f32 %v5352_v57, %v5351_v1  ;;  %vm5622_vm15 = vcmask 482304   ;;  %v5299_v54 = vrot.slane %v5294_v9, 6 }
 0x40e   : > { %v5410_v46 = vsel %vm955_vm7, %v5392_v27, 0.0  ;;  %5450 = vst [vmem:[#allocation1 + $0x10] ss:$2 sm:$0xff] %v5445_v24  ;;  %v5287_v6 = vadd.f32 %v5286_v62, %v5285_v51  ;;  %v5344_v35 = vadd.f32 %v5343_v63, %v5342_v56  ;;  %v5559_v15 = vrot.slane %v8215_v41, 4  ;;  %v8226_v24 = vpop.permute.xlu2 %5617 }
 0x40f   : > { %v5411_v49 = vrot.slane %v5410_v46, 4  ;;  %v5338_v45 = vrot.slane %v5337_v2, 2  ;;  %v5354_v14 = vrot.slane %v5353_v4, 1  ;;  %v5280_v5 = vadd.f32 %v5279_v60, %v5278_v37 }
 0x410   : > { %v5298_v17 = vrot.slane %v5287_v6, 7  ;;  %v5345_v21 = vrot.slane %v5344_v35, 2  ;;  %v5501_v61 = vsel %vm5500_vm2, %v8191_v58, %v5499_v7  ;;  %v5502_v25 = vsel %vm5500_vm2, %v5496_v20, %v5498_v38 }
 0x411   : > { %v5412_v10 = vadd.f32 %v5411_v49, %v5410_v46  ;;  %v5339_v0 = vadd.f32 %v5338_v45, %v5337_v2  ;;  %v5390_v22 = vld.sshfl [vmem:[#allocation1] sm:$0xff pattern:$0x75316420]  ;;  %v5391_v13 = vld.sshfl [vmem:[#allocation1 + $0x8] sm:$0xff pattern:$0x75316420]  ;;  %v5355_v23 = vadd.f32 %v5354_v14, %v5353_v4  ;;  %v5506_v11 = vmul.f32 %v5502_v25, %v6903_v12 }
 0x412   : > { %v5300_v3 = vsel %vm982_vm0, %v5280_v5, %v5298_v17  ;;  %v5346_v16 = vadd.f32 %v5345_v21, %v5344_v35  ;;  %v5396_v28 = vsel %vm955_vm7, %v5390_v22, 0.0  ;;  %v5403_v30 = vsel %vm955_vm7, %v5391_v13, 0.0  ;;  %5448 = vst [vmem:[#allocation1] ss:$2 sm:$0xff] %v5444_v52  ;;  %v8246_v35 = vpop.permute.xlu0 %5676 }
 0x413   : > { %v5301_v31 = vsel %vm984_vm9, %v5300_v3, %v5299_v54  ;;  %v5340_v33 = vrot.slane %v5339_v0, 1  ;;  %v5397_v36 = vrot.slane %v5396_v28, 4  ;;  %v5404_v32 = vrot.slane %v5403_v30, 4 }
 0x414   : > { %6027 = vst.msk [vmem:[%s6929_s20 + $0xc7] ss:$8 sm:$0x7] %vm6931_vm1, %v5301_v31  ;;  %v5347_v58 = vrot.slane %v5346_v16, 1  ;;  %v5413_v26 = vrot.slane %v5412_v10, 2  ;;  %v5620_v20 = vrot.slane %v8226_v24, 4  ;;  %v5560_v40 = vsel %vm955_vm7, %v5558_v50, %v5559_v15  ;;  %v5679_v31 = vpop.permute.xlu1 %5678 }
 0x415   : > { %v5398_v39 = vadd.f32 %v5397_v36, %v5396_v28  ;;  %v5453_v34 = vld.sshfl [vmem:[#allocation1 + $0x10] sm:$0xff pattern:$0x75316420]  ;;  %vm5561_vm6 = vcmask 490496   ;;  %v5405_v43 = vadd.f32 %v5404_v32, %v5403_v30  ;;  %v5360_v47 = vrot.slane %v5355_v23, 6 }
 0x416   : > { %v5348_v37 = vadd.f32 %v5347_v58, %v5346_v16  ;;  %v5414_v29 = vadd.f32 %v5413_v26, %v5412_v10  ;;  %v5471_v1 = vsel %vm955_vm7, %v5453_v34, 0.0  ;;  %5511 = vst [vmem:[#allocation1 + $0x10] ss:$2 sm:$0xff] %v5506_v11  ;;  %v5505_v48 = vmul.f32 %v5501_v61, %v6894_v8  ;;  %v8255_v25 = vpop.permute.xlu2 %5737 }
 0x417   : > { %v5399_v55 = vrot.slane %v5398_v39, 2  ;;  %v5472_v18 = vrot.slane %v5471_v1, 4  ;;  %v5341_v51 = vadd.f32 %v5340_v33, %v5339_v0  ;;  %v5406_v38 = vrot.slane %v5405_v43, 2 }
 0x418   : > { %v5359_v59 = vrot.slane %v5348_v37, 7  ;;  %v5415_v9 = vrot.slane %v5414_v29, 1  ;;  %v5624_v60 = vsel %vm5622_vm15, %v8226_v24, %v5620_v20  ;;  %v5563_v62 = vsel %vm5561_vm6, %v8215_v41, %v5559_v15 }
 0x419   : > { %v5400_v53 = vadd.f32 %v5399_v55, %v5398_v39  ;;  %v5473_v56 = vadd.f32 %v5472_v18, %v5471_v1  ;;  %v5451_v50 = vld.sshfl [vmem:[#allocation1] sm:$0xff pattern:$0x75316420]  ;;  %v5452_v57 = vld.sshfl [vmem:[#allocation1 + $0x8] sm:$0xff pattern:$0x75316420]  ;;  %v5407_v27 = vadd.f32 %v5406_v38, %v5405_v43  ;;  %v5562_v2 = vsel %vm5561_vm6, %v8200_v19, %v5560_v40 }
 0x41a   : > { %v5361_v63 = vsel %vm982_vm0, %v5341_v51, %v5359_v59  ;;  %v5457_v52 = vsel %vm955_vm7, %v5451_v50, 0.0  ;;  %5509 = vst [vmem:[#allocation1] ss:$2 sm:$0xff] %v5505_v48  ;;  %v5619_v49 = vrot.slane %v5616_v44, 4  ;;  %v5464_v54 = vsel %vm955_vm7, %v5452_v57, 0.0 }
 0x41b   : > { %v5362_v4 = vsel %vm984_vm9, %v5361_v63, %v5360_v47  ;;  %v5474_v46 = vrot.slane %v5473_v56, 2  ;;  %v5458_v6 = vrot.slane %v5457_v52, 4  ;;  %v5401_v41 = vrot.slane %v5400_v53, 1 }
 0x41c   : > { %6028 = vst.msk [vmem:[%s6929_s20 + $0xd8] ss:$8 sm:$0x7] %vm6931_vm1, %v5362_v4  ;;  %v5408_v7 = vrot.slane %v5407_v27, 1  ;;  %v5567_v45 = vmul.f32 %v5563_v62, %v6903_v12  ;;  %v5416_v14 = vadd.f32 %v5415_v9, %v5414_v29  ;;  %v5465_v5 = vrot.slane %v5464_v54, 4  ;;  %v5740_v9 = vpop.permute.xlu0 %5739 }
 0x41d   : > { %v5475_v15 = vadd.f32 %v5474_v46, %v5473_v56  ;;  %v5459_v19 = vadd.f32 %v5458_v6, %v5457_v52  ;;  %v5514_v17 = vld.sshfl [vmem:[#allocation1 + $0x10] sm:$0xff pattern:$0x75316420]  ;;  %v5628_v10 = vmul.f32 %v5624_v60, %v6903_v12  ;;  %v5621_v3 = vsel %vm955_vm7, %v5619_v49, %v5620_v20 }
 0x41e   : > { %v5409_v21 = vadd.f32 %v5408_v7, %v5407_v27  ;;  %v5532_v0 = vsel %vm955_vm7, %v5514_v17, 0.0  ;;  %5572 = vst [vmem:[#allocation1 + $0x10] ss:$2 sm:$0xff] %v5567_v45  ;;  %v5466_v13 = vadd.f32 %v5465_v5, %v5464_v54  ;;  %v5402_v16 = vadd.f32 %v5401_v41, %v5400_v53 }
 0x41f   : > { %v5460_v22 = vrot.slane %v5459_v19, 2  ;;  %v5533_v61 = vrot.slane %v5532_v0, 4  ;;  %v5476_v30 = vrot.slane %v5475_v15, 1  ;;  %v5566_v24 = vmul.f32 %v5562_v2, %v6894_v8 }
 0x420   : > { %v5420_v28 = vrot.slane %v5409_v21, 7  ;;  %v5421_v33 = vrot.slane %v5416_v14, 6  ;;  %v5467_v36 = vrot.slane %v5466_v13, 2  ;;  %v5741_v34 = vrot.slane %v8255_v25, 4 }
 0x421   : > { %v5461_v23 = vadd.f32 %v5460_v22, %v5459_v19  ;;  %v5512_v58 = vld.sshfl [vmem:[#allocation1] sm:$0xff pattern:$0x75316420]  ;;  %v5534_v32 = vadd.f32 %v5533_v61, %v5532_v0  ;;  %v5513_v11 = vld.sshfl [vmem:[#allocation1 + $0x8] sm:$0xff pattern:$0x75316420]  ;;  %v5623_v20 = vsel %vm5622_vm15, %v5616_v44, %v5621_v3  ;;  %v5477_v1 = vadd.f32 %v5476_v30, %v5475_v15 }
 0x422   : > { %v5422_v26 = vsel %vm982_vm0, %v5402_v16, %v5420_v28  ;;  %v5518_v39 = vsel %vm955_vm7, %v5512_v58, 0.0  ;;  %v5468_v37 = vadd.f32 %v5467_v36, %v5466_v13  ;;  %5570 = vst [vmem:[#allocation1] ss:$2 sm:$0xff] %v5566_v24  ;;  %v5680_v43 = vrot.slane %v8246_v35, 4 }
 0x423   : > { %v5423_v40 = vsel %vm984_vm9, %v5422_v26, %v5421_v33  ;;  %v5681_v29 = vrot.slane %v5679_v31, 4  ;;  %v5519_v47 = vrot.slane %v5518_v39, 4  ;;  %v5525_v55 = vsel %vm955_vm7, %v5513_v11, 0.0  ;;  %v5801_v11 = vpop.permute.xlu2 %5800 }
 0x424   : > { %6029 = vst.msk [vmem:[%s6929_s20 + $0xd9] ss:$8 sm:$0x7] %vm6931_vm1, %v5423_v40  ;;  %v5535_v18 = vrot.slane %v5534_v32, 2  ;;  %v5462_v48 = vrot.slane %v5461_v23, 1  ;;  %v5469_v51 = vrot.slane %v5468_v37, 1  ;;  %v5627_v44 = vmul.f32 %v5623_v20, %v6894_v8 }
 0x425   : > { %v5526_v59 = vrot.slane %v5525_v55, 4  ;;  %v5575_v38 = vld.sshfl [vmem:[#allocation1 + $0x10] sm:$0xff pattern:$0x75316420]  ;;  %v5520_v53 = vadd.f32 %v5519_v47, %v5518_v39  ;;  %vm5683_vm3 = vcmask 474112   ;;  %v5682_v63 = vsel %vm955_vm7, %v5680_v43, %v5681_v29 }
 0x426   : > { %v5536_v56 = vadd.f32 %v5535_v18, %v5534_v32  ;;  %v5593_v50 = vsel %vm955_vm7, %v5575_v38, 0.0  ;;  %5633 = vst [vmem:[#allocation1 + $0x10] ss:$2 sm:$0xff] %v5628_v10  ;;  %v5470_v57 = vadd.f32 %v5469_v51, %v5468_v37  ;;  %v5482_v27 = vrot.slane %v5477_v1, 6 }
 0x427   : > { %v5527_v60 = vadd.f32 %v5526_v59, %v5525_v55  ;;  %v5594_v62 = vrot.slane %v5593_v50, 4  ;;  %v5521_v52 = vrot.slane %v5520_v53, 2  ;;  %v5742_v4 = vrot.slane %v5740_v9, 4 }
 0x428   : > { %v5537_v2 = vrot.slane %v5536_v56, 1  ;;  %v5463_v46 = vadd.f32 %v5462_v48, %v5461_v23  ;;  %v5481_v6 = vrot.slane %v5470_v57, 7  ;;  %v5684_v14 = vsel %vm5683_vm3, %v8246_v35, %v5682_v63 }
 0x429   : > { %v5528_v49 = vrot.slane %v5527_v60, 2  ;;  %v5595_v41 = vadd.f32 %v5594_v62, %v5593_v50  ;;  %v5522_v7 = vadd.f32 %v5521_v52, %v5520_v53  ;;  %v5573_v54 = vld.sshfl [vmem:[#allocation1] sm:$0xff pattern:$0x75316420]  ;;  %v5685_v15 = vsel %vm5683_vm3, %v5679_v31, %v5681_v29  ;;  %v5799_v50 = vpop.permute.xlu1 %5798 }
 0x42a   : > { %v5574_v45 = vld.sshfl [vmem:[#allocation1 + $0x8] sm:$0xff pattern:$0x75316420]  ;;  %v5483_v19 = vsel %vm982_vm0, %v5463_v46, %v5481_v6  ;;  %v5579_v17 = vsel %vm955_vm7, %v5573_v54, 0.0  ;;  %v5538_v22 = vadd.f32 %v5537_v2, %v5536_v56  ;;  %v5689_v16 = vmul.f32 %v5685_v15, %v6903_v12 }
 0x42b   : > { %v5529_v5 = vadd.f32 %v5528_v49, %v5527_v60  ;;  %v5586_v21 = vsel %vm955_vm7, %v5574_v45, 0.0  ;;  %5631 = vst [vmem:[#allocation1] ss:$2 sm:$0xff] %v5627_v44  ;;  %v5484_v10 = vsel %vm984_vm9, %v5483_v19, %v5482_v27  ;;  %v5523_v0 = vrot.slane %v5522_v7, 1 }
 0x42c   : > { %v5580_v13 = vrot.slane %v5579_v17, 4  ;;  %6030 = vst.msk [vmem:[%s6929_s20 + $0xda] ss:$8 sm:$0x7] %vm6931_vm1, %v5484_v10  ;;  %v5587_v35 = vrot.slane %v5586_v21, 4  ;;  %v5596_v3 = vrot.slane %v5595_v41, 2  ;;  %v5743_v24 = vsel %vm955_vm7, %v5741_v34, %v5742_v4 }
 0x42d   : > { %v5530_v61 = vrot.slane %v5529_v5, 1  ;;  %v5636_v30 = vld.sshfl [vmem:[#allocation1 + $0x10] sm:$0xff pattern:$0x75316420]  ;;  %vm5744_vm4 = vcmask 465920   ;;  %v5543_v58 = vrot.slane %v5538_v22, 6  ;;  %v5688_v39 = vmul.f32 %v5684_v14, %v6894_v8 }
 0x42e   : > { %v5581_v28 = vadd.f32 %v5580_v13, %v5579_v17  ;;  %v5588_v33 = vadd.f32 %v5587_v35, %v5586_v21  ;;  %v5597_v23 = vadd.f32 %v5596_v3, %v5595_v41  ;;  %v5654_v36 = vsel %vm955_vm7, %v5636_v30, 0.0  ;;  %5694 = vst [vmem:[#allocation1 + $0x10] ss:$2 sm:$0xff] %v5689_v16 }
 0x42f   : > { %v5531_v31 = vadd.f32 %v5530_v61, %v5529_v5  ;;  %v5655_v26 = vrot.slane %v5654_v36, 4  ;;  %v5524_v20 = vadd.f32 %v5523_v0, %v5522_v7  ;;  %v5746_v55 = vsel %vm5744_vm4, %v5740_v9, %v5742_v4 }
 0x430   : > { %v5582_v32 = vrot.slane %v5581_v28, 2  ;;  %v5589_v37 = vrot.slane %v5588_v33, 2  ;;  %v5598_v43 = vrot.slane %v5597_v23, 1  ;;  %v5803_v59 = vrot.slane %v5801_v11, 4 }
 0x431   : > { %v5542_v40 = vrot.slane %v5531_v31, 7  ;;  %v5656_v1 = vadd.f32 %v5655_v26, %v5654_v36  ;;  %v5745_v56 = vsel %vm5744_vm4, %v8255_v25, %v5743_v24  ;;  %v5750_v62 = vmul.f32 %v5746_v55, %v6903_v12 }
 0x432   : > { %v5583_v29 = vadd.f32 %v5582_v32, %v5581_v28  ;;  %v5634_v34 = vld.sshfl [vmem:[#allocation1] sm:$0xff pattern:$0x75316420]  ;;  %v5635_v47 = vld.sshfl [vmem:[#allocation1 + $0x8] sm:$0xff pattern:$0x75316420]  ;;  %v5590_v48 = vadd.f32 %v5589_v37, %v5588_v33  ;;  %v5599_v63 = vadd.f32 %v5598_v43, %v5597_v23  ;;  %v5806_v7 = vsel %vm2588_vm10, %v5801_v11, %v5803_v59 }
 0x433   : > { %v5544_v18 = vsel %vm982_vm0, %v5524_v20, %v5542_v40  ;;  %v5640_v51 = vsel %vm955_vm7, %v5634_v34, 0.0  ;;  %5692 = vst [vmem:[#allocation1] ss:$2 sm:$0xff] %v5688_v39  ;;  %v5657_v44 = vrot.slane %v5656_v1, 2  ;;  %v5647_v60 = vsel %vm955_vm7, %v5635_v47, 0.0 }
 0x434   : > { %v5545_v38 = vsel %vm984_vm9, %v5544_v18, %v5543_v58  ;;  %v5641_v53 = vrot.slane %v5640_v51, 4  ;;  %v5584_v57 = vrot.slane %v5583_v29, 1  ;;  %v5591_v9 = vrot.slane %v5590_v48, 1 }
 0x435   : > { %6031 = vst.msk [vmem:[%s6929_s20 + $0xdb] ss:$8 sm:$0x7] %vm6931_vm1, %v5545_v38  ;;  %v5658_v27 = vadd.f32 %v5657_v44, %v5656_v1  ;;  %v5648_v2 = vrot.slane %v5647_v60, 4  ;;  %v5802_v25 = vrot.slane %v5799_v50, 4  ;;  %v5749_v19 = vmul.f32 %v5745_v56, %v6894_v8 }
 0x436   : > { %v5642_v52 = vadd.f32 %v5641_v53, %v5640_v51  ;;  %v5697_v4 = vld.sshfl [vmem:[#allocation1 + $0x10] sm:$0xff pattern:$0x75316420]  ;;  %v5592_v46 = vadd.f32 %v5591_v9, %v5590_v48  ;;  %v5585_v45 = vadd.f32 %v5584_v57, %v5583_v29  ;;  %v5604_v5 = vrot.slane %v5599_v63, 6 }
 0x437   : > { %v5715_v6 = vsel %vm955_vm7, %v5697_v4, 0.0  ;;  %5755 = vst [vmem:[#allocation1 + $0x10] ss:$2 sm:$0xff] %v5750_v62  ;;  %v5649_v41 = vadd.f32 %v5648_v2, %v5647_v60  ;;  %v5659_v15 = vrot.slane %v5658_v27, 1  ;;  %v5804_v35 = vsel %vm955_vm7, %v5802_v25, %v5803_v59 }
 0x438   : > { %v5643_v49 = vrot.slane %v5642_v52, 2  ;;  %v5716_v54 = vrot.slane %v5715_v6, 4  ;;  %v5603_v14 = vrot.slane %v5592_v46, 7  ;;  %v5810_v28 = vmul.f32 %v5806_v7, %v6903_v12 }
 0x439   : > { %v5650_v21 = vrot.slane %v5649_v41, 2  ;;  %v5660_v30 = vadd.f32 %v5659_v15, %v5658_v27  ;;  %v5805_v26 = vsel %vm2588_vm10, %v5799_v50, %v5804_v35 }
 0x43a   : > { %v5644_v17 = vadd.f32 %v5643_v49, %v5642_v52  ;;  %v5695_v10 = vld.sshfl [vmem:[#allocation1] sm:$0xff pattern:$0x75316420]  ;;  %v5717_v0 = vadd.f32 %v5716_v54, %v5715_v6  ;;  %v5605_v22 = vsel %vm982_vm0, %v5585_v45, %v5603_v14  ;;  %v5696_v13 = vld.sshfl [vmem:[#allocation1 + $0x8] sm:$0xff pattern:$0x75316420]  ;;  %v5809_v34 = vmul.f32 %v5805_v26, %v6894_v8 }
 0x43b   : > { %v5701_v61 = vsel %vm955_vm7, %v5695_v10, 0.0  ;;  %v5606_v3 = vsel %vm984_vm9, %v5605_v22, %v5604_v5  ;;  %v5651_v16 = vadd.f32 %v5650_v21, %v5649_v41  ;;  %5753 = vst [vmem:[#allocation1] ss:$2 sm:$0xff] %v5749_v19  ;;  %v5708_v31 = vsel %vm955_vm7, %v5696_v13, 0.0 }
 0x43c   : > { %6032 = vst.msk [vmem:[%s6929_s20 + $0xdc] ss:$8 sm:$0x7] %vm6931_vm1, %v5606_v3  ;;  %v5702_v24 = vrot.slane %v5701_v61, 4  ;;  %v5718_v33 = vrot.slane %v5717_v0, 2  ;;  %v5645_v23 = vrot.slane %v5644_v17, 1 }
 0x43d   : > { %v5652_v36 = vrot.slane %v5651_v16, 1  ;;  %v5709_v58 = vrot.slane %v5708_v31, 4  ;;  %v5665_v43 = vrot.slane %v5660_v30, 6 }
 0x43e   : > { %v5758_v32 = vld.sshfl [vmem:[#allocation1 + $0x10] sm:$0xff pattern:$0x75316420]  ;;  %v5703_v11 = vadd.f32 %v5702_v24, %v5701_v61  ;;  %v5719_v39 = vadd.f32 %v5718_v33, %v5717_v0  ;;  %v5646_v47 = vadd.f32 %v5645_v23, %v5644_v17 }
 0x43f   : > { %v5776_v20 = vsel %vm955_vm7, %v5758_v32, 0.0  ;;  %5815 = vst [vmem:[#allocation1 + $0x10] ss:$2 sm:$0xff] %v5810_v28  ;;  %v5653_v12 = vadd.f32 %v5652_v36, %v5651_v16  ;;  %v5710_v40 = vadd.f32 %v5709_v58, %v5708_v31 }
 0x440   : > { %v5777_v37 = vrot.slane %v5776_v20, 4  ;;  %v5704_v29 = vrot.slane %v5703_v11, 2  ;;  %v5720_v1 = vrot.slane %v5719_v39, 1 }
 0x441   : > { %v5664_v55 = vrot.slane %v5653_v12, 7  ;;  %v5711_v18 = vrot.slane %v5710_v40, 2 }
 0x442   : > { %v5778_v48 = vadd.f32 %v5777_v37, %v5776_v20  ;;  %v5705_v51 = vadd.f32 %v5704_v29, %v5703_v11  ;;  %v5756_v59 = vld.sshfl [vmem:[#allocation1] sm:$0xff pattern:$0x75316420]  ;;  %v5757_v38 = vld.sshfl [vmem:[#allocation1 + $0x8] sm:$0xff pattern:$0x75316420]  ;;  %v5721_v8 = vadd.f32 %v5720_v1, %v5719_v39 }
 0x443   : > { %v5666_v44 = vsel %vm982_vm0, %v5646_v47, %v5664_v55  ;;  %v5712_v53 = vadd.f32 %v5711_v18, %v5710_v40  ;;  %v5762_v56 = vsel %vm955_vm7, %v5756_v59, 0.0  ;;  %v5769_v50 = vsel %vm955_vm7, %v5757_v38, 0.0  ;;  %5813 = vst [vmem:[#allocation1] ss:$2 sm:$0xff] %v5809_v34 }
 0x444   : > { %v5667_v57 = vsel %vm984_vm9, %v5666_v44, %v5665_v43  ;;  %v5706_v9 = vrot.slane %v5705_v51, 1  ;;  %v5763_v60 = vrot.slane %v5762_v56, 4  ;;  %v5770_v63 = vrot.slane %v5769_v50, 4 }
 0x445   : > { %6033 = vst.msk [vmem:[%s6929_s20 + $0xdd] ss:$8 sm:$0x7] %vm6931_vm1, %v5667_v57  ;;  %v5713_v62 = vrot.slane %v5712_v53, 1  ;;  %v5779_v27 = vrot.slane %v5778_v48, 2  ;;  %v5726_v49 = vrot.slane %v5721_v8, 6 }
 0x446   : > { %v5764_v52 = vadd.f32 %v5763_v60, %v5762_v56  ;;  %v5818_v2 = vld.sshfl [vmem:[#allocation1 + $0x10] sm:$0xff pattern:$0x75316420]  ;;  %v5771_v46 = vadd.f32 %v5770_v63, %v5769_v50  ;;  %v5707_v54 = vadd.f32 %v5706_v9, %v5705_v51 }
 0x447   : > { %v5714_v4 = vadd.f32 %v5713_v62, %v5712_v53  ;;  %v5780_v6 = vadd.f32 %v5779_v27, %v5778_v48  ;;  %v5836_v25 = vsel %vm955_vm7, %v5818_v2, 0.0 }
 0x448   : > { %v5765_v41 = vrot.slane %v5764_v52, 2  ;;  %v5837_v7 = vrot.slane %v5836_v25, 4  ;;  %v5772_v14 = vrot.slane %v5771_v46, 2 }
 0x449   : > { %v5725_v45 = vrot.slane %v5714_v4, 7  ;;  %v5781_v15 = vrot.slane %v5780_v6, 1 }
 0x44a   : > { %v5766_v19 = vadd.f32 %v5765_v41, %v5764_v52  ;;  %v5838_v5 = vadd.f32 %v5837_v7, %v5836_v25  ;;  %v5816_v17 = vld.sshfl [vmem:[#allocation1] sm:$0xff pattern:$0x75316420]  ;;  %v5817_v21 = vld.sshfl [vmem:[#allocation1 + $0x8] sm:$0xff pattern:$0x75316420]  ;;  %v5773_v0 = vadd.f32 %v5772_v14, %v5771_v46 }
 0x44b   : > { %v5727_v10 = vsel %vm982_vm0, %v5707_v54, %v5725_v45  ;;  %v5822_v22 = vsel %vm955_vm7, %v5816_v17, 0.0  ;;  %v5829_v28 = vsel %vm955_vm7, %v5817_v21, 0.0  ;;  %v5782_v30 = vadd.f32 %v5781_v15, %v5780_v6 }
 0x44c   : > { %v5728_v13 = vsel %vm984_vm9, %v5727_v10, %v5726_v49  ;;  %v5839_v61 = vrot.slane %v5838_v5, 2  ;;  %v5823_v35 = vrot.slane %v5822_v22, 4  ;;  %v5767_v3 = vrot.slane %v5766_v19, 1 }
 0x44d   : > { %6034 = vst.msk [vmem:[%s6929_s20 + $0xde] ss:$8 sm:$0x7] %vm6931_vm1, %v5728_v13  ;;  %v5774_v16 = vrot.slane %v5773_v0, 1  ;;  %v5830_v31 = vrot.slane %v5829_v28, 4  ;;  %v5787_v11 = vrot.slane %v5782_v30, 6 }
 0x44e   : > { %v5824_v24 = vadd.f32 %v5823_v35, %v5822_v22  ;;  %v5840_v23 = vadd.f32 %v5839_v61, %v5838_v5  ;;  %v5768_v32 = vadd.f32 %v5767_v3, %v5766_v19 }
 0x44f   : > { %v5775_v33 = vadd.f32 %v5774_v16, %v5773_v0  ;;  %v5831_v58 = vadd.f32 %v5830_v31, %v5829_v28 }
 0x450   : > { %v5825_v36 = vrot.slane %v5824_v24, 2  ;;  %v5841_v40 = vrot.slane %v5840_v23, 1 }
 0x451   : > { %v5786_v26 = vrot.slane %v5775_v33, 7  ;;  %v5832_v20 = vrot.slane %v5831_v58, 2 }
 0x452   : > { %v5826_v39 = vadd.f32 %v5825_v36, %v5824_v24  ;;  %v5842_v34 = vadd.f32 %v5841_v40, %v5840_v23 }
 0x453   : > { %v5788_v12 = vsel %vm982_vm0, %v5768_v32, %v5786_v26  ;;  %v5833_v43 = vadd.f32 %v5832_v20, %v5831_v58 }
 0x454   : > { %v5789_v37 = vsel %vm984_vm9, %v5788_v12, %v5787_v11  ;;  %v5827_v29 = vrot.slane %v5826_v39, 1  ;;  %v5847_v48 = vrot.slane %v5842_v34, 6 }
 0x455   : > { %6035 = vst.msk [vmem:[%s6929_s20 + $0xdf] ss:$8 sm:$0x7] %vm6931_vm1, %v5789_v37  ;;  %v5834_v1 = vrot.slane %v5833_v43, 1 }
 0x456   : > { %v5828_v55 = vadd.f32 %v5827_v29, %v5826_v39 }
 0x457   : > { %v5835_v47 = vadd.f32 %v5834_v1, %v5833_v43 }
 0x459   : > { %v5846_v18 = vrot.slane %v5835_v47, 7 }
 0x45b   : > { %v5848_v51 = vsel %vm982_vm0, %v5828_v55, %v5846_v18 }
 0x45c   : > { %v5849_v59 = vsel %vm984_vm9, %v5848_v51, %v5847_v48 }
 0x45d   : > { %6036 = vst.msk [vmem:[%s6929_s20 + $0xf0] ss:$8 sm:$0x7] %vm6931_vm1, %v5849_v59 }
 0x45e PF: > { %p15_p8 = scmp.ge.s32.totalorder %s6399_s14, 4   ;;  %s8368_s9 = smov %s6264_s10 }
 0x45f   : > { %s8369_s10 = smov %s6268_s11  ;;  %s8370_s11 = smov %s6409_s17 }
 0x460   : > { %s8371_s12 = smov %s6399_s14  ;;  %17 = sbr.rel (!%p15_p8) target bundleno = 5 (0x5), region = 242 }
 0x465   :  { %5875 = vsyncpa [#allocation5], 1 }
 0x466   :  { %5877 = vsyncpa [#allocation5 + $0x1], 1 }
 0x467   :  { %5878 = vsyncpa [#allocation7], 1 }
 0x468   :  { %5880 = vsyncpa [#allocation7 + $0x1], 1 }

</bundles_post_ra>
